<compile_context>
chip_gen: v7x
topology: tpu7x:2x2x1
jax: 0.10.0
libtpu: 0.0.40
codegen_flags: <defaults>
</compile_context>

<pallas_src>
import functools

import jax
import jax.numpy as jnp
from jax.experimental import pallas as pl
from jax.experimental.pallas import tpu as pltpu

LANE = 128  # lane width; aux logits are padded to this for lane-dense stores


# ----------------------------------------------------------------------------
# Kernel 1: fused backbone.
#   stem matmul (BN scale pre-folded) + bias + ReLU6
#   -> per-256-lane-chunk: 1x1 conv_head matmul + bias + ReLU6
#   -> partial global-average-pool via MXU ones-dot, accumulated in VMEM.
# Accumulator correctness requires the HW axis to stay the innermost,
# sequential ("arbitrary") grid axis.
# ----------------------------------------------------------------------------
def _backbone_kernel(patch_ref, sw_ref, sb_ref, hw_ref, hb_ref,
                     feat_ref, acc_ref, *, inv_hw, n_chunk, n_chunks, tile_hw):
    t = pl.program_id(1)

    @pl.when(t == 0)
    def _init():
        acc_ref[...] = jnp.zeros_like(acc_ref)

    # stem 3x3 conv as matmul on im2col patches (bf16 MXU operands, f32 acc).
    # BN scale is folded into sw; epilogue is bias-add + ReLU6 only.
    stem = jnp.dot(patch_ref[...], sw_ref[...],
                   preferred_element_type=jnp.float32)
    stem = jnp.clip(stem + sb_ref[...], 0.0, 6.0)
    stem16 = stem.astype(jnp.bfloat16)          # reused by every N chunk

    ones16 = jnp.ones((1, tile_hw), jnp.bfloat16)   # pooled-sum via MXU

    # conv_head 1x1 -> 1280 channels, processed in lane-aligned chunks so the
    # live f32 intermediate stays well under the 64-vreg file.
    for c in range(n_chunks):
        lo = c * n_chunk
        head = jnp.dot(stem16, hw_ref[:, lo:lo + n_chunk],
                       preferred_element_type=jnp.float32)
        head = jnp.clip(head + hb_ref[:, lo:lo + n_chunk], 0.0, 6.0)
        # partial global-average-pool: spatial sum via an MXU ones-row dot
        # (MXU is heavily underfilled here; this frees VALU/XLU/vst slots).
        acc_ref[:, lo:lo + n_chunk] += jnp.dot(
            ones16, head.astype(jnp.bfloat16),
            preferred_element_type=jnp.float32)

    @pl.when(t == pl.num_programs(1) - 1)
    def _finish():
        feat_ref[...] = acc_ref[...] * inv_hw


def backbone_features(patches_bhwk, stem_w16, stem_bias, head_w16, head_bias,
                      *, tile_hw=None, n_chunk=256):
    """patches: [B, HW, k*k*Cin] (bf16) -> pooled features [B, N=1280] (f32)."""
    b, hw, kc = patches_bhwk.shape
    cm = stem_w16.shape[1]            # 32
    n = head_w16.shape[1]             # 1280

    # Largest HW tile <= 512 dividing HW (per-step overhead ~0.35us; measured
    # HBM-roofline saturation needs 512+-row tiles at real resolutions).
    if tile_hw is None:
        tile_hw = hw
        for cand in (512, 256, 128, 64, 32, 16, 8):
            if cand <= hw and hw % cand == 0:
                tile_hw = cand
                break
    if hw % tile_hw != 0:
        tile_hw = hw                  # toy fallback
    if n % n_chunk != 0:
        n_chunk = n
    grid = (b, hw // tile_hw)

    kernel = functools.partial(_backbone_kernel, inv_hw=1.0 / hw,
                               n_chunk=n_chunk, n_chunks=n // n_chunk,
                               tile_hw=tile_hw)
    feat = pl.pallas_call(
        kernel,
        out_shape=jax.ShapeDtypeStruct((b, 1, n), jnp.float32),
        grid=grid,
        in_specs=[
            # per-(batch, hw-tile) patch slab; batch dim squeezed
            pl.BlockSpec((None, tile_hw, kc), lambda bi, ti: (bi, ti, 0)),
            # grid-invariant folded weights / biases
            pl.BlockSpec((kc, cm), lambda bi, ti: (0, 0)),
            pl.BlockSpec((1, cm), lambda bi, ti: (0, 0)),
            pl.BlockSpec((cm, n), lambda bi, ti: (0, 0)),
            pl.BlockSpec((1, n), lambda bi, ti: (0, 0)),
        ],
        # output block revisited across the HW-reduction axis (accumulator);
        # HW axis MUST stay innermost + "arbitrary".
        out_specs=pl.BlockSpec((None, 1, n), lambda bi, ti: (bi, 0, 0)),
        scratch_shapes=[pltpu.VMEM((1, n), jnp.float32)],
        compiler_params=pltpu.CompilerParams(
            dimension_semantics=("parallel", "arbitrary"),
            # explicit budget that also fits v7x's 64 MiB physical VMEM
            vmem_limit_bytes=32 * 1024 * 1024),
    )(patches_bhwk, stem_w16, stem_bias, head_w16, head_bias)
    return feat.reshape(b, n)


# ----------------------------------------------------------------------------
# Kernel 2: both auxiliary heads fused into one call.
#   enc_cat = features @ [W1a | W1b] + [b1a | b1b]            -> [B, 1024]
#   out_cat = enc_cat @ blockdiag(pad(W2a), pad(W2b)) + b2pad  -> [B, 256]
# ----------------------------------------------------------------------------
def _heads_kernel(f_ref, w1_ref, b1_ref, w2_ref, b2_ref, enc_ref, out_ref):
    f16 = f_ref[...].astype(jnp.bfloat16)
    enc = jnp.dot(f16, w1_ref[...],
                  preferred_element_type=jnp.float32) + b1_ref[...]
    enc_ref[...] = enc
    out_ref[...] = jnp.dot(enc.astype(jnp.bfloat16), w2_ref[...],
                           preferred_element_type=jnp.float32) + b2_ref[...]


def fused_heads(features, w1_cat, b1_cat, w2_bd, b2_pad):
    b, d = features.shape
    h2 = w1_cat.shape[1]            # 1024
    n2 = w2_bd.shape[1]             # 256 (lane-dense padded logits)
    full = lambda shape: pl.BlockSpec(shape, lambda i: (0, 0))
    enc_cat, out_cat = pl.pallas_call(
        _heads_kernel,
        out_shape=(jax.ShapeDtypeStruct((b, h2), jnp.float32),
                   jax.ShapeDtypeStruct((b, n2), jnp.float32)),
        grid=(1,),
        in_specs=[full((b, d)), full((d, h2)), full((1, h2)),
                  full((h2, n2)), full((1, n2))],
        out_specs=(full((b, h2)), full((b, n2))),
        compiler_params=pltpu.CompilerParams(
            vmem_limit_bytes=32 * 1024 * 1024),
    )(features, w1_cat, b1_cat, w2_bd, b2_pad)
    return enc_cat, out_cat


# ----------------------------------------------------------------------------
# Glue: im2col, BN folding, parameter init / one-time prep, forward
# ----------------------------------------------------------------------------
def im2col(x_nhwc, ksize, stride, pad):
    """Extract ksize x ksize patches -> [B, Ho*Wo, ksize*ksize*Cin]."""
    xp = jnp.pad(x_nhwc, ((0, 0), (pad, pad), (pad, pad), (0, 0)))
    b, hp, wp, c = xp.shape
    ho = (hp - ksize) // stride + 1
    wo = (wp - ksize) // stride + 1
    cols = []
    for di in range(ksize):
        for dj in range(ksize):
            cols.append(xp[:, di:di + ho * stride:stride,
                           dj:dj + wo * stride:stride, :])
    patches = jnp.stack(cols, axis=3)               # [B, Ho, Wo, k*k, Cin]
    return patches.reshape(b, ho * wo, ksize * ksize * c), (b, ho, wo)


def fold_bn(gamma, beta, mean, var, eps=1e-5):
    scale = gamma / jnp.sqrt(var + eps)
    bias = beta - mean * scale
    return scale, bias


def init_params(key, num_aux1_classes, num_aux2_classes):
    ks = jax.random.split(key, 12)
    p = {}
    # conv_stem: 3x3, 3 -> 32  (stored HWIO, flattened to [k*k*Cin, Cout])
    p["stem_w"] = 0.1 * jax.random.normal(ks[0], (3, 3, 3, 32), jnp.float32)
    p["stem_bn"] = fold_bn(
        1.0 + 0.1 * jax.random.normal(ks[1], (32,), jnp.float32),
        0.1 * jax.random.normal(ks[2], (32,), jnp.float32),
        0.1 * jax.random.normal(ks[3], (32,), jnp.float32),
        jnp.abs(1.0 + 0.1 * jax.random.normal(ks[4], (32,), jnp.float32)))
    # conv_head: 1x1, 32 -> 1280
    p["head_w"] = 0.05 * jax.random.normal(ks[5], (32, 1280), jnp.float32)
    p["head_bn"] = fold_bn(
        jnp.ones((1280,), jnp.float32), jnp.zeros((1280,), jnp.float32),
        jnp.zeros((1280,), jnp.float32), jnp.ones((1280,), jnp.float32))
    # auxiliary heads (Linear weights stored [in, out])
    p["aux1_w1"] = 0.02 * jax.random.normal(ks[6], (1280, 512), jnp.float32)
    p["aux1_b1"] = jnp.zeros((512,), jnp.float32)
    p["aux1_w2"] = 0.05 * jax.random.normal(ks[7], (512, num_aux1_classes),
                                            jnp.float32)
    p["aux1_b2"] = jnp.zeros((num_aux1_classes,), jnp.float32)
    p["aux2_w1"] = 0.02 * jax.random.normal(ks[8], (1280, 512), jnp.float32)
    p["aux2_b1"] = jnp.zeros((512,), jnp.float32)
    p["aux2_w2"] = 0.05 * jax.random.normal(ks[9], (512, num_aux2_classes),
                                            jnp.float32)
    p["aux2_b2"] = jnp.zeros((num_aux2_classes,), jnp.float32)
    return p


def prepare_inference_params(params):
    """One-time weight prep: fold BN scales into conv weights (f32, then bf16),
    build the fused-head weight slabs, and cast everything kernel-ready.
    Called ONCE outside the jitted forward (no per-call re-materialization)."""
    s_scale, s_bias = params["stem_bn"]
    h_scale, h_bias = params["head_bn"]
    kc = 3 * 3 * params["stem_w"].shape[2]
    stem_w = params["stem_w"].reshape(kc, -1)
    stem_w16 = (stem_w * s_scale[None, :]).astype(jnp.bfloat16)      # fold BN
    head_w16 = (params["head_w"] * h_scale[None, :]).astype(jnp.bfloat16)

    hdim = params["aux1_w1"].shape[1]               # 512
    num1 = params["aux1_w2"].shape[1]
    num2 = params["aux2_w2"].shape[1]
    w1_cat = jnp.concatenate([params["aux1_w1"], params["aux2_w1"]],
                             axis=1).astype(jnp.bfloat16)
    b1_cat = jnp.concatenate([params["aux1_b1"], params["aux2_b1"]])
    # block-diagonal, lane-padded second-layer weight -> one MXU dot,
    # lane-dense [B, 256] logit slab.
    w2_bd = jnp.zeros((2 * hdim, 2 * LANE), jnp.float32)
    w2_bd = w2_bd.at[:hdim, :num1].set(params["aux1_w2"])
    w2_bd = w2_bd.at[hdim:, LANE:LANE + num2].set(params["aux2_w2"])
    b2_pad = jnp.zeros((2 * LANE,), jnp.float32)
    b2_pad = b2_pad.at[:num1].set(params["aux1_b2"])
    b2_pad = b2_pad.at[LANE:LANE + num2].set(params["aux2_b2"])

    prep = {
        "stem_w16": stem_w16,
        "stem_bias": s_bias.reshape(1, -1),
        "head_w16": head_w16,
        "head_bias": h_bias.reshape(1, -1),
        "w1_cat16": w1_cat,
        "b1_cat": b1_cat.reshape(1, -1),
        "w2_bd16": w2_bd.astype(jnp.bfloat16),
        "b2_pad": b2_pad.reshape(1, -1),
    }
    return jax.tree_util.tree_map(jnp.asarray, prep)


@functools.partial(jax.jit, static_argnames=("num1", "num2"))
def multi_task_forward(x_nchw, prep, *, num1, num2):
    # NCHW (PyTorch convention) -> NHWC for the kernels.
    x = jnp.transpose(x_nchw, (0, 2, 3, 1)).astype(jnp.float32)

    # --- fused feature extractor (stem + conv_head + global pool) -----------
    patches, _ = im2col(x, ksize=3, stride=2, pad=1)
    patches = patches.astype(jnp.bfloat16)          # halve patch DMA bytes
    features = backbone_features(patches,
                                 prep["stem_w16"], prep["stem_bias"],
                                 prep["head_w16"], prep["head_bias"])  # [B,1280]

    # --- fused auxiliary heads ----------------------------------------------
    enc_cat, out_cat = fused_heads(features,
                                   prep["w1_cat16"], prep["b1_cat"],
                                   prep["w2_bd16"], prep["b2_pad"])
    hdim = prep["w1_cat16"].shape[1] // 2
    enc1 = enc_cat[:, :hdim]
    enc2 = enc_cat[:, hdim:]
    aux1_out = out_cat[:, :num1]
    aux2_out = out_cat[:, LANE:LANE + num2]

    # Matches PyTorch return: (aux1_out, aux2_out, enc_1(features), enc_2(features))
    return aux1_out, aux2_out, enc1, enc2


if __name__ == "__main__":
    key = jax.random.PRNGKey(0)
    k_x, k_p = jax.random.split(key)

    num_aux1_classes, num_aux2_classes = 10, 7
    B, C, H, W = 2, 3, 32, 32
    x = jax.random.normal(k_x, (B, C, H, W), jnp.float32)

    params = init_params(k_p, num_aux1_classes, num_aux2_classes)
    prep = prepare_inference_params(params)          # one-time weight prep
    jax.block_until_ready(prep)

    aux1, aux2, enc1, enc2 = multi_task_forward(
        x, prep, num1=num_aux1_classes, num2=num_aux2_classes)
    jax.block_until_ready((aux1, aux2, enc1, enc2))

    assert aux1.shape == (B, num_aux1_classes)
    assert aux2.shape == (B, num_aux2_classes)
    assert enc1.shape == (B, 512)
    assert enc2.shape == (B, 512)
    print("KERNEL_OK")
</pallas_src>

<mosaic_0001>
module attributes {stable_mosaic.version = 11 : i64} {
  func.func @_backbone_kernel(%arg0: i32, %arg1: i32, %arg2: memref<1x256x27xbf16, #tpu.memory_space<vmem>>, %arg3: memref<27x32xbf16, #tpu.memory_space<vmem>>, %arg4: memref<1x32xf32, #tpu.memory_space<vmem>>, %arg5: memref<32x1280xbf16, #tpu.memory_space<vmem>>, %arg6: memref<1x1280xf32, #tpu.memory_space<vmem>>, %arg7: memref<1x1x1280xf32, #tpu.memory_space<vmem>>, %arg8: memref<1x1280xf32, #tpu.memory_space<vmem>>) attributes {dimension_semantics = [#tpu.dimension_semantics<parallel>, #tpu.dimension_semantics<arbitrary>], iteration_bounds = array<i64: 2, 1>, scalar_prefetch = 0 : i64, scratch_operands = 1 : i64, tpu.core_type = #tpu.core_type<tc>, window_params = [{transform_indices = @transform_0, window_bounds = array<i64: 1, 256, 27>}, {pipeline_mode = #tpu.pipeline_mode<synchronous>, transform_indices = @transform_1, window_bounds = array<i64: 27, 32>}, {pipeline_mode = #tpu.pipeline_mode<synchronous>, transform_indices = @transform_2, window_bounds = array<i64: 1, 32>}, {pipeline_mode = #tpu.pipeline_mode<synchronous>, transform_indices = @transform_3, window_bounds = array<i64: 32, 1280>}, {pipeline_mode = #tpu.pipeline_mode<synchronous>, transform_indices = @transform_4, window_bounds = array<i64: 1, 1280>}, {transform_indices = @transform_5, window_bounds = array<i64: 1, 1, 1280>}]} {
    %c0_i32 = arith.constant 0 : i32
    %0 = arith.cmpi eq, %arg1, %c0_i32 : i32
    %1 = arith.extui %0 : i1 to i32
    %c0_i32_0 = arith.constant 0 : i32
    %2 = arith.cmpi ne, %1, %c0_i32_0 : i32
    scf.if %2 {
      %cst_68 = arith.constant 0.000000e+00 : f32
      %89 = vector.broadcast %cst_68 : f32 to vector<1x1280xf32>
      %c0_69 = arith.constant 0 : index
      %c0_70 = arith.constant 0 : index
      %90 = vector.load %arg8[%c0_69, %c0_70] : memref<1x1280xf32, #tpu.memory_space<vmem>>, vector<1x1280xf32>
      tpu.vector_store %arg8[%c0_69, %c0_70], %89 {strides = array<i32>} : memref<1x1280xf32, #tpu.memory_space<vmem>>, vector<1x1280xf32>,
    } else {
    }
    %c0 = arith.constant 0 : index
    %c0_1 = arith.constant 0 : index
    %c0_2 = arith.constant 0 : index
    %3 = vector.load %arg2[%c0, %c0_1, %c0_2] : memref<1x256x27xbf16, #tpu.memory_space<vmem>>, vector<1x256x27xbf16>
    %4 = vector.shape_cast %3 : vector<1x256x27xbf16> to vector<256x27xbf16>
    %c0_3 = arith.constant 0 : index
    %c0_4 = arith.constant 0 : index
    %5 = vector.load %arg3[%c0_3, %c0_4] : memref<27x32xbf16, #tpu.memory_space<vmem>>, vector<27x32xbf16>
    %cst = arith.constant dense<0.000000e+00> : vector<256x32xf32>
    %6 = tpu.matmul %4, %5, %cst {dimension_numbers = #tpu.dot_dimension_numbers<[1], [0], [0], [1], [0, 0, 1, 1], [], []>} : vector<256x27xbf16>, vector<27x32xbf16>, vector<256x32xf32> -> vector<256x32xf32>
    %c0_5 = arith.constant 0 : index
    %c0_6 = arith.constant 0 : index
    %7 = vector.load %arg4[%c0_5, %c0_6] : memref<1x32xf32, #tpu.memory_space<vmem>>, vector<1x32xf32>
    %8 = vector.broadcast %7 : vector<1x32xf32> to vector<256x32xf32>
    %9 = arith.addf %6, %8 : vector<256x32xf32>
    %cst_7 = arith.constant 0.000000e+00 : f32
    %cst_8 = arith.constant 6.000000e+00 : f32
    %10 = vector.broadcast %cst_7 : f32 to vector<256x32xf32>
    %11 = arith.maximumf %10, %9 : vector<256x32xf32>
    %12 = vector.broadcast %cst_8 : f32 to vector<256x32xf32>
    %13 = arith.minimumf %12, %11 : vector<256x32xf32>
    %14 = arith.truncf %13 : vector<256x32xf32> to vector<256x32xbf16>
    %cst_9 = arith.constant 1.000000e+00 : bf16
    %15 = vector.broadcast %cst_9 : bf16 to vector<1x256xbf16>
    %c0_10 = arith.constant 0 : index
    %c0_11 = arith.constant 0 : index
    %16 = vector.load %arg5[%c0_10, %c0_11] : memref<32x1280xbf16, #tpu.memory_space<vmem>>, vector<32x256xbf16>
    %cst_12 = arith.constant dense<0.000000e+00> : vector<256x256xf32>
    %17 = tpu.matmul %14, %16, %cst_12 {dimension_numbers = #tpu.dot_dimension_numbers<[1], [0], [0], [1], [0, 0, 1, 1], [], []>} : vector<256x32xbf16>, vector<32x256xbf16>, vector<256x256xf32> -> vector<256x256xf32>
    %c0_13 = arith.constant 0 : index
    %c0_14 = arith.constant 0 : index
    %18 = vector.load %arg6[%c0_13, %c0_14] : memref<1x1280xf32, #tpu.memory_space<vmem>>, vector<1x256xf32>
    %19 = vector.broadcast %18 : vector<1x256xf32> to vector<256x256xf32>
    %20 = arith.addf %17, %19 : vector<256x256xf32>
    %cst_15 = arith.constant 0.000000e+00 : f32
    %cst_16 = arith.constant 6.000000e+00 : f32
    %21 = vector.broadcast %cst_15 : f32 to vector<256x256xf32>
    %22 = arith.maximumf %21, %20 : vector<256x256xf32>
    %23 = vector.broadcast %cst_16 : f32 to vector<256x256xf32>
    %24 = arith.minimumf %23, %22 : vector<256x256xf32>
    %c0_17 = arith.constant 0 : index
    %c0_18 = arith.constant 0 : index
    %25 = vector.load %arg8[%c0_17, %c0_18] : memref<1x1280xf32, #tpu.memory_space<vmem>>, vector<1x256xf32>
    %26 = arith.truncf %24 : vector<256x256xf32> to vector<256x256xbf16>
    %cst_19 = arith.constant dense<0.000000e+00> : vector<1x256xf32>
    %27 = tpu.matmul %15, %26, %cst_19 {dimension_numbers = #tpu.dot_dimension_numbers<[1], [0], [0], [1], [0, 0, 1, 1], [], []>} : vector<1x256xbf16>, vector<256x256xbf16>, vector<1x256xf32> -> vector<1x256xf32>
    %28 = arith.addf %25, %27 : vector<1x256xf32>
    %c0_20 = arith.constant 0 : index
    %c0_21 = arith.constant 0 : index
    %29 = vector.load %arg8[%c0_20, %c0_21] : memref<1x1280xf32, #tpu.memory_space<vmem>>, vector<1x256xf32>
    tpu.vector_store %arg8[%c0_20, %c0_21], %28 {strides = array<i32>} : memref<1x1280xf32, #tpu.memory_space<vmem>>, vector<1x256xf32>,
    %c0_22 = arith.constant 0 : index
    %c256 = arith.constant 256 : index
    %30 = vector.load %arg5[%c0_22, %c256] : memref<32x1280xbf16, #tpu.memory_space<vmem>>, vector<32x256xbf16>
    %cst_23 = arith.constant dense<0.000000e+00> : vector<256x256xf32>
    %31 = tpu.matmul %14, %30, %cst_23 {dimension_numbers = #tpu.dot_dimension_numbers<[1], [0], [0], [1], [0, 0, 1, 1], [], []>} : vector<256x32xbf16>, vector<32x256xbf16>, vector<256x256xf32> -> vector<256x256xf32>
    %c0_24 = arith.constant 0 : index
    %c256_25 = arith.constant 256 : index
    %32 = vector.load %arg6[%c0_24, %c256_25] : memref<1x1280xf32, #tpu.memory_space<vmem>>, vector<1x256xf32>
    %33 = vector.broadcast %32 : vector<1x256xf32> to vector<256x256xf32>
    %34 = arith.addf %31, %33 : vector<256x256xf32>
    %cst_26 = arith.constant 0.000000e+00 : f32
    %cst_27 = arith.constant 6.000000e+00 : f32
    %35 = vector.broadcast %cst_26 : f32 to vector<256x256xf32>
    %36 = arith.maximumf %35, %34 : vector<256x256xf32>
    %37 = vector.broadcast %cst_27 : f32 to vector<256x256xf32>
    %38 = arith.minimumf %37, %36 : vector<256x256xf32>
    %c0_28 = arith.constant 0 : index
    %c256_29 = arith.constant 256 : index
    %39 = vector.load %arg8[%c0_28, %c256_29] : memref<1x1280xf32, #tpu.memory_space<vmem>>, vector<1x256xf32>
    %40 = arith.truncf %38 : vector<256x256xf32> to vector<256x256xbf16>
    %cst_30 = arith.constant dense<0.000000e+00> : vector<1x256xf32>
    %41 = tpu.matmul %15, %40, %cst_30 {dimension_numbers = #tpu.dot_dimension_numbers<[1], [0], [0], [1], [0, 0, 1, 1], [], []>} : vector<1x256xbf16>, vector<256x256xbf16>, vector<1x256xf32> -> vector<1x256xf32>
    %42 = arith.addf %39, %41 : vector<1x256xf32>
    %c0_31 = arith.constant 0 : index
    %c256_32 = arith.constant 256 : index
    %43 = vector.load %arg8[%c0_31, %c256_32] : memref<1x1280xf32, #tpu.memory_space<vmem>>, vector<1x256xf32>
    tpu.vector_store %arg8[%c0_31, %c256_32], %42 {strides = array<i32>} : memref<1x1280xf32, #tpu.memory_space<vmem>>, vector<1x256xf32>,
    %c0_33 = arith.constant 0 : index
    %c512 = arith.constant 512 : index
    %44 = vector.load %arg5[%c0_33, %c512] : memref<32x1280xbf16, #tpu.memory_space<vmem>>, vector<32x256xbf16>
    %cst_34 = arith.constant dense<0.000000e+00> : vector<256x256xf32>
    %45 = tpu.matmul %14, %44, %cst_34 {dimension_numbers = #tpu.dot_dimension_numbers<[1], [0], [0], [1], [0, 0, 1, 1], [], []>} : vector<256x32xbf16>, vector<32x256xbf16>, vector<256x256xf32> -> vector<256x256xf32>
    %c0_35 = arith.constant 0 : index
    %c512_36 = arith.constant 512 : index
    %46 = vector.load %arg6[%c0_35, %c512_36] : memref<1x1280xf32, #tpu.memory_space<vmem>>, vector<1x256xf32>
    %47 = vector.broadcast %46 : vector<1x256xf32> to vector<256x256xf32>
    %48 = arith.addf %45, %47 : vector<256x256xf32>
    %cst_37 = arith.constant 0.000000e+00 : f32
    %cst_38 = arith.constant 6.000000e+00 : f32
    %49 = vector.broadcast %cst_37 : f32 to vector<256x256xf32>
    %50 = arith.maximumf %49, %48 : vector<256x256xf32>
    %51 = vector.broadcast %cst_38 : f32 to vector<256x256xf32>
    %52 = arith.minimumf %51, %50 : vector<256x256xf32>
    %c0_39 = arith.constant 0 : index
    %c512_40 = arith.constant 512 : index
    %53 = vector.load %arg8[%c0_39, %c512_40] : memref<1x1280xf32, #tpu.memory_space<vmem>>, vector<1x256xf32>
    %54 = arith.truncf %52 : vector<256x256xf32> to vector<256x256xbf16>
    %cst_41 = arith.constant dense<0.000000e+00> : vector<1x256xf32>
    %55 = tpu.matmul %15, %54, %cst_41 {dimension_numbers = #tpu.dot_dimension_numbers<[1], [0], [0], [1], [0, 0, 1, 1], [], []>} : vector<1x256xbf16>, vector<256x256xbf16>, vector<1x256xf32> -> vector<1x256xf32>
    %56 = arith.addf %53, %55 : vector<1x256xf32>
    %c0_42 = arith.constant 0 : index
    %c512_43 = arith.constant 512 : index
    %57 = vector.load %arg8[%c0_42, %c512_43] : memref<1x1280xf32, #tpu.memory_space<vmem>>, vector<1x256xf32>
    tpu.vector_store %arg8[%c0_42, %c512_43], %56 {strides = array<i32>} : memref<1x1280xf32, #tpu.memory_space<vmem>>, vector<1x256xf32>,
    %c0_44 = arith.constant 0 : index
    %c768 = arith.constant 768 : index
    %58 = vector.load %arg5[%c0_44, %c768] : memref<32x1280xbf16, #tpu.memory_space<vmem>>, vector<32x256xbf16>
    %cst_45 = arith.constant dense<0.000000e+00> : vector<256x256xf32>
    %59 = tpu.matmul %14, %58, %cst_45 {dimension_numbers = #tpu.dot_dimension_numbers<[1], [0], [0], [1], [0, 0, 1, 1], [], []>} : vector<256x32xbf16>, vector<32x256xbf16>, vector<256x256xf32> -> vector<256x256xf32>
    %c0_46 = arith.constant 0 : index
    %c768_47 = arith.constant 768 : index
    %60 = vector.load %arg6[%c0_46, %c768_47] : memref<1x1280xf32, #tpu.memory_space<vmem>>, vector<1x256xf32>
    %61 = vector.broadcast %60 : vector<1x256xf32> to vector<256x256xf32>
    %62 = arith.addf %59, %61 : vector<256x256xf32>
    %cst_48 = arith.constant 0.000000e+00 : f32
    %cst_49 = arith.constant 6.000000e+00 : f32
    %63 = vector.broadcast %cst_48 : f32 to vector<256x256xf32>
    %64 = arith.maximumf %63, %62 : vector<256x256xf32>
    %65 = vector.broadcast %cst_49 : f32 to vector<256x256xf32>
    %66 = arith.minimumf %65, %64 : vector<256x256xf32>
    %c0_50 = arith.constant 0 : index
    %c768_51 = arith.constant 768 : index
    %67 = vector.load %arg8[%c0_50, %c768_51] : memref<1x1280xf32, #tpu.memory_space<vmem>>, vector<1x256xf32>
    %68 = arith.truncf %66 : vector<256x256xf32> to vector<256x256xbf16>
    %cst_52 = arith.constant dense<0.000000e+00> : vector<1x256xf32>
    %69 = tpu.matmul %15, %68, %cst_52 {dimension_numbers = #tpu.dot_dimension_numbers<[1], [0], [0], [1], [0, 0, 1, 1], [], []>} : vector<1x256xbf16>, vector<256x256xbf16>, vector<1x256xf32> -> vector<1x256xf32>
    %70 = arith.addf %67, %69 : vector<1x256xf32>
    %c0_53 = arith.constant 0 : index
    %c768_54 = arith.constant 768 : index
    %71 = vector.load %arg8[%c0_53, %c768_54] : memref<1x1280xf32, #tpu.memory_space<vmem>>, vector<1x256xf32>
    tpu.vector_store %arg8[%c0_53, %c768_54], %70 {strides = array<i32>} : memref<1x1280xf32, #tpu.memory_space<vmem>>, vector<1x256xf32>,
    %c0_55 = arith.constant 0 : index
    %c1024 = arith.constant 1024 : index
    %72 = vector.load %arg5[%c0_55, %c1024] : memref<32x1280xbf16, #tpu.memory_space<vmem>>, vector<32x256xbf16>
    %cst_56 = arith.constant dense<0.000000e+00> : vector<256x256xf32>
    %73 = tpu.matmul %14, %72, %cst_56 {dimension_numbers = #tpu.dot_dimension_numbers<[1], [0], [0], [1], [0, 0, 1, 1], [], []>} : vector<256x32xbf16>, vector<32x256xbf16>, vector<256x256xf32> -> vector<256x256xf32>
    %c0_57 = arith.constant 0 : index
    %c1024_58 = arith.constant 1024 : index
    %74 = vector.load %arg6[%c0_57, %c1024_58] : memref<1x1280xf32, #tpu.memory_space<vmem>>, vector<1x256xf32>
    %75 = vector.broadcast %74 : vector<1x256xf32> to vector<256x256xf32>
    %76 = arith.addf %73, %75 : vector<256x256xf32>
    %cst_59 = arith.constant 0.000000e+00 : f32
    %cst_60 = arith.constant 6.000000e+00 : f32
    %77 = vector.broadcast %cst_59 : f32 to vector<256x256xf32>
    %78 = arith.maximumf %77, %76 : vector<256x256xf32>
    %79 = vector.broadcast %cst_60 : f32 to vector<256x256xf32>
    %80 = arith.minimumf %79, %78 : vector<256x256xf32>
    %c0_61 = arith.constant 0 : index
    %c1024_62 = arith.constant 1024 : index
    %81 = vector.load %arg8[%c0_61, %c1024_62] : memref<1x1280xf32, #tpu.memory_space<vmem>>, vector<1x256xf32>
    %82 = arith.truncf %80 : vector<256x256xf32> to vector<256x256xbf16>
    %cst_63 = arith.constant dense<0.000000e+00> : vector<1x256xf32>
    %83 = tpu.matmul %15, %82, %cst_63 {dimension_numbers = #tpu.dot_dimension_numbers<[1], [0], [0], [1], [0, 0, 1, 1], [], []>} : vector<1x256xbf16>, vector<256x256xbf16>, vector<1x256xf32> -> vector<1x256xf32>
    %84 = arith.addf %81, %83 : vector<1x256xf32>
    %c0_64 = arith.constant 0 : index
    %c1024_65 = arith.constant 1024 : index
    %85 = vector.load %arg8[%c0_64, %c1024_65] : memref<1x1280xf32, #tpu.memory_space<vmem>>, vector<1x256xf32>
    tpu.vector_store %arg8[%c0_64, %c1024_65], %84 {strides = array<i32>} : memref<1x1280xf32, #tpu.memory_space<vmem>>, vector<1x256xf32>,
    %c0_i32_66 = arith.constant 0 : i32
    %86 = arith.cmpi eq, %arg1, %c0_i32_66 : i32
    %87 = arith.extui %86 : i1 to i32
    %c0_i32_67 = arith.constant 0 : i32
    %88 = arith.cmpi ne, %87, %c0_i32_67 : i32
    scf.if %88 {
      %c0_68 = arith.constant 0 : index
      %c0_69 = arith.constant 0 : index
      %89 = vector.load %arg8[%c0_68, %c0_69] : memref<1x1280xf32, #tpu.memory_space<vmem>>, vector<1x1280xf32>
      %cst_70 = arith.constant 3.906250e-03 : f32
      %90 = vector.broadcast %cst_70 : f32 to vector<1x1280xf32>
      %91 = arith.mulf %89, %90 : vector<1x1280xf32>
      %c0_71 = arith.constant 0 : index
      %c0_72 = arith.constant 0 : index
      %c0_73 = arith.constant 0 : index
      %92 = vector.load %arg7[%c0_71, %c0_72, %c0_73] : memref<1x1x1280xf32, #tpu.memory_space<vmem>>, vector<1x1x1280xf32>
      %93 = vector.shape_cast %92 : vector<1x1x1280xf32> to vector<1x1280xf32>
      %94 = vector.shape_cast %91 : vector<1x1280xf32> to vector<1x1x1280xf32>
      tpu.vector_store %arg7[%c0_71, %c0_72, %c0_73], %94 {strides = array<i32>} : memref<1x1x1280xf32, #tpu.memory_space<vmem>>, vector<1x1x1280xf32>,
    } else {
    }
    return
  }
  func.func @transform_0(%arg0: i32, %arg1: i32) -> (i32, i32, i32) {
    %c0_i32 = arith.constant 0 : i32
    %c0_i32_0 = arith.constant 0 : i32
    return %arg0, %arg1, %c0_i32 : i32, i32, i32
  }
  func.func @transform_1(%arg0: i32, %arg1: i32) -> (i32, i32) {
    %c0_i32 = arith.constant 0 : i32
    %c0_i32_0 = arith.constant 0 : i32
    %c0_i32_1 = arith.constant 0 : i32
    return %c0_i32, %c0_i32_0 : i32, i32
  }
  func.func @transform_2(%arg0: i32, %arg1: i32) -> (i32, i32) {
    %c0_i32 = arith.constant 0 : i32
    %c0_i32_0 = arith.constant 0 : i32
    %c0_i32_1 = arith.constant 0 : i32
    return %c0_i32, %c0_i32_0 : i32, i32
  }
  func.func @transform_3(%arg0: i32, %arg1: i32) -> (i32, i32) {
    %c0_i32 = arith.constant 0 : i32
    %c0_i32_0 = arith.constant 0 : i32
    %c0_i32_1 = arith.constant 0 : i32
    return %c0_i32, %c0_i32_0 : i32, i32
  }
  func.func @transform_4(%arg0: i32, %arg1: i32) -> (i32, i32) {
    %c0_i32 = arith.constant 0 : i32
    %c0_i32_0 = arith.constant 0 : i32
    %c0_i32_1 = arith.constant 0 : i32
    return %c0_i32, %c0_i32_0 : i32, i32
  }
  func.func @transform_5(%arg0: i32, %arg1: i32) -> (i32, i32, i32) {
    %c0_i32 = arith.constant 0 : i32
    %c0_i32_0 = arith.constant 0 : i32
    %c0_i32_1 = arith.constant 0 : i32
    return %arg0, %c0_i32, %c0_i32_0 : i32, i32, i32
  }
}

module attributes {stable_mosaic.version = 11 : i64} {
  func.func @_heads_kernel(%arg0: i32, %arg1: memref<2x1280xf32, #tpu.memory_space<vmem>>, %arg2: memref<1280x1024xbf16, #tpu.memory_space<vmem>>, %arg3: memref<1x1024xf32, #tpu.memory_space<vmem>>, %arg4: memref<1024x256xbf16, #tpu.memory_space<vmem>>, %arg5: memref<1x256xf32, #tpu.memory_space<vmem>>, %arg6: memref<2x1024xf32, #tpu.memory_space<vmem>>, %arg7: memref<2x256xf32, #tpu.memory_space<vmem>>) attributes {dimension_semantics = [#tpu.dimension_semantics<arbitrary>], iteration_bounds = array<i64: 1>, scalar_prefetch = 0 : i64, scratch_operands = 0 : i64, tpu.core_type = #tpu.core_type<tc>, window_params = [{pipeline_mode = #tpu.pipeline_mode<synchronous>, transform_indices = @transform_0, window_bounds = array<i64: 2, 1280>}, {pipeline_mode = #tpu.pipeline_mode<synchronous>, transform_indices = @transform_1, window_bounds = array<i64: 1280, 1024>}, {pipeline_mode = #tpu.pipeline_mode<synchronous>, transform_indices = @transform_2, window_bounds = array<i64: 1, 1024>}, {pipeline_mode = #tpu.pipeline_mode<synchronous>, transform_indices = @transform_3, window_bounds = array<i64: 1024, 256>}, {pipeline_mode = #tpu.pipeline_mode<synchronous>, transform_indices = @transform_4, window_bounds = array<i64: 1, 256>}, {pipeline_mode = #tpu.pipeline_mode<synchronous>, transform_indices = @transform_5, window_bounds = array<i64: 2, 1024>}, {pipeline_mode = #tpu.pipeline_mode<synchronous>, transform_indices = @transform_6, window_bounds = array<i64: 2, 256>}]} {
    %c0 = arith.constant 0 : index
    %c0_0 = arith.constant 0 : index
    %0 = vector.load %arg1[%c0, %c0_0] : memref<2x1280xf32, #tpu.memory_space<vmem>>, vector<2x1280xf32>
    %1 = arith.truncf %0 : vector<2x1280xf32> to vector<2x1280xbf16>
    %c0_1 = arith.constant 0 : index
    %c0_2 = arith.constant 0 : index
    %2 = vector.load %arg2[%c0_1, %c0_2] : memref<1280x1024xbf16, #tpu.memory_space<vmem>>, vector<1280x1024xbf16>
    %cst = arith.constant dense<0.000000e+00> : vector<2x1024xf32>
    %3 = tpu.matmul %1, %2, %cst {dimension_numbers = #tpu.dot_dimension_numbers<[1], [0], [0], [1], [0, 0, 1, 1], [], []>} : vector<2x1280xbf16>, vector<1280x1024xbf16>, vector<2x1024xf32> -> vector<2x1024xf32>
    %c0_3 = arith.constant 0 : index
    %c0_4 = arith.constant 0 : index
    %4 = vector.load %arg3[%c0_3, %c0_4] : memref<1x1024xf32, #tpu.memory_space<vmem>>, vector<1x1024xf32>
    %5 = vector.broadcast %4 : vector<1x1024xf32> to vector<2x1024xf32>
    %6 = arith.addf %3, %5 : vector<2x1024xf32>
    %c0_5 = arith.constant 0 : index
    %c0_6 = arith.constant 0 : index
    %7 = vector.load %arg6[%c0_5, %c0_6] : memref<2x1024xf32, #tpu.memory_space<vmem>>, vector<2x1024xf32>
    tpu.vector_store %arg6[%c0_5, %c0_6], %6 {strides = array<i32>} : memref<2x1024xf32, #tpu.memory_space<vmem>>, vector<2x1024xf32>,
    %8 = arith.truncf %6 : vector<2x1024xf32> to vector<2x1024xbf16>
    %c0_7 = arith.constant 0 : index
    %c0_8 = arith.constant 0 : index
    %9 = vector.load %arg4[%c0_7, %c0_8] : memref<1024x256xbf16, #tpu.memory_space<vmem>>, vector<1024x256xbf16>
    %cst_9 = arith.constant dense<0.000000e+00> : vector<2x256xf32>
    %10 = tpu.matmul %8, %9, %cst_9 {dimension_numbers = #tpu.dot_dimension_numbers<[1], [0], [0], [1], [0, 0, 1, 1], [], []>} : vector<2x1024xbf16>, vector<1024x256xbf16>, vector<2x256xf32> -> vector<2x256xf32>
    %c0_10 = arith.constant 0 : index
    %c0_11 = arith.constant 0 : index
    %11 = vector.load %arg5[%c0_10, %c0_11] : memref<1x256xf32, #tpu.memory_space<vmem>>, vector<1x256xf32>
    %12 = vector.broadcast %11 : vector<1x256xf32> to vector<2x256xf32>
    %13 = arith.addf %10, %12 : vector<2x256xf32>
    %c0_12 = arith.constant 0 : index
    %c0_13 = arith.constant 0 : index
    %14 = vector.load %arg7[%c0_12, %c0_13] : memref<2x256xf32, #tpu.memory_space<vmem>>, vector<2x256xf32>
    tpu.vector_store %arg7[%c0_12, %c0_13], %13 {strides = array<i32>} : memref<2x256xf32, #tpu.memory_space<vmem>>, vector<2x256xf32>,
    return
  }
  func.func @transform_0(%arg0: i32) -> (i32, i32) {
    %c0_i32 = arith.constant 0 : i32
    %c0_i32_0 = arith.constant 0 : i32
    %c0_i32_1 = arith.constant 0 : i32
    return %c0_i32, %c0_i32_0 : i32, i32
  }
  func.func @transform_1(%arg0: i32) -> (i32, i32) {
    %c0_i32 = arith.constant 0 : i32
    %c0_i32_0 = arith.constant 0 : i32
    %c0_i32_1 = arith.constant 0 : i32
    return %c0_i32, %c0_i32_0 : i32, i32
  }
  func.func @transform_2(%arg0: i32) -> (i32, i32) {
    %c0_i32 = arith.constant 0 : i32
    %c0_i32_0 = arith.constant 0 : i32
    %c0_i32_1 = arith.constant 0 : i32
    return %c0_i32, %c0_i32_0 : i32, i32
  }
  func.func @transform_3(%arg0: i32) -> (i32, i32) {
    %c0_i32 = arith.constant 0 : i32
    %c0_i32_0 = arith.constant 0 : i32
    %c0_i32_1 = arith.constant 0 : i32
    return %c0_i32, %c0_i32_0 : i32, i32
  }
  func.func @transform_4(%arg0: i32) -> (i32, i32) {
    %c0_i32 = arith.constant 0 : i32
    %c0_i32_0 = arith.constant 0 : i32
    %c0_i32_1 = arith.constant 0 : i32
    return %c0_i32, %c0_i32_0 : i32, i32
  }
  func.func @transform_5(%arg0: i32) -> (i32, i32) {
    %c0_i32 = arith.constant 0 : i32
    %c0_i32_0 = arith.constant 0 : i32
    %c0_i32_1 = arith.constant 0 : i32
    return %c0_i32, %c0_i32_0 : i32, i32
  }
  func.func @transform_6(%arg0: i32) -> (i32, i32) {
    %c0_i32 = arith.constant 0 : i32
    %c0_i32_0 = arith.constant 0 : i32
    %c0_i32_1 = arith.constant 0 : i32
    return %c0_i32, %c0_i32_0 : i32, i32
  }
}

</mosaic_0001>

<bundles_post_ra>
// kernel: multi_task_forward.2
= control target key start
LH: loop header
LB: loop body
LE: loop exit
PB: predicated region body
PF: predicated region fallthrough
CT: control target
= control target key end

     0   :  { %10 = vsyncpa [#allocation4], 0  ;;  %s4604_s0 = inlined_call_operand.vmem [shape: bf16[2,256,27], index: 0, kind: input, shape index: {}]   ;;  %s4605_s1 = inlined_call_operand.hbm [shape: bf16[27,32], index: 1, kind: input, shape index: {}]   ;;  %s4606_s2 = inlined_call_operand.hbm [shape: f32[1,32], index: 2, kind: input, shape index: {}]   ;;  %s4607_s3 = inlined_call_operand.hbm [shape: bf16[32,1280], index: 3, kind: input, shape index: {}]   ;;  %s4608_s4 = inlined_call_operand.hbm [shape: f32[1,1280], index: 4, kind: input, shape index: {}]   ;;  %s4609_s5 = inlined_call_operand.vmem [shape: f32[2,1,1280], index: 5, kind: output, shape index: {}]  }
   0x1   :  { %11 = vsyncpa [#allocation6], 0 }
   0x2   :  { %12 = vsyncpa [#allocation9], 0  ;;  %s3696_s18 = smov 0   ;;  %s3698_s19 = smov 0  }
   0x3   :  { %s3700_s20 = smov 0  }
   0x4 LB: > { %s3653_s21 = smov [#allocation5]   ;;  %s3175_s23 = sadd.s32 4294967295, %s3651_s20   ;;  %s3651_s20 = sphi %s3700_s20, %s18_s20   ;;  %s3647_s19 = sphi %s3698_s19, %s4624_s19   ;;  %s3643_s18 = sphi %s3696_s18, %s4623_s18  }
   0x5   : > { %s199_s22 = sshll.u32 %s3653_s21, 4  ;;  %p3177_p0 = scmp.ge.s32.totalorder %s3651_s20, 1  ;;  %s200_s22 = int_to_ptr.vmem [resolvable:$true] %s199_s22 }
   0x6   : > { %p173_p1 = scmp.lt.s32.totalorder %s3651_s20, 3  ;;  %p3714_p2 = scmp.eq.s32.totalorder %s3175_s23, 0 }
   0x7   : > { %s30_s26 = sadd.s32 1, %s3647_s19  ;;  %s3654_s29 = smov [#allocation3]  }
   0x8   : > { %s4613_s24 = scalar_select %p3714_p2, 1, 0 }
   0x9   : > { %p3718_p3 = pnand %p3177_p0, %p173_p1  ;;  %p3731_p6 = scmp.ge.s32.totalorder %s30_s26, 2 }
   0xa   : > { %s185_s30 = sshll.u32 %s3654_s29, 4  ;;  %s3505_s8 = scalar_lea.hbm %s4606_s2, 16  ;;  %s3735_s30 = int_to_ptr.vmem [resolvable:$true] %s185_s30 }
   0xb   : > { %s4614_s25 = scalar_select %p3718_p3, 1, 0 }
   0xc   : > { %p3399_p4 = pneg %p3718_p3  ;;  %p3506_p7 = scmp.ne.s32.totalorder %s4606_s2, %s3505_s8 }
   0xd   : > { %s4616_s28 = scalar_select %p3731_p6, 1, 0 }
   0xe   : > { %p3727_p5 = pnand %p3714_p2, %p3399_p4  ;;  %p3512_p11 = scmp.lt.u32.totalorder %s3505_s8, %s4606_s2 }
  0x10   : > { %p3745_p8 = pneg %p3727_p5 }
  0x12   : > { %p3508_p9 = pnand %p3745_p8, %p3506_p7 }
  0x14   : > { %p3509_p10 = pneg %p3508_p9 }
  0x16   : > { %p3514_p12 = pnand %p3512_p11, %p3509_p10 }
  0x18   : > { %3517 = shalt.err (!%p3514_p12)
}
  0x19   : > { %s3518_s14 = scalar_lea.vmem %s200_s22, 16  ;;  %s3525_s15 = scalar_lea.vmem %s200_s22, 32 }
  0x1a   : > { %p3519_p13 = scmp.ne.s32.totalorder %s200_s22, %s3518_s14  ;;  %p3526_p4 = scmp.lt.s32.totalorder %s200_s22, %s200_s22 }
  0x1b   : > { %p3527_p2 = scmp.lt.s32.totalorder %s3525_s15, %s3518_s14 }
  0x1c   : > { %p3521_p0 = pnand %p3519_p13, %p3745_p8 }
  0x1d   : > { %p3528_p3 = por %p3527_p2, %p3526_p4 }
  0x1e   : > { %p3522_p1 = pneg %p3521_p0 }
  0x20   : > { %p3529_p6 = pnand %p3528_p3, %p3522_p1 }
  0x22   : > { %3532 = shalt.err (!%p3529_p6)
}
  0x23   : > { %3405 = dma.hbm_to_vmem [thread:$0]  (!%p3727_p5), %s4606_s2, 16, %s200_s22, [#allocation6]  }
  0x24   : > { %p4618_p7 = scmp.ne.s32.totalorder %s4616_s28, 0  ;;  %s3533_s29 = scalar_lea.hbm %s4605_s1, 256 }
  0x25   : > { %p3534_p2 = scmp.ne.s32.totalorder %s4605_s1, %s3533_s29  ;;  %p3540_p9 = scmp.lt.u32.totalorder %s3533_s29, %s4605_s1 }
  0x26   : > { %s4626_s26 = smov (%p4618_p7, %s30_s26), 0 }
  0x27   : > { %p3536_p3 = pnand %p3534_p2, %p3745_p8 }
  0x29   : > { %p3537_p6 = pneg %p3536_p3 }
  0x2b   : > { %p3542_p10 = pnand %p3540_p9, %p3537_p6 }
  0x2d   : > { %3545 = shalt.err (!%p3542_p10)
}
  0x2e   : > { %s3546_s22 = scalar_lea.vmem %s3735_s30, 256  ;;  %p3554_p0 = scmp.lt.s32.totalorder %s3735_s30, %s3735_s30 }
  0x2f   : > { %p3547_p11 = scmp.ne.s32.totalorder %s3735_s30, %s3546_s22  ;;  %p3555_p1 = scmp.lt.s32.totalorder %s3546_s22, %s3546_s22 }
  0x31   : > { %p3549_p12 = pnand %p3547_p11, %p3745_p8  ;;  %p3556_p4 = por %p3555_p1, %p3554_p0 }
  0x33   : > { %p3550_p13 = pneg %p3549_p12 }
  0x35   : > { %p3557_p7 = pnand %p3556_p4, %p3550_p13 }
  0x37   : > { %3560 = shalt.err (!%p3557_p7)
}
  0x38   : > { %s3655_s28 = smov 64   ;;  %s3656_s10 = smov 4  }
  0x39   : > { %3402 = dma.hbm_to_vmem [thread:$0]  (!%p3727_p5), %s4605_s1, 256, %s3735_s30, [#allocation4], %s3655_s28, %s3655_s28, %s3656_s10  }
  0x3a   : > { %s3657_s14 = smov [#allocation7]   ;;  %s3561_s21 = scalar_lea.hbm %s4607_s3, 2560 }
  0x3b   : > { %s209_s15 = sshll.u32 %s3657_s14, 4  ;;  %p3562_p2 = scmp.ne.s32.totalorder %s4607_s3, %s3561_s21  ;;  %s210_s15 = int_to_ptr.vmem [resolvable:$true] %s209_s15 }
  0x3c   : > { %p3568_p9 = scmp.lt.u32.totalorder %s3561_s21, %s4607_s3 }
  0x3d   : > { %p3564_p3 = pnand %p3562_p2, %p3745_p8 }
  0x3f   : > { %p3565_p6 = pneg %p3564_p3 }
  0x41   : > { %p3570_p10 = pnand %p3568_p9, %p3565_p6 }
  0x43   : > { %3573 = shalt.err (!%p3570_p10)
}
  0x44   : > { %s3574_s30 = scalar_lea.vmem %s210_s15, 2560  ;;  %p3582_p0 = scmp.lt.s32.totalorder %s210_s15, %s210_s15 }
  0x45   : > { %p3575_p11 = scmp.ne.s32.totalorder %s210_s15, %s3574_s30  ;;  %p3583_p1 = scmp.lt.s32.totalorder %s3574_s30, %s3574_s30 }
  0x47   : > { %p3577_p12 = pnand %p3575_p11, %p3745_p8  ;;  %p3584_p4 = por %p3583_p1, %p3582_p0 }
  0x49   : > { %p3578_p13 = pneg %p3577_p12 }
  0x4b   : > { %p3585_p7 = pnand %p3584_p4, %p3578_p13 }
  0x4d   : > { %3588 = shalt.err (!%p3585_p7)
}
  0x4e   : > { %s3658_s8 = smov 640   ;;  %s3659_s9 = smov 40  }
  0x4f   : > { %3408 = dma.hbm_to_vmem [thread:$0]  (!%p3727_p5), %s4607_s3, 2560, %s210_s15, [#allocation6], %s3658_s8, %s3658_s8, %s3659_s9  }
  0x50   : > { %s3660_s10 = smov [#allocation8]   ;;  %s3589_s16 = scalar_lea.hbm %s4608_s4, 160 }
  0x51   : > { %s223_s12 = sshll.u32 %s3660_s10, 4  ;;  %p3590_p2 = scmp.ne.s32.totalorder %s4608_s4, %s3589_s16  ;;  %s224_s12 = int_to_ptr.vmem [resolvable:$true] %s223_s12 }
  0x52   : > { %p3596_p9 = scmp.lt.u32.totalorder %s3589_s16, %s4608_s4 }
  0x53   : > { %p3592_p3 = pnand %p3590_p2, %p3745_p8 }
  0x55   : > { %p3593_p6 = pneg %p3592_p3 }
  0x57   : > { %p3598_p10 = pnand %p3596_p9, %p3593_p6 }
  0x59   : > { %3601 = shalt.err (!%p3598_p10)
}
  0x5a   : > { %s3602_s15 = scalar_lea.vmem %s224_s12, 160  ;;  %p3610_p0 = scmp.lt.s32.totalorder %s224_s12, %s224_s12 }
  0x5b   : > { %p3603_p11 = scmp.ne.s32.totalorder %s224_s12, %s3602_s15  ;;  %p3611_p1 = scmp.lt.s32.totalorder %s3602_s15, %s3602_s15 }
  0x5d   : > { %p3605_p12 = pnand %p3603_p11, %p3745_p8  ;;  %p3612_p4 = por %p3611_p1, %p3610_p0 }
  0x5f   : > { %p3606_p13 = pneg %p3605_p12 }
  0x61   : > { %p3613_p7 = pnand %p3612_p4, %p3606_p13 }
  0x63   : > { %3616 = shalt.err (!%p3613_p7)
}
  0x64   : > { %3411 = dma.hbm_to_vmem [thread:$0]  (!%p3727_p5), %s4608_s4, 160, %s224_s12, [#allocation9]  }
  0x65   : > { %p4619_p2 = scmp.ne.s32.totalorder %s4614_s25, 0 }
  0x66   : > { %p4620_p3 = scmp.ne.s32.totalorder (!%p4619_p2), %s4613_s24, 0 }
  0x67   : > { %249 = sbr.rel (%p4619_p2) target bundleno = 2347 (0x92b), region = 40 }
  0x6e   : > { %3630 = dma.done.wait (%p4620_p3), [#allocation4], 256  }
  0x6f   : > { %3632 = vsyncadd (%p4620_p3), [#allocation4], 4294967040 }
  0x70   : > { %3634 = dma.done.wait (%p4620_p3), [#allocation6], 2576  }
  0x71   : > { %3636 = vsyncadd (%p4620_p3), [#allocation6], 4294964720 }
  0x72   : > { %3638 = dma.done.wait (%p4620_p3), [#allocation9], 160  }
  0x73   : > { %3640 = vsyncadd (%p4620_p3), [#allocation9], 4294967136  ;;  %p293_p5 = scmp.lt.s32.totalorder %s3643_s18, 1  ;;  %vm501_vm0 = vcmask 1044480   ;;  %vm502_vm1 = vcmask 1045504   ;;  %v3661_v0 = vmov 65535  }
  0x74   : > { %v503_v1 = vsel %vm501_vm0, 4294967295, %v3661_v0  ;;  %vm452_vm2 = vcmask 220160   ;;  %v3457_v2 = vld [vmem:[#allocation3] sm:$0xff]   ;;  %v3458_v4 = vld [vmem:[#allocation3 + $0x8] sm:$0x3f]   ;;  %v3662_v26 = vmov 0  }
  0x75   : > { %s4628_s18 = smov (!%p293_p5, %s3643_s18), 1  ;;  %v504_v3 = vsel %vm502_vm1, %v503_v1, 0  ;;  %3346 = vmatprep.subr.bf16.mxu0 %v3457_v2  ;;  %v3475_v22 = vld [vmem:[#allocation7 + $0x4] ss:$40 sps:$4 sm:$0xff]   ;;  %v3477_v23 = vld [vmem:[#allocation7] ss:$40 sps:$4 sm:$0xff]   ;;  %866 = vmatprep.mubr.bf16.mxu1 %v3662_v26 }
  0x76   : > { %s3327_s25 = sshll.u32 %s4628_s18, 7  ;;  %3347 = vmatpush3.bf16.msra.mxu0 %v3457_v2  ;;  %v506_v6 = vand.u32 %v3458_v4, %v504_v3  ;;  %834 = vmatprep.subr.bf16.mxu1 %v3475_v22  ;;  %v3478_v24 = vld [vmem:[#allocation7 + $0x54] ss:$40 sps:$4 sm:$0xff]   ;;  %v3480_v25 = vld [vmem:[#allocation7 + $0x50] ss:$40 sps:$4 sm:$0xff]   ;;  %vm785_vm3 = vcmask 261120  }
  0x77   : > { %s3846_s30 = scalar_lea.vmem %s4604_s0, %s3327_s25  ;;  %835 = vmatpush1.bf16.msra.mxu1 %v3477_v23  ;;  %v3881_v27 = vld [vmem:[#allocation5] ss:$0 sm:$0xff]  ;;  %s3382_s24 = smul.u32 10, %s4628_s18 }
  0x78   : > { %v3459_v5 = vld [vmem:[%s3846_s30] sm:$0xff]   ;;  %3348 = vmatprep.subr.bf16.mxu0 %v506_v6  ;;  %v3460_v7 = vld [vmem:[%s3846_s30 + $0x8] sm:$0xff]   ;;  %v3461_v8 = vld [vmem:[%s3846_s30 + $0x10] sm:$0xff]   ;;  %836 = vmatprep.subr.bf16.mxu1 %v3478_v24 }
  0x79   : > { %3350 = vmatprep.mubr.msk.bf16.mxu0 %vm452_vm2, %v3459_v5  ;;  %v3462_v9 = vld [vmem:[%s3846_s30 + $0x18] sm:$0xff]   ;;  %v3463_v10 = vld [vmem:[%s3846_s30 + $0x20] sm:$0xff]   ;;  %v3464_v11 = vld [vmem:[%s3846_s30 + $0x28] sm:$0xff]   ;;  %s4524_s22 = scalar_lea.vmem %s4609_s5, %s3382_s24 }
  0x7a   : > { %3349 = vmatpush3.bf16.msra.mxu0 %v506_v6  ;;  %v3465_v12 = vld [vmem:[%s3846_s30 + $0x30] sm:$0xff]   ;;  %v3466_v13 = vld [vmem:[%s3846_s30 + $0x38] sm:$0xff]   ;;  %v3467_v14 = vld [vmem:[%s3846_s30 + $0x40] sm:$0xff]  }
  0x7b   : > { %v3468_v15 = vld [vmem:[%s3846_s30 + $0x48] sm:$0xff]   ;;  %v3469_v16 = vld [vmem:[%s3846_s30 + $0x50] sm:$0xff]   ;;  %v3470_v17 = vld [vmem:[%s3846_s30 + $0x58] sm:$0xff]   ;;  %837 = vmatpush1.bf16.msra.mxu1 %v3480_v25 }
  0x7c   : > { %v3471_v18 = vld [vmem:[%s3846_s30 + $0x60] sm:$0xff]   ;;  %v3472_v19 = vld [vmem:[%s3846_s30 + $0x68] sm:$0xff]   ;;  %v3473_v20 = vld [vmem:[%s3846_s30 + $0x70] sm:$0xff]  }
  0x7d   : > { %3351 = vmatmul.mubr.msk.bf16.vlgmr.msra.gmra.mrb[0].mxu0 %vm452_vm2, %v3460_v7  ;;  %v3474_v21 = vld [vmem:[%s3846_s30 + $0x78] sm:$0xff]  }
  0x7e   : > { %3354 = vmatprep.mubr.msk.bf16.mxu0 %vm452_vm2, %v3461_v8 }
  0x85   : > { %3355 = vmatmul.mubr.msk.bf16.gmra.mrb[4].mxu0 %vm452_vm2, %v3462_v9 }
  0x86   : > { %3358 = vmatprep.mubr.msk.bf16.mxu0 %vm452_vm2, %v3463_v10 }
  0x8d   : > { %3359 = vmatmul.mubr.msk.bf16.gmra.mrb[8].mxu0 %vm452_vm2, %v3464_v11 }
  0x8e   : > { %3362 = vmatprep.mubr.msk.bf16.mxu0 %vm452_vm2, %v3465_v12 }
  0x95   : > { %3363 = vmatmul.mubr.msk.bf16.gmra.mrb[12].mxu0 %vm452_vm2, %v3466_v13 }
  0x96   : > { %3366 = vmatprep.mubr.msk.bf16.mxu0 %vm452_vm2, %v3467_v14 }
  0x9d   : > { %3367 = vmatmul.mubr.msk.bf16.gmra.mrb[16].mxu0 %vm452_vm2, %v3468_v15 }
  0x9e   : > { %3370 = vmatprep.mubr.msk.bf16.mxu0 %vm452_vm2, %v3469_v16 }
  0xa5   : > { %3371 = vmatmul.mubr.msk.bf16.gmra.mrb[20].mxu0 %vm452_vm2, %v3470_v17 }
  0xa6   : > { %3374 = vmatprep.mubr.msk.bf16.mxu0 %vm452_vm2, %v3471_v18 }
  0xad   : > { %3375 = vmatmul.mubr.msk.bf16.gmra.mrb[24].mxu0 %vm452_vm2, %v3472_v19 }
  0xae   : > { %3378 = vmatprep.mubr.msk.bf16.mxu0 %vm452_vm2, %v3473_v20 }
  0xb5   : > { %3379 = vmatmul.mubr.msk.bf16.gmra.mrb[28].mxu0 %vm452_vm2, %v3474_v21 }
 0x150   : > { %v3352_v28 = vpop.f32.mrb[0].mxu0 }
 0x151   : > { %v551_v29 = vadd.f32 %v3352_v28, %v3881_v27  ;;  %v542_v30 = vpop.f32.mrb[1].mxu0 }
 0x152   : > { %v543_v31 = vadd.f32 %v3881_v27, %v542_v30  ;;  %v3353_v32 = vpop.f32.mrb[2].mxu0 }
 0x153   : > { %v671_v33 = vmax.f32 %v551_v29, 0.0  ;;  %v554_v34 = vadd.f32 %v3353_v32, %v3881_v27  ;;  %v545_v35 = vpop.f32.mrb[3].mxu0 }
 0x154   : > { %v669_v36 = vmax.f32 %v543_v31, 0.0  ;;  %v546_v37 = vadd.f32 %v3881_v27, %v545_v35 }
 0x155   : > { %v672_v38 = vmax.f32 %v554_v34, 0.0  ;;  %v703_v40 = vmin.f32 %v671_v33, 6.0 }
 0x156   : > { %v670_v39 = vmax.f32 %v546_v37, 0.0  ;;  %v701_v42 = vmin.f32 %v669_v36, 6.0 }
 0x157   : > { %v704_v41 = vmin.f32 %v672_v38, 6.0 }
 0x158   : > { %v702_v43 = vmin.f32 %v670_v39, 6.0  ;;  %v3356_v44 = vpop.f32.mrb[4].mxu0 }
 0x159   : > { %v3887_v45 = vpack.c.bf16 %v704_v41, %v703_v40  ;;  %v567_v46 = vadd.f32 %v3356_v44, %v3881_v27  ;;  %v558_v47 = vpop.f32.mrb[5].mxu0 }
 0x15a   : > { %v3890_v48 = vpack.c.bf16 %v702_v43, %v701_v42  ;;  %v559_v49 = vadd.f32 %v3881_v27, %v558_v47  ;;  %v3357_v50 = vpop.f32.mrb[6].mxu0 }
 0x15b   : > { %v675_v51 = vmax.f32 %v567_v46, 0.0  ;;  %v570_v52 = vadd.f32 %v3357_v50, %v3881_v27  ;;  %v561_v53 = vpop.f32.mrb[7].mxu0 }
 0x15c   : > { %3229 = vmatmul.mubr.msk.bf16.vlgmr.msra.gmra.mrb[0].mxu1 %vm785_vm3, %v3890_v48  ;;  %v673_v54 = vmax.f32 %v559_v49, 0.0  ;;  %v562_v55 = vadd.f32 %v3881_v27, %v561_v53 }
 0x15d   : > { %v707_v56 = vmin.f32 %v675_v51, 6.0  ;;  %v676_v57 = vmax.f32 %v570_v52, 0.0  ;;  %876 = vmatprep.mubr.bf16.mxu1 %v3662_v26 }
 0x15e   : > { %v705_v58 = vmin.f32 %v673_v54, 6.0  ;;  %v674_v59 = vmax.f32 %v562_v55, 0.0 }
 0x15f   : > { %v708_v60 = vmin.f32 %v676_v57, 6.0 }
 0x160   : > { %v706_v61 = vmin.f32 %v674_v59, 6.0  ;;  %v3360_v62 = vpop.f32.mrb[8].mxu0 }
 0x161   : > { %v3898_v63 = vpack.c.bf16 %v708_v60, %v707_v56  ;;  %v583_v0 = vadd.f32 %v3360_v62, %v3881_v27  ;;  %v574_v1 = vpop.f32.mrb[9].mxu0 }
 0x162   : > { %v3901_v2 = vpack.c.bf16 %v706_v61, %v705_v58  ;;  %v575_v3 = vadd.f32 %v3881_v27, %v574_v1  ;;  %v3361_v4 = vpop.f32.mrb[10].mxu0 }
 0x163   : > { %v679_v5 = vmax.f32 %v583_v0, 0.0  ;;  %v586_v6 = vadd.f32 %v3361_v4, %v3881_v27  ;;  %v577_v7 = vpop.f32.mrb[11].mxu0 }
 0x164   : > { %3230 = vmatmul.mubr.msk.bf16.gmra.mrb[4].mxu1 %vm785_vm3, %v3887_v45  ;;  %v677_v8 = vmax.f32 %v575_v3, 0.0  ;;  %v578_v9 = vadd.f32 %v3881_v27, %v577_v7 }
 0x165   : > { %886 = vmatprep.mubr.bf16.mxu1 %v3662_v26  ;;  %v711_v10 = vmin.f32 %v679_v5, 6.0  ;;  %v680_v11 = vmax.f32 %v586_v6, 0.0 }
 0x166   : > { %v709_v12 = vmin.f32 %v677_v8, 6.0  ;;  %v678_v13 = vmax.f32 %v578_v9, 0.0 }
 0x167   : > { %v712_v14 = vmin.f32 %v680_v11, 6.0 }
 0x168   : > { %v710_v15 = vmin.f32 %v678_v13, 6.0  ;;  %v3364_v16 = vpop.f32.mrb[12].mxu0 }
 0x169   : > { %v3909_v17 = vpack.c.bf16 %v712_v14, %v711_v10  ;;  %v599_v18 = vadd.f32 %v3364_v16, %v3881_v27  ;;  %v590_v19 = vpop.f32.mrb[13].mxu0 }
 0x16a   : > { %v3912_v20 = vpack.c.bf16 %v710_v15, %v709_v12  ;;  %v591_v21 = vadd.f32 %v3881_v27, %v590_v19  ;;  %v3365_v22 = vpop.f32.mrb[14].mxu0 }
 0x16b   : > { %v683_v23 = vmax.f32 %v599_v18, 0.0  ;;  %v602_v24 = vadd.f32 %v3365_v22, %v3881_v27  ;;  %v593_v25 = vpop.f32.mrb[15].mxu0 }
 0x16c   : > { %3231 = vmatmul.mubr.msk.bf16.gmra.mrb[8].mxu1 %vm785_vm3, %v3901_v2  ;;  %v681_v28 = vmax.f32 %v591_v21, 0.0  ;;  %v594_v29 = vadd.f32 %v3881_v27, %v593_v25 }
 0x16d   : > { %896 = vmatprep.mubr.bf16.mxu1 %v3662_v26  ;;  %v715_v30 = vmin.f32 %v683_v23, 6.0  ;;  %v684_v31 = vmax.f32 %v602_v24, 0.0 }
 0x16e   : > { %v713_v32 = vmin.f32 %v681_v28, 6.0  ;;  %v682_v33 = vmax.f32 %v594_v29, 0.0 }
 0x16f   : > { %v716_v34 = vmin.f32 %v684_v31, 6.0 }
 0x170   : > { %v714_v35 = vmin.f32 %v682_v33, 6.0  ;;  %v3368_v36 = vpop.f32.mrb[16].mxu0 }
 0x171   : > { %v3920_v37 = vpack.c.bf16 %v716_v34, %v715_v30  ;;  %v615_v38 = vadd.f32 %v3368_v36, %v3881_v27  ;;  %v606_v39 = vpop.f32.mrb[17].mxu0 }
 0x172   : > { %v3923_v40 = vpack.c.bf16 %v714_v35, %v713_v32  ;;  %v607_v41 = vadd.f32 %v3881_v27, %v606_v39  ;;  %v3369_v42 = vpop.f32.mrb[18].mxu0 }
 0x173   : > { %v687_v43 = vmax.f32 %v615_v38, 0.0  ;;  %v618_v44 = vadd.f32 %v3369_v42, %v3881_v27  ;;  %v609_v46 = vpop.f32.mrb[19].mxu0 }
 0x174   : > { %3232 = vmatmul.mubr.msk.bf16.gmra.mrb[12].mxu1 %vm785_vm3, %v3898_v63  ;;  %v685_v47 = vmax.f32 %v607_v41, 0.0  ;;  %v610_v49 = vadd.f32 %v3881_v27, %v609_v46 }
 0x175   : > { %906 = vmatprep.mubr.bf16.mxu1 %v3662_v26  ;;  %v719_v50 = vmin.f32 %v687_v43, 6.0  ;;  %v688_v51 = vmax.f32 %v618_v44, 0.0 }
 0x176   : > { %v717_v52 = vmin.f32 %v685_v47, 6.0  ;;  %v686_v53 = vmax.f32 %v610_v49, 0.0 }
 0x177   : > { %v720_v54 = vmin.f32 %v688_v51, 6.0 }
 0x178   : > { %v718_v55 = vmin.f32 %v686_v53, 6.0  ;;  %v3372_v56 = vpop.f32.mrb[20].mxu0 }
 0x179   : > { %v3931_v57 = vpack.c.bf16 %v720_v54, %v719_v50  ;;  %v631_v58 = vadd.f32 %v3372_v56, %v3881_v27  ;;  %v622_v59 = vpop.f32.mrb[21].mxu0 }
 0x17a   : > { %v3934_v60 = vpack.c.bf16 %v718_v55, %v717_v52  ;;  %v623_v61 = vadd.f32 %v3881_v27, %v622_v59  ;;  %v3373_v62 = vpop.f32.mrb[22].mxu0 }
 0x17b   : > { %v691_v0 = vmax.f32 %v631_v58, 0.0  ;;  %v634_v1 = vadd.f32 %v3373_v62, %v3881_v27  ;;  %v625_v3 = vpop.f32.mrb[23].mxu0  ;;  %v753_v62 = vld [vmem:[#allocation8] sm:$0x3] }
 0x17c   : > { %3233 = vmatmul.mubr.msk.bf16.gmra.mrb[16].mxu1 %vm785_vm3, %v3912_v20  ;;  %v689_v4 = vmax.f32 %v623_v61, 0.0  ;;  %v626_v5 = vadd.f32 %v3881_v27, %v625_v3 }
 0x17d   : > { %916 = vmatprep.mubr.bf16.mxu1 %v3662_v26  ;;  %v723_v6 = vmin.f32 %v691_v0, 6.0  ;;  %v692_v7 = vmax.f32 %v634_v1, 0.0 }
 0x17e   : > { %v721_v8 = vmin.f32 %v689_v4, 6.0  ;;  %v690_v9 = vmax.f32 %v626_v5, 0.0 }
 0x17f   : > { %v724_v10 = vmin.f32 %v692_v7, 6.0 }
 0x180   : > { %v722_v11 = vmin.f32 %v690_v9, 6.0  ;;  %v3376_v12 = vpop.f32.mrb[24].mxu0 }
 0x181   : > { %v3942_v13 = vpack.c.bf16 %v724_v10, %v723_v6  ;;  %v647_v14 = vadd.f32 %v3376_v12, %v3881_v27  ;;  %v638_v15 = vpop.f32.mrb[25].mxu0 }
 0x182   : > { %v3945_v16 = vpack.c.bf16 %v722_v11, %v721_v8  ;;  %v639_v18 = vadd.f32 %v3881_v27, %v638_v15  ;;  %v3377_v19 = vpop.f32.mrb[26].mxu0 }
 0x183   : > { %v695_v21 = vmax.f32 %v647_v14, 0.0  ;;  %v650_v22 = vadd.f32 %v3377_v19, %v3881_v27  ;;  %v641_v23 = vpop.f32.mrb[27].mxu0  ;;  %v3663_v19 = vmov 1065369472  }
 0x184   : > { %3234 = vmatmul.mubr.msk.bf16.gmra.mrb[20].mxu1 %vm785_vm3, %v3909_v17  ;;  %v693_v24 = vmax.f32 %v639_v18, 0.0  ;;  %v642_v25 = vadd.f32 %v3881_v27, %v641_v23  ;;  %1220 = vmatprep.mubr.bf16.mxu0 %v3663_v19 }
 0x185   : > { %926 = vmatprep.mubr.bf16.mxu1 %v3662_v26  ;;  %v727_v28 = vmin.f32 %v695_v21, 6.0  ;;  %v696_v29 = vmax.f32 %v650_v22, 0.0 }
 0x186   : > { %v725_v30 = vmin.f32 %v693_v24, 6.0  ;;  %v694_v31 = vmax.f32 %v642_v25, 0.0 }
 0x187   : > { %v728_v32 = vmin.f32 %v696_v29, 6.0 }
 0x188   : > { %v726_v33 = vmin.f32 %v694_v31, 6.0  ;;  %v3380_v34 = vpop.f32.mrb[28].mxu0 }
 0x189   : > { %v3953_v35 = vpack.c.bf16 %v728_v32, %v727_v28  ;;  %v663_v36 = vadd.f32 %v3380_v34, %v3881_v27  ;;  %v654_v38 = vpop.f32.mrb[29].mxu0 }
 0x18a   : > { %v3956_v39 = vpack.c.bf16 %v726_v33, %v725_v30  ;;  %v655_v41 = vadd.f32 %v3881_v27, %v654_v38  ;;  %v3381_v42 = vpop.f32.mrb[30].mxu0 }
 0x18b   : > { %v699_v43 = vmax.f32 %v663_v36, 0.0  ;;  %v666_v44 = vadd.f32 %v3381_v42, %v3881_v27  ;;  %v657_v46 = vpop.f32.mrb[31].mxu0 }
 0x18c   : > { %3235 = vmatmul.mubr.msk.bf16.gmra.mrb[24].mxu1 %vm785_vm3, %v3923_v40  ;;  %v697_v47 = vmax.f32 %v655_v41, 0.0  ;;  %v658_v49 = vadd.f32 %v3881_v27, %v657_v46  ;;  %v313_v27 = vlaneseq }
 0x18d   : > { %936 = vmatprep.mubr.bf16.mxu1 %v3662_v26  ;;  %v731_v50 = vmin.f32 %v699_v43, 6.0  ;;  %v700_v51 = vmax.f32 %v666_v44, 0.0 }
 0x18e   : > { %v729_v52 = vmin.f32 %v697_v47, 6.0  ;;  %v698_v53 = vmax.f32 %v658_v49, 0.0  ;;  %v3995_v59 = vshrl.u32 %v313_v27, 7  ;;  %vm4108_vm4 = vcmp.lt.s32.totalorder %v313_v27, 256 }
 0x18f   : > { %v732_v54 = vmin.f32 %v700_v51, 6.0  ;;  %v3665_v27 = vmov 1966171168  }
 0x190   : > { %v730_v55 = vmin.f32 %v698_v53, 6.0  ;;  %v3998_v61 = vsub.s32 0, %v3995_v59  ;;  %v4001_v0 = vsub.s32 1, %v3995_v59 }
 0x191   : > { %v3964_v56 = vpack.c.bf16 %v732_v54, %v731_v50 }
 0x192   : > { %v3966_v58 = vpack.c.bf16 %v730_v55, %v729_v52  ;;  %v4004_v1 = vrot.slane %v753_v62, %v3998_v61  ;;  %v4007_v3 = vrot.slane %v753_v62, %v4001_v0 }
 0x194   : > { %3236 = vmatmul.mubr.msk.bf16.gmra.mrb[28].mxu1 %vm785_vm3, %v3920_v37 }
 0x195   : > { %946 = vmatprep.mubr.bf16.mxu1 %v3662_v26 }
 0x19c   : > { %3237 = vmatmul.mubr.msk.bf16.gmra.mrb[32].mxu1 %vm785_vm3, %v3934_v60 }
 0x19d   : > { %956 = vmatprep.mubr.bf16.mxu1 %v3662_v26 }
 0x1a4   : > { %3238 = vmatmul.mubr.msk.bf16.gmra.mrb[36].mxu1 %vm785_vm3, %v3931_v57 }
 0x1a5   : > { %966 = vmatprep.mubr.bf16.mxu1 %v3662_v26 }
 0x1ac   : > { %3239 = vmatmul.mubr.msk.bf16.gmra.mrb[40].mxu1 %vm785_vm3, %v3945_v16 }
 0x1ad   : > { %976 = vmatprep.mubr.bf16.mxu1 %v3662_v26 }
 0x1b4   : > { %3240 = vmatmul.mubr.msk.bf16.gmra.mrb[44].mxu1 %vm785_vm3, %v3942_v13 }
 0x1b5   : > { %986 = vmatprep.mubr.bf16.mxu1 %v3662_v26 }
 0x1bc   : > { %3241 = vmatmul.mubr.msk.bf16.gmra.mrb[48].mxu1 %vm785_vm3, %v3956_v39 }
 0x1bd   : > { %996 = vmatprep.mubr.bf16.mxu1 %v3662_v26 }
 0x1c4   : > { %3242 = vmatmul.mubr.msk.bf16.gmra.mrb[52].mxu1 %vm785_vm3, %v3953_v35 }
 0x1c5   : > { %1006 = vmatprep.mubr.bf16.mxu1 %v3662_v26 }
 0x1cc   : > { %3243 = vmatmul.mubr.msk.bf16.gmra.mrb[56].mxu1 %vm785_vm3, %v3966_v58 }
 0x1cd   : > { %1016 = vmatprep.mubr.bf16.mxu1 %v3662_v26 }
 0x1d4   : > { %3244 = vmatmul.mubr.msk.bf16.gmra.mrb[60].mxu1 %vm785_vm3, %v3964_v56 }
 0x1d5   : > { %1675 = vmatprep.mubr.bf16.mxu1 %v3663_v19 }
 0x22f   : > { %v868_v4 = vpop.f32.mrb[0].mxu1 }
 0x230   : > { %v869_v5 = vadd.f32 %v868_v4, %v4004_v1  ;;  %v870_v6 = vpop.f32.mrb[1].mxu1 }
 0x231   : > { %v871_v7 = vadd.f32 %v870_v6, %v4007_v3  ;;  %v872_v8 = vpop.f32.mrb[2].mxu1 }
 0x232   : > { %v1027_v9 = vmax.f32 %v869_v5, 0.0  ;;  %v873_v10 = vadd.f32 %v872_v8, %v4004_v1  ;;  %v874_v11 = vpop.f32.mrb[3].mxu1 }
 0x233   : > { %v1028_v12 = vmax.f32 %v871_v7, 0.0  ;;  %v875_v14 = vadd.f32 %v874_v11, %v4007_v3 }
 0x234   : > { %v1029_v15 = vmax.f32 %v873_v10, 0.0  ;;  %v1091_v21 = vmin.f32 %v1027_v9, 6.0 }
 0x235   : > { %v1030_v18 = vmax.f32 %v875_v14, 0.0  ;;  %v1092_v23 = vmin.f32 %v1028_v12, 6.0 }
 0x236   : > { %v1093_v22 = vmin.f32 %v1029_v15, 6.0 }
 0x237   : > { %v1094_v24 = vmin.f32 %v1030_v18, 6.0  ;;  %v878_v25 = vpop.f32.mrb[4].mxu1 }
 0x238   : > { %v1156_v28 = vpack.c.bf16 %v1093_v22, %v1091_v21  ;;  %v879_v29 = vadd.f32 %v878_v25, %v4004_v1  ;;  %v880_v30 = vpop.f32.mrb[5].mxu1 }
 0x239   : > { %v1157_v31 = vpack.c.bf16 %v1094_v24, %v1092_v23  ;;  %v881_v32 = vadd.f32 %v880_v30, %v4007_v3  ;;  %v882_v33 = vpop.f32.mrb[6].mxu1 }
 0x23a   : > { %v1031_v34 = vmax.f32 %v879_v29, 0.0  ;;  %v883_v36 = vadd.f32 %v882_v33, %v4004_v1  ;;  %v884_v38 = vpop.f32.mrb[7].mxu1 }
 0x23b   : > { %v1032_v41 = vmax.f32 %v881_v32, 0.0  ;;  %v885_v42 = vadd.f32 %v884_v38, %v4007_v3  ;;  %1188 = vmatprep.subr.bf16.mxu0 %v1157_v31 }
 0x23c   : > { %v1033_v43 = vmax.f32 %v883_v36, 0.0  ;;  %1189 = vmatpush1.bf16.msra.mxu0 %v1156_v28  ;;  %v1095_v46 = vmin.f32 %v1031_v34, 6.0 }
 0x23d   : > { %v1034_v44 = vmax.f32 %v885_v42, 0.0  ;;  %v1096_v49 = vmin.f32 %v1032_v41, 6.0 }
 0x23e   : > { %v1097_v47 = vmin.f32 %v1033_v43, 6.0 }
 0x23f   : > { %v1098_v50 = vmin.f32 %v1034_v44, 6.0  ;;  %v888_v51 = vpop.f32.mrb[8].mxu1 }
 0x240   : > { %v1158_v52 = vpack.c.bf16 %v1097_v47, %v1095_v46  ;;  %v889_v53 = vadd.f32 %v888_v51, %v4004_v1  ;;  %v890_v54 = vpop.f32.mrb[9].mxu1 }
 0x241   : > { %v1159_v55 = vpack.c.bf16 %v1098_v50, %v1096_v49  ;;  %v891_v62 = vadd.f32 %v890_v54, %v4007_v3  ;;  %v892_v4 = vpop.f32.mrb[10].mxu1 }
 0x242   : > { %v1035_v5 = vmax.f32 %v889_v53, 0.0  ;;  %v893_v6 = vadd.f32 %v892_v4, %v4004_v1  ;;  %v894_v7 = vpop.f32.mrb[11].mxu1 }
 0x243   : > { %v1036_v8 = vmax.f32 %v891_v62, 0.0  ;;  %v895_v9 = vadd.f32 %v894_v7, %v4007_v3  ;;  %1190 = vmatprep.subr.bf16.mxu0 %v1159_v55 }
 0x244   : > { %v1037_v10 = vmax.f32 %v893_v6, 0.0  ;;  %1191 = vmatpush1.bf16.msra.mxu0 %v1158_v52  ;;  %v1099_v12 = vmin.f32 %v1035_v5, 6.0 }
 0x245   : > { %v1038_v11 = vmax.f32 %v895_v9, 0.0  ;;  %v1100_v15 = vmin.f32 %v1036_v8, 6.0 }
 0x246   : > { %v1101_v14 = vmin.f32 %v1037_v10, 6.0 }
 0x247   : > { %v1102_v18 = vmin.f32 %v1038_v11, 6.0  ;;  %v898_v21 = vpop.f32.mrb[12].mxu1 }
 0x248   : > { %v1160_v22 = vpack.c.bf16 %v1101_v14, %v1099_v12  ;;  %v899_v23 = vadd.f32 %v898_v21, %v4004_v1  ;;  %v900_v24 = vpop.f32.mrb[13].mxu1 }
 0x249   : > { %v1161_v25 = vpack.c.bf16 %v1102_v18, %v1100_v15  ;;  %v901_v28 = vadd.f32 %v900_v24, %v4007_v3  ;;  %v902_v29 = vpop.f32.mrb[14].mxu1 }
 0x24a   : > { %v1039_v30 = vmax.f32 %v899_v23, 0.0  ;;  %v903_v31 = vadd.f32 %v902_v29, %v4004_v1  ;;  %v904_v32 = vpop.f32.mrb[15].mxu1 }
 0x24b   : > { %v1040_v33 = vmax.f32 %v901_v28, 0.0  ;;  %v905_v34 = vadd.f32 %v904_v32, %v4007_v3  ;;  %1192 = vmatprep.subr.bf16.mxu0 %v1161_v25 }
 0x24c   : > { %v1041_v36 = vmax.f32 %v903_v31, 0.0  ;;  %1193 = vmatpush1.bf16.msra.mxu0 %v1160_v22  ;;  %v1103_v41 = vmin.f32 %v1039_v30, 6.0 }
 0x24d   : > { %v1042_v38 = vmax.f32 %v905_v34, 0.0  ;;  %v1104_v43 = vmin.f32 %v1040_v33, 6.0 }
 0x24e   : > { %v1105_v42 = vmin.f32 %v1041_v36, 6.0 }
 0x24f   : > { %v1106_v44 = vmin.f32 %v1042_v38, 6.0  ;;  %v908_v46 = vpop.f32.mrb[16].mxu1 }
 0x250   : > { %v1162_v47 = vpack.c.bf16 %v1105_v42, %v1103_v41  ;;  %v909_v49 = vadd.f32 %v908_v46, %v4004_v1  ;;  %v910_v50 = vpop.f32.mrb[17].mxu1 }
 0x251   : > { %v1163_v51 = vpack.c.bf16 %v1106_v44, %v1104_v43  ;;  %v911_v52 = vadd.f32 %v910_v50, %v4007_v3  ;;  %v912_v53 = vpop.f32.mrb[18].mxu1 }
 0x252   : > { %v1043_v54 = vmax.f32 %v909_v49, 0.0  ;;  %v913_v55 = vadd.f32 %v912_v53, %v4004_v1  ;;  %v914_v62 = vpop.f32.mrb[19].mxu1 }
 0x253   : > { %v1044_v4 = vmax.f32 %v911_v52, 0.0  ;;  %v915_v5 = vadd.f32 %v914_v62, %v4007_v3  ;;  %1194 = vmatprep.subr.bf16.mxu0 %v1163_v51 }
 0x254   : > { %v1045_v6 = vmax.f32 %v913_v55, 0.0  ;;  %1195 = vmatpush1.bf16.msra.mxu0 %v1162_v47  ;;  %v1107_v8 = vmin.f32 %v1043_v54, 6.0 }
 0x255   : > { %v1046_v7 = vmax.f32 %v915_v5, 0.0  ;;  %v1108_v10 = vmin.f32 %v1044_v4, 6.0 }
 0x256   : > { %v1109_v9 = vmin.f32 %v1045_v6, 6.0 }
 0x257   : > { %v1110_v11 = vmin.f32 %v1046_v7, 6.0  ;;  %v918_v12 = vpop.f32.mrb[20].mxu1 }
 0x258   : > { %v1164_v14 = vpack.c.bf16 %v1109_v9, %v1107_v8  ;;  %v919_v15 = vadd.f32 %v918_v12, %v4004_v1  ;;  %v920_v18 = vpop.f32.mrb[21].mxu1 }
 0x259   : > { %v1165_v21 = vpack.c.bf16 %v1110_v11, %v1108_v10  ;;  %v921_v22 = vadd.f32 %v920_v18, %v4007_v3  ;;  %v922_v23 = vpop.f32.mrb[22].mxu1 }
 0x25a   : > { %v1047_v24 = vmax.f32 %v919_v15, 0.0  ;;  %v923_v25 = vadd.f32 %v922_v23, %v4004_v1  ;;  %v924_v28 = vpop.f32.mrb[23].mxu1 }
 0x25b   : > { %v1048_v29 = vmax.f32 %v921_v22, 0.0  ;;  %v925_v30 = vadd.f32 %v924_v28, %v4007_v3  ;;  %1196 = vmatprep.subr.bf16.mxu0 %v1165_v21 }
 0x25c   : > { %v1049_v31 = vmax.f32 %v923_v25, 0.0  ;;  %1197 = vmatpush1.bf16.msra.mxu0 %v1164_v14  ;;  %v1111_v33 = vmin.f32 %v1047_v24, 6.0 }
 0x25d   : > { %v1050_v32 = vmax.f32 %v925_v30, 0.0  ;;  %v1112_v36 = vmin.f32 %v1048_v29, 6.0 }
 0x25e   : > { %v1113_v34 = vmin.f32 %v1049_v31, 6.0 }
 0x25f   : > { %v1114_v38 = vmin.f32 %v1050_v32, 6.0  ;;  %v928_v41 = vpop.f32.mrb[24].mxu1 }
 0x260   : > { %v1166_v42 = vpack.c.bf16 %v1113_v34, %v1111_v33  ;;  %v929_v43 = vadd.f32 %v928_v41, %v4004_v1  ;;  %v930_v44 = vpop.f32.mrb[25].mxu1 }
 0x261   : > { %v1167_v46 = vpack.c.bf16 %v1114_v38, %v1112_v36  ;;  %v931_v47 = vadd.f32 %v930_v44, %v4007_v3  ;;  %v932_v49 = vpop.f32.mrb[26].mxu1 }
 0x262   : > { %v1051_v50 = vmax.f32 %v929_v43, 0.0  ;;  %v933_v51 = vadd.f32 %v932_v49, %v4004_v1  ;;  %v934_v52 = vpop.f32.mrb[27].mxu1 }
 0x263   : > { %v1052_v53 = vmax.f32 %v931_v47, 0.0  ;;  %v935_v54 = vadd.f32 %v934_v52, %v4007_v3  ;;  %1198 = vmatprep.subr.bf16.mxu0 %v1167_v46 }
 0x264   : > { %v1053_v55 = vmax.f32 %v933_v51, 0.0  ;;  %1199 = vmatpush1.bf16.msra.mxu0 %v1166_v42  ;;  %v1115_v4 = vmin.f32 %v1051_v50, 6.0 }
 0x265   : > { %v1054_v62 = vmax.f32 %v935_v54, 0.0  ;;  %v1116_v6 = vmin.f32 %v1052_v53, 6.0 }
 0x266   : > { %v1117_v5 = vmin.f32 %v1053_v55, 6.0 }
 0x267   : > { %v1118_v7 = vmin.f32 %v1054_v62, 6.0  ;;  %v938_v8 = vpop.f32.mrb[28].mxu1 }
 0x268   : > { %v1168_v9 = vpack.c.bf16 %v1117_v5, %v1115_v4  ;;  %v939_v10 = vadd.f32 %v938_v8, %v4004_v1  ;;  %v940_v11 = vpop.f32.mrb[29].mxu1 }
 0x269   : > { %v1169_v12 = vpack.c.bf16 %v1118_v7, %v1116_v6  ;;  %v941_v14 = vadd.f32 %v940_v11, %v4007_v3  ;;  %v942_v15 = vpop.f32.mrb[30].mxu1 }
 0x26a   : > { %v1055_v18 = vmax.f32 %v939_v10, 0.0  ;;  %v943_v21 = vadd.f32 %v942_v15, %v4004_v1  ;;  %v944_v22 = vpop.f32.mrb[31].mxu1 }
 0x26b   : > { %v1056_v23 = vmax.f32 %v941_v14, 0.0  ;;  %v945_v24 = vadd.f32 %v944_v22, %v4007_v3  ;;  %1200 = vmatprep.subr.bf16.mxu0 %v1169_v12 }
 0x26c   : > { %v1057_v25 = vmax.f32 %v943_v21, 0.0  ;;  %1201 = vmatpush1.bf16.msra.mxu0 %v1168_v9  ;;  %v1119_v29 = vmin.f32 %v1055_v18, 6.0 }
 0x26d   : > { %v1058_v28 = vmax.f32 %v945_v24, 0.0  ;;  %v1120_v31 = vmin.f32 %v1056_v23, 6.0 }
 0x26e   : > { %v1121_v30 = vmin.f32 %v1057_v25, 6.0 }
 0x26f   : > { %v1122_v32 = vmin.f32 %v1058_v28, 6.0  ;;  %v948_v33 = vpop.f32.mrb[32].mxu1 }
 0x270   : > { %v1170_v34 = vpack.c.bf16 %v1121_v30, %v1119_v29  ;;  %v949_v36 = vadd.f32 %v948_v33, %v4004_v1  ;;  %v950_v38 = vpop.f32.mrb[33].mxu1 }
 0x271   : > { %v1171_v41 = vpack.c.bf16 %v1122_v32, %v1120_v31  ;;  %v951_v42 = vadd.f32 %v950_v38, %v4007_v3  ;;  %v952_v43 = vpop.f32.mrb[34].mxu1 }
 0x272   : > { %v1059_v44 = vmax.f32 %v949_v36, 0.0  ;;  %v953_v46 = vadd.f32 %v952_v43, %v4004_v1  ;;  %v954_v47 = vpop.f32.mrb[35].mxu1 }
 0x273   : > { %v1060_v49 = vmax.f32 %v951_v42, 0.0  ;;  %v955_v50 = vadd.f32 %v954_v47, %v4007_v3  ;;  %1202 = vmatprep.subr.bf16.mxu0 %v1171_v41 }
 0x274   : > { %v1061_v51 = vmax.f32 %v953_v46, 0.0  ;;  %1203 = vmatpush1.bf16.msra.mxu0 %v1170_v34  ;;  %v1123_v53 = vmin.f32 %v1059_v44, 6.0 }
 0x275   : > { %v1062_v52 = vmax.f32 %v955_v50, 0.0  ;;  %v1124_v55 = vmin.f32 %v1060_v49, 6.0 }
 0x276   : > { %v1125_v54 = vmin.f32 %v1061_v51, 6.0 }
 0x277   : > { %v1126_v62 = vmin.f32 %v1062_v52, 6.0  ;;  %v958_v4 = vpop.f32.mrb[36].mxu1 }
 0x278   : > { %v1172_v5 = vpack.c.bf16 %v1125_v54, %v1123_v53  ;;  %v959_v6 = vadd.f32 %v958_v4, %v4004_v1  ;;  %v960_v7 = vpop.f32.mrb[37].mxu1 }
 0x279   : > { %v1173_v8 = vpack.c.bf16 %v1126_v62, %v1124_v55  ;;  %v961_v9 = vadd.f32 %v960_v7, %v4007_v3  ;;  %v962_v10 = vpop.f32.mrb[38].mxu1 }
 0x27a   : > { %v1063_v11 = vmax.f32 %v959_v6, 0.0  ;;  %v963_v12 = vadd.f32 %v962_v10, %v4004_v1  ;;  %v964_v14 = vpop.f32.mrb[39].mxu1 }
 0x27b   : > { %v1064_v15 = vmax.f32 %v961_v9, 0.0  ;;  %v965_v18 = vadd.f32 %v964_v14, %v4007_v3  ;;  %1204 = vmatprep.subr.bf16.mxu0 %v1173_v8 }
 0x27c   : > { %v1065_v21 = vmax.f32 %v963_v12, 0.0  ;;  %1205 = vmatpush1.bf16.msra.mxu0 %v1172_v5  ;;  %v1127_v23 = vmin.f32 %v1063_v11, 6.0 }
 0x27d   : > { %v1066_v22 = vmax.f32 %v965_v18, 0.0  ;;  %v1128_v25 = vmin.f32 %v1064_v15, 6.0 }
 0x27e   : > { %v1129_v24 = vmin.f32 %v1065_v21, 6.0 }
 0x27f   : > { %v1130_v28 = vmin.f32 %v1066_v22, 6.0  ;;  %v968_v29 = vpop.f32.mrb[40].mxu1 }
 0x280   : > { %v1174_v30 = vpack.c.bf16 %v1129_v24, %v1127_v23  ;;  %v969_v31 = vadd.f32 %v968_v29, %v4004_v1  ;;  %v970_v32 = vpop.f32.mrb[41].mxu1 }
 0x281   : > { %v1175_v33 = vpack.c.bf16 %v1130_v28, %v1128_v25  ;;  %v971_v34 = vadd.f32 %v970_v32, %v4007_v3  ;;  %v972_v36 = vpop.f32.mrb[42].mxu1 }
 0x282   : > { %v1067_v38 = vmax.f32 %v969_v31, 0.0  ;;  %v973_v41 = vadd.f32 %v972_v36, %v4004_v1  ;;  %v974_v42 = vpop.f32.mrb[43].mxu1 }
 0x283   : > { %v1068_v43 = vmax.f32 %v971_v34, 0.0  ;;  %v975_v44 = vadd.f32 %v974_v42, %v4007_v3  ;;  %1206 = vmatprep.subr.bf16.mxu0 %v1175_v33 }
 0x284   : > { %v1069_v46 = vmax.f32 %v973_v41, 0.0  ;;  %1207 = vmatpush1.bf16.msra.mxu0 %v1174_v30  ;;  %v1131_v49 = vmin.f32 %v1067_v38, 6.0 }
 0x285   : > { %v1070_v47 = vmax.f32 %v975_v44, 0.0  ;;  %v1132_v51 = vmin.f32 %v1068_v43, 6.0 }
 0x286   : > { %v1133_v50 = vmin.f32 %v1069_v46, 6.0 }
 0x287   : > { %v1134_v52 = vmin.f32 %v1070_v47, 6.0  ;;  %v978_v53 = vpop.f32.mrb[44].mxu1 }
 0x288   : > { %v1176_v54 = vpack.c.bf16 %v1133_v50, %v1131_v49  ;;  %v979_v55 = vadd.f32 %v978_v53, %v4004_v1  ;;  %v980_v62 = vpop.f32.mrb[45].mxu1 }
 0x289   : > { %v1177_v4 = vpack.c.bf16 %v1134_v52, %v1132_v51  ;;  %v981_v5 = vadd.f32 %v980_v62, %v4007_v3  ;;  %v982_v6 = vpop.f32.mrb[46].mxu1 }
 0x28a   : > { %v1071_v7 = vmax.f32 %v979_v55, 0.0  ;;  %v983_v8 = vadd.f32 %v982_v6, %v4004_v1  ;;  %v984_v9 = vpop.f32.mrb[47].mxu1 }
 0x28b   : > { %v1072_v10 = vmax.f32 %v981_v5, 0.0  ;;  %v985_v11 = vadd.f32 %v984_v9, %v4007_v3  ;;  %1208 = vmatprep.subr.bf16.mxu0 %v1177_v4 }
 0x28c   : > { %v1073_v12 = vmax.f32 %v983_v8, 0.0  ;;  %1209 = vmatpush1.bf16.msra.mxu0 %v1176_v54  ;;  %v1135_v15 = vmin.f32 %v1071_v7, 6.0 }
 0x28d   : > { %v1074_v14 = vmax.f32 %v985_v11, 0.0  ;;  %v1136_v21 = vmin.f32 %v1072_v10, 6.0 }
 0x28e   : > { %v1137_v18 = vmin.f32 %v1073_v12, 6.0 }
 0x28f   : > { %v1138_v22 = vmin.f32 %v1074_v14, 6.0  ;;  %v988_v23 = vpop.f32.mrb[48].mxu1 }
 0x290   : > { %v1178_v24 = vpack.c.bf16 %v1137_v18, %v1135_v15  ;;  %v989_v25 = vadd.f32 %v988_v23, %v4004_v1  ;;  %v990_v28 = vpop.f32.mrb[49].mxu1 }
 0x291   : > { %v1179_v29 = vpack.c.bf16 %v1138_v22, %v1136_v21  ;;  %v991_v30 = vadd.f32 %v990_v28, %v4007_v3  ;;  %v992_v31 = vpop.f32.mrb[50].mxu1 }
 0x292   : > { %v1075_v32 = vmax.f32 %v989_v25, 0.0  ;;  %v993_v33 = vadd.f32 %v992_v31, %v4004_v1  ;;  %v994_v34 = vpop.f32.mrb[51].mxu1 }
 0x293   : > { %v1076_v36 = vmax.f32 %v991_v30, 0.0  ;;  %v995_v38 = vadd.f32 %v994_v34, %v4007_v3  ;;  %1210 = vmatprep.subr.bf16.mxu0 %v1179_v29 }
 0x294   : > { %v1077_v41 = vmax.f32 %v993_v33, 0.0  ;;  %1211 = vmatpush1.bf16.msra.mxu0 %v1178_v24  ;;  %v1139_v43 = vmin.f32 %v1075_v32, 6.0 }
 0x295   : > { %v1078_v42 = vmax.f32 %v995_v38, 0.0  ;;  %v1140_v46 = vmin.f32 %v1076_v36, 6.0 }
 0x296   : > { %v1141_v44 = vmin.f32 %v1077_v41, 6.0 }
 0x297   : > { %v1142_v47 = vmin.f32 %v1078_v42, 6.0  ;;  %v998_v49 = vpop.f32.mrb[52].mxu1 }
 0x298   : > { %v1180_v50 = vpack.c.bf16 %v1141_v44, %v1139_v43  ;;  %v999_v51 = vadd.f32 %v998_v49, %v4004_v1  ;;  %v1000_v52 = vpop.f32.mrb[53].mxu1 }
 0x299   : > { %v1181_v53 = vpack.c.bf16 %v1142_v47, %v1140_v46  ;;  %v1001_v54 = vadd.f32 %v1000_v52, %v4007_v3  ;;  %v1002_v55 = vpop.f32.mrb[54].mxu1 }
 0x29a   : > { %v1079_v62 = vmax.f32 %v999_v51, 0.0  ;;  %v1003_v4 = vadd.f32 %v1002_v55, %v4004_v1  ;;  %v1004_v5 = vpop.f32.mrb[55].mxu1 }
 0x29b   : > { %v1080_v6 = vmax.f32 %v1001_v54, 0.0  ;;  %v1005_v7 = vadd.f32 %v1004_v5, %v4007_v3  ;;  %1212 = vmatprep.subr.bf16.mxu0 %v1181_v53 }
 0x29c   : > { %v1081_v8 = vmax.f32 %v1003_v4, 0.0  ;;  %1213 = vmatpush1.bf16.msra.mxu0 %v1180_v50  ;;  %v1143_v10 = vmin.f32 %v1079_v62, 6.0 }
 0x29d   : > { %v1082_v9 = vmax.f32 %v1005_v7, 0.0  ;;  %v1144_v12 = vmin.f32 %v1080_v6, 6.0 }
 0x29e   : > { %v1145_v11 = vmin.f32 %v1081_v8, 6.0 }
 0x29f   : > { %v1146_v14 = vmin.f32 %v1082_v9, 6.0  ;;  %v1008_v15 = vpop.f32.mrb[56].mxu1 }
 0x2a0   : > { %v1182_v18 = vpack.c.bf16 %v1145_v11, %v1143_v10  ;;  %v1009_v21 = vadd.f32 %v1008_v15, %v4004_v1  ;;  %v1010_v22 = vpop.f32.mrb[57].mxu1  ;;  %v3664_v15 = vmov 0.0  }
 0x2a1   : > { %v1183_v23 = vpack.c.bf16 %v1146_v14, %v1144_v12  ;;  %v1011_v24 = vadd.f32 %v1010_v22, %v4007_v3  ;;  %v1012_v25 = vpop.f32.mrb[58].mxu1  ;;  %v3483_v12 = vld [vmem:[#allocation7 + $0xc] ss:$40 sps:$4 sm:$0xff]   ;;  %v3481_v14 = vld [vmem:[#allocation7 + $0x8] ss:$40 sps:$4 sm:$0xff]   ;;  %312 = vst [vmem:[#allocation2] sm:$0xff] %v3664_v15 }
 0x2a2   : > { %v1083_v28 = vmax.f32 %v1009_v21, 0.0  ;;  %v1013_v29 = vadd.f32 %v1012_v25, %v4004_v1  ;;  %v1014_v30 = vpop.f32.mrb[59].mxu1  ;;  %317 = vst.msk [vmem:[#allocation2 + $0x8] sm:$0x3] %vm4108_vm4, %v3664_v15  ;;  %v1233_v21 = vunpack.c.l.s4 %v3665_v27 }
 0x2a3   : > { %v1084_v31 = vmax.f32 %v1011_v24, 0.0  ;;  %v1015_v32 = vadd.f32 %v1014_v30, %v4007_v3  ;;  %1214 = vmatprep.subr.bf16.mxu0 %v1183_v23  ;;  %v1257_v30 = vld [vmem:[#allocation8 + $0x2] sm:$0x3] }
 0x2a4   : > { %v1085_v33 = vmax.f32 %v1013_v29, 0.0  ;;  %1215 = vmatpush1.bf16.msra.mxu0 %v1182_v18  ;;  %v1147_v36 = vmin.f32 %v1083_v28, 6.0  ;;  %v1234_v22 = vunpack.c.0.s8 %v1233_v21 }
 0x2a5   : > { %v1086_v34 = vmax.f32 %v1015_v32, 0.0  ;;  %v1148_v41 = vmin.f32 %v1084_v31, 6.0 }
 0x2a6   : > { %v1149_v38 = vmin.f32 %v1085_v33, 6.0  ;;  %v4133_v24 = vsub.s32 %v1234_v22, %v3995_v59 }
 0x2a7   : > { %v1150_v42 = vmin.f32 %v1086_v34, 6.0  ;;  %v1018_v43 = vpop.f32.mrb[60].mxu1  ;;  %v4137_v34 = vrot.slane %v1257_v30, %v3998_v61 }
 0x2a8   : > { %v1184_v44 = vpack.c.bf16 %v1149_v38, %v1147_v36  ;;  %v1019_v46 = vadd.f32 %v1018_v43, %v4004_v1  ;;  %v1020_v47 = vpop.f32.mrb[61].mxu1  ;;  %v1155_v33 = vld [vmem:[#allocation2] sm:$0x3]  ;;  %v4141_v38 = vrot.slane %v1257_v30, %v4001_v0 }
 0x2a9   : > { %v1185_v49 = vpack.c.bf16 %v1150_v42, %v1148_v41  ;;  %v1021_v50 = vadd.f32 %v1020_v47, %v4007_v3  ;;  %v1022_v51 = vpop.f32.mrb[62].mxu1 }
 0x2aa   : > { %v1087_v52 = vmax.f32 %v1019_v46, 0.0  ;;  %v1023_v53 = vadd.f32 %v1022_v51, %v4004_v1  ;;  %v1024_v54 = vpop.f32.mrb[63].mxu1  ;;  %v3486_v1 = vld [vmem:[#allocation7 + $0x5c] ss:$40 sps:$4 sm:$0xff]  }
 0x2ab   : > { %v1088_v55 = vmax.f32 %v1021_v50, 0.0  ;;  %v1025_v62 = vadd.f32 %v1024_v54, %v4007_v3  ;;  %1216 = vmatprep.subr.bf16.mxu0 %v1185_v49  ;;  %v3484_v3 = vld [vmem:[#allocation7 + $0x58] ss:$40 sps:$4 sm:$0xff]  }
 0x2ac   : > { %v1089_v4 = vmax.f32 %v1023_v53, 0.0  ;;  %1217 = vmatpush1.bf16.msra.mxu0 %v1184_v44  ;;  %v1151_v6 = vmin.f32 %v1087_v52, 6.0 }
 0x2ad   : > { %v1090_v5 = vmax.f32 %v1025_v62, 0.0  ;;  %v1152_v8 = vmin.f32 %v1088_v55, 6.0 }
 0x2ae   : > { %v1153_v7 = vmin.f32 %v1089_v4, 6.0 }
 0x2af   : > { %v1154_v9 = vmin.f32 %v1090_v5, 6.0 }
 0x2b0   : > { %v1186_v10 = vpack.c.bf16 %v1153_v7, %v1151_v6 }
 0x2b1   : > { %v1187_v11 = vpack.c.bf16 %v1154_v9, %v1152_v8 }
 0x2b3   : > { %1218 = vmatprep.subr.bf16.mxu0 %v1187_v11 }
 0x2b4   : > { %1219 = vmatpush1.bf16.msra.mxu0 %v1186_v10 }
 0x2b5   : > { %1289 = vmatprep.subr.bf16.mxu0 %v3483_v12 }
 0x2b7   : > { %1221 = vmatmul.mubr.bf16.vlgmr.msra.gmra.mrb[32].mxu0 %v3663_v19 }
 0x2b8   : > { %1290 = vmatpush1.bf16.msra.mxu0 %v3481_v14  ;;  %1321 = vmatprep.mubr.bf16.mxu0 %v3662_v26 }
 0x2b9   : > { %1291 = vmatprep.subr.bf16.mxu0 %v3486_v1 }
 0x2bc   : > { %1292 = vmatpush1.bf16.msra.mxu0 %v3484_v3 }
 0x2bf   : > { %3249 = vmatmul.mubr.msk.bf16.vlgmr.msra.gmra.mrb[36].mxu0 %vm785_vm3, %v3890_v48 }
 0x2c0   : > { %1331 = vmatprep.mubr.bf16.mxu0 %v3662_v26 }
 0x2c7   : > { %3250 = vmatmul.mubr.msk.bf16.gmra.mrb[40].mxu0 %vm785_vm3, %v3887_v45 }
 0x2c8   : > { %1341 = vmatprep.mubr.bf16.mxu0 %v3662_v26 }
 0x2cf   : > { %3251 = vmatmul.mubr.msk.bf16.gmra.mrb[44].mxu0 %vm785_vm3, %v3901_v2 }
 0x2d0   : > { %1351 = vmatprep.mubr.bf16.mxu0 %v3662_v26 }
 0x2d7   : > { %3252 = vmatmul.mubr.msk.bf16.gmra.mrb[48].mxu0 %vm785_vm3, %v3898_v63 }
 0x2d8   : > { %1361 = vmatprep.mubr.bf16.mxu0 %v3662_v26 }
 0x2df   : > { %3253 = vmatmul.mubr.msk.bf16.gmra.mrb[52].mxu0 %vm785_vm3, %v3912_v20 }
 0x2e0   : > { %1371 = vmatprep.mubr.bf16.mxu0 %v3662_v26 }
 0x2e7   : > { %3254 = vmatmul.mubr.msk.bf16.gmra.mrb[56].mxu0 %vm785_vm3, %v3909_v17 }
 0x2e8   : > { %1381 = vmatprep.mubr.bf16.mxu0 %v3662_v26 }
 0x2ef   : > { %3255 = vmatmul.mubr.msk.bf16.gmra.mrb[60].mxu0 %vm785_vm3, %v3923_v40 }
 0x2f0   : > { %1391 = vmatprep.mubr.bf16.mxu0 %v3662_v26 }
 0x2f7   : > { %3256 = vmatmul.mubr.msk.bf16.gmra.mrb[64].mxu0 %vm785_vm3, %v3920_v37 }
 0x2f8   : > { %1401 = vmatprep.mubr.bf16.mxu0 %v3662_v26 }
 0x2ff   : > { %3257 = vmatmul.mubr.msk.bf16.gmra.mrb[68].mxu0 %vm785_vm3, %v3934_v60 }
 0x300   : > { %1411 = vmatprep.mubr.bf16.mxu0 %v3662_v26 }
 0x307   : > { %3258 = vmatmul.mubr.msk.bf16.gmra.mrb[72].mxu0 %vm785_vm3, %v3931_v57 }
 0x308   : > { %1421 = vmatprep.mubr.bf16.mxu0 %v3662_v26 }
 0x30f   : > { %3259 = vmatmul.mubr.msk.bf16.gmra.mrb[76].mxu0 %vm785_vm3, %v3945_v16 }
 0x310   : > { %1431 = vmatprep.mubr.bf16.mxu0 %v3662_v26 }
 0x317   : > { %3260 = vmatmul.mubr.msk.bf16.gmra.mrb[80].mxu0 %vm785_vm3, %v3942_v13 }
 0x318   : > { %1441 = vmatprep.mubr.bf16.mxu0 %v3662_v26 }
 0x31f   : > { %3261 = vmatmul.mubr.msk.bf16.gmra.mrb[84].mxu0 %vm785_vm3, %v3956_v39 }
 0x320   : > { %1451 = vmatprep.mubr.bf16.mxu0 %v3662_v26 }
 0x327   : > { %3262 = vmatmul.mubr.msk.bf16.gmra.mrb[88].mxu0 %vm785_vm3, %v3953_v35 }
 0x328   : > { %1461 = vmatprep.mubr.bf16.mxu0 %v3662_v26 }
 0x32f   : > { %3263 = vmatmul.mubr.msk.bf16.gmra.mrb[92].mxu0 %vm785_vm3, %v3966_v58 }
 0x330   : > { %1471 = vmatprep.mubr.bf16.mxu0 %v3662_v26 }
 0x337   : > { %3264 = vmatmul.mubr.msk.bf16.gmra.mrb[96].mxu0 %vm785_vm3, %v3964_v56 }
 0x338   : > { %2126 = vmatprep.mubr.bf16.mxu0 %v3663_v19 }
 0x38a   : > { %v1222_v23 = vpop.f32.mrb[32].mxu0 }
 0x38b   : > { %v1224_v25 = vpop.f32.mrb[33].mxu0 }
 0x38c   : > { %v1231_v28 = vcombine.low %v1222_v23, %v1224_v25  ;;  %v1226_v29 = vpop.f32.mrb[34].mxu0 }
 0x38d   : > { %v1227_v31 = vpop.f32.mrb[35].mxu0 }
 0x38e   : > { %v1238_v32 = vrot.slane %v1231_v28, %v4133_v24 }
 0x390   : > { %v1245_v36 = vrot.slane %v1238_v32, %v4133_v24 }
 0x392   : > { %v1247_v41 = vadd.f32 %v1245_v36, %v1155_v33  ;;  %v1323_v42 = vpop.f32.mrb[36].mxu0 }
 0x393   : > { %v1324_v59 = vadd.f32 %v1323_v42, %v4137_v34  ;;  %v1325_v43 = vpop.f32.mrb[37].mxu0 }
 0x394   : > { %1252 = vst.msk [vmem:[#allocation2] sm:$0x3] %vm4108_vm4, %v1247_v41  ;;  %v1326_v44 = vadd.f32 %v1325_v43, %v4141_v38  ;;  %v1327_v46 = vpop.f32.mrb[38].mxu0 }
 0x395   : > { %v1482_v47 = vmax.f32 %v1324_v59, 0.0  ;;  %v1328_v49 = vadd.f32 %v1327_v46, %v4137_v34  ;;  %v1329_v50 = vpop.f32.mrb[39].mxu0 }
 0x396   : > { %v1483_v51 = vmax.f32 %v1326_v44, 0.0  ;;  %v1330_v52 = vadd.f32 %v1329_v50, %v4141_v38 }
 0x397   : > { %v1484_v53 = vmax.f32 %v1328_v49, 0.0  ;;  %v1546_v55 = vmin.f32 %v1482_v47, 6.0 }
 0x398   : > { %v1485_v54 = vmax.f32 %v1330_v52, 0.0  ;;  %v1547_v4 = vmin.f32 %v1483_v51, 6.0 }
 0x399   : > { %v1548_v62 = vmin.f32 %v1484_v53, 6.0 }
 0x39a   : > { %v1549_v5 = vmin.f32 %v1485_v54, 6.0  ;;  %v1333_v6 = vpop.f32.mrb[40].mxu0 }
 0x39b   : > { %v1611_v7 = vpack.c.bf16 %v1548_v62, %v1546_v55  ;;  %v1334_v8 = vadd.f32 %v1333_v6, %v4137_v34  ;;  %v1335_v9 = vpop.f32.mrb[41].mxu0 }
 0x39c   : > { %v1612_v10 = vpack.c.bf16 %v1549_v5, %v1547_v4  ;;  %v1336_v11 = vadd.f32 %v1335_v9, %v4141_v38  ;;  %v1337_v12 = vpop.f32.mrb[42].mxu0 }
 0x39d   : > { %v1486_v14 = vmax.f32 %v1334_v8, 0.0  ;;  %v1338_v1 = vadd.f32 %v1337_v12, %v4137_v34  ;;  %v1339_v3 = vpop.f32.mrb[43].mxu0 }
 0x39e   : > { %v1487_v15 = vmax.f32 %v1336_v11, 0.0  ;;  %v1340_v27 = vadd.f32 %v1339_v3, %v4141_v38  ;;  %1643 = vmatprep.subr.bf16.mxu1 %v1612_v10 }
 0x39f   : > { %v1488_v21 = vmax.f32 %v1338_v1, 0.0  ;;  %1644 = vmatpush1.bf16.msra.mxu1 %v1611_v7  ;;  %v1550_v23 = vmin.f32 %v1486_v14, 6.0 }
 0x3a0   : > { %v1489_v22 = vmax.f32 %v1340_v27, 0.0  ;;  %v1551_v28 = vmin.f32 %v1487_v15, 6.0 }
 0x3a1   : > { %v1552_v25 = vmin.f32 %v1488_v21, 6.0 }
 0x3a2   : > { %v1553_v29 = vmin.f32 %v1489_v22, 6.0  ;;  %v1343_v30 = vpop.f32.mrb[44].mxu0 }
 0x3a3   : > { %v1613_v31 = vpack.c.bf16 %v1552_v25, %v1550_v23  ;;  %v1344_v32 = vadd.f32 %v1343_v30, %v4137_v34  ;;  %v1345_v33 = vpop.f32.mrb[45].mxu0 }
 0x3a4   : > { %v1614_v36 = vpack.c.bf16 %v1553_v29, %v1551_v28  ;;  %v1346_v41 = vadd.f32 %v1345_v33, %v4141_v38  ;;  %v1347_v42 = vpop.f32.mrb[46].mxu0 }
 0x3a5   : > { %v1490_v59 = vmax.f32 %v1344_v32, 0.0  ;;  %v1348_v43 = vadd.f32 %v1347_v42, %v4137_v34  ;;  %v1349_v44 = vpop.f32.mrb[47].mxu0 }
 0x3a6   : > { %v1491_v46 = vmax.f32 %v1346_v41, 0.0  ;;  %v1350_v47 = vadd.f32 %v1349_v44, %v4141_v38  ;;  %1645 = vmatprep.subr.bf16.mxu1 %v1614_v36 }
 0x3a7   : > { %v1492_v49 = vmax.f32 %v1348_v43, 0.0  ;;  %1646 = vmatpush1.bf16.msra.mxu1 %v1613_v31  ;;  %v1554_v51 = vmin.f32 %v1490_v59, 6.0 }
 0x3a8   : > { %v1493_v50 = vmax.f32 %v1350_v47, 0.0  ;;  %v1555_v53 = vmin.f32 %v1491_v46, 6.0 }
 0x3a9   : > { %v1556_v52 = vmin.f32 %v1492_v49, 6.0 }
 0x3aa   : > { %v1557_v54 = vmin.f32 %v1493_v50, 6.0  ;;  %v1353_v55 = vpop.f32.mrb[48].mxu0 }
 0x3ab   : > { %v1615_v62 = vpack.c.bf16 %v1556_v52, %v1554_v51  ;;  %v1354_v4 = vadd.f32 %v1353_v55, %v4137_v34  ;;  %v1355_v5 = vpop.f32.mrb[49].mxu0 }
 0x3ac   : > { %v1616_v6 = vpack.c.bf16 %v1557_v54, %v1555_v53  ;;  %v1356_v7 = vadd.f32 %v1355_v5, %v4141_v38  ;;  %v1357_v8 = vpop.f32.mrb[50].mxu0 }
 0x3ad   : > { %v1494_v9 = vmax.f32 %v1354_v4, 0.0  ;;  %v1358_v10 = vadd.f32 %v1357_v8, %v4137_v34  ;;  %v1359_v11 = vpop.f32.mrb[51].mxu0 }
 0x3ae   : > { %v1495_v12 = vmax.f32 %v1356_v7, 0.0  ;;  %v1360_v14 = vadd.f32 %v1359_v11, %v4141_v38  ;;  %1647 = vmatprep.subr.bf16.mxu1 %v1616_v6 }
 0x3af   : > { %v1496_v1 = vmax.f32 %v1358_v10, 0.0  ;;  %1648 = vmatpush1.bf16.msra.mxu1 %v1615_v62  ;;  %v1558_v15 = vmin.f32 %v1494_v9, 6.0 }
 0x3b0   : > { %v1497_v3 = vmax.f32 %v1360_v14, 0.0  ;;  %v1559_v21 = vmin.f32 %v1495_v12, 6.0 }
 0x3b1   : > { %v1560_v27 = vmin.f32 %v1496_v1, 6.0 }
 0x3b2   : > { %v1561_v22 = vmin.f32 %v1497_v3, 6.0  ;;  %v1363_v23 = vpop.f32.mrb[52].mxu0 }
 0x3b3   : > { %v1617_v25 = vpack.c.bf16 %v1560_v27, %v1558_v15  ;;  %v1364_v28 = vadd.f32 %v1363_v23, %v4137_v34  ;;  %v1365_v29 = vpop.f32.mrb[53].mxu0 }
 0x3b4   : > { %v1618_v30 = vpack.c.bf16 %v1561_v22, %v1559_v21  ;;  %v1366_v31 = vadd.f32 %v1365_v29, %v4141_v38  ;;  %v1367_v32 = vpop.f32.mrb[54].mxu0 }
 0x3b5   : > { %v1498_v33 = vmax.f32 %v1364_v28, 0.0  ;;  %v1368_v36 = vadd.f32 %v1367_v32, %v4137_v34  ;;  %v1369_v41 = vpop.f32.mrb[55].mxu0 }
 0x3b6   : > { %v1499_v42 = vmax.f32 %v1366_v31, 0.0  ;;  %v1370_v59 = vadd.f32 %v1369_v41, %v4141_v38  ;;  %1649 = vmatprep.subr.bf16.mxu1 %v1618_v30 }
 0x3b7   : > { %v1500_v43 = vmax.f32 %v1368_v36, 0.0  ;;  %1650 = vmatpush1.bf16.msra.mxu1 %v1617_v25  ;;  %v1562_v46 = vmin.f32 %v1498_v33, 6.0 }
 0x3b8   : > { %v1501_v44 = vmax.f32 %v1370_v59, 0.0  ;;  %v1563_v49 = vmin.f32 %v1499_v42, 6.0 }
 0x3b9   : > { %v1564_v47 = vmin.f32 %v1500_v43, 6.0 }
 0x3ba   : > { %v1565_v50 = vmin.f32 %v1501_v44, 6.0  ;;  %v1373_v51 = vpop.f32.mrb[56].mxu0 }
 0x3bb   : > { %v1619_v52 = vpack.c.bf16 %v1564_v47, %v1562_v46  ;;  %v1374_v53 = vadd.f32 %v1373_v51, %v4137_v34  ;;  %v1375_v54 = vpop.f32.mrb[57].mxu0 }
 0x3bc   : > { %v1620_v55 = vpack.c.bf16 %v1565_v50, %v1563_v49  ;;  %v1376_v62 = vadd.f32 %v1375_v54, %v4141_v38  ;;  %v1377_v4 = vpop.f32.mrb[58].mxu0 }
 0x3bd   : > { %v1502_v5 = vmax.f32 %v1374_v53, 0.0  ;;  %v1378_v6 = vadd.f32 %v1377_v4, %v4137_v34  ;;  %v1379_v7 = vpop.f32.mrb[59].mxu0 }
 0x3be   : > { %v1503_v8 = vmax.f32 %v1376_v62, 0.0  ;;  %v1380_v9 = vadd.f32 %v1379_v7, %v4141_v38  ;;  %1651 = vmatprep.subr.bf16.mxu1 %v1620_v55 }
 0x3bf   : > { %v1504_v10 = vmax.f32 %v1378_v6, 0.0  ;;  %1652 = vmatpush1.bf16.msra.mxu1 %v1619_v52  ;;  %v1566_v12 = vmin.f32 %v1502_v5, 6.0 }
 0x3c0   : > { %v1505_v11 = vmax.f32 %v1380_v9, 0.0  ;;  %v1567_v1 = vmin.f32 %v1503_v8, 6.0 }
 0x3c1   : > { %v1568_v14 = vmin.f32 %v1504_v10, 6.0 }
 0x3c2   : > { %v1569_v3 = vmin.f32 %v1505_v11, 6.0  ;;  %v1383_v15 = vpop.f32.mrb[60].mxu0 }
 0x3c3   : > { %v1621_v27 = vpack.c.bf16 %v1568_v14, %v1566_v12  ;;  %v1384_v21 = vadd.f32 %v1383_v15, %v4137_v34  ;;  %v1385_v22 = vpop.f32.mrb[61].mxu0 }
 0x3c4   : > { %v1622_v23 = vpack.c.bf16 %v1569_v3, %v1567_v1  ;;  %v1386_v25 = vadd.f32 %v1385_v22, %v4141_v38  ;;  %v1387_v28 = vpop.f32.mrb[62].mxu0 }
 0x3c5   : > { %v1506_v29 = vmax.f32 %v1384_v21, 0.0  ;;  %v1388_v30 = vadd.f32 %v1387_v28, %v4137_v34  ;;  %v1389_v31 = vpop.f32.mrb[63].mxu0 }
 0x3c6   : > { %v1507_v32 = vmax.f32 %v1386_v25, 0.0  ;;  %v1390_v33 = vadd.f32 %v1389_v31, %v4141_v38  ;;  %1653 = vmatprep.subr.bf16.mxu1 %v1622_v23 }
 0x3c7   : > { %v1508_v36 = vmax.f32 %v1388_v30, 0.0  ;;  %1654 = vmatpush1.bf16.msra.mxu1 %v1621_v27  ;;  %v1570_v42 = vmin.f32 %v1506_v29, 6.0 }
 0x3c8   : > { %v1509_v41 = vmax.f32 %v1390_v33, 0.0  ;;  %v1571_v43 = vmin.f32 %v1507_v32, 6.0 }
 0x3c9   : > { %v1572_v59 = vmin.f32 %v1508_v36, 6.0 }
 0x3ca   : > { %v1573_v44 = vmin.f32 %v1509_v41, 6.0  ;;  %v1393_v46 = vpop.f32.mrb[64].mxu0 }
 0x3cb   : > { %v1623_v47 = vpack.c.bf16 %v1572_v59, %v1570_v42  ;;  %v1394_v49 = vadd.f32 %v1393_v46, %v4137_v34  ;;  %v1395_v50 = vpop.f32.mrb[65].mxu0 }
 0x3cc   : > { %v1624_v51 = vpack.c.bf16 %v1573_v44, %v1571_v43  ;;  %v1396_v52 = vadd.f32 %v1395_v50, %v4141_v38  ;;  %v1397_v53 = vpop.f32.mrb[66].mxu0 }
 0x3cd   : > { %v1510_v54 = vmax.f32 %v1394_v49, 0.0  ;;  %v1398_v55 = vadd.f32 %v1397_v53, %v4137_v34  ;;  %v1399_v62 = vpop.f32.mrb[67].mxu0 }
 0x3ce   : > { %v1511_v4 = vmax.f32 %v1396_v52, 0.0  ;;  %v1400_v5 = vadd.f32 %v1399_v62, %v4141_v38  ;;  %1655 = vmatprep.subr.bf16.mxu1 %v1624_v51 }
 0x3cf   : > { %v1512_v6 = vmax.f32 %v1398_v55, 0.0  ;;  %1656 = vmatpush1.bf16.msra.mxu1 %v1623_v47  ;;  %v1574_v8 = vmin.f32 %v1510_v54, 6.0 }
 0x3d0   : > { %v1513_v7 = vmax.f32 %v1400_v5, 0.0  ;;  %v1575_v10 = vmin.f32 %v1511_v4, 6.0 }
 0x3d1   : > { %v1576_v9 = vmin.f32 %v1512_v6, 6.0 }
 0x3d2   : > { %v1577_v11 = vmin.f32 %v1513_v7, 6.0  ;;  %v1403_v12 = vpop.f32.mrb[68].mxu0 }
 0x3d3   : > { %v1625_v14 = vpack.c.bf16 %v1576_v9, %v1574_v8  ;;  %v1404_v1 = vadd.f32 %v1403_v12, %v4137_v34  ;;  %v1405_v3 = vpop.f32.mrb[69].mxu0 }
 0x3d4   : > { %v1626_v15 = vpack.c.bf16 %v1577_v11, %v1575_v10  ;;  %v1406_v27 = vadd.f32 %v1405_v3, %v4141_v38  ;;  %v1407_v21 = vpop.f32.mrb[70].mxu0 }
 0x3d5   : > { %v1514_v22 = vmax.f32 %v1404_v1, 0.0  ;;  %v1408_v23 = vadd.f32 %v1407_v21, %v4137_v34  ;;  %v1409_v25 = vpop.f32.mrb[71].mxu0 }
 0x3d6   : > { %v1515_v28 = vmax.f32 %v1406_v27, 0.0  ;;  %v1410_v29 = vadd.f32 %v1409_v25, %v4141_v38  ;;  %1657 = vmatprep.subr.bf16.mxu1 %v1626_v15 }
 0x3d7   : > { %v1516_v30 = vmax.f32 %v1408_v23, 0.0  ;;  %1658 = vmatpush1.bf16.msra.mxu1 %v1625_v14  ;;  %v1578_v32 = vmin.f32 %v1514_v22, 6.0 }
 0x3d8   : > { %v1517_v31 = vmax.f32 %v1410_v29, 0.0  ;;  %v1579_v36 = vmin.f32 %v1515_v28, 6.0 }
 0x3d9   : > { %v1580_v33 = vmin.f32 %v1516_v30, 6.0 }
 0x3da   : > { %v1581_v41 = vmin.f32 %v1517_v31, 6.0  ;;  %v1413_v42 = vpop.f32.mrb[72].mxu0 }
 0x3db   : > { %v1627_v59 = vpack.c.bf16 %v1580_v33, %v1578_v32  ;;  %v1414_v43 = vadd.f32 %v1413_v42, %v4137_v34  ;;  %v1415_v44 = vpop.f32.mrb[73].mxu0 }
 0x3dc   : > { %v1628_v46 = vpack.c.bf16 %v1581_v41, %v1579_v36  ;;  %v1416_v47 = vadd.f32 %v1415_v44, %v4141_v38  ;;  %v1417_v49 = vpop.f32.mrb[74].mxu0 }
 0x3dd   : > { %v1518_v50 = vmax.f32 %v1414_v43, 0.0  ;;  %v1418_v51 = vadd.f32 %v1417_v49, %v4137_v34  ;;  %v1419_v52 = vpop.f32.mrb[75].mxu0 }
 0x3de   : > { %v1519_v53 = vmax.f32 %v1416_v47, 0.0  ;;  %v1420_v54 = vadd.f32 %v1419_v52, %v4141_v38  ;;  %1659 = vmatprep.subr.bf16.mxu1 %v1628_v46 }
 0x3df   : > { %v1520_v55 = vmax.f32 %v1418_v51, 0.0  ;;  %1660 = vmatpush1.bf16.msra.mxu1 %v1627_v59  ;;  %v1582_v4 = vmin.f32 %v1518_v50, 6.0 }
 0x3e0   : > { %v1521_v62 = vmax.f32 %v1420_v54, 0.0  ;;  %v1583_v6 = vmin.f32 %v1519_v53, 6.0 }
 0x3e1   : > { %v1584_v5 = vmin.f32 %v1520_v55, 6.0 }
 0x3e2   : > { %v1585_v7 = vmin.f32 %v1521_v62, 6.0  ;;  %v1423_v8 = vpop.f32.mrb[76].mxu0 }
 0x3e3   : > { %v1629_v9 = vpack.c.bf16 %v1584_v5, %v1582_v4  ;;  %v1424_v10 = vadd.f32 %v1423_v8, %v4137_v34  ;;  %v1425_v11 = vpop.f32.mrb[77].mxu0 }
 0x3e4   : > { %v1630_v12 = vpack.c.bf16 %v1585_v7, %v1583_v6  ;;  %v1426_v14 = vadd.f32 %v1425_v11, %v4141_v38  ;;  %v1427_v1 = vpop.f32.mrb[78].mxu0 }
 0x3e5   : > { %v1522_v3 = vmax.f32 %v1424_v10, 0.0  ;;  %v1428_v15 = vadd.f32 %v1427_v1, %v4137_v34  ;;  %v1429_v27 = vpop.f32.mrb[79].mxu0 }
 0x3e6   : > { %v1523_v21 = vmax.f32 %v1426_v14, 0.0  ;;  %v1430_v22 = vadd.f32 %v1429_v27, %v4141_v38  ;;  %1661 = vmatprep.subr.bf16.mxu1 %v1630_v12 }
 0x3e7   : > { %v1524_v23 = vmax.f32 %v1428_v15, 0.0  ;;  %1662 = vmatpush1.bf16.msra.mxu1 %v1629_v9  ;;  %v1586_v28 = vmin.f32 %v1522_v3, 6.0 }
 0x3e8   : > { %v1525_v25 = vmax.f32 %v1430_v22, 0.0  ;;  %v1587_v30 = vmin.f32 %v1523_v21, 6.0 }
 0x3e9   : > { %v1588_v29 = vmin.f32 %v1524_v23, 6.0 }
 0x3ea   : > { %v1589_v31 = vmin.f32 %v1525_v25, 6.0  ;;  %v1433_v32 = vpop.f32.mrb[80].mxu0 }
 0x3eb   : > { %v1631_v33 = vpack.c.bf16 %v1588_v29, %v1586_v28  ;;  %v1434_v36 = vadd.f32 %v1433_v32, %v4137_v34  ;;  %v1435_v41 = vpop.f32.mrb[81].mxu0 }
 0x3ec   : > { %v1632_v42 = vpack.c.bf16 %v1589_v31, %v1587_v30  ;;  %v1436_v59 = vadd.f32 %v1435_v41, %v4141_v38  ;;  %v1437_v43 = vpop.f32.mrb[82].mxu0 }
 0x3ed   : > { %v1526_v44 = vmax.f32 %v1434_v36, 0.0  ;;  %v1438_v46 = vadd.f32 %v1437_v43, %v4137_v34  ;;  %v1439_v47 = vpop.f32.mrb[83].mxu0 }
 0x3ee   : > { %v1527_v49 = vmax.f32 %v1436_v59, 0.0  ;;  %v1440_v50 = vadd.f32 %v1439_v47, %v4141_v38  ;;  %1663 = vmatprep.subr.bf16.mxu1 %v1632_v42 }
 0x3ef   : > { %v1528_v51 = vmax.f32 %v1438_v46, 0.0  ;;  %1664 = vmatpush1.bf16.msra.mxu1 %v1631_v33  ;;  %v1590_v53 = vmin.f32 %v1526_v44, 6.0 }
 0x3f0   : > { %v1529_v52 = vmax.f32 %v1440_v50, 0.0  ;;  %v1591_v55 = vmin.f32 %v1527_v49, 6.0 }
 0x3f1   : > { %v1592_v54 = vmin.f32 %v1528_v51, 6.0 }
 0x3f2   : > { %v1593_v62 = vmin.f32 %v1529_v52, 6.0  ;;  %v1443_v4 = vpop.f32.mrb[84].mxu0 }
 0x3f3   : > { %v1633_v5 = vpack.c.bf16 %v1592_v54, %v1590_v53  ;;  %v1444_v6 = vadd.f32 %v1443_v4, %v4137_v34  ;;  %v1445_v7 = vpop.f32.mrb[85].mxu0 }
 0x3f4   : > { %v1634_v8 = vpack.c.bf16 %v1593_v62, %v1591_v55  ;;  %v1446_v9 = vadd.f32 %v1445_v7, %v4141_v38  ;;  %v1447_v10 = vpop.f32.mrb[86].mxu0 }
 0x3f5   : > { %v1530_v11 = vmax.f32 %v1444_v6, 0.0  ;;  %v1448_v12 = vadd.f32 %v1447_v10, %v4137_v34  ;;  %v1449_v14 = vpop.f32.mrb[87].mxu0 }
 0x3f6   : > { %v1531_v1 = vmax.f32 %v1446_v9, 0.0  ;;  %v1450_v3 = vadd.f32 %v1449_v14, %v4141_v38  ;;  %1665 = vmatprep.subr.bf16.mxu1 %v1634_v8 }
 0x3f7   : > { %v1532_v15 = vmax.f32 %v1448_v12, 0.0  ;;  %1666 = vmatpush1.bf16.msra.mxu1 %v1633_v5  ;;  %v1594_v21 = vmin.f32 %v1530_v11, 6.0 }
 0x3f8   : > { %v1533_v27 = vmax.f32 %v1450_v3, 0.0  ;;  %v1595_v23 = vmin.f32 %v1531_v1, 6.0 }
 0x3f9   : > { %v1596_v22 = vmin.f32 %v1532_v15, 6.0 }
 0x3fa   : > { %v1597_v25 = vmin.f32 %v1533_v27, 6.0  ;;  %v1453_v28 = vpop.f32.mrb[88].mxu0 }
 0x3fb   : > { %v1635_v29 = vpack.c.bf16 %v1596_v22, %v1594_v21  ;;  %v1454_v30 = vadd.f32 %v1453_v28, %v4137_v34  ;;  %v1455_v31 = vpop.f32.mrb[89].mxu0 }
 0x3fc   : > { %v1636_v32 = vpack.c.bf16 %v1597_v25, %v1595_v23  ;;  %v1456_v33 = vadd.f32 %v1455_v31, %v4141_v38  ;;  %v1457_v36 = vpop.f32.mrb[90].mxu0 }
 0x3fd   : > { %v1534_v41 = vmax.f32 %v1454_v30, 0.0  ;;  %v1458_v42 = vadd.f32 %v1457_v36, %v4137_v34  ;;  %v1459_v59 = vpop.f32.mrb[91].mxu0 }
 0x3fe   : > { %v1535_v43 = vmax.f32 %v1456_v33, 0.0  ;;  %v1460_v44 = vadd.f32 %v1459_v59, %v4141_v38  ;;  %1667 = vmatprep.subr.bf16.mxu1 %v1636_v32 }
 0x3ff   : > { %v1536_v46 = vmax.f32 %v1458_v42, 0.0  ;;  %1668 = vmatpush1.bf16.msra.mxu1 %v1635_v29  ;;  %v1598_v49 = vmin.f32 %v1534_v41, 6.0 }
 0x400   : > { %v1537_v47 = vmax.f32 %v1460_v44, 0.0  ;;  %v1599_v51 = vmin.f32 %v1535_v43, 6.0 }
 0x401   : > { %v1600_v50 = vmin.f32 %v1536_v46, 6.0 }
 0x402   : > { %v1601_v52 = vmin.f32 %v1537_v47, 6.0  ;;  %v1463_v53 = vpop.f32.mrb[92].mxu0 }
 0x403   : > { %v1637_v54 = vpack.c.bf16 %v1600_v50, %v1598_v49  ;;  %v1464_v55 = vadd.f32 %v1463_v53, %v4137_v34  ;;  %v1465_v62 = vpop.f32.mrb[93].mxu0 }
 0x404   : > { %v1638_v4 = vpack.c.bf16 %v1601_v52, %v1599_v51  ;;  %v1466_v5 = vadd.f32 %v1465_v62, %v4141_v38  ;;  %v1467_v6 = vpop.f32.mrb[94].mxu0  ;;  %v3489_v51 = vld [vmem:[#allocation7 + $0x14] ss:$40 sps:$4 sm:$0xff]   ;;  %v3487_v52 = vld [vmem:[#allocation7 + $0x10] ss:$40 sps:$4 sm:$0xff]  }
 0x405   : > { %v1538_v7 = vmax.f32 %v1464_v55, 0.0  ;;  %v1468_v8 = vadd.f32 %v1467_v6, %v4137_v34  ;;  %v1469_v9 = vpop.f32.mrb[95].mxu0 }
 0x406   : > { %v1539_v10 = vmax.f32 %v1466_v5, 0.0  ;;  %v1470_v11 = vadd.f32 %v1469_v9, %v4141_v38  ;;  %1669 = vmatprep.subr.bf16.mxu1 %v1638_v4  ;;  %v1708_v4 = vld [vmem:[#allocation8 + $0x4] sm:$0x3] }
 0x407   : > { %v1540_v12 = vmax.f32 %v1468_v8, 0.0  ;;  %1670 = vmatpush1.bf16.msra.mxu1 %v1637_v54  ;;  %v1602_v1 = vmin.f32 %v1538_v7, 6.0  ;;  %v1610_v7 = vld [vmem:[#allocation2 + $0x2] sm:$0x3]  ;;  %v4261_v8 = vrot.slane %v1708_v4, %v3998_v61 }
 0x408   : > { %v1541_v14 = vmax.f32 %v1470_v11, 0.0  ;;  %v1603_v15 = vmin.f32 %v1539_v10, 6.0  ;;  %v4265_v10 = vrot.slane %v1708_v4, %v4001_v0 }
 0x409   : > { %v1604_v3 = vmin.f32 %v1540_v12, 6.0 }
 0x40a   : > { %v1605_v27 = vmin.f32 %v1541_v14, 6.0  ;;  %v1473_v21 = vpop.f32.mrb[96].mxu0 }
 0x40b   : > { %v1639_v22 = vpack.c.bf16 %v1604_v3, %v1602_v1  ;;  %v1474_v23 = vadd.f32 %v1473_v21, %v4137_v34  ;;  %v1475_v25 = vpop.f32.mrb[97].mxu0 }
 0x40c   : > { %v1640_v28 = vpack.c.bf16 %v1605_v27, %v1603_v15  ;;  %v1476_v29 = vadd.f32 %v1475_v25, %v4141_v38  ;;  %v1477_v30 = vpop.f32.mrb[98].mxu0 }
 0x40d   : > { %v1542_v31 = vmax.f32 %v1474_v23, 0.0  ;;  %v1478_v32 = vadd.f32 %v1477_v30, %v4137_v34  ;;  %v1479_v33 = vpop.f32.mrb[99].mxu0  ;;  %v3492_v34 = vld [vmem:[#allocation7 + $0x64] ss:$40 sps:$4 sm:$0xff]  }
 0x40e   : > { %v1543_v36 = vmax.f32 %v1476_v29, 0.0  ;;  %v1480_v41 = vadd.f32 %v1479_v33, %v4141_v38  ;;  %1671 = vmatprep.subr.bf16.mxu1 %v1640_v28  ;;  %v3490_v38 = vld [vmem:[#allocation7 + $0x60] ss:$40 sps:$4 sm:$0xff]  }
 0x40f   : > { %v1544_v42 = vmax.f32 %v1478_v32, 0.0  ;;  %1672 = vmatpush1.bf16.msra.mxu1 %v1639_v22  ;;  %v1606_v43 = vmin.f32 %v1542_v31, 6.0 }
 0x410   : > { %v1545_v59 = vmax.f32 %v1480_v41, 0.0  ;;  %v1607_v46 = vmin.f32 %v1543_v36, 6.0 }
 0x411   : > { %v1608_v44 = vmin.f32 %v1544_v42, 6.0 }
 0x412   : > { %v1609_v47 = vmin.f32 %v1545_v59, 6.0 }
 0x413   : > { %v1641_v49 = vpack.c.bf16 %v1608_v44, %v1606_v43 }
 0x414   : > { %v1642_v50 = vpack.c.bf16 %v1609_v47, %v1607_v46 }
 0x416   : > { %1673 = vmatprep.subr.bf16.mxu1 %v1642_v50 }
 0x417   : > { %1674 = vmatpush1.bf16.msra.mxu1 %v1641_v49 }
 0x418   : > { %1740 = vmatprep.subr.bf16.mxu1 %v3489_v51 }
 0x41a   : > { %1676 = vmatmul.mubr.bf16.vlgmr.msra.gmra.mrb[64].mxu1 %v3663_v19 }
 0x41b   : > { %1741 = vmatpush1.bf16.msra.mxu1 %v3487_v52  ;;  %1772 = vmatprep.mubr.bf16.mxu1 %v3662_v26 }
 0x41c   : > { %1742 = vmatprep.subr.bf16.mxu1 %v3492_v34 }
 0x41f   : > { %1743 = vmatpush1.bf16.msra.mxu1 %v3490_v38 }
 0x422   : > { %3269 = vmatmul.mubr.msk.bf16.vlgmr.msra.gmra.mrb[68].mxu1 %vm785_vm3, %v3890_v48 }
 0x423   : > { %1782 = vmatprep.mubr.bf16.mxu1 %v3662_v26 }
 0x42a   : > { %3270 = vmatmul.mubr.msk.bf16.gmra.mrb[72].mxu1 %vm785_vm3, %v3887_v45 }
 0x42b   : > { %1792 = vmatprep.mubr.bf16.mxu1 %v3662_v26 }
 0x432   : > { %3271 = vmatmul.mubr.msk.bf16.gmra.mrb[76].mxu1 %vm785_vm3, %v3901_v2 }
 0x433   : > { %1802 = vmatprep.mubr.bf16.mxu1 %v3662_v26 }
 0x43a   : > { %3272 = vmatmul.mubr.msk.bf16.gmra.mrb[80].mxu1 %vm785_vm3, %v3898_v63 }
 0x43b   : > { %1812 = vmatprep.mubr.bf16.mxu1 %v3662_v26 }
 0x442   : > { %3273 = vmatmul.mubr.msk.bf16.gmra.mrb[84].mxu1 %vm785_vm3, %v3912_v20 }
 0x443   : > { %1822 = vmatprep.mubr.bf16.mxu1 %v3662_v26 }
 0x44a   : > { %3274 = vmatmul.mubr.msk.bf16.gmra.mrb[88].mxu1 %vm785_vm3, %v3909_v17 }
 0x44b   : > { %1832 = vmatprep.mubr.bf16.mxu1 %v3662_v26 }
 0x452   : > { %3275 = vmatmul.mubr.msk.bf16.gmra.mrb[92].mxu1 %vm785_vm3, %v3923_v40 }
 0x453   : > { %1842 = vmatprep.mubr.bf16.mxu1 %v3662_v26 }
 0x45a   : > { %3276 = vmatmul.mubr.msk.bf16.gmra.mrb[96].mxu1 %vm785_vm3, %v3920_v37 }
 0x45b   : > { %1852 = vmatprep.mubr.bf16.mxu1 %v3662_v26 }
 0x462   : > { %3277 = vmatmul.mubr.msk.bf16.gmra.mrb[100].mxu1 %vm785_vm3, %v3934_v60 }
 0x463   : > { %1862 = vmatprep.mubr.bf16.mxu1 %v3662_v26 }
 0x46a   : > { %3278 = vmatmul.mubr.msk.bf16.gmra.mrb[104].mxu1 %vm785_vm3, %v3931_v57 }
 0x46b   : > { %1872 = vmatprep.mubr.bf16.mxu1 %v3662_v26 }
 0x472   : > { %3279 = vmatmul.mubr.msk.bf16.gmra.mrb[108].mxu1 %vm785_vm3, %v3945_v16 }
 0x473   : > { %1882 = vmatprep.mubr.bf16.mxu1 %v3662_v26 }
 0x47a   : > { %3280 = vmatmul.mubr.msk.bf16.gmra.mrb[112].mxu1 %vm785_vm3, %v3942_v13 }
 0x47b   : > { %1892 = vmatprep.mubr.bf16.mxu1 %v3662_v26 }
 0x482   : > { %3281 = vmatmul.mubr.msk.bf16.gmra.mrb[116].mxu1 %vm785_vm3, %v3956_v39 }
 0x483   : > { %1902 = vmatprep.mubr.bf16.mxu1 %v3662_v26 }
 0x48a   : > { %3282 = vmatmul.mubr.msk.bf16.gmra.mrb[120].mxu1 %vm785_vm3, %v3953_v35 }
 0x48b   : > { %1912 = vmatprep.mubr.bf16.mxu1 %v3662_v26 }
 0x492   : > { %3283 = vmatmul.mubr.msk.bf16.gmra.mrb[124].mxu1 %vm785_vm3, %v3966_v58 }
 0x493   : > { %1922 = vmatprep.mubr.bf16.mxu1 %v3662_v26 }
 0x49a   : > { %3284 = vmatmul.mubr.msk.bf16.gmra.mrb[128].mxu1 %vm785_vm3, %v3964_v56 }
 0x49b   : > { %2577 = vmatprep.mubr.bf16.mxu1 %v3663_v19 }
 0x4ed   : > { %v1677_v53 = vpop.f32.mrb[64].mxu1 }
 0x4ee   : > { %v1679_v54 = vpop.f32.mrb[65].mxu1 }
 0x4ef   : > { %v1686_v55 = vcombine.low %v1677_v53, %v1679_v54  ;;  %v1681_v62 = vpop.f32.mrb[66].mxu1 }
 0x4f0   : > { %v1682_v5 = vpop.f32.mrb[67].mxu1 }
 0x4f1   : > { %v1693_v6 = vrot.slane %v1686_v55, %v4133_v24 }
 0x4f3   : > { %v1700_v9 = vrot.slane %v1693_v6, %v4133_v24 }
 0x4f5   : > { %v1702_v11 = vadd.f32 %v1700_v9, %v1610_v7  ;;  %v1774_v12 = vpop.f32.mrb[68].mxu1 }
 0x4f6   : > { %v1775_v14 = vadd.f32 %v1774_v12, %v4261_v8  ;;  %v1776_v1 = vpop.f32.mrb[69].mxu1 }
 0x4f7   : > { %1703 = vst.msk [vmem:[#allocation2 + $0x2] sm:$0x3] %vm4108_vm4, %v1702_v11  ;;  %v1777_v3 = vadd.f32 %v1776_v1, %v4265_v10  ;;  %v1778_v15 = vpop.f32.mrb[70].mxu1 }
 0x4f8   : > { %v1933_v27 = vmax.f32 %v1775_v14, 0.0  ;;  %v1779_v21 = vadd.f32 %v1778_v15, %v4261_v8  ;;  %v1780_v22 = vpop.f32.mrb[71].mxu1 }
 0x4f9   : > { %v1934_v23 = vmax.f32 %v1777_v3, 0.0  ;;  %v1781_v25 = vadd.f32 %v1780_v22, %v4265_v10 }
 0x4fa   : > { %v1935_v28 = vmax.f32 %v1779_v21, 0.0  ;;  %v1997_v30 = vmin.f32 %v1933_v27, 6.0 }
 0x4fb   : > { %v1936_v29 = vmax.f32 %v1781_v25, 0.0  ;;  %v1998_v32 = vmin.f32 %v1934_v23, 6.0 }
 0x4fc   : > { %v1999_v31 = vmin.f32 %v1935_v28, 6.0 }
 0x4fd   : > { %v2000_v33 = vmin.f32 %v1936_v29, 6.0  ;;  %v1784_v36 = vpop.f32.mrb[72].mxu1 }
 0x4fe   : > { %v2062_v41 = vpack.c.bf16 %v1999_v31, %v1997_v30  ;;  %v1785_v42 = vadd.f32 %v1784_v36, %v4261_v8  ;;  %v1786_v59 = vpop.f32.mrb[73].mxu1 }
 0x4ff   : > { %v2063_v43 = vpack.c.bf16 %v2000_v33, %v1998_v32  ;;  %v1787_v44 = vadd.f32 %v1786_v59, %v4265_v10  ;;  %v1788_v46 = vpop.f32.mrb[74].mxu1 }
 0x500   : > { %v1937_v47 = vmax.f32 %v1785_v42, 0.0  ;;  %v1789_v49 = vadd.f32 %v1788_v46, %v4261_v8  ;;  %v1790_v50 = vpop.f32.mrb[75].mxu1 }
 0x501   : > { %v1938_v51 = vmax.f32 %v1787_v44, 0.0  ;;  %v1791_v52 = vadd.f32 %v1790_v50, %v4265_v10  ;;  %2094 = vmatprep.subr.bf16.mxu0 %v2063_v43 }
 0x502   : > { %v1939_v34 = vmax.f32 %v1789_v49, 0.0  ;;  %2095 = vmatpush1.bf16.msra.mxu0 %v2062_v41  ;;  %v2001_v53 = vmin.f32 %v1937_v47, 6.0 }
 0x503   : > { %v1940_v38 = vmax.f32 %v1791_v52, 0.0  ;;  %v2002_v55 = vmin.f32 %v1938_v51, 6.0 }
 0x504   : > { %v2003_v54 = vmin.f32 %v1939_v34, 6.0 }
 0x505   : > { %v2004_v62 = vmin.f32 %v1940_v38, 6.0  ;;  %v1794_v4 = vpop.f32.mrb[76].mxu1 }
 0x506   : > { %v2064_v5 = vpack.c.bf16 %v2003_v54, %v2001_v53  ;;  %v1795_v6 = vadd.f32 %v1794_v4, %v4261_v8  ;;  %v1796_v7 = vpop.f32.mrb[77].mxu1 }
 0x507   : > { %v2065_v9 = vpack.c.bf16 %v2004_v62, %v2002_v55  ;;  %v1797_v11 = vadd.f32 %v1796_v7, %v4265_v10  ;;  %v1798_v12 = vpop.f32.mrb[78].mxu1 }
 0x508   : > { %v1941_v14 = vmax.f32 %v1795_v6, 0.0  ;;  %v1799_v1 = vadd.f32 %v1798_v12, %v4261_v8  ;;  %v1800_v3 = vpop.f32.mrb[79].mxu1 }
 0x509   : > { %v1942_v15 = vmax.f32 %v1797_v11, 0.0  ;;  %v1801_v27 = vadd.f32 %v1800_v3, %v4265_v10  ;;  %2096 = vmatprep.subr.bf16.mxu0 %v2065_v9 }
 0x50a   : > { %v1943_v21 = vmax.f32 %v1799_v1, 0.0  ;;  %2097 = vmatpush1.bf16.msra.mxu0 %v2064_v5  ;;  %v2005_v23 = vmin.f32 %v1941_v14, 6.0 }
 0x50b   : > { %v1944_v22 = vmax.f32 %v1801_v27, 0.0  ;;  %v2006_v28 = vmin.f32 %v1942_v15, 6.0 }
 0x50c   : > { %v2007_v25 = vmin.f32 %v1943_v21, 6.0 }
 0x50d   : > { %v2008_v29 = vmin.f32 %v1944_v22, 6.0  ;;  %v1804_v30 = vpop.f32.mrb[80].mxu1 }
 0x50e   : > { %v2066_v31 = vpack.c.bf16 %v2007_v25, %v2005_v23  ;;  %v1805_v32 = vadd.f32 %v1804_v30, %v4261_v8  ;;  %v1806_v33 = vpop.f32.mrb[81].mxu1 }
 0x50f   : > { %v2067_v36 = vpack.c.bf16 %v2008_v29, %v2006_v28  ;;  %v1807_v41 = vadd.f32 %v1806_v33, %v4265_v10  ;;  %v1808_v42 = vpop.f32.mrb[82].mxu1 }
 0x510   : > { %v1945_v59 = vmax.f32 %v1805_v32, 0.0  ;;  %v1809_v43 = vadd.f32 %v1808_v42, %v4261_v8  ;;  %v1810_v44 = vpop.f32.mrb[83].mxu1 }
 0x511   : > { %v1946_v46 = vmax.f32 %v1807_v41, 0.0  ;;  %v1811_v47 = vadd.f32 %v1810_v44, %v4265_v10  ;;  %2098 = vmatprep.subr.bf16.mxu0 %v2067_v36 }
 0x512   : > { %v1947_v49 = vmax.f32 %v1809_v43, 0.0  ;;  %2099 = vmatpush1.bf16.msra.mxu0 %v2066_v31  ;;  %v2009_v51 = vmin.f32 %v1945_v59, 6.0 }
 0x513   : > { %v1948_v50 = vmax.f32 %v1811_v47, 0.0  ;;  %v2010_v34 = vmin.f32 %v1946_v46, 6.0 }
 0x514   : > { %v2011_v52 = vmin.f32 %v1947_v49, 6.0 }
 0x515   : > { %v2012_v38 = vmin.f32 %v1948_v50, 6.0  ;;  %v1814_v53 = vpop.f32.mrb[84].mxu1 }
 0x516   : > { %v2068_v54 = vpack.c.bf16 %v2011_v52, %v2009_v51  ;;  %v1815_v55 = vadd.f32 %v1814_v53, %v4261_v8  ;;  %v1816_v62 = vpop.f32.mrb[85].mxu1 }
 0x517   : > { %v2069_v4 = vpack.c.bf16 %v2012_v38, %v2010_v34  ;;  %v1817_v5 = vadd.f32 %v1816_v62, %v4265_v10  ;;  %v1818_v6 = vpop.f32.mrb[86].mxu1 }
 0x518   : > { %v1949_v7 = vmax.f32 %v1815_v55, 0.0  ;;  %v1819_v9 = vadd.f32 %v1818_v6, %v4261_v8  ;;  %v1820_v11 = vpop.f32.mrb[87].mxu1 }
 0x519   : > { %v1950_v12 = vmax.f32 %v1817_v5, 0.0  ;;  %v1821_v14 = vadd.f32 %v1820_v11, %v4265_v10  ;;  %2100 = vmatprep.subr.bf16.mxu0 %v2069_v4 }
 0x51a   : > { %v1951_v1 = vmax.f32 %v1819_v9, 0.0  ;;  %2101 = vmatpush1.bf16.msra.mxu0 %v2068_v54  ;;  %v2013_v15 = vmin.f32 %v1949_v7, 6.0 }
 0x51b   : > { %v1952_v3 = vmax.f32 %v1821_v14, 0.0  ;;  %v2014_v21 = vmin.f32 %v1950_v12, 6.0 }
 0x51c   : > { %v2015_v27 = vmin.f32 %v1951_v1, 6.0 }
 0x51d   : > { %v2016_v22 = vmin.f32 %v1952_v3, 6.0  ;;  %v1824_v23 = vpop.f32.mrb[88].mxu1 }
 0x51e   : > { %v2070_v25 = vpack.c.bf16 %v2015_v27, %v2013_v15  ;;  %v1825_v28 = vadd.f32 %v1824_v23, %v4261_v8  ;;  %v1826_v29 = vpop.f32.mrb[89].mxu1 }
 0x51f   : > { %v2071_v30 = vpack.c.bf16 %v2016_v22, %v2014_v21  ;;  %v1827_v31 = vadd.f32 %v1826_v29, %v4265_v10  ;;  %v1828_v32 = vpop.f32.mrb[90].mxu1 }
 0x520   : > { %v1953_v33 = vmax.f32 %v1825_v28, 0.0  ;;  %v1829_v36 = vadd.f32 %v1828_v32, %v4261_v8  ;;  %v1830_v41 = vpop.f32.mrb[91].mxu1 }
 0x521   : > { %v1954_v42 = vmax.f32 %v1827_v31, 0.0  ;;  %v1831_v59 = vadd.f32 %v1830_v41, %v4265_v10  ;;  %2102 = vmatprep.subr.bf16.mxu0 %v2071_v30 }
 0x522   : > { %v1955_v43 = vmax.f32 %v1829_v36, 0.0  ;;  %2103 = vmatpush1.bf16.msra.mxu0 %v2070_v25  ;;  %v2017_v46 = vmin.f32 %v1953_v33, 6.0 }
 0x523   : > { %v1956_v44 = vmax.f32 %v1831_v59, 0.0  ;;  %v2018_v49 = vmin.f32 %v1954_v42, 6.0 }
 0x524   : > { %v2019_v47 = vmin.f32 %v1955_v43, 6.0 }
 0x525   : > { %v2020_v50 = vmin.f32 %v1956_v44, 6.0  ;;  %v1834_v51 = vpop.f32.mrb[92].mxu1 }
 0x526   : > { %v2072_v52 = vpack.c.bf16 %v2019_v47, %v2017_v46  ;;  %v1835_v34 = vadd.f32 %v1834_v51, %v4261_v8  ;;  %v1836_v38 = vpop.f32.mrb[93].mxu1 }
 0x527   : > { %v2073_v53 = vpack.c.bf16 %v2020_v50, %v2018_v49  ;;  %v1837_v54 = vadd.f32 %v1836_v38, %v4265_v10  ;;  %v1838_v55 = vpop.f32.mrb[94].mxu1 }
 0x528   : > { %v1957_v62 = vmax.f32 %v1835_v34, 0.0  ;;  %v1839_v4 = vadd.f32 %v1838_v55, %v4261_v8  ;;  %v1840_v5 = vpop.f32.mrb[95].mxu1 }
 0x529   : > { %v1958_v6 = vmax.f32 %v1837_v54, 0.0  ;;  %v1841_v7 = vadd.f32 %v1840_v5, %v4265_v10  ;;  %2104 = vmatprep.subr.bf16.mxu0 %v2073_v53 }
 0x52a   : > { %v1959_v9 = vmax.f32 %v1839_v4, 0.0  ;;  %2105 = vmatpush1.bf16.msra.mxu0 %v2072_v52  ;;  %v2021_v12 = vmin.f32 %v1957_v62, 6.0 }
 0x52b   : > { %v1960_v11 = vmax.f32 %v1841_v7, 0.0  ;;  %v2022_v1 = vmin.f32 %v1958_v6, 6.0 }
 0x52c   : > { %v2023_v14 = vmin.f32 %v1959_v9, 6.0 }
 0x52d   : > { %v2024_v3 = vmin.f32 %v1960_v11, 6.0  ;;  %v1844_v15 = vpop.f32.mrb[96].mxu1 }
 0x52e   : > { %v2074_v27 = vpack.c.bf16 %v2023_v14, %v2021_v12  ;;  %v1845_v21 = vadd.f32 %v1844_v15, %v4261_v8  ;;  %v1846_v22 = vpop.f32.mrb[97].mxu1 }
 0x52f   : > { %v2075_v23 = vpack.c.bf16 %v2024_v3, %v2022_v1  ;;  %v1847_v25 = vadd.f32 %v1846_v22, %v4265_v10  ;;  %v1848_v28 = vpop.f32.mrb[98].mxu1 }
 0x530   : > { %v1961_v29 = vmax.f32 %v1845_v21, 0.0  ;;  %v1849_v30 = vadd.f32 %v1848_v28, %v4261_v8  ;;  %v1850_v31 = vpop.f32.mrb[99].mxu1 }
 0x531   : > { %v1962_v32 = vmax.f32 %v1847_v25, 0.0  ;;  %v1851_v33 = vadd.f32 %v1850_v31, %v4265_v10  ;;  %2106 = vmatprep.subr.bf16.mxu0 %v2075_v23 }
 0x532   : > { %v1963_v36 = vmax.f32 %v1849_v30, 0.0  ;;  %2107 = vmatpush1.bf16.msra.mxu0 %v2074_v27  ;;  %v2025_v42 = vmin.f32 %v1961_v29, 6.0 }
 0x533   : > { %v1964_v41 = vmax.f32 %v1851_v33, 0.0  ;;  %v2026_v43 = vmin.f32 %v1962_v32, 6.0 }
 0x534   : > { %v2027_v59 = vmin.f32 %v1963_v36, 6.0 }
 0x535   : > { %v2028_v44 = vmin.f32 %v1964_v41, 6.0  ;;  %v1854_v46 = vpop.f32.mrb[100].mxu1 }
 0x536   : > { %v2076_v47 = vpack.c.bf16 %v2027_v59, %v2025_v42  ;;  %v1855_v49 = vadd.f32 %v1854_v46, %v4261_v8  ;;  %v1856_v50 = vpop.f32.mrb[101].mxu1 }
 0x537   : > { %v2077_v51 = vpack.c.bf16 %v2028_v44, %v2026_v43  ;;  %v1857_v52 = vadd.f32 %v1856_v50, %v4265_v10  ;;  %v1858_v34 = vpop.f32.mrb[102].mxu1 }
 0x538   : > { %v1965_v38 = vmax.f32 %v1855_v49, 0.0  ;;  %v1859_v53 = vadd.f32 %v1858_v34, %v4261_v8  ;;  %v1860_v54 = vpop.f32.mrb[103].mxu1 }
 0x539   : > { %v1966_v55 = vmax.f32 %v1857_v52, 0.0  ;;  %v1861_v62 = vadd.f32 %v1860_v54, %v4265_v10  ;;  %2108 = vmatprep.subr.bf16.mxu0 %v2077_v51 }
 0x53a   : > { %v1967_v4 = vmax.f32 %v1859_v53, 0.0  ;;  %2109 = vmatpush1.bf16.msra.mxu0 %v2076_v47  ;;  %v2029_v6 = vmin.f32 %v1965_v38, 6.0 }
 0x53b   : > { %v1968_v5 = vmax.f32 %v1861_v62, 0.0  ;;  %v2030_v9 = vmin.f32 %v1966_v55, 6.0 }
 0x53c   : > { %v2031_v7 = vmin.f32 %v1967_v4, 6.0 }
 0x53d   : > { %v2032_v11 = vmin.f32 %v1968_v5, 6.0  ;;  %v1864_v12 = vpop.f32.mrb[104].mxu1 }
 0x53e   : > { %v2078_v14 = vpack.c.bf16 %v2031_v7, %v2029_v6  ;;  %v1865_v1 = vadd.f32 %v1864_v12, %v4261_v8  ;;  %v1866_v3 = vpop.f32.mrb[105].mxu1 }
 0x53f   : > { %v2079_v15 = vpack.c.bf16 %v2032_v11, %v2030_v9  ;;  %v1867_v27 = vadd.f32 %v1866_v3, %v4265_v10  ;;  %v1868_v21 = vpop.f32.mrb[106].mxu1 }
 0x540   : > { %v1969_v22 = vmax.f32 %v1865_v1, 0.0  ;;  %v1869_v23 = vadd.f32 %v1868_v21, %v4261_v8  ;;  %v1870_v25 = vpop.f32.mrb[107].mxu1 }
 0x541   : > { %v1970_v28 = vmax.f32 %v1867_v27, 0.0  ;;  %v1871_v29 = vadd.f32 %v1870_v25, %v4265_v10  ;;  %2110 = vmatprep.subr.bf16.mxu0 %v2079_v15 }
 0x542   : > { %v1971_v30 = vmax.f32 %v1869_v23, 0.0  ;;  %2111 = vmatpush1.bf16.msra.mxu0 %v2078_v14  ;;  %v2033_v32 = vmin.f32 %v1969_v22, 6.0 }
 0x543   : > { %v1972_v31 = vmax.f32 %v1871_v29, 0.0  ;;  %v2034_v36 = vmin.f32 %v1970_v28, 6.0 }
 0x544   : > { %v2035_v33 = vmin.f32 %v1971_v30, 6.0 }
 0x545   : > { %v2036_v41 = vmin.f32 %v1972_v31, 6.0  ;;  %v1874_v42 = vpop.f32.mrb[108].mxu1 }
 0x546   : > { %v2080_v59 = vpack.c.bf16 %v2035_v33, %v2033_v32  ;;  %v1875_v43 = vadd.f32 %v1874_v42, %v4261_v8  ;;  %v1876_v44 = vpop.f32.mrb[109].mxu1 }
 0x547   : > { %v2081_v46 = vpack.c.bf16 %v2036_v41, %v2034_v36  ;;  %v1877_v47 = vadd.f32 %v1876_v44, %v4265_v10  ;;  %v1878_v49 = vpop.f32.mrb[110].mxu1 }
 0x548   : > { %v1973_v50 = vmax.f32 %v1875_v43, 0.0  ;;  %v1879_v51 = vadd.f32 %v1878_v49, %v4261_v8  ;;  %v1880_v52 = vpop.f32.mrb[111].mxu1 }
 0x549   : > { %v1974_v34 = vmax.f32 %v1877_v47, 0.0  ;;  %v1881_v38 = vadd.f32 %v1880_v52, %v4265_v10  ;;  %2112 = vmatprep.subr.bf16.mxu0 %v2081_v46 }
 0x54a   : > { %v1975_v53 = vmax.f32 %v1879_v51, 0.0  ;;  %2113 = vmatpush1.bf16.msra.mxu0 %v2080_v59  ;;  %v2037_v55 = vmin.f32 %v1973_v50, 6.0 }
 0x54b   : > { %v1976_v54 = vmax.f32 %v1881_v38, 0.0  ;;  %v2038_v4 = vmin.f32 %v1974_v34, 6.0 }
 0x54c   : > { %v2039_v62 = vmin.f32 %v1975_v53, 6.0 }
 0x54d   : > { %v2040_v5 = vmin.f32 %v1976_v54, 6.0  ;;  %v1884_v6 = vpop.f32.mrb[112].mxu1 }
 0x54e   : > { %v2082_v7 = vpack.c.bf16 %v2039_v62, %v2037_v55  ;;  %v1885_v9 = vadd.f32 %v1884_v6, %v4261_v8  ;;  %v1886_v11 = vpop.f32.mrb[113].mxu1 }
 0x54f   : > { %v2083_v12 = vpack.c.bf16 %v2040_v5, %v2038_v4  ;;  %v1887_v14 = vadd.f32 %v1886_v11, %v4265_v10  ;;  %v1888_v1 = vpop.f32.mrb[114].mxu1 }
 0x550   : > { %v1977_v3 = vmax.f32 %v1885_v9, 0.0  ;;  %v1889_v15 = vadd.f32 %v1888_v1, %v4261_v8  ;;  %v1890_v27 = vpop.f32.mrb[115].mxu1 }
 0x551   : > { %v1978_v21 = vmax.f32 %v1887_v14, 0.0  ;;  %v1891_v22 = vadd.f32 %v1890_v27, %v4265_v10  ;;  %2114 = vmatprep.subr.bf16.mxu0 %v2083_v12 }
 0x552   : > { %v1979_v23 = vmax.f32 %v1889_v15, 0.0  ;;  %2115 = vmatpush1.bf16.msra.mxu0 %v2082_v7  ;;  %v2041_v28 = vmin.f32 %v1977_v3, 6.0 }
 0x553   : > { %v1980_v25 = vmax.f32 %v1891_v22, 0.0  ;;  %v2042_v30 = vmin.f32 %v1978_v21, 6.0 }
 0x554   : > { %v2043_v29 = vmin.f32 %v1979_v23, 6.0 }
 0x555   : > { %v2044_v31 = vmin.f32 %v1980_v25, 6.0  ;;  %v1894_v32 = vpop.f32.mrb[116].mxu1 }
 0x556   : > { %v2084_v33 = vpack.c.bf16 %v2043_v29, %v2041_v28  ;;  %v1895_v36 = vadd.f32 %v1894_v32, %v4261_v8  ;;  %v1896_v41 = vpop.f32.mrb[117].mxu1 }
 0x557   : > { %v2085_v42 = vpack.c.bf16 %v2044_v31, %v2042_v30  ;;  %v1897_v59 = vadd.f32 %v1896_v41, %v4265_v10  ;;  %v1898_v43 = vpop.f32.mrb[118].mxu1 }
 0x558   : > { %v1981_v44 = vmax.f32 %v1895_v36, 0.0  ;;  %v1899_v46 = vadd.f32 %v1898_v43, %v4261_v8  ;;  %v1900_v47 = vpop.f32.mrb[119].mxu1 }
 0x559   : > { %v1982_v49 = vmax.f32 %v1897_v59, 0.0  ;;  %v1901_v50 = vadd.f32 %v1900_v47, %v4265_v10  ;;  %2116 = vmatprep.subr.bf16.mxu0 %v2085_v42 }
 0x55a   : > { %v1983_v51 = vmax.f32 %v1899_v46, 0.0  ;;  %2117 = vmatpush1.bf16.msra.mxu0 %v2084_v33  ;;  %v2045_v34 = vmin.f32 %v1981_v44, 6.0 }
 0x55b   : > { %v1984_v52 = vmax.f32 %v1901_v50, 0.0  ;;  %v2046_v53 = vmin.f32 %v1982_v49, 6.0 }
 0x55c   : > { %v2047_v38 = vmin.f32 %v1983_v51, 6.0 }
 0x55d   : > { %v2048_v54 = vmin.f32 %v1984_v52, 6.0  ;;  %v1904_v55 = vpop.f32.mrb[120].mxu1 }
 0x55e   : > { %v2086_v62 = vpack.c.bf16 %v2047_v38, %v2045_v34  ;;  %v1905_v4 = vadd.f32 %v1904_v55, %v4261_v8  ;;  %v1906_v5 = vpop.f32.mrb[121].mxu1 }
 0x55f   : > { %v2087_v6 = vpack.c.bf16 %v2048_v54, %v2046_v53  ;;  %v1907_v7 = vadd.f32 %v1906_v5, %v4265_v10  ;;  %v1908_v9 = vpop.f32.mrb[122].mxu1 }
 0x560   : > { %v1985_v11 = vmax.f32 %v1905_v4, 0.0  ;;  %v1909_v12 = vadd.f32 %v1908_v9, %v4261_v8  ;;  %v1910_v14 = vpop.f32.mrb[123].mxu1 }
 0x561   : > { %v1986_v1 = vmax.f32 %v1907_v7, 0.0  ;;  %v1911_v3 = vadd.f32 %v1910_v14, %v4265_v10  ;;  %2118 = vmatprep.subr.bf16.mxu0 %v2087_v6 }
 0x562   : > { %v1987_v15 = vmax.f32 %v1909_v12, 0.0  ;;  %2119 = vmatpush1.bf16.msra.mxu0 %v2086_v62  ;;  %v2049_v21 = vmin.f32 %v1985_v11, 6.0 }
 0x563   : > { %v1988_v27 = vmax.f32 %v1911_v3, 0.0  ;;  %v2050_v23 = vmin.f32 %v1986_v1, 6.0 }
 0x564   : > { %v2051_v22 = vmin.f32 %v1987_v15, 6.0 }
 0x565   : > { %v2052_v25 = vmin.f32 %v1988_v27, 6.0  ;;  %v1914_v28 = vpop.f32.mrb[124].mxu1 }
 0x566   : > { %v2088_v29 = vpack.c.bf16 %v2051_v22, %v2049_v21  ;;  %v1915_v30 = vadd.f32 %v1914_v28, %v4261_v8  ;;  %v1916_v31 = vpop.f32.mrb[125].mxu1 }
 0x567   : > { %v2089_v32 = vpack.c.bf16 %v2052_v25, %v2050_v23  ;;  %v1917_v33 = vadd.f32 %v1916_v31, %v4265_v10  ;;  %v1918_v36 = vpop.f32.mrb[126].mxu1  ;;  %v3495_v23 = vld [vmem:[#allocation7 + $0x1c] ss:$40 sps:$4 sm:$0xff]   ;;  %v3493_v25 = vld [vmem:[#allocation7 + $0x18] ss:$40 sps:$4 sm:$0xff]  }
 0x568   : > { %v1989_v41 = vmax.f32 %v1915_v30, 0.0  ;;  %v1919_v42 = vadd.f32 %v1918_v36, %v4261_v8  ;;  %v1920_v59 = vpop.f32.mrb[127].mxu1 }
 0x569   : > { %v1990_v43 = vmax.f32 %v1917_v33, 0.0  ;;  %v1921_v44 = vadd.f32 %v1920_v59, %v4265_v10  ;;  %2120 = vmatprep.subr.bf16.mxu0 %v2089_v32  ;;  %v2159_v32 = vld [vmem:[#allocation8 + $0x6] sm:$0x3] }
 0x56a   : > { %v1991_v46 = vmax.f32 %v1919_v42, 0.0  ;;  %2121 = vmatpush1.bf16.msra.mxu0 %v2088_v29  ;;  %v2053_v49 = vmin.f32 %v1989_v41, 6.0  ;;  %v2061_v41 = vld [vmem:[#allocation2 + $0x4] sm:$0x3]  ;;  %v4385_v42 = vrot.slane %v2159_v32, %v3998_v61 }
 0x56b   : > { %v1992_v47 = vmax.f32 %v1921_v44, 0.0  ;;  %v2054_v51 = vmin.f32 %v1990_v43, 6.0  ;;  %v4389_v43 = vrot.slane %v2159_v32, %v4001_v0 }
 0x56c   : > { %v2055_v50 = vmin.f32 %v1991_v46, 6.0 }
 0x56d   : > { %v2056_v52 = vmin.f32 %v1992_v47, 6.0  ;;  %v1924_v34 = vpop.f32.mrb[128].mxu1 }
 0x56e   : > { %v2090_v38 = vpack.c.bf16 %v2055_v50, %v2053_v49  ;;  %v1925_v53 = vadd.f32 %v1924_v34, %v4261_v8  ;;  %v1926_v54 = vpop.f32.mrb[129].mxu1 }
 0x56f   : > { %v2091_v55 = vpack.c.bf16 %v2056_v52, %v2054_v51  ;;  %v1927_v62 = vadd.f32 %v1926_v54, %v4265_v10  ;;  %v1928_v4 = vpop.f32.mrb[130].mxu1 }
 0x570   : > { %v1993_v5 = vmax.f32 %v1925_v53, 0.0  ;;  %v1929_v6 = vadd.f32 %v1928_v4, %v4261_v8  ;;  %v1930_v7 = vpop.f32.mrb[131].mxu1  ;;  %v3498_v8 = vld [vmem:[#allocation7 + $0x6c] ss:$40 sps:$4 sm:$0xff]  }
 0x571   : > { %v1994_v9 = vmax.f32 %v1927_v62, 0.0  ;;  %v1931_v11 = vadd.f32 %v1930_v7, %v4265_v10  ;;  %2122 = vmatprep.subr.bf16.mxu0 %v2091_v55  ;;  %v3496_v10 = vld [vmem:[#allocation7 + $0x68] ss:$40 sps:$4 sm:$0xff]  }
 0x572   : > { %v1995_v12 = vmax.f32 %v1929_v6, 0.0  ;;  %2123 = vmatpush1.bf16.msra.mxu0 %v2090_v38  ;;  %v2057_v1 = vmin.f32 %v1993_v5, 6.0 }
 0x573   : > { %v1996_v14 = vmax.f32 %v1931_v11, 0.0  ;;  %v2058_v15 = vmin.f32 %v1994_v9, 6.0 }
 0x574   : > { %v2059_v3 = vmin.f32 %v1995_v12, 6.0 }
 0x575   : > { %v2060_v27 = vmin.f32 %v1996_v14, 6.0 }
 0x576   : > { %v2092_v21 = vpack.c.bf16 %v2059_v3, %v2057_v1 }
 0x577   : > { %v2093_v22 = vpack.c.bf16 %v2060_v27, %v2058_v15 }
 0x579   : > { %2124 = vmatprep.subr.bf16.mxu0 %v2093_v22 }
 0x57a   : > { %2125 = vmatpush1.bf16.msra.mxu0 %v2092_v21 }
 0x57b   : > { %2191 = vmatprep.subr.bf16.mxu0 %v3495_v23 }
 0x57d   : > { %2127 = vmatmul.mubr.bf16.vlgmr.msra.gmra.mrb[100].mxu0 %v3663_v19 }
 0x57e   : > { %2192 = vmatpush1.bf16.msra.mxu0 %v3493_v25  ;;  %2223 = vmatprep.mubr.bf16.mxu0 %v3662_v26 }
 0x57f   : > { %2193 = vmatprep.subr.bf16.mxu0 %v3498_v8 }
 0x582   : > { %2194 = vmatpush1.bf16.msra.mxu0 %v3496_v10 }
 0x585   : > { %3289 = vmatmul.mubr.msk.bf16.vlgmr.msra.gmra.mrb[104].mxu0 %vm785_vm3, %v3890_v48 }
 0x586   : > { %2233 = vmatprep.mubr.bf16.mxu0 %v3662_v26 }
 0x58d   : > { %3290 = vmatmul.mubr.msk.bf16.gmra.mrb[108].mxu0 %vm785_vm3, %v3887_v45 }
 0x58e   : > { %2243 = vmatprep.mubr.bf16.mxu0 %v3662_v26 }
 0x595   : > { %3291 = vmatmul.mubr.msk.bf16.gmra.mrb[112].mxu0 %vm785_vm3, %v3901_v2 }
 0x596   : > { %2253 = vmatprep.mubr.bf16.mxu0 %v3662_v26 }
 0x59d   : > { %3292 = vmatmul.mubr.msk.bf16.gmra.mrb[116].mxu0 %vm785_vm3, %v3898_v63 }
 0x59e   : > { %2263 = vmatprep.mubr.bf16.mxu0 %v3662_v26 }
 0x5a5   : > { %3293 = vmatmul.mubr.msk.bf16.gmra.mrb[120].mxu0 %vm785_vm3, %v3912_v20 }
 0x5a6   : > { %2273 = vmatprep.mubr.bf16.mxu0 %v3662_v26 }
 0x5ad   : > { %3294 = vmatmul.mubr.msk.bf16.gmra.mrb[124].mxu0 %vm785_vm3, %v3909_v17 }
 0x5ae   : > { %2283 = vmatprep.mubr.bf16.mxu0 %v3662_v26 }
 0x5b5   : > { %3295 = vmatmul.mubr.msk.bf16.gmra.mrb[128].mxu0 %vm785_vm3, %v3923_v40 }
 0x5b6   : > { %2293 = vmatprep.mubr.bf16.mxu0 %v3662_v26 }
 0x5bd   : > { %3296 = vmatmul.mubr.msk.bf16.gmra.mrb[132].mxu0 %vm785_vm3, %v3920_v37 }
 0x5be   : > { %2303 = vmatprep.mubr.bf16.mxu0 %v3662_v26 }
 0x5c5   : > { %3297 = vmatmul.mubr.msk.bf16.gmra.mrb[136].mxu0 %vm785_vm3, %v3934_v60 }
 0x5c6   : > { %2313 = vmatprep.mubr.bf16.mxu0 %v3662_v26 }
 0x5cd   : > { %3298 = vmatmul.mubr.msk.bf16.gmra.mrb[140].mxu0 %vm785_vm3, %v3931_v57 }
 0x5ce   : > { %2323 = vmatprep.mubr.bf16.mxu0 %v3662_v26 }
 0x5d5   : > { %3299 = vmatmul.mubr.msk.bf16.gmra.mrb[144].mxu0 %vm785_vm3, %v3945_v16 }
 0x5d6   : > { %2333 = vmatprep.mubr.bf16.mxu0 %v3662_v26 }
 0x5dd   : > { %3300 = vmatmul.mubr.msk.bf16.gmra.mrb[148].mxu0 %vm785_vm3, %v3942_v13 }
 0x5de   : > { %2343 = vmatprep.mubr.bf16.mxu0 %v3662_v26 }
 0x5e5   : > { %3301 = vmatmul.mubr.msk.bf16.gmra.mrb[152].mxu0 %vm785_vm3, %v3956_v39 }
 0x5e6   : > { %2353 = vmatprep.mubr.bf16.mxu0 %v3662_v26 }
 0x5ed   : > { %3302 = vmatmul.mubr.msk.bf16.gmra.mrb[156].mxu0 %vm785_vm3, %v3953_v35 }
 0x5ee   : > { %2363 = vmatprep.mubr.bf16.mxu0 %v3662_v26 }
 0x5f5   : > { %3303 = vmatmul.mubr.msk.bf16.gmra.mrb[160].mxu0 %vm785_vm3, %v3966_v58 }
 0x5f6   : > { %2373 = vmatprep.mubr.bf16.mxu0 %v3662_v26 }
 0x5fd   : > { %3304 = vmatmul.mubr.msk.bf16.gmra.mrb[164].mxu0 %vm785_vm3, %v3964_v56 }
 0x5fe   : > { %3028 = vmatprep.mubr.bf16.mxu0 %v3663_v19 }
 0x650   : > { %v2128_v28 = vpop.f32.mrb[100].mxu0 }
 0x651   : > { %v2130_v29 = vpop.f32.mrb[101].mxu0 }
 0x652   : > { %v2137_v30 = vcombine.low %v2128_v28, %v2130_v29  ;;  %v2132_v31 = vpop.f32.mrb[102].mxu0 }
 0x653   : > { %v2133_v33 = vpop.f32.mrb[103].mxu0 }
 0x654   : > { %v2144_v36 = vrot.slane %v2137_v30, %v4133_v24 }
 0x656   : > { %v2151_v59 = vrot.slane %v2144_v36, %v4133_v24 }
 0x658   : > { %v2153_v44 = vadd.f32 %v2151_v59, %v2061_v41  ;;  %v2225_v46 = vpop.f32.mrb[104].mxu0 }
 0x659   : > { %v2226_v47 = vadd.f32 %v2225_v46, %v4385_v42  ;;  %v2227_v49 = vpop.f32.mrb[105].mxu0 }
 0x65a   : > { %2154 = vst.msk [vmem:[#allocation2 + $0x4] sm:$0x3] %vm4108_vm4, %v2153_v44  ;;  %v2228_v50 = vadd.f32 %v2227_v49, %v4389_v43  ;;  %v2229_v51 = vpop.f32.mrb[106].mxu0 }
 0x65b   : > { %v2384_v52 = vmax.f32 %v2226_v47, 0.0  ;;  %v2230_v34 = vadd.f32 %v2229_v51, %v4385_v42  ;;  %v2231_v38 = vpop.f32.mrb[107].mxu0 }
 0x65c   : > { %v2385_v53 = vmax.f32 %v2228_v50, 0.0  ;;  %v2232_v54 = vadd.f32 %v2231_v38, %v4389_v43 }
 0x65d   : > { %v2386_v55 = vmax.f32 %v2230_v34, 0.0  ;;  %v2448_v4 = vmin.f32 %v2384_v52, 6.0 }
 0x65e   : > { %v2387_v62 = vmax.f32 %v2232_v54, 0.0  ;;  %v2449_v6 = vmin.f32 %v2385_v53, 6.0 }
 0x65f   : > { %v2450_v5 = vmin.f32 %v2386_v55, 6.0 }
 0x660   : > { %v2451_v7 = vmin.f32 %v2387_v62, 6.0  ;;  %v2235_v9 = vpop.f32.mrb[108].mxu0 }
 0x661   : > { %v2513_v11 = vpack.c.bf16 %v2450_v5, %v2448_v4  ;;  %v2236_v12 = vadd.f32 %v2235_v9, %v4385_v42  ;;  %v2237_v14 = vpop.f32.mrb[109].mxu0 }
 0x662   : > { %v2514_v1 = vpack.c.bf16 %v2451_v7, %v2449_v6  ;;  %v2238_v3 = vadd.f32 %v2237_v14, %v4389_v43  ;;  %v2239_v15 = vpop.f32.mrb[110].mxu0 }
 0x663   : > { %v2388_v27 = vmax.f32 %v2236_v12, 0.0  ;;  %v2240_v21 = vadd.f32 %v2239_v15, %v4385_v42  ;;  %v2241_v22 = vpop.f32.mrb[111].mxu0 }
 0x664   : > { %v2389_v23 = vmax.f32 %v2238_v3, 0.0  ;;  %v2242_v25 = vadd.f32 %v2241_v22, %v4389_v43  ;;  %2545 = vmatprep.subr.bf16.mxu1 %v2514_v1 }
 0x665   : > { %v2390_v8 = vmax.f32 %v2240_v21, 0.0  ;;  %2546 = vmatpush1.bf16.msra.mxu1 %v2513_v11  ;;  %v2452_v28 = vmin.f32 %v2388_v27, 6.0 }
 0x666   : > { %v2391_v10 = vmax.f32 %v2242_v25, 0.0  ;;  %v2453_v30 = vmin.f32 %v2389_v23, 6.0 }
 0x667   : > { %v2454_v29 = vmin.f32 %v2390_v8, 6.0 }
 0x668   : > { %v2455_v31 = vmin.f32 %v2391_v10, 6.0  ;;  %v2245_v32 = vpop.f32.mrb[112].mxu0 }
 0x669   : > { %v2515_v33 = vpack.c.bf16 %v2454_v29, %v2452_v28  ;;  %v2246_v36 = vadd.f32 %v2245_v32, %v4385_v42  ;;  %v2247_v41 = vpop.f32.mrb[113].mxu0 }
 0x66a   : > { %v2516_v59 = vpack.c.bf16 %v2455_v31, %v2453_v30  ;;  %v2248_v44 = vadd.f32 %v2247_v41, %v4389_v43  ;;  %v2249_v46 = vpop.f32.mrb[114].mxu0 }
 0x66b   : > { %v2392_v47 = vmax.f32 %v2246_v36, 0.0  ;;  %v2250_v49 = vadd.f32 %v2249_v46, %v4385_v42  ;;  %v2251_v50 = vpop.f32.mrb[115].mxu0 }
 0x66c   : > { %v2393_v51 = vmax.f32 %v2248_v44, 0.0  ;;  %v2252_v52 = vadd.f32 %v2251_v50, %v4389_v43  ;;  %2547 = vmatprep.subr.bf16.mxu1 %v2516_v59 }
 0x66d   : > { %v2394_v34 = vmax.f32 %v2250_v49, 0.0  ;;  %2548 = vmatpush1.bf16.msra.mxu1 %v2515_v33  ;;  %v2456_v53 = vmin.f32 %v2392_v47, 6.0 }
 0x66e   : > { %v2395_v38 = vmax.f32 %v2252_v52, 0.0  ;;  %v2457_v55 = vmin.f32 %v2393_v51, 6.0 }
 0x66f   : > { %v2458_v54 = vmin.f32 %v2394_v34, 6.0 }
 0x670   : > { %v2459_v62 = vmin.f32 %v2395_v38, 6.0  ;;  %v2255_v4 = vpop.f32.mrb[116].mxu0 }
 0x671   : > { %v2517_v5 = vpack.c.bf16 %v2458_v54, %v2456_v53  ;;  %v2256_v6 = vadd.f32 %v2255_v4, %v4385_v42  ;;  %v2257_v7 = vpop.f32.mrb[117].mxu0 }
 0x672   : > { %v2518_v9 = vpack.c.bf16 %v2459_v62, %v2457_v55  ;;  %v2258_v11 = vadd.f32 %v2257_v7, %v4389_v43  ;;  %v2259_v12 = vpop.f32.mrb[118].mxu0 }
 0x673   : > { %v2396_v14 = vmax.f32 %v2256_v6, 0.0  ;;  %v2260_v1 = vadd.f32 %v2259_v12, %v4385_v42  ;;  %v2261_v3 = vpop.f32.mrb[119].mxu0 }
 0x674   : > { %v2397_v15 = vmax.f32 %v2258_v11, 0.0  ;;  %v2262_v27 = vadd.f32 %v2261_v3, %v4389_v43  ;;  %2549 = vmatprep.subr.bf16.mxu1 %v2518_v9 }
 0x675   : > { %v2398_v21 = vmax.f32 %v2260_v1, 0.0  ;;  %2550 = vmatpush1.bf16.msra.mxu1 %v2517_v5  ;;  %v2460_v23 = vmin.f32 %v2396_v14, 6.0 }
 0x676   : > { %v2399_v22 = vmax.f32 %v2262_v27, 0.0  ;;  %v2461_v8 = vmin.f32 %v2397_v15, 6.0 }
 0x677   : > { %v2462_v25 = vmin.f32 %v2398_v21, 6.0 }
 0x678   : > { %v2463_v10 = vmin.f32 %v2399_v22, 6.0  ;;  %v2265_v28 = vpop.f32.mrb[120].mxu0 }
 0x679   : > { %v2519_v29 = vpack.c.bf16 %v2462_v25, %v2460_v23  ;;  %v2266_v30 = vadd.f32 %v2265_v28, %v4385_v42  ;;  %v2267_v31 = vpop.f32.mrb[121].mxu0 }
 0x67a   : > { %v2520_v32 = vpack.c.bf16 %v2463_v10, %v2461_v8  ;;  %v2268_v33 = vadd.f32 %v2267_v31, %v4389_v43  ;;  %v2269_v36 = vpop.f32.mrb[122].mxu0 }
 0x67b   : > { %v2400_v41 = vmax.f32 %v2266_v30, 0.0  ;;  %v2270_v59 = vadd.f32 %v2269_v36, %v4385_v42  ;;  %v2271_v44 = vpop.f32.mrb[123].mxu0 }
 0x67c   : > { %v2401_v46 = vmax.f32 %v2268_v33, 0.0  ;;  %v2272_v47 = vadd.f32 %v2271_v44, %v4389_v43  ;;  %2551 = vmatprep.subr.bf16.mxu1 %v2520_v32 }
 0x67d   : > { %v2402_v49 = vmax.f32 %v2270_v59, 0.0  ;;  %2552 = vmatpush1.bf16.msra.mxu1 %v2519_v29  ;;  %v2464_v51 = vmin.f32 %v2400_v41, 6.0 }
 0x67e   : > { %v2403_v50 = vmax.f32 %v2272_v47, 0.0  ;;  %v2465_v34 = vmin.f32 %v2401_v46, 6.0 }
 0x67f   : > { %v2466_v52 = vmin.f32 %v2402_v49, 6.0 }
 0x680   : > { %v2467_v38 = vmin.f32 %v2403_v50, 6.0  ;;  %v2275_v53 = vpop.f32.mrb[124].mxu0 }
 0x681   : > { %v2521_v54 = vpack.c.bf16 %v2466_v52, %v2464_v51  ;;  %v2276_v55 = vadd.f32 %v2275_v53, %v4385_v42  ;;  %v2277_v62 = vpop.f32.mrb[125].mxu0 }
 0x682   : > { %v2522_v4 = vpack.c.bf16 %v2467_v38, %v2465_v34  ;;  %v2278_v5 = vadd.f32 %v2277_v62, %v4389_v43  ;;  %v2279_v6 = vpop.f32.mrb[126].mxu0 }
 0x683   : > { %v2404_v7 = vmax.f32 %v2276_v55, 0.0  ;;  %v2280_v9 = vadd.f32 %v2279_v6, %v4385_v42  ;;  %v2281_v11 = vpop.f32.mrb[127].mxu0 }
 0x684   : > { %v2405_v12 = vmax.f32 %v2278_v5, 0.0  ;;  %v2282_v14 = vadd.f32 %v2281_v11, %v4389_v43  ;;  %2553 = vmatprep.subr.bf16.mxu1 %v2522_v4 }
 0x685   : > { %v2406_v1 = vmax.f32 %v2280_v9, 0.0  ;;  %2554 = vmatpush1.bf16.msra.mxu1 %v2521_v54  ;;  %v2468_v15 = vmin.f32 %v2404_v7, 6.0 }
 0x686   : > { %v2407_v3 = vmax.f32 %v2282_v14, 0.0  ;;  %v2469_v21 = vmin.f32 %v2405_v12, 6.0 }
 0x687   : > { %v2470_v27 = vmin.f32 %v2406_v1, 6.0 }
 0x688   : > { %v2471_v22 = vmin.f32 %v2407_v3, 6.0  ;;  %v2285_v23 = vpop.f32.mrb[128].mxu0 }
 0x689   : > { %v2523_v25 = vpack.c.bf16 %v2470_v27, %v2468_v15  ;;  %v2286_v8 = vadd.f32 %v2285_v23, %v4385_v42  ;;  %v2287_v10 = vpop.f32.mrb[129].mxu0 }
 0x68a   : > { %v2524_v28 = vpack.c.bf16 %v2471_v22, %v2469_v21  ;;  %v2288_v29 = vadd.f32 %v2287_v10, %v4389_v43  ;;  %v2289_v30 = vpop.f32.mrb[130].mxu0 }
 0x68b   : > { %v2408_v31 = vmax.f32 %v2286_v8, 0.0  ;;  %v2290_v32 = vadd.f32 %v2289_v30, %v4385_v42  ;;  %v2291_v33 = vpop.f32.mrb[131].mxu0 }
 0x68c   : > { %v2409_v36 = vmax.f32 %v2288_v29, 0.0  ;;  %v2292_v41 = vadd.f32 %v2291_v33, %v4389_v43  ;;  %2555 = vmatprep.subr.bf16.mxu1 %v2524_v28 }
 0x68d   : > { %v2410_v59 = vmax.f32 %v2290_v32, 0.0  ;;  %2556 = vmatpush1.bf16.msra.mxu1 %v2523_v25  ;;  %v2472_v46 = vmin.f32 %v2408_v31, 6.0 }
 0x68e   : > { %v2411_v44 = vmax.f32 %v2292_v41, 0.0  ;;  %v2473_v49 = vmin.f32 %v2409_v36, 6.0 }
 0x68f   : > { %v2474_v47 = vmin.f32 %v2410_v59, 6.0 }
 0x690   : > { %v2475_v50 = vmin.f32 %v2411_v44, 6.0  ;;  %v2295_v51 = vpop.f32.mrb[132].mxu0 }
 0x691   : > { %v2525_v52 = vpack.c.bf16 %v2474_v47, %v2472_v46  ;;  %v2296_v34 = vadd.f32 %v2295_v51, %v4385_v42  ;;  %v2297_v38 = vpop.f32.mrb[133].mxu0 }
 0x692   : > { %v2526_v53 = vpack.c.bf16 %v2475_v50, %v2473_v49  ;;  %v2298_v54 = vadd.f32 %v2297_v38, %v4389_v43  ;;  %v2299_v55 = vpop.f32.mrb[134].mxu0 }
 0x693   : > { %v2412_v62 = vmax.f32 %v2296_v34, 0.0  ;;  %v2300_v4 = vadd.f32 %v2299_v55, %v4385_v42  ;;  %v2301_v5 = vpop.f32.mrb[135].mxu0 }
 0x694   : > { %v2413_v6 = vmax.f32 %v2298_v54, 0.0  ;;  %v2302_v7 = vadd.f32 %v2301_v5, %v4389_v43  ;;  %2557 = vmatprep.subr.bf16.mxu1 %v2526_v53 }
 0x695   : > { %v2414_v9 = vmax.f32 %v2300_v4, 0.0  ;;  %2558 = vmatpush1.bf16.msra.mxu1 %v2525_v52  ;;  %v2476_v12 = vmin.f32 %v2412_v62, 6.0 }
 0x696   : > { %v2415_v11 = vmax.f32 %v2302_v7, 0.0  ;;  %v2477_v1 = vmin.f32 %v2413_v6, 6.0 }
 0x697   : > { %v2478_v14 = vmin.f32 %v2414_v9, 6.0 }
 0x698   : > { %v2479_v3 = vmin.f32 %v2415_v11, 6.0  ;;  %v2305_v15 = vpop.f32.mrb[136].mxu0 }
 0x699   : > { %v2527_v27 = vpack.c.bf16 %v2478_v14, %v2476_v12  ;;  %v2306_v21 = vadd.f32 %v2305_v15, %v4385_v42  ;;  %v2307_v22 = vpop.f32.mrb[137].mxu0 }
 0x69a   : > { %v2528_v23 = vpack.c.bf16 %v2479_v3, %v2477_v1  ;;  %v2308_v25 = vadd.f32 %v2307_v22, %v4389_v43  ;;  %v2309_v8 = vpop.f32.mrb[138].mxu0 }
 0x69b   : > { %v2416_v10 = vmax.f32 %v2306_v21, 0.0  ;;  %v2310_v28 = vadd.f32 %v2309_v8, %v4385_v42  ;;  %v2311_v29 = vpop.f32.mrb[139].mxu0 }
 0x69c   : > { %v2417_v30 = vmax.f32 %v2308_v25, 0.0  ;;  %v2312_v31 = vadd.f32 %v2311_v29, %v4389_v43  ;;  %2559 = vmatprep.subr.bf16.mxu1 %v2528_v23 }
 0x69d   : > { %v2418_v32 = vmax.f32 %v2310_v28, 0.0  ;;  %2560 = vmatpush1.bf16.msra.mxu1 %v2527_v27  ;;  %v2480_v36 = vmin.f32 %v2416_v10, 6.0 }
 0x69e   : > { %v2419_v33 = vmax.f32 %v2312_v31, 0.0  ;;  %v2481_v59 = vmin.f32 %v2417_v30, 6.0 }
 0x69f   : > { %v2482_v41 = vmin.f32 %v2418_v32, 6.0 }
 0x6a0   : > { %v2483_v44 = vmin.f32 %v2419_v33, 6.0  ;;  %v2315_v46 = vpop.f32.mrb[140].mxu0 }
 0x6a1   : > { %v2529_v47 = vpack.c.bf16 %v2482_v41, %v2480_v36  ;;  %v2316_v49 = vadd.f32 %v2315_v46, %v4385_v42  ;;  %v2317_v50 = vpop.f32.mrb[141].mxu0 }
 0x6a2   : > { %v2530_v51 = vpack.c.bf16 %v2483_v44, %v2481_v59  ;;  %v2318_v52 = vadd.f32 %v2317_v50, %v4389_v43  ;;  %v2319_v34 = vpop.f32.mrb[142].mxu0 }
 0x6a3   : > { %v2420_v38 = vmax.f32 %v2316_v49, 0.0  ;;  %v2320_v53 = vadd.f32 %v2319_v34, %v4385_v42  ;;  %v2321_v54 = vpop.f32.mrb[143].mxu0 }
 0x6a4   : > { %v2421_v55 = vmax.f32 %v2318_v52, 0.0  ;;  %v2322_v62 = vadd.f32 %v2321_v54, %v4389_v43  ;;  %2561 = vmatprep.subr.bf16.mxu1 %v2530_v51 }
 0x6a5   : > { %v2422_v4 = vmax.f32 %v2320_v53, 0.0  ;;  %2562 = vmatpush1.bf16.msra.mxu1 %v2529_v47  ;;  %v2484_v6 = vmin.f32 %v2420_v38, 6.0 }
 0x6a6   : > { %v2423_v5 = vmax.f32 %v2322_v62, 0.0  ;;  %v2485_v9 = vmin.f32 %v2421_v55, 6.0 }
 0x6a7   : > { %v2486_v7 = vmin.f32 %v2422_v4, 6.0 }
 0x6a8   : > { %v2487_v11 = vmin.f32 %v2423_v5, 6.0  ;;  %v2325_v12 = vpop.f32.mrb[144].mxu0 }
 0x6a9   : > { %v2531_v14 = vpack.c.bf16 %v2486_v7, %v2484_v6  ;;  %v2326_v1 = vadd.f32 %v2325_v12, %v4385_v42  ;;  %v2327_v3 = vpop.f32.mrb[145].mxu0 }
 0x6aa   : > { %v2532_v15 = vpack.c.bf16 %v2487_v11, %v2485_v9  ;;  %v2328_v27 = vadd.f32 %v2327_v3, %v4389_v43  ;;  %v2329_v21 = vpop.f32.mrb[146].mxu0 }
 0x6ab   : > { %v2424_v22 = vmax.f32 %v2326_v1, 0.0  ;;  %v2330_v23 = vadd.f32 %v2329_v21, %v4385_v42  ;;  %v2331_v25 = vpop.f32.mrb[147].mxu0 }
 0x6ac   : > { %v2425_v8 = vmax.f32 %v2328_v27, 0.0  ;;  %v2332_v10 = vadd.f32 %v2331_v25, %v4389_v43  ;;  %2563 = vmatprep.subr.bf16.mxu1 %v2532_v15 }
 0x6ad   : > { %v2426_v28 = vmax.f32 %v2330_v23, 0.0  ;;  %2564 = vmatpush1.bf16.msra.mxu1 %v2531_v14  ;;  %v2488_v30 = vmin.f32 %v2424_v22, 6.0 }
 0x6ae   : > { %v2427_v29 = vmax.f32 %v2332_v10, 0.0  ;;  %v2489_v32 = vmin.f32 %v2425_v8, 6.0 }
 0x6af   : > { %v2490_v31 = vmin.f32 %v2426_v28, 6.0 }
 0x6b0   : > { %v2491_v33 = vmin.f32 %v2427_v29, 6.0  ;;  %v2335_v36 = vpop.f32.mrb[148].mxu0 }
 0x6b1   : > { %v2533_v41 = vpack.c.bf16 %v2490_v31, %v2488_v30  ;;  %v2336_v59 = vadd.f32 %v2335_v36, %v4385_v42  ;;  %v2337_v44 = vpop.f32.mrb[149].mxu0 }
 0x6b2   : > { %v2534_v46 = vpack.c.bf16 %v2491_v33, %v2489_v32  ;;  %v2338_v47 = vadd.f32 %v2337_v44, %v4389_v43  ;;  %v2339_v49 = vpop.f32.mrb[150].mxu0 }
 0x6b3   : > { %v2428_v50 = vmax.f32 %v2336_v59, 0.0  ;;  %v2340_v51 = vadd.f32 %v2339_v49, %v4385_v42  ;;  %v2341_v52 = vpop.f32.mrb[151].mxu0 }
 0x6b4   : > { %v2429_v34 = vmax.f32 %v2338_v47, 0.0  ;;  %v2342_v38 = vadd.f32 %v2341_v52, %v4389_v43  ;;  %2565 = vmatprep.subr.bf16.mxu1 %v2534_v46 }
 0x6b5   : > { %v2430_v53 = vmax.f32 %v2340_v51, 0.0  ;;  %2566 = vmatpush1.bf16.msra.mxu1 %v2533_v41  ;;  %v2492_v55 = vmin.f32 %v2428_v50, 6.0 }
 0x6b6   : > { %v2431_v54 = vmax.f32 %v2342_v38, 0.0  ;;  %v2493_v4 = vmin.f32 %v2429_v34, 6.0 }
 0x6b7   : > { %v2494_v62 = vmin.f32 %v2430_v53, 6.0 }
 0x6b8   : > { %v2495_v5 = vmin.f32 %v2431_v54, 6.0  ;;  %v2345_v6 = vpop.f32.mrb[152].mxu0 }
 0x6b9   : > { %v2535_v7 = vpack.c.bf16 %v2494_v62, %v2492_v55  ;;  %v2346_v9 = vadd.f32 %v2345_v6, %v4385_v42  ;;  %v2347_v11 = vpop.f32.mrb[153].mxu0 }
 0x6ba   : > { %v2536_v12 = vpack.c.bf16 %v2495_v5, %v2493_v4  ;;  %v2348_v14 = vadd.f32 %v2347_v11, %v4389_v43  ;;  %v2349_v1 = vpop.f32.mrb[154].mxu0 }
 0x6bb   : > { %v2432_v3 = vmax.f32 %v2346_v9, 0.0  ;;  %v2350_v15 = vadd.f32 %v2349_v1, %v4385_v42  ;;  %v2351_v27 = vpop.f32.mrb[155].mxu0 }
 0x6bc   : > { %v2433_v21 = vmax.f32 %v2348_v14, 0.0  ;;  %v2352_v22 = vadd.f32 %v2351_v27, %v4389_v43  ;;  %2567 = vmatprep.subr.bf16.mxu1 %v2536_v12 }
 0x6bd   : > { %v2434_v23 = vmax.f32 %v2350_v15, 0.0  ;;  %2568 = vmatpush1.bf16.msra.mxu1 %v2535_v7  ;;  %v2496_v8 = vmin.f32 %v2432_v3, 6.0 }
 0x6be   : > { %v2435_v25 = vmax.f32 %v2352_v22, 0.0  ;;  %v2497_v28 = vmin.f32 %v2433_v21, 6.0 }
 0x6bf   : > { %v2498_v10 = vmin.f32 %v2434_v23, 6.0 }
 0x6c0   : > { %v2499_v29 = vmin.f32 %v2435_v25, 6.0  ;;  %v2355_v30 = vpop.f32.mrb[156].mxu0 }
 0x6c1   : > { %v2537_v31 = vpack.c.bf16 %v2498_v10, %v2496_v8  ;;  %v2356_v32 = vadd.f32 %v2355_v30, %v4385_v42  ;;  %v2357_v33 = vpop.f32.mrb[157].mxu0 }
 0x6c2   : > { %v2538_v36 = vpack.c.bf16 %v2499_v29, %v2497_v28  ;;  %v2358_v41 = vadd.f32 %v2357_v33, %v4389_v43  ;;  %v2359_v59 = vpop.f32.mrb[158].mxu0 }
 0x6c3   : > { %v2436_v44 = vmax.f32 %v2356_v32, 0.0  ;;  %v2360_v46 = vadd.f32 %v2359_v59, %v4385_v42  ;;  %v2361_v47 = vpop.f32.mrb[159].mxu0 }
 0x6c4   : > { %v2437_v49 = vmax.f32 %v2358_v41, 0.0  ;;  %v2362_v50 = vadd.f32 %v2361_v47, %v4389_v43  ;;  %2569 = vmatprep.subr.bf16.mxu1 %v2538_v36 }
 0x6c5   : > { %v2438_v51 = vmax.f32 %v2360_v46, 0.0  ;;  %2570 = vmatpush1.bf16.msra.mxu1 %v2537_v31  ;;  %v2500_v34 = vmin.f32 %v2436_v44, 6.0 }
 0x6c6   : > { %v2439_v52 = vmax.f32 %v2362_v50, 0.0  ;;  %v2501_v53 = vmin.f32 %v2437_v49, 6.0 }
 0x6c7   : > { %v2502_v38 = vmin.f32 %v2438_v51, 6.0 }
 0x6c8   : > { %v2503_v54 = vmin.f32 %v2439_v52, 6.0  ;;  %v2365_v55 = vpop.f32.mrb[160].mxu0 }
 0x6c9   : > { %v2539_v62 = vpack.c.bf16 %v2502_v38, %v2500_v34  ;;  %v2366_v4 = vadd.f32 %v2365_v55, %v4385_v42  ;;  %v2367_v5 = vpop.f32.mrb[161].mxu0 }
 0x6ca   : > { %v2540_v6 = vpack.c.bf16 %v2503_v54, %v2501_v53  ;;  %v2368_v7 = vadd.f32 %v2367_v5, %v4389_v43  ;;  %v2369_v9 = vpop.f32.mrb[162].mxu0  ;;  %v3501_v53 = vld [vmem:[#allocation7 + $0x24] ss:$40 sps:$4 sm:$0xff]   ;;  %v3499_v54 = vld [vmem:[#allocation7 + $0x20] ss:$40 sps:$4 sm:$0xff]  }
 0x6cb   : > { %v2440_v11 = vmax.f32 %v2366_v4, 0.0  ;;  %v2370_v12 = vadd.f32 %v2369_v9, %v4385_v42  ;;  %v2371_v14 = vpop.f32.mrb[163].mxu0 }
 0x6cc   : > { %v2441_v1 = vmax.f32 %v2368_v7, 0.0  ;;  %v2372_v3 = vadd.f32 %v2371_v14, %v4389_v43  ;;  %2571 = vmatprep.subr.bf16.mxu1 %v2540_v6 }
 0x6cd   : > { %v2442_v15 = vmax.f32 %v2370_v12, 0.0  ;;  %2572 = vmatpush1.bf16.msra.mxu1 %v2539_v62  ;;  %v2504_v21 = vmin.f32 %v2440_v11, 6.0 }
 0x6ce   : > { %v2443_v27 = vmax.f32 %v2372_v3, 0.0  ;;  %v2505_v23 = vmin.f32 %v2441_v1, 6.0 }
 0x6cf   : > { %v2506_v22 = vmin.f32 %v2442_v15, 6.0 }
 0x6d0   : > { %v2507_v25 = vmin.f32 %v2443_v27, 6.0  ;;  %v2375_v8 = vpop.f32.mrb[164].mxu0 }
 0x6d1   : > { %v2541_v10 = vpack.c.bf16 %v2506_v22, %v2504_v21  ;;  %v2376_v28 = vadd.f32 %v2375_v8, %v4385_v42  ;;  %v2377_v29 = vpop.f32.mrb[165].mxu0 }
 0x6d2   : > { %v2542_v30 = vpack.c.bf16 %v2507_v25, %v2505_v23  ;;  %v2378_v31 = vadd.f32 %v2377_v29, %v4389_v43  ;;  %v2379_v32 = vpop.f32.mrb[166].mxu0 }
 0x6d3   : > { %v2444_v33 = vmax.f32 %v2376_v28, 0.0  ;;  %v2380_v36 = vadd.f32 %v2379_v32, %v4385_v42  ;;  %v2381_v41 = vpop.f32.mrb[167].mxu0  ;;  %v3504_v42 = vld [vmem:[#allocation7 + $0x74] ss:$40 sps:$4 sm:$0xff]  }
 0x6d4   : > { %v2445_v59 = vmax.f32 %v2378_v31, 0.0  ;;  %v2382_v44 = vadd.f32 %v2381_v41, %v4389_v43  ;;  %2573 = vmatprep.subr.bf16.mxu1 %v2542_v30  ;;  %v3502_v43 = vld [vmem:[#allocation7 + $0x70] ss:$40 sps:$4 sm:$0xff]  }
 0x6d5   : > { %v2446_v46 = vmax.f32 %v2380_v36, 0.0  ;;  %2574 = vmatpush1.bf16.msra.mxu1 %v2541_v10  ;;  %v2508_v49 = vmin.f32 %v2444_v33, 6.0 }
 0x6d6   : > { %v2447_v47 = vmax.f32 %v2382_v44, 0.0  ;;  %v2509_v51 = vmin.f32 %v2445_v59, 6.0 }
 0x6d7   : > { %v2510_v50 = vmin.f32 %v2446_v46, 6.0 }
 0x6d8   : > { %v2511_v52 = vmin.f32 %v2447_v47, 6.0 }
 0x6d9   : > { %v2543_v34 = vpack.c.bf16 %v2510_v50, %v2508_v49 }
 0x6da   : > { %v2544_v38 = vpack.c.bf16 %v2511_v52, %v2509_v51 }
 0x6dc   : > { %2575 = vmatprep.subr.bf16.mxu1 %v2544_v38 }
 0x6dd   : > { %2576 = vmatpush1.bf16.msra.mxu1 %v2543_v34 }
 0x6de   : > { %2642 = vmatprep.subr.bf16.mxu1 %v3501_v53 }
 0x6e0   : > { %2578 = vmatmul.mubr.bf16.vlgmr.msra.gmra.mrb[132].mxu1 %v3663_v19 }
 0x6e1   : > { %2643 = vmatpush1.bf16.msra.mxu1 %v3499_v54  ;;  %2674 = vmatprep.mubr.bf16.mxu1 %v3662_v26 }
 0x6e2   : > { %2644 = vmatprep.subr.bf16.mxu1 %v3504_v42 }
 0x6e5   : > { %2645 = vmatpush1.bf16.msra.mxu1 %v3502_v43 }
 0x6e8   : > { %3309 = vmatmul.mubr.msk.bf16.vlgmr.msra.gmra.mrb[136].mxu1 %vm785_vm3, %v3890_v48 }
 0x6e9   : > { %2684 = vmatprep.mubr.bf16.mxu1 %v3662_v26 }
 0x6f0   : > { %3310 = vmatmul.mubr.msk.bf16.gmra.mrb[140].mxu1 %vm785_vm3, %v3887_v45 }
 0x6f1   : > { %2694 = vmatprep.mubr.bf16.mxu1 %v3662_v26 }
 0x6f8   : > { %3311 = vmatmul.mubr.msk.bf16.gmra.mrb[144].mxu1 %vm785_vm3, %v3901_v2 }
 0x6f9   : > { %2704 = vmatprep.mubr.bf16.mxu1 %v3662_v26 }
 0x700   : > { %3312 = vmatmul.mubr.msk.bf16.gmra.mrb[148].mxu1 %vm785_vm3, %v3898_v63 }
 0x701   : > { %2714 = vmatprep.mubr.bf16.mxu1 %v3662_v26 }
 0x708   : > { %3313 = vmatmul.mubr.msk.bf16.gmra.mrb[152].mxu1 %vm785_vm3, %v3912_v20 }
 0x709   : > { %2724 = vmatprep.mubr.bf16.mxu1 %v3662_v26 }
 0x710   : > { %3314 = vmatmul.mubr.msk.bf16.gmra.mrb[156].mxu1 %vm785_vm3, %v3909_v17  ;;  %v2610_v17 = vld [vmem:[#allocation8 + $0x8] sm:$0x3] }
 0x711   : > { %2734 = vmatprep.mubr.bf16.mxu1 %v3662_v26 }
 0x718   : > { %3315 = vmatmul.mubr.msk.bf16.gmra.mrb[160].mxu1 %vm785_vm3, %v3923_v40  ;;  %v2512_v40 = vld [vmem:[#allocation2 + $0x6] sm:$0x3] }
 0x719   : > { %2744 = vmatprep.mubr.bf16.mxu1 %v3662_v26 }
 0x720   : > { %3316 = vmatmul.mubr.msk.bf16.gmra.mrb[164].mxu1 %vm785_vm3, %v3920_v37 }
 0x721   : > { %2754 = vmatprep.mubr.bf16.mxu1 %v3662_v26 }
 0x728   : > { %3317 = vmatmul.mubr.msk.bf16.gmra.mrb[168].mxu1 %vm785_vm3, %v3934_v60 }
 0x729   : > { %2764 = vmatprep.mubr.bf16.mxu1 %v3662_v26 }
 0x730   : > { %3318 = vmatmul.mubr.msk.bf16.gmra.mrb[172].mxu1 %vm785_vm3, %v3931_v57  ;;  %v4508_v57 = vrot.slane %v2610_v17, %v3998_v61 }
 0x731   : > { %2774 = vmatprep.mubr.bf16.mxu1 %v3662_v26 }
 0x738   : > { %3319 = vmatmul.mubr.msk.bf16.gmra.mrb[176].mxu1 %vm785_vm3, %v3945_v16 }
 0x739   : > { %2784 = vmatprep.mubr.bf16.mxu1 %v3662_v26 }
 0x740   : > { %3320 = vmatmul.mubr.msk.bf16.gmra.mrb[180].mxu1 %vm785_vm3, %v3942_v13 }
 0x741   : > { %2794 = vmatprep.mubr.bf16.mxu1 %v3662_v26 }
 0x748   : > { %3321 = vmatmul.mubr.msk.bf16.gmra.mrb[184].mxu1 %vm785_vm3, %v3956_v39 }
 0x749   : > { %2804 = vmatprep.mubr.bf16.mxu1 %v3662_v26 }
 0x750   : > { %3322 = vmatmul.mubr.msk.bf16.gmra.mrb[188].mxu1 %vm785_vm3, %v3953_v35 }
 0x751   : > { %2814 = vmatprep.mubr.bf16.mxu1 %v3662_v26 }
 0x758   : > { %3323 = vmatmul.mubr.msk.bf16.gmra.mrb[192].mxu1 %vm785_vm3, %v3966_v58 }
 0x759   : > { %2824 = vmatprep.mubr.bf16.mxu1 %v3662_v26  ;;  %v4512_v26 = vrot.slane %v2610_v17, %v4001_v0 }
 0x760   : > { %3324 = vmatmul.mubr.msk.bf16.gmra.mrb[196].mxu1 %vm785_vm3, %v3964_v56 }
 0x7b3   : > { %v2579_v45 = vpop.f32.mrb[132].mxu1 }
 0x7b4   : > { %v2581_v48 = vpop.f32.mrb[133].mxu1 }
 0x7b5   : > { %v2588_v63 = vcombine.low %v2579_v45, %v2581_v48  ;;  %v2583_v2 = vpop.f32.mrb[134].mxu1 }
 0x7b6   : > { %v2584_v20 = vpop.f32.mrb[135].mxu1 }
 0x7b7   : > { %v2595_v37 = vrot.slane %v2588_v63, %v4133_v24 }
 0x7b9   : > { %v2602_v60 = vrot.slane %v2595_v37, %v4133_v24 }
 0x7bb   : > { %v2604_v13 = vadd.f32 %v2602_v60, %v2512_v40  ;;  %v2676_v16 = vpop.f32.mrb[136].mxu1 }
 0x7bc   : > { %v2677_v35 = vadd.f32 %v2676_v16, %v4508_v57  ;;  %v2678_v39 = vpop.f32.mrb[137].mxu1 }
 0x7bd   : > { %2605 = vst.msk [vmem:[#allocation2 + $0x6] sm:$0x3] %vm4108_vm4, %v2604_v13  ;;  %v2679_v56 = vadd.f32 %v2678_v39, %v4512_v26  ;;  %v2680_v58 = vpop.f32.mrb[138].mxu1 }
 0x7be   : > { %v2835_v55 = vmax.f32 %v2677_v35, 0.0  ;;  %v2681_v61 = vadd.f32 %v2680_v58, %v4508_v57  ;;  %v2682_v62 = vpop.f32.mrb[139].mxu1 }
 0x7bf   : > { %v2836_v4 = vmax.f32 %v2679_v56, 0.0  ;;  %v2683_v5 = vadd.f32 %v2682_v62, %v4512_v26 }
 0x7c0   : > { %v2837_v0 = vmax.f32 %v2681_v61, 0.0  ;;  %v2899_v7 = vmin.f32 %v2835_v55, 6.0 }
 0x7c1   : > { %v2838_v6 = vmax.f32 %v2683_v5, 0.0  ;;  %v2900_v11 = vmin.f32 %v2836_v4, 6.0 }
 0x7c2   : > { %v2901_v9 = vmin.f32 %v2837_v0, 6.0 }
 0x7c3   : > { %v2902_v12 = vmin.f32 %v2838_v6, 6.0  ;;  %v2686_v14 = vpop.f32.mrb[140].mxu1 }
 0x7c4   : > { %v3060_v1 = vld [vmem:[#allocation2] sm:$0xff]  ;;  %v2964_v3 = vpack.c.bf16 %v2901_v9, %v2899_v7  ;;  %v2687_v15 = vadd.f32 %v2686_v14, %v4508_v57  ;;  %v2688_v27 = vpop.f32.mrb[141].mxu1 }
 0x7c5   : > { %v3062_v21 = vmul.f32 0.00390625, %v3060_v1  ;;  %v2965_v22 = vpack.c.bf16 %v2902_v12, %v2900_v11  ;;  %v2689_v23 = vadd.f32 %v2688_v27, %v4512_v26  ;;  %v2690_v25 = vpop.f32.mrb[142].mxu1 }
 0x7c6   : > { %v2839_v8 = vmax.f32 %v2687_v15, 0.0  ;;  %v2691_v10 = vadd.f32 %v2690_v25, %v4508_v57  ;;  %v2692_v28 = vpop.f32.mrb[143].mxu1 }
 0x7c7   : > { %3064 = vst [vmem:[%s4524_s22] sm:$0xff] %v3062_v21  ;;  %v2840_v29 = vmax.f32 %v2689_v23, 0.0  ;;  %v2693_v30 = vadd.f32 %v2692_v28, %v4512_v26  ;;  %2996 = vmatprep.subr.bf16.mxu0 %v2965_v22 }
 0x7c8   : > { %v2841_v31 = vmax.f32 %v2691_v10, 0.0  ;;  %2997 = vmatpush1.bf16.msra.mxu0 %v2964_v3  ;;  %v2903_v33 = vmin.f32 %v2839_v8, 6.0 }
 0x7c9   : > { %v2842_v32 = vmax.f32 %v2693_v30, 0.0  ;;  %v2904_v41 = vmin.f32 %v2840_v29, 6.0 }
 0x7ca   : > { %v2905_v36 = vmin.f32 %v2841_v31, 6.0 }
 0x7cb   : > { %v2906_v59 = vmin.f32 %v2842_v32, 6.0  ;;  %v2696_v44 = vpop.f32.mrb[144].mxu1 }
 0x7cc   : > { %v2966_v46 = vpack.c.bf16 %v2905_v36, %v2903_v33  ;;  %v2697_v47 = vadd.f32 %v2696_v44, %v4508_v57  ;;  %v2698_v49 = vpop.f32.mrb[145].mxu1 }
 0x7cd   : > { %v2967_v50 = vpack.c.bf16 %v2906_v59, %v2904_v41  ;;  %v2699_v51 = vadd.f32 %v2698_v49, %v4512_v26  ;;  %v2700_v52 = vpop.f32.mrb[146].mxu1 }
 0x7ce   : > { %v2843_v34 = vmax.f32 %v2697_v47, 0.0  ;;  %v2701_v38 = vadd.f32 %v2700_v52, %v4508_v57  ;;  %v2702_v53 = vpop.f32.mrb[147].mxu1 }
 0x7cf   : > { %v2844_v54 = vmax.f32 %v2699_v51, 0.0  ;;  %v2703_v42 = vadd.f32 %v2702_v53, %v4512_v26  ;;  %2998 = vmatprep.subr.bf16.mxu0 %v2967_v50 }
 0x7d0   : > { %v2845_v43 = vmax.f32 %v2701_v38, 0.0  ;;  %2999 = vmatpush1.bf16.msra.mxu0 %v2966_v46  ;;  %v2907_v48 = vmin.f32 %v2843_v34, 6.0 }
 0x7d1   : > { %v2846_v45 = vmax.f32 %v2703_v42, 0.0  ;;  %v2908_v2 = vmin.f32 %v2844_v54, 6.0 }
 0x7d2   : > { %v2909_v63 = vmin.f32 %v2845_v43, 6.0 }
 0x7d3   : > { %v2910_v17 = vmin.f32 %v2846_v45, 6.0  ;;  %v2706_v20 = vpop.f32.mrb[148].mxu1 }
 0x7d4   : > { %v2968_v37 = vpack.c.bf16 %v2909_v63, %v2907_v48  ;;  %v2707_v40 = vadd.f32 %v2706_v20, %v4508_v57  ;;  %v2708_v60 = vpop.f32.mrb[149].mxu1 }
 0x7d5   : > { %v2969_v13 = vpack.c.bf16 %v2910_v17, %v2908_v2  ;;  %v2709_v16 = vadd.f32 %v2708_v60, %v4512_v26  ;;  %v2710_v35 = vpop.f32.mrb[150].mxu1 }
 0x7d6   : > { %v2847_v39 = vmax.f32 %v2707_v40, 0.0  ;;  %v2711_v56 = vadd.f32 %v2710_v35, %v4508_v57  ;;  %v2712_v58 = vpop.f32.mrb[151].mxu1 }
 0x7d7   : > { %v2848_v55 = vmax.f32 %v2709_v16, 0.0  ;;  %v2713_v61 = vadd.f32 %v2712_v58, %v4512_v26  ;;  %3000 = vmatprep.subr.bf16.mxu0 %v2969_v13 }
 0x7d8   : > { %v2849_v62 = vmax.f32 %v2711_v56, 0.0  ;;  %3001 = vmatpush1.bf16.msra.mxu0 %v2968_v37  ;;  %v2911_v5 = vmin.f32 %v2847_v39, 6.0 }
 0x7d9   : > { %v2850_v4 = vmax.f32 %v2713_v61, 0.0  ;;  %v2912_v6 = vmin.f32 %v2848_v55, 6.0 }
 0x7da   : > { %v2913_v0 = vmin.f32 %v2849_v62, 6.0 }
 0x7db   : > { %v2914_v7 = vmin.f32 %v2850_v4, 6.0  ;;  %v2716_v9 = vpop.f32.mrb[152].mxu1 }
 0x7dc   : > { %v2970_v11 = vpack.c.bf16 %v2913_v0, %v2911_v5  ;;  %v2717_v12 = vadd.f32 %v2716_v9, %v4508_v57  ;;  %v2718_v14 = vpop.f32.mrb[153].mxu1 }
 0x7dd   : > { %v2971_v1 = vpack.c.bf16 %v2914_v7, %v2912_v6  ;;  %v2719_v3 = vadd.f32 %v2718_v14, %v4512_v26  ;;  %v2720_v15 = vpop.f32.mrb[154].mxu1 }
 0x7de   : > { %v2851_v27 = vmax.f32 %v2717_v12, 0.0  ;;  %v2721_v21 = vadd.f32 %v2720_v15, %v4508_v57  ;;  %v2722_v22 = vpop.f32.mrb[155].mxu1 }
 0x7df   : > { %v2852_v23 = vmax.f32 %v2719_v3, 0.0  ;;  %v2723_v25 = vadd.f32 %v2722_v22, %v4512_v26  ;;  %3002 = vmatprep.subr.bf16.mxu0 %v2971_v1 }
 0x7e0   : > { %v2853_v8 = vmax.f32 %v2721_v21, 0.0  ;;  %3003 = vmatpush1.bf16.msra.mxu0 %v2970_v11  ;;  %v2915_v28 = vmin.f32 %v2851_v27, 6.0 }
 0x7e1   : > { %v2854_v10 = vmax.f32 %v2723_v25, 0.0  ;;  %v2916_v30 = vmin.f32 %v2852_v23, 6.0 }
 0x7e2   : > { %v2917_v29 = vmin.f32 %v2853_v8, 6.0 }
 0x7e3   : > { %v2918_v31 = vmin.f32 %v2854_v10, 6.0  ;;  %v2726_v32 = vpop.f32.mrb[156].mxu1 }
 0x7e4   : > { %v2972_v33 = vpack.c.bf16 %v2917_v29, %v2915_v28  ;;  %v2727_v36 = vadd.f32 %v2726_v32, %v4508_v57  ;;  %v2728_v41 = vpop.f32.mrb[157].mxu1 }
 0x7e5   : > { %v2973_v59 = vpack.c.bf16 %v2918_v31, %v2916_v30  ;;  %v2729_v44 = vadd.f32 %v2728_v41, %v4512_v26  ;;  %v2730_v46 = vpop.f32.mrb[158].mxu1 }
 0x7e6   : > { %v2855_v47 = vmax.f32 %v2727_v36, 0.0  ;;  %v2731_v49 = vadd.f32 %v2730_v46, %v4508_v57  ;;  %v2732_v50 = vpop.f32.mrb[159].mxu1 }
 0x7e7   : > { %v2856_v51 = vmax.f32 %v2729_v44, 0.0  ;;  %v2733_v52 = vadd.f32 %v2732_v50, %v4512_v26  ;;  %3004 = vmatprep.subr.bf16.mxu0 %v2973_v59 }
 0x7e8   : > { %v2857_v34 = vmax.f32 %v2731_v49, 0.0  ;;  %3005 = vmatpush1.bf16.msra.mxu0 %v2972_v33  ;;  %v2919_v53 = vmin.f32 %v2855_v47, 6.0 }
 0x7e9   : > { %v2858_v38 = vmax.f32 %v2733_v52, 0.0  ;;  %v2920_v42 = vmin.f32 %v2856_v51, 6.0 }
 0x7ea   : > { %v2921_v54 = vmin.f32 %v2857_v34, 6.0 }
 0x7eb   : > { %v2922_v43 = vmin.f32 %v2858_v38, 6.0  ;;  %v2736_v45 = vpop.f32.mrb[160].mxu1 }
 0x7ec   : > { %v2974_v48 = vpack.c.bf16 %v2921_v54, %v2919_v53  ;;  %v2737_v63 = vadd.f32 %v2736_v45, %v4508_v57  ;;  %v2738_v2 = vpop.f32.mrb[161].mxu1 }
 0x7ed   : > { %v2975_v17 = vpack.c.bf16 %v2922_v43, %v2920_v42  ;;  %v2739_v20 = vadd.f32 %v2738_v2, %v4512_v26  ;;  %v2740_v37 = vpop.f32.mrb[162].mxu1 }
 0x7ee   : > { %v2859_v40 = vmax.f32 %v2737_v63, 0.0  ;;  %v2741_v60 = vadd.f32 %v2740_v37, %v4508_v57  ;;  %v2742_v13 = vpop.f32.mrb[163].mxu1 }
 0x7ef   : > { %v2860_v16 = vmax.f32 %v2739_v20, 0.0  ;;  %v2743_v35 = vadd.f32 %v2742_v13, %v4512_v26  ;;  %3006 = vmatprep.subr.bf16.mxu0 %v2975_v17 }
 0x7f0   : > { %v2861_v39 = vmax.f32 %v2741_v60, 0.0  ;;  %3007 = vmatpush1.bf16.msra.mxu0 %v2974_v48  ;;  %v2923_v58 = vmin.f32 %v2859_v40, 6.0 }
 0x7f1   : > { %v2862_v56 = vmax.f32 %v2743_v35, 0.0  ;;  %v2924_v61 = vmin.f32 %v2860_v16, 6.0 }
 0x7f2   : > { %v2925_v55 = vmin.f32 %v2861_v39, 6.0 }
 0x7f3   : > { %v2926_v62 = vmin.f32 %v2862_v56, 6.0  ;;  %v2746_v4 = vpop.f32.mrb[164].mxu1 }
 0x7f4   : > { %v2976_v5 = vpack.c.bf16 %v2925_v55, %v2923_v58  ;;  %v2747_v0 = vadd.f32 %v2746_v4, %v4508_v57  ;;  %v2748_v6 = vpop.f32.mrb[165].mxu1 }
 0x7f5   : > { %v2977_v7 = vpack.c.bf16 %v2926_v62, %v2924_v61  ;;  %v2749_v9 = vadd.f32 %v2748_v6, %v4512_v26  ;;  %v2750_v11 = vpop.f32.mrb[166].mxu1 }
 0x7f6   : > { %v2863_v12 = vmax.f32 %v2747_v0, 0.0  ;;  %v2751_v14 = vadd.f32 %v2750_v11, %v4508_v57  ;;  %v2752_v1 = vpop.f32.mrb[167].mxu1 }
 0x7f7   : > { %v2864_v3 = vmax.f32 %v2749_v9, 0.0  ;;  %v2753_v15 = vadd.f32 %v2752_v1, %v4512_v26  ;;  %3008 = vmatprep.subr.bf16.mxu0 %v2977_v7 }
 0x7f8   : > { %v2865_v27 = vmax.f32 %v2751_v14, 0.0  ;;  %3009 = vmatpush1.bf16.msra.mxu0 %v2976_v5  ;;  %v2927_v22 = vmin.f32 %v2863_v12, 6.0 }
 0x7f9   : > { %v2866_v21 = vmax.f32 %v2753_v15, 0.0  ;;  %v2928_v25 = vmin.f32 %v2864_v3, 6.0 }
 0x7fa   : > { %v2929_v23 = vmin.f32 %v2865_v27, 6.0 }
 0x7fb   : > { %v2930_v8 = vmin.f32 %v2866_v21, 6.0  ;;  %v2756_v10 = vpop.f32.mrb[168].mxu1 }
 0x7fc   : > { %v2978_v28 = vpack.c.bf16 %v2929_v23, %v2927_v22  ;;  %v2757_v29 = vadd.f32 %v2756_v10, %v4508_v57  ;;  %v2758_v30 = vpop.f32.mrb[169].mxu1 }
 0x7fd   : > { %v2979_v31 = vpack.c.bf16 %v2930_v8, %v2928_v25  ;;  %v2759_v32 = vadd.f32 %v2758_v30, %v4512_v26  ;;  %v2760_v33 = vpop.f32.mrb[170].mxu1 }
 0x7fe   : > { %v2867_v36 = vmax.f32 %v2757_v29, 0.0  ;;  %v2761_v41 = vadd.f32 %v2760_v33, %v4508_v57  ;;  %v2762_v59 = vpop.f32.mrb[171].mxu1 }
 0x7ff   : > { %v2868_v44 = vmax.f32 %v2759_v32, 0.0  ;;  %v2763_v46 = vadd.f32 %v2762_v59, %v4512_v26  ;;  %3010 = vmatprep.subr.bf16.mxu0 %v2979_v31 }
 0x800   : > { %v2869_v47 = vmax.f32 %v2761_v41, 0.0  ;;  %3011 = vmatpush1.bf16.msra.mxu0 %v2978_v28  ;;  %v2931_v50 = vmin.f32 %v2867_v36, 6.0 }
 0x801   : > { %v2870_v49 = vmax.f32 %v2763_v46, 0.0  ;;  %v2932_v52 = vmin.f32 %v2868_v44, 6.0 }
 0x802   : > { %v2933_v51 = vmin.f32 %v2869_v47, 6.0 }
 0x803   : > { %v2934_v34 = vmin.f32 %v2870_v49, 6.0  ;;  %v2766_v38 = vpop.f32.mrb[172].mxu1 }
 0x804   : > { %v2980_v53 = vpack.c.bf16 %v2933_v51, %v2931_v50  ;;  %v2767_v54 = vadd.f32 %v2766_v38, %v4508_v57  ;;  %v2768_v42 = vpop.f32.mrb[173].mxu1 }
 0x805   : > { %v2981_v43 = vpack.c.bf16 %v2934_v34, %v2932_v52  ;;  %v2769_v45 = vadd.f32 %v2768_v42, %v4512_v26  ;;  %v2770_v48 = vpop.f32.mrb[174].mxu1 }
 0x806   : > { %v2871_v63 = vmax.f32 %v2767_v54, 0.0  ;;  %v2771_v2 = vadd.f32 %v2770_v48, %v4508_v57  ;;  %v2772_v17 = vpop.f32.mrb[175].mxu1 }
 0x807   : > { %v2872_v20 = vmax.f32 %v2769_v45, 0.0  ;;  %v2773_v37 = vadd.f32 %v2772_v17, %v4512_v26  ;;  %3012 = vmatprep.subr.bf16.mxu0 %v2981_v43 }
 0x808   : > { %v2873_v40 = vmax.f32 %v2771_v2, 0.0  ;;  %3013 = vmatpush1.bf16.msra.mxu0 %v2980_v53  ;;  %v2935_v13 = vmin.f32 %v2871_v63, 6.0 }
 0x809   : > { %v2874_v60 = vmax.f32 %v2773_v37, 0.0  ;;  %v2936_v35 = vmin.f32 %v2872_v20, 6.0 }
 0x80a   : > { %v2937_v16 = vmin.f32 %v2873_v40, 6.0 }
 0x80b   : > { %v2938_v39 = vmin.f32 %v2874_v60, 6.0  ;;  %v2776_v56 = vpop.f32.mrb[176].mxu1 }
 0x80c   : > { %v2982_v58 = vpack.c.bf16 %v2937_v16, %v2935_v13  ;;  %v2777_v55 = vadd.f32 %v2776_v56, %v4508_v57  ;;  %v2778_v61 = vpop.f32.mrb[177].mxu1 }
 0x80d   : > { %v2983_v62 = vpack.c.bf16 %v2938_v39, %v2936_v35  ;;  %v2779_v4 = vadd.f32 %v2778_v61, %v4512_v26  ;;  %v2780_v5 = vpop.f32.mrb[178].mxu1 }
 0x80e   : > { %v2875_v0 = vmax.f32 %v2777_v55, 0.0  ;;  %v2781_v6 = vadd.f32 %v2780_v5, %v4508_v57  ;;  %v2782_v7 = vpop.f32.mrb[179].mxu1 }
 0x80f   : > { %v2876_v9 = vmax.f32 %v2779_v4, 0.0  ;;  %v2783_v11 = vadd.f32 %v2782_v7, %v4512_v26  ;;  %3014 = vmatprep.subr.bf16.mxu0 %v2983_v62 }
 0x810   : > { %v2877_v12 = vmax.f32 %v2781_v6, 0.0  ;;  %3015 = vmatpush1.bf16.msra.mxu0 %v2982_v58  ;;  %v2939_v1 = vmin.f32 %v2875_v0, 6.0 }
 0x811   : > { %v2878_v14 = vmax.f32 %v2783_v11, 0.0  ;;  %v2940_v15 = vmin.f32 %v2876_v9, 6.0 }
 0x812   : > { %v2941_v3 = vmin.f32 %v2877_v12, 6.0 }
 0x813   : > { %v2942_v27 = vmin.f32 %v2878_v14, 6.0  ;;  %v2786_v21 = vpop.f32.mrb[180].mxu1 }
 0x814   : > { %v2984_v22 = vpack.c.bf16 %v2941_v3, %v2939_v1  ;;  %v2787_v23 = vadd.f32 %v2786_v21, %v4508_v57  ;;  %v2788_v25 = vpop.f32.mrb[181].mxu1 }
 0x815   : > { %v2985_v8 = vpack.c.bf16 %v2942_v27, %v2940_v15  ;;  %v2789_v10 = vadd.f32 %v2788_v25, %v4512_v26  ;;  %v2790_v28 = vpop.f32.mrb[182].mxu1 }
 0x816   : > { %v2879_v29 = vmax.f32 %v2787_v23, 0.0  ;;  %v2791_v30 = vadd.f32 %v2790_v28, %v4508_v57  ;;  %v2792_v31 = vpop.f32.mrb[183].mxu1 }
 0x817   : > { %v2880_v32 = vmax.f32 %v2789_v10, 0.0  ;;  %v2793_v33 = vadd.f32 %v2792_v31, %v4512_v26  ;;  %3016 = vmatprep.subr.bf16.mxu0 %v2985_v8 }
 0x818   : > { %v2881_v36 = vmax.f32 %v2791_v30, 0.0  ;;  %3017 = vmatpush1.bf16.msra.mxu0 %v2984_v22  ;;  %v2943_v59 = vmin.f32 %v2879_v29, 6.0 }
 0x819   : > { %v2882_v41 = vmax.f32 %v2793_v33, 0.0  ;;  %v2944_v46 = vmin.f32 %v2880_v32, 6.0 }
 0x81a   : > { %v2945_v44 = vmin.f32 %v2881_v36, 6.0 }
 0x81b   : > { %v2946_v47 = vmin.f32 %v2882_v41, 6.0  ;;  %v2796_v49 = vpop.f32.mrb[184].mxu1 }
 0x81c   : > { %v2986_v50 = vpack.c.bf16 %v2945_v44, %v2943_v59  ;;  %v2797_v51 = vadd.f32 %v2796_v49, %v4508_v57  ;;  %v2798_v52 = vpop.f32.mrb[185].mxu1 }
 0x81d   : > { %v2987_v34 = vpack.c.bf16 %v2946_v47, %v2944_v46  ;;  %v2799_v38 = vadd.f32 %v2798_v52, %v4512_v26  ;;  %v2800_v53 = vpop.f32.mrb[186].mxu1 }
 0x81e   : > { %v2883_v54 = vmax.f32 %v2797_v51, 0.0  ;;  %v2801_v42 = vadd.f32 %v2800_v53, %v4508_v57  ;;  %v2802_v43 = vpop.f32.mrb[187].mxu1 }
 0x81f   : > { %v2884_v45 = vmax.f32 %v2799_v38, 0.0  ;;  %v2803_v48 = vadd.f32 %v2802_v43, %v4512_v26  ;;  %3018 = vmatprep.subr.bf16.mxu0 %v2987_v34 }
 0x820   : > { %v2885_v63 = vmax.f32 %v2801_v42, 0.0  ;;  %3019 = vmatpush1.bf16.msra.mxu0 %v2986_v50  ;;  %v2947_v17 = vmin.f32 %v2883_v54, 6.0 }
 0x821   : > { %v2886_v2 = vmax.f32 %v2803_v48, 0.0  ;;  %v2948_v37 = vmin.f32 %v2884_v45, 6.0 }
 0x822   : > { %v2949_v20 = vmin.f32 %v2885_v63, 6.0 }
 0x823   : > { %v2950_v40 = vmin.f32 %v2886_v2, 6.0  ;;  %v2806_v60 = vpop.f32.mrb[188].mxu1 }
 0x824   : > { %v2988_v13 = vpack.c.bf16 %v2949_v20, %v2947_v17  ;;  %v2807_v16 = vadd.f32 %v2806_v60, %v4508_v57  ;;  %v2808_v35 = vpop.f32.mrb[189].mxu1 }
 0x825   : > { %v2989_v39 = vpack.c.bf16 %v2950_v40, %v2948_v37  ;;  %v2809_v56 = vadd.f32 %v2808_v35, %v4512_v26  ;;  %v2810_v58 = vpop.f32.mrb[190].mxu1 }
 0x826   : > { %v2887_v55 = vmax.f32 %v2807_v16, 0.0  ;;  %v2811_v61 = vadd.f32 %v2810_v58, %v4508_v57  ;;  %v2812_v62 = vpop.f32.mrb[191].mxu1 }
 0x827   : > { %v2888_v4 = vmax.f32 %v2809_v56, 0.0  ;;  %v2813_v5 = vadd.f32 %v2812_v62, %v4512_v26  ;;  %3020 = vmatprep.subr.bf16.mxu0 %v2989_v39 }
 0x828   : > { %v2889_v0 = vmax.f32 %v2811_v61, 0.0  ;;  %3021 = vmatpush1.bf16.msra.mxu0 %v2988_v13  ;;  %v2951_v7 = vmin.f32 %v2887_v55, 6.0  ;;  %v2963_v13 = vld [vmem:[#allocation2 + $0x8] sm:$0x3] }
 0x829   : > { %v2890_v6 = vmax.f32 %v2813_v5, 0.0  ;;  %v2952_v11 = vmin.f32 %v2888_v4, 6.0 }
 0x82a   : > { %v2953_v9 = vmin.f32 %v2889_v0, 6.0 }
 0x82b   : > { %v2954_v12 = vmin.f32 %v2890_v6, 6.0  ;;  %v2816_v14 = vpop.f32.mrb[192].mxu1 }
 0x82c   : > { %v2990_v1 = vpack.c.bf16 %v2953_v9, %v2951_v7  ;;  %v2817_v3 = vadd.f32 %v2816_v14, %v4508_v57  ;;  %v2818_v15 = vpop.f32.mrb[193].mxu1 }
 0x82d   : > { %v2991_v27 = vpack.c.bf16 %v2954_v12, %v2952_v11  ;;  %v2819_v21 = vadd.f32 %v2818_v15, %v4512_v26  ;;  %v2820_v22 = vpop.f32.mrb[194].mxu1 }
 0x82e   : > { %v2891_v23 = vmax.f32 %v2817_v3, 0.0  ;;  %v2821_v25 = vadd.f32 %v2820_v22, %v4508_v57  ;;  %v2822_v8 = vpop.f32.mrb[195].mxu1 }
 0x82f   : > { %v2892_v10 = vmax.f32 %v2819_v21, 0.0  ;;  %v2823_v28 = vadd.f32 %v2822_v8, %v4512_v26  ;;  %3022 = vmatprep.subr.bf16.mxu0 %v2991_v27 }
 0x830   : > { %v2893_v29 = vmax.f32 %v2821_v25, 0.0  ;;  %3023 = vmatpush1.bf16.msra.mxu0 %v2990_v1  ;;  %v2955_v31 = vmin.f32 %v2891_v23, 6.0 }
 0x831   : > { %v2894_v30 = vmax.f32 %v2823_v28, 0.0  ;;  %v2956_v33 = vmin.f32 %v2892_v10, 6.0 }
 0x832   : > { %v2957_v32 = vmin.f32 %v2893_v29, 6.0 }
 0x833   : > { %v2958_v36 = vmin.f32 %v2894_v30, 6.0  ;;  %v2826_v41 = vpop.f32.mrb[196].mxu1 }
 0x834   : > { %v2992_v59 = vpack.c.bf16 %v2957_v32, %v2955_v31  ;;  %v2827_v44 = vadd.f32 %v2826_v41, %v4508_v57  ;;  %v2828_v46 = vpop.f32.mrb[197].mxu1 }
 0x835   : > { %v2993_v47 = vpack.c.bf16 %v2958_v36, %v2956_v33  ;;  %v2829_v49 = vadd.f32 %v2828_v46, %v4512_v26  ;;  %v2830_v50 = vpop.f32.mrb[198].mxu1 }
 0x836   : > { %v2895_v51 = vmax.f32 %v2827_v44, 0.0  ;;  %v2831_v52 = vadd.f32 %v2830_v50, %v4508_v57  ;;  %v2832_v34 = vpop.f32.mrb[199].mxu1 }
 0x837   : > { %v2896_v38 = vmax.f32 %v2829_v49, 0.0  ;;  %v2833_v53 = vadd.f32 %v2832_v34, %v4512_v26  ;;  %3024 = vmatprep.subr.bf16.mxu0 %v2993_v47 }
 0x838   : > { %v2897_v54 = vmax.f32 %v2831_v52, 0.0  ;;  %3025 = vmatpush1.bf16.msra.mxu0 %v2992_v59  ;;  %v2959_v43 = vmin.f32 %v2895_v51, 6.0 }
 0x839   : > { %v2898_v42 = vmax.f32 %v2833_v53, 0.0  ;;  %v2960_v48 = vmin.f32 %v2896_v38, 6.0 }
 0x83a   : > { %v2961_v45 = vmin.f32 %v2897_v54, 6.0 }
 0x83b   : > { %v2962_v63 = vmin.f32 %v2898_v42, 6.0 }
 0x83c   : > { %v2994_v2 = vpack.c.bf16 %v2961_v45, %v2959_v43 }
 0x83d   : > { %v2995_v17 = vpack.c.bf16 %v2962_v63, %v2960_v48 }
 0x83f   : > { %3026 = vmatprep.subr.bf16.mxu0 %v2995_v17 }
 0x840   : > { %3027 = vmatpush1.bf16.msra.mxu0 %v2994_v2 }
 0x843   : > { %3029 = vmatmul.mubr.bf16.vlgmr.msra.gmra.mrb[168].mxu0 %v3663_v19 }
 0x916   : > { %v3030_v57 = vpop.f32.mrb[168].mxu0 }
 0x917   : > { %v3032_v20 = vpop.f32.mrb[169].mxu0 }
 0x918   : > { %v3039_v37 = vcombine.low %v3030_v57, %v3032_v20  ;;  %v3034_v40 = vpop.f32.mrb[170].mxu0 }
 0x919   : > { %v3035_v26 = vpop.f32.mrb[171].mxu0 }
 0x91a   : > { %v3046_v60 = vrot.slane %v3039_v37, %v4133_v24 }
 0x91c   : > { %v3053_v16 = vrot.slane %v3046_v60, %v4133_v24 }
 0x91e   : > { %v3055_v35 = vadd.f32 %v3053_v16, %v2963_v13 }
 0x920   : > { %3056 = vst.msk [vmem:[#allocation2 + $0x8] sm:$0x3] %vm4108_vm4, %v3055_v35 }
 0x927   : > { %v3061_v39 = vld [vmem:[#allocation2 + $0x8] sm:$0x3] }
 0x928   : > { %v3063_v56 = vmul.f32 0.00390625, %v3061_v39 }
 0x92a   : > { %3065 = vst.msk [vmem:[%s4524_s22 + $0x8] sm:$0x3] %vm4108_vm4, %v3063_v56 }
 0x92b PF: > { %s18_s20 = sadd.s32 1, %s3651_s20   ;;  %s4623_s18 = smov %s3647_s19 }
 0x92c   : > { %p15_p8 = scmp.ge.s32.totalorder %s18_s20, 4   ;;  %s4624_s19 = smov %s4626_s26 }
 0x92e   :  { %17 = sbr.rel (!%p15_p8) target bundleno = 4 (0x4), region = 95 }
 0x935   :  { %3085 = vsyncpa [#allocation4], 1 }
 0x936   :  { %3087 = vsyncpa [#allocation4 + $0x1], 1 }
 0x937   :  { %3088 = vsyncpa [#allocation6], 1 }
 0x938   :  { %3089 = vsyncpa [#allocation9], 1 }

// kernel: multi_task_forward.3
= control target key start
LH: loop header
LB: loop body
LE: loop exit
PB: predicated region body
PF: predicated region fallthrough
CT: control target
= control target key end

     0   :  { %12 = vsyncpa [#allocation3], 0  ;;  %s7302_s0 = inlined_call_operand.vmem [shape: f32[2,1280], index: 0, kind: input, shape index: {}]   ;;  %s7303_s1 = inlined_call_operand.hbm [shape: bf16[1280,1024], index: 1, kind: input, shape index: {}]   ;;  %s7304_s2 = inlined_call_operand.hbm [shape: f32[1,1024], index: 2, kind: input, shape index: {}]   ;;  %s7305_s3 = inlined_call_operand.hbm [shape: bf16[1024,256], index: 3, kind: input, shape index: {}]   ;;  %s7306_s4 = inlined_call_operand.hbm [shape: f32[1,256], index: 4, kind: input, shape index: {}]   ;;  %s7307_s5 = inlined_call_operand.vmem [shape: f32[2,1024], index: 5, kind: output, shape index: {0}]   ;;  %s7308_s6 = inlined_call_operand.vmem [shape: f32[2,256], index: 6, kind: output, shape index: {1}]  }
   0x1   :  { %13 = vsyncpa [#allocation5], 0 }
   0x2   :  { %14 = vsyncpa [#allocation8], 0  ;;  %s7016_s21 = smov [#allocation4]   ;;  %s7017_s23 = smov [#allocation2]  }
   0x3   :  { %s35_s22 = sshll.u32 %s7016_s21, 4  ;;  %s22_s24 = sshll.u32 %s7017_s23, 4  ;;  %s36_s22 = int_to_ptr.vmem [resolvable:$true] %s35_s22  ;;  %s7060_s24 = int_to_ptr.vmem [resolvable:$true] %s22_s24 }
   0x4   :  { %s6922_s27 = scalar_lea.hbm %s7304_s2, 128 }
   0x5   :  { %p6923_p0 = scmp.ne.s32.totalorder %s7304_s2, %s6922_s27  ;;  %p6926_p1 = scmp.lt.u32.totalorder %s6922_s27, %s7304_s2 }
   0x7   :  { %p6928_p2 = pnand %p6926_p1, %p6923_p0 }
   0x9   :  { %6931 = shalt.err (!%p6928_p2)
}
   0xa   :  { %s6932_s8 = scalar_lea.vmem %s36_s22, 128  ;;  %p6937_p4 = scmp.lt.s32.totalorder %s36_s22, %s36_s22 }
   0xb   :  { %p6933_p3 = scmp.ne.s32.totalorder %s36_s22, %s6932_s8  ;;  %p6938_p5 = scmp.lt.s32.totalorder %s6932_s8, %s6932_s8 }
   0xd   :  { %p6939_p6 = por %p6938_p5, %p6937_p4 }
   0xf   :  { %p6940_p7 = pnand %p6939_p6, %p6933_p3 }
  0x11   :  { %6943 = shalt.err (!%p6940_p7)
}
  0x12   :  { %38 = dma.hbm_to_vmem [thread:$0]  %s7304_s2, 128, %s36_s22, [#allocation5]  }
  0x13   :  { %s6944_s13 = scalar_lea.hbm %s7303_s1, 81920 }
  0x14   :  { %p6945_p8 = scmp.ne.s32.totalorder %s7303_s1, %s6944_s13  ;;  %p6948_p9 = scmp.lt.u32.totalorder %s6944_s13, %s7303_s1 }
  0x16   :  { %p6950_p10 = pnand %p6948_p9, %p6945_p8 }
  0x18   :  { %6953 = shalt.err (!%p6950_p10)
}
  0x19   :  { %s6954_s18 = scalar_lea.vmem %s7060_s24, 81920  ;;  %p6959_p12 = scmp.lt.s32.totalorder %s7060_s24, %s7060_s24 }
  0x1a   :  { %p6955_p11 = scmp.ne.s32.totalorder %s7060_s24, %s6954_s18  ;;  %p6960_p13 = scmp.lt.s32.totalorder %s6954_s18, %s6954_s18 }
  0x1c   :  { %p6961_p0 = por %p6960_p13, %p6959_p12 }
  0x1e   :  { %p6962_p1 = pnand %p6961_p0, %p6955_p11 }
  0x20   :  { %6965 = shalt.err (!%p6962_p1)
}
  0x21   :  { %s7018_s2 = smov 512   ;;  %s7019_s19 = smov 32  }
  0x22   :  { %28 = dma.hbm_to_vmem [thread:$0]  %s7303_s1, 81920, %s7060_s24, [#allocation3], %s7018_s2, %s7018_s2, %s7019_s19  }
  0x23   :  { %s7020_s22 = smov [#allocation6]   ;;  %s6966_s27 = scalar_lea.hbm %s7305_s3, 16384 }
  0x24   :  { %s44_s23 = sshll.u32 %s7020_s22, 4  ;;  %p6967_p2 = scmp.ne.s32.totalorder %s7305_s3, %s6966_s27  ;;  %s45_s23 = int_to_ptr.vmem [resolvable:$true] %s44_s23 }
  0x25   :  { %p6970_p3 = scmp.lt.u32.totalorder %s6966_s27, %s7305_s3 }
  0x27   :  { %p6972_p4 = pnand %p6970_p3, %p6967_p2 }
  0x29   :  { %6975 = shalt.err (!%p6972_p4)
}
  0x2a   :  { %s6976_s8 = scalar_lea.vmem %s45_s23, 16384  ;;  %p6981_p6 = scmp.lt.s32.totalorder %s45_s23, %s45_s23 }
  0x2b   :  { %p6977_p5 = scmp.ne.s32.totalorder %s45_s23, %s6976_s8  ;;  %p6982_p7 = scmp.lt.s32.totalorder %s6976_s8, %s6976_s8 }
  0x2d   :  { %p6983_p8 = por %p6982_p7, %p6981_p6 }
  0x2f   :  { %p6984_p9 = pnand %p6983_p8, %p6977_p5 }
  0x31   :  { %6987 = shalt.err (!%p6984_p9)
}
  0x32   :  { %s7021_s1 = smov 128   ;;  %s7022_s24 = smov 8  }
  0x33   :  { %50 = dma.hbm_to_vmem [thread:$0]  %s7305_s3, 16384, %s45_s23, [#allocation5], %s7021_s1, %s7021_s1, %s7022_s24  }
  0x34   :  { %s7023_s11 = smov [#allocation7]   ;;  %s6988_s15 = scalar_lea.hbm %s7306_s4, 32 }
  0x35   :  { %s57_s12 = sshll.u32 %s7023_s11, 4  ;;  %p6989_p10 = scmp.ne.s32.totalorder %s7306_s4, %s6988_s15  ;;  %s58_s12 = int_to_ptr.vmem [resolvable:$true] %s57_s12 }
  0x36   :  { %p6992_p11 = scmp.lt.u32.totalorder %s6988_s15, %s7306_s4 }
  0x38   :  { %p6994_p12 = pnand %p6992_p11, %p6989_p10 }
  0x3a   :  { %6997 = shalt.err (!%p6994_p12)
}
  0x3b   :  { %s6998_s19 = scalar_lea.vmem %s58_s12, 32  ;;  %p7003_p0 = scmp.lt.s32.totalorder %s58_s12, %s58_s12 }
  0x3c   :  { %p6999_p13 = scmp.ne.s32.totalorder %s58_s12, %s6998_s19  ;;  %p7004_p1 = scmp.lt.s32.totalorder %s6998_s19, %s6998_s19 }
  0x3e   :  { %p7005_p2 = por %p7004_p1, %p7003_p0 }
  0x40   :  { %p7006_p3 = pnand %p7005_p2, %p6999_p13 }
  0x42   :  { %7009 = shalt.err (!%p7006_p3)
}
  0x43   :  { %60 = dma.hbm_to_vmem [thread:$0]  %s7306_s4, 32, %s58_s12, [#allocation8]  }
  0x44   :  { %7010 = dma.done.wait [#allocation3], 81920  }
  0x45   :  { %7011 = vsyncadd [#allocation3], 4294885376 }
  0x46   :  { %7012 = dma.done.wait [#allocation5], 16512  }
  0x47   :  { %7013 = vsyncadd [#allocation5], 4294950784 }
  0x48   :  { %7014 = dma.done.wait [#allocation8], 32  }
  0x49   :  { %7015 = vsyncadd [#allocation8], 4294967264  ;;  %v141_v0 = vld [vmem:[#allocation2] sm:$0xff]  ;;  %v7024_v32 = vmov 1983009808   ;;  %v83_v34 = vlaneseq }
  0x4a   :  { %v145_v1 = vld [vmem:[#allocation2 + $0x20] sm:$0xff]  ;;  %v81_v33 = vunpack.c.l.s4 %v7024_v32 }
  0x4b   :  { %v397_v2 = vld [vmem:[#allocation2 + $0x800] sm:$0xff]  ;;  %v5866_v3 = vcombine.high %v141_v0, %v145_v1  ;;  %v5865_v5 = vcombine.low %v141_v0, %v145_v1  ;;  %v7115_v44 = vshrl.u32 %v83_v34, 7  ;;  %v7132_v0 = vld [vmem:[%s7302_s0 + $0x8] sm:$0xff] }
  0x4c   :  { %v401_v4 = vld [vmem:[#allocation2 + $0x820] sm:$0xff]  ;;  %v82_v43 = vunpack.c.0.s8 %v81_v33 }
  0x4d   :  { %v149_v6 = vld [vmem:[#allocation2 + $0x40] sm:$0xff]  ;;  %v6122_v8 = vcombine.high %v397_v2, %v401_v4  ;;  %v6121_v9 = vcombine.low %v397_v2, %v401_v4  ;;  %4023 = vmatprep.subr.bf16.mxu1 %v5866_v3 }
  0x4e   :  { %v153_v7 = vld [vmem:[#allocation2 + $0x60] sm:$0xff]  ;;  %4024 = vmatpush1.bf16.msra.mxu1 %v5865_v5  ;;  %v7118_v53 = vsub.s32 %v82_v43, %v7115_v44 }
  0x4f   :  { %v5874_v10 = vcombine.high %v149_v6, %v153_v7  ;;  %v405_v11 = vld [vmem:[#allocation2 + $0x840] sm:$0xff]  ;;  %4105 = vmatprep.subr.bf16.mxu0 %v6122_v8  ;;  %v5873_v18 = vcombine.low %v149_v6, %v153_v7 }
  0x50   :  { %v409_v12 = vld [vmem:[#allocation2 + $0x860] sm:$0xff]  ;;  %4106 = vmatpush1.bf16.msra.mxu0 %v6121_v9  ;;  %v7136_v3 = vrot.slane %v7132_v0, %v7118_v53 }
  0x51   :  { %v157_v13 = vld [vmem:[#allocation2 + $0x80] sm:$0xff]  ;;  %v6130_v14 = vcombine.high %v405_v11, %v409_v12  ;;  %4025 = vmatprep.subr.bf16.mxu1 %v5874_v10  ;;  %v6129_v19 = vcombine.low %v405_v11, %v409_v12 }
  0x52   :  { %v161_v15 = vld [vmem:[#allocation2 + $0xa0] sm:$0xff]  ;;  %4026 = vmatpush1.bf16.msra.mxu1 %v5873_v18  ;;  %v111_v8 = vcombine.high %v7136_v3, %v7136_v3 }
  0x53   :  { %v413_v16 = vld [vmem:[#allocation2 + $0x880] sm:$0xff]  ;;  %v5882_v20 = vcombine.high %v157_v13, %v161_v15  ;;  %4107 = vmatprep.subr.bf16.mxu0 %v6130_v14  ;;  %v5881_v26 = vcombine.low %v157_v13, %v161_v15 }
  0x54   :  { %v417_v17 = vld [vmem:[#allocation2 + $0x8a0] sm:$0xff]  ;;  %4108 = vmatpush1.bf16.msra.mxu0 %v6129_v19  ;;  %v7144_v15 = vpack.c.bf16 %v111_v8, %v111_v8 }
  0x55   :  { %v6138_v21 = vcombine.high %v413_v16, %v417_v17  ;;  %v165_v22 = vld [vmem:[#allocation2 + $0xc0] sm:$0xff]  ;;  %4027 = vmatprep.subr.bf16.mxu1 %v5882_v20  ;;  %v6137_v27 = vcombine.low %v413_v16, %v417_v17 }
  0x56   :  { %v169_v23 = vld [vmem:[#allocation2 + $0xe0] sm:$0xff]  ;;  %4028 = vmatpush1.bf16.msra.mxu1 %v5881_v26  ;;  %4137 = vmatprep.mubr.bf16.mxu0 %v7144_v15 }
  0x57   :  { %v421_v24 = vld [vmem:[#allocation2 + $0x8c0] sm:$0xff]  ;;  %v5890_v28 = vcombine.high %v165_v22, %v169_v23  ;;  %4109 = vmatprep.subr.bf16.mxu0 %v6138_v21  ;;  %v5889_v37 = vcombine.low %v165_v22, %v169_v23 }
  0x58   :  { %v425_v25 = vld [vmem:[#allocation2 + $0x8e0] sm:$0xff]  ;;  %4110 = vmatpush1.bf16.msra.mxu0 %v6137_v27 }
  0x59   :  { %v6146_v29 = vcombine.high %v421_v24, %v425_v25  ;;  %v173_v30 = vld [vmem:[#allocation2 + $0x100] sm:$0xff]  ;;  %4029 = vmatprep.subr.bf16.mxu1 %v5890_v28  ;;  %v6145_v38 = vcombine.low %v421_v24, %v425_v25 }
  0x5a   :  { %v177_v31 = vld [vmem:[#allocation2 + $0x120] sm:$0xff]  ;;  %4030 = vmatpush1.bf16.msra.mxu1 %v5889_v37 }
  0x5b   :  { %v429_v35 = vld [vmem:[#allocation2 + $0x900] sm:$0xff]  ;;  %v5898_v39 = vcombine.high %v173_v30, %v177_v31  ;;  %4111 = vmatprep.subr.bf16.mxu0 %v6146_v29  ;;  %v5897_v47 = vcombine.low %v173_v30, %v177_v31 }
  0x5c   :  { %v433_v36 = vld [vmem:[#allocation2 + $0x920] sm:$0xff]  ;;  %4112 = vmatpush1.bf16.msra.mxu0 %v6145_v38 }
  0x5d   :  { %v6154_v40 = vcombine.high %v429_v35, %v433_v36  ;;  %v181_v41 = vld [vmem:[#allocation2 + $0x140] sm:$0xff]  ;;  %4031 = vmatprep.subr.bf16.mxu1 %v5898_v39  ;;  %v6153_v48 = vcombine.low %v429_v35, %v433_v36 }
  0x5e   :  { %v185_v42 = vld [vmem:[#allocation2 + $0x160] sm:$0xff]  ;;  %4032 = vmatpush1.bf16.msra.mxu1 %v5897_v47 }
  0x5f   :  { %v437_v45 = vld [vmem:[#allocation2 + $0x940] sm:$0xff]  ;;  %v5906_v49 = vcombine.high %v181_v41, %v185_v42  ;;  %4113 = vmatprep.subr.bf16.mxu0 %v6154_v40  ;;  %v5905_v56 = vcombine.low %v181_v41, %v185_v42 }
  0x60   :  { %v441_v46 = vld [vmem:[#allocation2 + $0x960] sm:$0xff]  ;;  %4114 = vmatpush1.bf16.msra.mxu0 %v6153_v48 }
  0x61   :  { %v6162_v50 = vcombine.high %v437_v45, %v441_v46  ;;  %v189_v51 = vld [vmem:[#allocation2 + $0x180] sm:$0xff]  ;;  %4033 = vmatprep.subr.bf16.mxu1 %v5906_v49  ;;  %v6161_v57 = vcombine.low %v437_v45, %v441_v46 }
  0x62   :  { %v193_v52 = vld [vmem:[#allocation2 + $0x1a0] sm:$0xff]  ;;  %4034 = vmatpush1.bf16.msra.mxu1 %v5905_v56 }
  0x63   :  { %v445_v54 = vld [vmem:[#allocation2 + $0x980] sm:$0xff]  ;;  %v5914_v58 = vcombine.high %v189_v51, %v193_v52  ;;  %4115 = vmatprep.subr.bf16.mxu0 %v6162_v50  ;;  %v5913_v4 = vcombine.low %v189_v51, %v193_v52 }
  0x64   :  { %v449_v55 = vld [vmem:[#allocation2 + $0x9a0] sm:$0xff]  ;;  %4116 = vmatpush1.bf16.msra.mxu0 %v6161_v57 }
  0x65   :  { %v7123_v59 = vld [vmem:[%s7302_s0] sm:$0xff]  ;;  %v6170_v60 = vcombine.high %v445_v54, %v449_v55  ;;  %4035 = vmatprep.subr.bf16.mxu1 %v5914_v58  ;;  %v6169_v6 = vcombine.low %v445_v54, %v449_v55 }
  0x66   :  { %v197_v61 = vld [vmem:[#allocation2 + $0x1c0] sm:$0xff]  ;;  %v7127_v63 = vrot.slane %v7123_v59, %v7118_v53  ;;  %4036 = vmatpush1.bf16.msra.mxu1 %v5913_v4 }
  0x67   :  { %v201_v62 = vld [vmem:[#allocation2 + $0x1e0] sm:$0xff]  ;;  %4117 = vmatprep.subr.bf16.mxu0 %v6170_v60 }
  0x68   :  { %v453_v1 = vld [vmem:[#allocation2 + $0x9c0] sm:$0xff]  ;;  %v94_v5 = vcombine.high %v7127_v63, %v7127_v63  ;;  %v5922_v7 = vcombine.high %v197_v61, %v201_v62  ;;  %v5921_v16 = vcombine.low %v197_v61, %v201_v62  ;;  %4118 = vmatpush1.bf16.msra.mxu0 %v6169_v6 }
  0x69   :  { %v457_v2 = vld [vmem:[#allocation2 + $0x9e0] sm:$0xff] }
  0x6a   :  { %v6178_v9 = vcombine.high %v453_v1, %v457_v2  ;;  %v205_v10 = vld [vmem:[#allocation2 + $0x200] sm:$0xff]  ;;  %v7142_v12 = vpack.c.bf16 %v94_v5, %v94_v5  ;;  %4037 = vmatprep.subr.bf16.mxu1 %v5922_v7  ;;  %v6177_v17 = vcombine.low %v453_v1, %v457_v2 }
  0x6b   :  { %v209_v11 = vld [vmem:[#allocation2 + $0x220] sm:$0xff]  ;;  %4038 = vmatpush1.bf16.msra.mxu1 %v5921_v16 }
  0x6c   :  { %v461_v13 = vld [vmem:[#allocation2 + $0xa00] sm:$0xff]  ;;  %4055 = vmatprep.mubr.bf16.mxu1 %v7142_v12  ;;  %v5930_v18 = vcombine.high %v205_v10, %v209_v11  ;;  %4119 = vmatprep.subr.bf16.mxu0 %v6178_v9  ;;  %v5929_v24 = vcombine.low %v205_v10, %v209_v11 }
  0x6d   :  { %v465_v14 = vld [vmem:[#allocation2 + $0xa20] sm:$0xff]  ;;  %4120 = vmatpush1.bf16.msra.mxu0 %v6177_v17  ;;  %v96_v17 = vcombine.high %v7132_v0, %v7132_v0 }
  0x6e   :  { %v6186_v19 = vcombine.high %v461_v13, %v465_v14  ;;  %v213_v20 = vld [vmem:[#allocation2 + $0x240] sm:$0xff]  ;;  %4039 = vmatprep.subr.bf16.mxu1 %v5930_v18  ;;  %v6185_v25 = vcombine.low %v461_v13, %v465_v14  ;;  %v79_v13 = vcombine.high %v7123_v59, %v7123_v59 }
  0x6f   :  { %v217_v21 = vld [vmem:[#allocation2 + $0x260] sm:$0xff]  ;;  %4040 = vmatpush1.bf16.msra.mxu1 %v5929_v24 }
  0x70   :  { %v469_v22 = vld [vmem:[#allocation2 + $0xa40] sm:$0xff]  ;;  %v5938_v26 = vcombine.high %v213_v20, %v217_v21  ;;  %4121 = vmatprep.subr.bf16.mxu0 %v6186_v19  ;;  %v5937_v32 = vcombine.low %v213_v20, %v217_v21  ;;  %v7153_v24 = vrot.slane %v79_v13, %v7118_v53 }
  0x71   :  { %v473_v23 = vld [vmem:[#allocation2 + $0xa60] sm:$0xff]  ;;  %4122 = vmatpush1.bf16.msra.mxu0 %v6185_v25 }
  0x72   :  { %v6194_v27 = vcombine.high %v469_v22, %v473_v23  ;;  %v221_v28 = vld [vmem:[#allocation2 + $0x280] sm:$0xff]  ;;  %4041 = vmatprep.subr.bf16.mxu1 %v5938_v26  ;;  %v6193_v33 = vcombine.low %v469_v22, %v473_v23  ;;  %v7156_v26 = vrot.slane %v96_v17, %v7118_v53 }
  0x73   :  { %v225_v29 = vld [vmem:[#allocation2 + $0x2a0] sm:$0xff]  ;;  %4042 = vmatpush1.bf16.msra.mxu1 %v5937_v32  ;;  %v95_v32 = vcombine.high %v7153_v24, %v7153_v24 }
  0x74   :  { %v477_v30 = vld [vmem:[#allocation2 + $0xa80] sm:$0xff]  ;;  %v5946_v34 = vcombine.high %v221_v28, %v225_v29  ;;  %4123 = vmatprep.subr.bf16.mxu0 %v6194_v27  ;;  %v5945_v40 = vcombine.low %v221_v28, %v225_v29 }
  0x75   :  { %v481_v31 = vld [vmem:[#allocation2 + $0xaa0] sm:$0xff]  ;;  %4124 = vmatpush1.bf16.msra.mxu0 %v6193_v33  ;;  %v7162_v33 = vpack.c.bf16 %v7127_v63, %v7127_v63 }
  0x76   :  { %v6202_v35 = vcombine.high %v477_v30, %v481_v31  ;;  %v229_v36 = vld [vmem:[#allocation2 + $0x2c0] sm:$0xff]  ;;  %4043 = vmatprep.subr.bf16.mxu1 %v5946_v34  ;;  %v6201_v41 = vcombine.low %v477_v30, %v481_v31 }
  0x77   :  { %v233_v37 = vld [vmem:[#allocation2 + $0x2e0] sm:$0xff]  ;;  %4044 = vmatpush1.bf16.msra.mxu1 %v5945_v40 }
  0x78   :  { %v485_v38 = vld [vmem:[#allocation2 + $0xac0] sm:$0xff]  ;;  %v5954_v42 = vcombine.high %v229_v36, %v233_v37  ;;  %4125 = vmatprep.subr.bf16.mxu0 %v6202_v35  ;;  %v5953_v49 = vcombine.low %v229_v36, %v233_v37  ;;  %v112_v36 = vcombine.high %v7156_v26, %v7156_v26 }
  0x79   :  { %v489_v39 = vld [vmem:[#allocation2 + $0xae0] sm:$0xff]  ;;  %4126 = vmatpush1.bf16.msra.mxu0 %v6201_v41 }
  0x7a   :  { %v6210_v43 = vcombine.high %v485_v38, %v489_v39  ;;  %v237_v45 = vld [vmem:[#allocation2 + $0x300] sm:$0xff]  ;;  %4045 = vmatprep.subr.bf16.mxu1 %v5954_v42  ;;  %v6209_v50 = vcombine.low %v485_v38, %v489_v39  ;;  %v7168_v38 = vpack.c.bf16 %v7136_v3, %v7136_v3 }
  0x7b   :  { %v241_v46 = vld [vmem:[#allocation2 + $0x320] sm:$0xff]  ;;  %4046 = vmatpush1.bf16.msra.mxu1 %v5953_v49 }
  0x7c   :  { %v493_v47 = vld [vmem:[#allocation2 + $0xb00] sm:$0xff]  ;;  %v5962_v51 = vcombine.high %v237_v45, %v241_v46  ;;  %4127 = vmatprep.subr.bf16.mxu0 %v6210_v43  ;;  %v5961_v58 = vcombine.low %v237_v45, %v241_v46  ;;  %v7170_v46 = vpack.c.bf16 %v95_v32, %v95_v32 }
  0x7d   :  { %v497_v48 = vld [vmem:[#allocation2 + $0xb20] sm:$0xff]  ;;  %4128 = vmatpush1.bf16.msra.mxu0 %v6209_v50 }
  0x7e   :  { %v6218_v52 = vcombine.high %v493_v47, %v497_v48  ;;  %v245_v54 = vld [vmem:[#allocation2 + $0x340] sm:$0xff]  ;;  %4047 = vmatprep.subr.bf16.mxu1 %v5962_v51  ;;  %v6217_v60 = vcombine.low %v493_v47, %v497_v48  ;;  %v7173_v47 = vpack.c.bf16 %v112_v36, %v112_v36 }
  0x7f   :  { %v249_v55 = vld [vmem:[#allocation2 + $0x360] sm:$0xff]  ;;  %4048 = vmatpush1.bf16.msra.mxu1 %v5961_v58 }
  0x80   :  { %v501_v56 = vld [vmem:[#allocation2 + $0xb40] sm:$0xff]  ;;  %v5970_v61 = vcombine.high %v245_v54, %v249_v55  ;;  %4129 = vmatprep.subr.bf16.mxu0 %v6218_v52  ;;  %v5969_v6 = vcombine.low %v245_v54, %v249_v55 }
  0x81   :  { %v505_v57 = vld [vmem:[#allocation2 + $0xb60] sm:$0xff]  ;;  %4130 = vmatpush1.bf16.msra.mxu0 %v6217_v60 }
  0x82   :  { %v6226_v62 = vcombine.high %v501_v56, %v505_v57  ;;  %v253_v1 = vld [vmem:[#allocation2 + $0x380] sm:$0xff]  ;;  %4049 = vmatprep.subr.bf16.mxu1 %v5970_v61  ;;  %v6225_v7 = vcombine.low %v501_v56, %v505_v57 }
  0x83   :  { %v257_v2 = vld [vmem:[#allocation2 + $0x3a0] sm:$0xff]  ;;  %4050 = vmatpush1.bf16.msra.mxu1 %v5969_v6 }
  0x84   :  { %v509_v4 = vld [vmem:[#allocation2 + $0xb80] sm:$0xff]  ;;  %v5978_v8 = vcombine.high %v253_v1, %v257_v2  ;;  %4131 = vmatprep.subr.bf16.mxu0 %v6226_v62  ;;  %v5977_v18 = vcombine.low %v253_v1, %v257_v2 }
  0x85   :  { %v513_v5 = vld [vmem:[#allocation2 + $0xba0] sm:$0xff]  ;;  %4132 = vmatpush1.bf16.msra.mxu0 %v6225_v7 }
  0x86   :  { %v6234_v9 = vcombine.high %v509_v4, %v513_v5  ;;  %v261_v10 = vld [vmem:[#allocation2 + $0x3c0] sm:$0xff]  ;;  %4051 = vmatprep.subr.bf16.mxu1 %v5978_v8  ;;  %v6233_v19 = vcombine.low %v509_v4, %v513_v5 }
  0x87   :  { %v265_v11 = vld [vmem:[#allocation2 + $0x3e0] sm:$0xff]  ;;  %4052 = vmatpush1.bf16.msra.mxu1 %v5977_v18 }
  0x88   :  { %v517_v14 = vld [vmem:[#allocation2 + $0xbc0] sm:$0xff]  ;;  %v5986_v20 = vcombine.high %v261_v10, %v265_v11  ;;  %4133 = vmatprep.subr.bf16.mxu0 %v6234_v9  ;;  %v5985_v0 = vcombine.low %v261_v10, %v265_v11 }
  0x89   :  { %v521_v16 = vld [vmem:[#allocation2 + $0xbe0] sm:$0xff]  ;;  %4134 = vmatpush1.bf16.msra.mxu0 %v6233_v19 }
  0x8a   :  { %v6242_v21 = vcombine.high %v517_v14, %v521_v16  ;;  %v269_v22 = vld [vmem:[#allocation2 + $0x400] sm:$0xff]  ;;  %4053 = vmatprep.subr.bf16.mxu1 %v5986_v20  ;;  %v6241_v27 = vcombine.low %v517_v14, %v521_v16 }
  0x8b   :  { %v273_v23 = vld [vmem:[#allocation2 + $0x420] sm:$0xff]  ;;  %4054 = vmatpush1.bf16.msra.mxu1 %v5985_v0 }
  0x8c   :  { %v525_v25 = vld [vmem:[#allocation2 + $0xc00] sm:$0xff]  ;;  %v5994_v28 = vcombine.high %v269_v22, %v273_v23  ;;  %4135 = vmatprep.subr.bf16.mxu0 %v6242_v21  ;;  %v5993_v37 = vcombine.low %v269_v22, %v273_v23 }
  0x8d   :  { %v529_v59 = vld [vmem:[#allocation2 + $0xc20] sm:$0xff]  ;;  %4136 = vmatpush1.bf16.msra.mxu0 %v6241_v27 }
  0x8e   :  { %v6250_v29 = vcombine.high %v525_v25, %v529_v59  ;;  %v277_v30 = vld [vmem:[#allocation2 + $0x440] sm:$0xff]  ;;  %4064 = vmatprep.subr.bf16.mxu1 %v5994_v28  ;;  %v6249_v39 = vcombine.low %v525_v25, %v529_v59  ;;  %4056 = vmatmul.mubr.bf16.vlgmr.msra.gmra.mrb[0].mxu1 %v7162_v33 }
  0x8f   :  { %v281_v31 = vld [vmem:[#allocation2 + $0x460] sm:$0xff]  ;;  %4065 = vmatpush1.bf16.msra.mxu1 %v5993_v37  ;;  %4096 = vmatprep.mubr.bf16.mxu1 %v7170_v46 }
  0x90   :  { %v533_v34 = vld [vmem:[#allocation2 + $0xc40] sm:$0xff]  ;;  %v6002_v40 = vcombine.high %v277_v30, %v281_v31  ;;  %4146 = vmatprep.subr.bf16.mxu0 %v6250_v29  ;;  %4138 = vmatmul.mubr.bf16.vlgmr.msra.gmra.mrb[0].mxu0 %v7168_v38  ;;  %v6001_v3 = vcombine.low %v277_v30, %v281_v31 }
  0x91   :  { %v537_v35 = vld [vmem:[#allocation2 + $0xc60] sm:$0xff]  ;;  %4147 = vmatpush1.bf16.msra.mxu0 %v6249_v39  ;;  %4178 = vmatprep.mubr.bf16.mxu0 %v7173_v47 }
  0x92   :  { %v285_v41 = vld [vmem:[#allocation2 + $0x480] sm:$0xff]  ;;  %v6258_v63 = vcombine.high %v533_v34, %v537_v35  ;;  %4066 = vmatprep.subr.bf16.mxu1 %v6002_v40  ;;  %v6257_v48 = vcombine.low %v533_v34, %v537_v35 }
  0x93   :  { %v289_v42 = vld [vmem:[#allocation2 + $0x4a0] sm:$0xff]  ;;  %4067 = vmatpush1.bf16.msra.mxu1 %v6001_v3 }
  0x94   :  { %v541_v43 = vld [vmem:[#allocation2 + $0xc80] sm:$0xff]  ;;  %v6010_v49 = vcombine.high %v285_v41, %v289_v42  ;;  %4148 = vmatprep.subr.bf16.mxu0 %v6258_v63  ;;  %v6009_v56 = vcombine.low %v285_v41, %v289_v42 }
  0x95   :  { %v545_v45 = vld [vmem:[#allocation2 + $0xca0] sm:$0xff]  ;;  %4149 = vmatpush1.bf16.msra.mxu0 %v6257_v48 }
  0x96   :  { %v293_v50 = vld [vmem:[#allocation2 + $0x4c0] sm:$0xff]  ;;  %v6266_v54 = vcombine.high %v541_v43, %v545_v45  ;;  %4068 = vmatprep.subr.bf16.mxu1 %v6010_v49  ;;  %v6265_v57 = vcombine.low %v541_v43, %v545_v45 }
  0x97   :  { %v297_v51 = vld [vmem:[#allocation2 + $0x4e0] sm:$0xff]  ;;  %4069 = vmatpush1.bf16.msra.mxu1 %v6009_v56 }
  0x98   :  { %v549_v52 = vld [vmem:[#allocation2 + $0xcc0] sm:$0xff]  ;;  %v6018_v58 = vcombine.high %v293_v50, %v297_v51  ;;  %4150 = vmatprep.subr.bf16.mxu0 %v6266_v54  ;;  %v6017_v4 = vcombine.low %v293_v50, %v297_v51 }
  0x99   :  { %v553_v55 = vld [vmem:[#allocation2 + $0xce0] sm:$0xff]  ;;  %4151 = vmatpush1.bf16.msra.mxu0 %v6265_v57 }
  0x9a   :  { %v301_v60 = vld [vmem:[#allocation2 + $0x500] sm:$0xff]  ;;  %v6274_v1 = vcombine.high %v549_v52, %v553_v55  ;;  %4070 = vmatprep.subr.bf16.mxu1 %v6018_v58  ;;  %v6273_v5 = vcombine.low %v549_v52, %v553_v55 }
  0x9b   :  { %v305_v61 = vld [vmem:[#allocation2 + $0x520] sm:$0xff]  ;;  %4071 = vmatpush1.bf16.msra.mxu1 %v6017_v4 }
  0x9c   :  { %v557_v62 = vld [vmem:[#allocation2 + $0xd00] sm:$0xff]  ;;  %v6026_v6 = vcombine.high %v301_v60, %v305_v61  ;;  %4152 = vmatprep.subr.bf16.mxu0 %v6274_v1  ;;  %v6025_v13 = vcombine.low %v301_v60, %v305_v61 }
  0x9d   :  { %v561_v2 = vld [vmem:[#allocation2 + $0xd20] sm:$0xff]  ;;  %4153 = vmatpush1.bf16.msra.mxu0 %v6273_v5 }
  0x9e   :  { %v309_v7 = vld [vmem:[#allocation2 + $0x540] sm:$0xff]  ;;  %v6282_v10 = vcombine.high %v557_v62, %v561_v2  ;;  %4072 = vmatprep.subr.bf16.mxu1 %v6026_v6  ;;  %v6281_v14 = vcombine.low %v557_v62, %v561_v2 }
  0x9f   :  { %v313_v8 = vld [vmem:[#allocation2 + $0x560] sm:$0xff]  ;;  %4073 = vmatpush1.bf16.msra.mxu1 %v6025_v13 }
  0xa0   :  { %v565_v9 = vld [vmem:[#allocation2 + $0xd40] sm:$0xff]  ;;  %v6034_v16 = vcombine.high %v309_v7, %v313_v8  ;;  %4154 = vmatprep.subr.bf16.mxu0 %v6282_v10  ;;  %v6033_v22 = vcombine.low %v309_v7, %v313_v8 }
  0xa1   :  { %v569_v11 = vld [vmem:[#allocation2 + $0xd60] sm:$0xff]  ;;  %4155 = vmatpush1.bf16.msra.mxu0 %v6281_v14 }
  0xa2   :  { %v317_v17 = vld [vmem:[#allocation2 + $0x580] sm:$0xff]  ;;  %v6290_v20 = vcombine.high %v565_v9, %v569_v11  ;;  %4074 = vmatprep.subr.bf16.mxu1 %v6034_v16  ;;  %v6289_v23 = vcombine.low %v565_v9, %v569_v11 }
  0xa3   :  { %v321_v18 = vld [vmem:[#allocation2 + $0x5a0] sm:$0xff]  ;;  %4075 = vmatpush1.bf16.msra.mxu1 %v6033_v22 }
  0xa4   :  { %v573_v19 = vld [vmem:[#allocation2 + $0xd80] sm:$0xff]  ;;  %v6042_v25 = vcombine.high %v317_v17, %v321_v18  ;;  %4156 = vmatprep.subr.bf16.mxu0 %v6290_v20  ;;  %v6041_v30 = vcombine.low %v317_v17, %v321_v18 }
  0xa5   :  { %v577_v21 = vld [vmem:[#allocation2 + $0xda0] sm:$0xff]  ;;  %4157 = vmatpush1.bf16.msra.mxu0 %v6289_v23 }
  0xa6   :  { %v325_v59 = vld [vmem:[#allocation2 + $0x5c0] sm:$0xff]  ;;  %v6298_v28 = vcombine.high %v573_v19, %v577_v21  ;;  %4076 = vmatprep.subr.bf16.mxu1 %v6042_v25  ;;  %v6297_v31 = vcombine.low %v573_v19, %v577_v21 }
  0xa7   :  { %v329_v0 = vld [vmem:[#allocation2 + $0x5e0] sm:$0xff]  ;;  %4077 = vmatpush1.bf16.msra.mxu1 %v6041_v30 }
  0xa8   :  { %v581_v27 = vld [vmem:[#allocation2 + $0xdc0] sm:$0xff]  ;;  %v6050_v32 = vcombine.high %v325_v59, %v329_v0  ;;  %4158 = vmatprep.subr.bf16.mxu0 %v6298_v28  ;;  %v6049_v40 = vcombine.low %v325_v59, %v329_v0 }
  0xa9   :  { %v585_v29 = vld [vmem:[#allocation2 + $0xde0] sm:$0xff]  ;;  %4159 = vmatpush1.bf16.msra.mxu0 %v6297_v31 }
  0xaa   :  { %v333_v34 = vld [vmem:[#allocation2 + $0x600] sm:$0xff]  ;;  %v6306_v37 = vcombine.high %v581_v27, %v585_v29  ;;  %4078 = vmatprep.subr.bf16.mxu1 %v6050_v32  ;;  %v6305_v41 = vcombine.low %v581_v27, %v585_v29 }
  0xab   :  { %v337_v35 = vld [vmem:[#allocation2 + $0x620] sm:$0xff]  ;;  %4079 = vmatpush1.bf16.msra.mxu1 %v6049_v40 }
  0xac   :  { %v589_v36 = vld [vmem:[#allocation2 + $0xe00] sm:$0xff]  ;;  %v6058_v42 = vcombine.high %v333_v34, %v337_v35  ;;  %4160 = vmatprep.subr.bf16.mxu0 %v6306_v37  ;;  %v6057_v49 = vcombine.low %v333_v34, %v337_v35 }
  0xad   :  { %v593_v39 = vld [vmem:[#allocation2 + $0xe20] sm:$0xff]  ;;  %4161 = vmatpush1.bf16.msra.mxu0 %v6305_v41 }
  0xae   :  { %v341_v43 = vld [vmem:[#allocation2 + $0x640] sm:$0xff]  ;;  %v6314_v3 = vcombine.high %v589_v36, %v593_v39  ;;  %4080 = vmatprep.subr.bf16.mxu1 %v6058_v42  ;;  %v6313_v50 = vcombine.low %v589_v36, %v593_v39 }
  0xaf   :  { %v345_v63 = vld [vmem:[#allocation2 + $0x660] sm:$0xff]  ;;  %4081 = vmatpush1.bf16.msra.mxu1 %v6057_v49  ;;  %v146_v49 = vld [vmem:[#allocation2 + $0x28] sm:$0xff] }
  0xb0   :  { %v597_v45 = vld [vmem:[#allocation2 + $0xe40] sm:$0xff]  ;;  %v6066_v51 = vcombine.high %v341_v43, %v345_v63  ;;  %4162 = vmatprep.subr.bf16.mxu0 %v6314_v3  ;;  %v6065_v58 = vcombine.low %v341_v43, %v345_v63 }
  0xb1   :  { %v601_v48 = vld [vmem:[#allocation2 + $0xe60] sm:$0xff]  ;;  %4163 = vmatpush1.bf16.msra.mxu0 %v6313_v50 }
  0xb2   :  { %v349_v52 = vld [vmem:[#allocation2 + $0x680] sm:$0xff]  ;;  %v6322_v56 = vcombine.high %v597_v45, %v601_v48  ;;  %4082 = vmatprep.subr.bf16.mxu1 %v6066_v51  ;;  %v6321_v60 = vcombine.low %v597_v45, %v601_v48  ;;  %v142_v48 = vld [vmem:[#allocation2 + $0x8] sm:$0xff]  ;;  %v7181_v51 = vld.sshfl [vmem:[%s7302_s0 + $0x10] sm:$0x33 pattern:$0x76325410] }
  0xb3   :  { %v353_v54 = vld [vmem:[#allocation2 + $0x6a0] sm:$0xff]  ;;  %4083 = vmatpush1.bf16.msra.mxu1 %v6065_v58  ;;  %v150_v58 = vld [vmem:[#allocation2 + $0x48] sm:$0xff] }
  0xb4   :  { %v605_v55 = vld [vmem:[#allocation2 + $0xe80] sm:$0xff]  ;;  %v6074_v61 = vcombine.high %v349_v52, %v353_v54  ;;  %4164 = vmatprep.subr.bf16.mxu0 %v6322_v56  ;;  %v6073_v6 = vcombine.low %v349_v52, %v353_v54 }
  0xb5   :  { %v609_v57 = vld [vmem:[#allocation2 + $0xea0] sm:$0xff]  ;;  %4165 = vmatpush1.bf16.msra.mxu0 %v6321_v60 }
  0xb6   :  { %v357_v62 = vld [vmem:[#allocation2 + $0x6c0] sm:$0xff]  ;;  %v6330_v4 = vcombine.high %v605_v55, %v609_v57  ;;  %4084 = vmatprep.subr.bf16.mxu1 %v6074_v61  ;;  %v6329_v7 = vcombine.low %v605_v55, %v609_v57  ;;  %v5868_v55 = vcombine.high %v142_v48, %v146_v49  ;;  %v154_v61 = vld [vmem:[#allocation2 + $0x68] sm:$0xff] }
  0xb7   :  { %v361_v1 = vld [vmem:[#allocation2 + $0x6e0] sm:$0xff]  ;;  %4085 = vmatpush1.bf16.msra.mxu1 %v6073_v6  ;;  %v5876_v6 = vcombine.high %v150_v58, %v154_v61 }
  0xb8   :  { %v613_v2 = vld [vmem:[#allocation2 + $0xec0] sm:$0xff]  ;;  %v6082_v8 = vcombine.high %v357_v62, %v361_v1  ;;  %4166 = vmatprep.subr.bf16.mxu0 %v6330_v4  ;;  %v6081_v16 = vcombine.low %v357_v62, %v361_v1  ;;  %v120_v62 = vcombine.high %v7181_v51, %v7181_v51  ;;  %v7187_v1 = vpack.c.bf16 %v7153_v24, %v7153_v24 }
  0xb9   :  { %v617_v5 = vld [vmem:[#allocation2 + $0xee0] sm:$0xff]  ;;  %4167 = vmatpush1.bf16.msra.mxu0 %v6329_v7  ;;  %v7191_v4 = vpack.c.bf16 %v7156_v26, %v7156_v26 }
  0xba   :  { %v365_v9 = vld [vmem:[#allocation2 + $0x700] sm:$0xff]  ;;  %v6338_v13 = vcombine.high %v613_v2, %v617_v5  ;;  %4086 = vmatprep.subr.bf16.mxu1 %v6082_v8  ;;  %v6337_v17 = vcombine.low %v613_v2, %v617_v5  ;;  %v5867_v2 = vcombine.low %v142_v48, %v146_v49  ;;  %v158_v8 = vld [vmem:[#allocation2 + $0x88] sm:$0xff] }
  0xbb   :  { %v369_v10 = vld [vmem:[#allocation2 + $0x720] sm:$0xff]  ;;  %4087 = vmatpush1.bf16.msra.mxu1 %v6081_v16 }
  0xbc   :  { %v621_v11 = vld [vmem:[#allocation2 + $0xf00] sm:$0xff]  ;;  %v6090_v18 = vcombine.high %v365_v9, %v369_v10  ;;  %4168 = vmatprep.subr.bf16.mxu0 %v6338_v13  ;;  %v6089_v25 = vcombine.low %v365_v9, %v369_v10  ;;  %v162_v9 = vld [vmem:[#allocation2 + $0xa8] sm:$0xff]  ;;  %v7193_v10 = vpack.c.bf16 %v120_v62, %v120_v62  ;;  %v5875_v13 = vcombine.low %v150_v58, %v154_v61 }
  0xbd   :  { %v625_v14 = vld [vmem:[#allocation2 + $0xf20] sm:$0xff]  ;;  %4169 = vmatpush1.bf16.msra.mxu0 %v6337_v17  ;;  %v166_v17 = vld [vmem:[#allocation2 + $0xc8] sm:$0xff] }
  0xbe   :  { %v373_v19 = vld [vmem:[#allocation2 + $0x740] sm:$0xff]  ;;  %v6346_v22 = vcombine.high %v621_v11, %v625_v14  ;;  %4088 = vmatprep.subr.bf16.mxu1 %v6090_v18  ;;  %v6345_v59 = vcombine.low %v621_v11, %v625_v14  ;;  %v5884_v14 = vcombine.high %v158_v8, %v162_v9  ;;  %v170_v18 = vld [vmem:[#allocation2 + $0xe8] sm:$0xff] }
  0xbf   :  { %v377_v20 = vld [vmem:[#allocation2 + $0x760] sm:$0xff]  ;;  %4089 = vmatpush1.bf16.msra.mxu1 %v6089_v25 }
  0xc0   :  { %v629_v21 = vld [vmem:[#allocation2 + $0xf40] sm:$0xff]  ;;  %v6098_v0 = vcombine.high %v373_v19, %v377_v20  ;;  %4170 = vmatprep.subr.bf16.mxu0 %v6346_v22  ;;  %v6097_v32 = vcombine.low %v373_v19, %v377_v20 }
  0xc1   :  { %v633_v23 = vld [vmem:[#allocation2 + $0xf60] sm:$0xff]  ;;  %4171 = vmatpush1.bf16.msra.mxu0 %v6345_v59  ;;  %v174_v59 = vld [vmem:[#allocation2 + $0x108] sm:$0xff] }
  0xc2   :  { %v381_v27 = vld [vmem:[#allocation2 + $0x780] sm:$0xff]  ;;  %v6354_v30 = vcombine.high %v629_v21, %v633_v23  ;;  %4090 = vmatprep.subr.bf16.mxu1 %v6098_v0  ;;  %v6353_v34 = vcombine.low %v629_v21, %v633_v23  ;;  %v5883_v21 = vcombine.low %v158_v8, %v162_v9  ;;  %v5892_v23 = vcombine.high %v166_v17, %v170_v18  ;;  %v178_v0 = vld [vmem:[#allocation2 + $0x128] sm:$0xff] }
  0xc3   :  { %v385_v28 = vld [vmem:[#allocation2 + $0x7a0] sm:$0xff]  ;;  %4091 = vmatpush1.bf16.msra.mxu1 %v6097_v32 }
  0xc4   :  { %v637_v29 = vld [vmem:[#allocation2 + $0xf80] sm:$0xff]  ;;  %v6106_v35 = vcombine.high %v381_v27, %v385_v28  ;;  %4172 = vmatprep.subr.bf16.mxu0 %v6354_v30  ;;  %v6105_v42 = vcombine.low %v381_v27, %v385_v28 }
  0xc5   :  { %v641_v31 = vld [vmem:[#allocation2 + $0xfa0] sm:$0xff]  ;;  %4173 = vmatpush1.bf16.msra.mxu0 %v6353_v34  ;;  %v182_v34 = vld [vmem:[#allocation2 + $0x148] sm:$0xff] }
  0xc6   :  { %v389_v36 = vld [vmem:[#allocation2 + $0x7c0] sm:$0xff]  ;;  %v6362_v40 = vcombine.high %v637_v29, %v641_v31  ;;  %4092 = vmatprep.subr.bf16.mxu1 %v6106_v35  ;;  %v6361_v43 = vcombine.low %v637_v29, %v641_v31  ;;  %v5891_v29 = vcombine.low %v166_v17, %v170_v18  ;;  %v5900_v31 = vcombine.high %v174_v59, %v178_v0  ;;  %v186_v35 = vld [vmem:[#allocation2 + $0x168] sm:$0xff] }
  0xc7   :  { %v393_v37 = vld [vmem:[#allocation2 + $0x7e0] sm:$0xff]  ;;  %4093 = vmatpush1.bf16.msra.mxu1 %v6105_v42  ;;  %v5907_v48 = vcombine.low %v182_v34, %v186_v35 }
  0xc8   :  { %v645_v39 = vld [vmem:[#allocation2 + $0xfc0] sm:$0xff]  ;;  %v6114_v63 = vcombine.high %v389_v36, %v393_v37  ;;  %4174 = vmatprep.subr.bf16.mxu0 %v6362_v40  ;;  %v6113_v52 = vcombine.low %v389_v36, %v393_v37 }
  0xc9   :  { %v649_v41 = vld [vmem:[#allocation2 + $0xfe0] sm:$0xff]  ;;  %4175 = vmatpush1.bf16.msra.mxu0 %v6361_v43  ;;  %v190_v43 = vld [vmem:[#allocation2 + $0x188] sm:$0xff] }
  0xca   :  { %v653_v45 = vld [vmem:[#allocation2 + $0x1000] sm:$0xff]  ;;  %v6370_v50 = vcombine.high %v645_v39, %v649_v41  ;;  %4094 = vmatprep.subr.bf16.mxu1 %v6114_v63  ;;  %v6369_v54 = vcombine.low %v645_v39, %v649_v41  ;;  %v5899_v39 = vcombine.low %v174_v59, %v178_v0  ;;  %v5908_v41 = vcombine.high %v182_v34, %v186_v35  ;;  %v194_v63 = vld [vmem:[#allocation2 + $0x1a8] sm:$0xff] }
  0xcb   :  { %v657_v3 = vld [vmem:[#allocation2 + $0x1020] sm:$0xff]  ;;  %4095 = vmatpush1.bf16.msra.mxu1 %v6113_v52  ;;  %v5915_v58 = vcombine.low %v190_v43, %v194_v63 }
  0xcc   :  { %v661_v56 = vld [vmem:[#allocation2 + $0x1040] sm:$0xff]  ;;  %4176 = vmatprep.subr.bf16.mxu0 %v6370_v50  ;;  %v6378_v60 = vcombine.high %v653_v45, %v657_v3  ;;  %v6377_v5 = vcombine.low %v653_v45, %v657_v3  ;;  %4228 = vmatprep.subr.bf16.mxu1 %v5868_v55  ;;  %v5916_v50 = vcombine.high %v190_v43, %v194_v63  ;;  %v202_v55 = vld [vmem:[#allocation2 + $0x1e8] sm:$0xff] }
  0xcd   :  { %v665_v57 = vld [vmem:[#allocation2 + $0x1060] sm:$0xff]  ;;  %4177 = vmatpush1.bf16.msra.mxu0 %v6369_v54  ;;  %v198_v54 = vld [vmem:[#allocation2 + $0x1c8] sm:$0xff] }
  0xce   :  { %4187 = vmatprep.subr.bf16.mxu0 %v6378_v60  ;;  %v6386_v7 = vcombine.high %v661_v56, %v665_v57  ;;  %4097 = vmatmul.mubr.bf16.vlgmr.msra.gmra.mrb[0].mxu1 %v7187_v1  ;;  %v669_v24 = vld [vmem:[#allocation2 + $0x1080] sm:$0xff]  ;;  %v6385_v26 = vcombine.low %v661_v56, %v665_v57  ;;  %v5924_v61 = vcombine.high %v198_v54, %v202_v55 }
  0xcf   :  { %v673_v11 = vld [vmem:[#allocation2 + $0x10a0] sm:$0xff]  ;;  %4229 = vmatpush1.bf16.msra.mxu1 %v5867_v2  ;;  %4260 = vmatprep.mubr.bf16.mxu1 %v7142_v12  ;;  %v206_v2 = vld [vmem:[#allocation2 + $0x208] sm:$0xff]  ;;  %v5923_v8 = vcombine.low %v198_v54, %v202_v55 }
  0xd0   :  { %4179 = vmatmul.mubr.bf16.vlgmr.msra.gmra.mrb[0].mxu0 %v7191_v4  ;;  %4230 = vmatprep.subr.bf16.mxu1 %v5876_v6  ;;  %v6394_v16 = vcombine.high %v669_v24, %v673_v11  ;;  %v677_v19 = vld [vmem:[#allocation2 + $0x10c0] sm:$0xff]  ;;  %v6393_v22 = vcombine.low %v669_v24, %v673_v11 }
  0xd1   :  { %4188 = vmatpush1.bf16.msra.mxu0 %v6377_v5  ;;  %4219 = vmatprep.mubr.bf16.mxu0 %v7193_v10  ;;  %v681_v20 = vld [vmem:[#allocation2 + $0x10e0] sm:$0xff]  ;;  %v210_v5 = vld [vmem:[#allocation2 + $0x228] sm:$0xff] }
  0xd2   :  { %4189 = vmatprep.subr.bf16.mxu0 %v6386_v7  ;;  %v6402_v25 = vcombine.high %v677_v19, %v681_v20  ;;  %v685_v27 = vld [vmem:[#allocation2 + $0x1100] sm:$0xff]  ;;  %v6401_v30 = vcombine.low %v677_v19, %v681_v20  ;;  %v5932_v24 = vcombine.high %v206_v2, %v210_v5  ;;  %v5931_v17 = vcombine.low %v206_v2, %v210_v5 }
  0xd3   :  { %4231 = vmatpush1.bf16.msra.mxu1 %v5875_v13  ;;  %v689_v28 = vld [vmem:[#allocation2 + $0x1120] sm:$0xff]  ;;  %v214_v13 = vld [vmem:[#allocation2 + $0x248] sm:$0xff] }
  0xd4   :  { %4232 = vmatprep.subr.bf16.mxu1 %v5884_v14  ;;  %v6410_v32 = vcombine.high %v685_v27, %v689_v28  ;;  %v693_v36 = vld [vmem:[#allocation2 + $0x1140] sm:$0xff]  ;;  %v6409_v40 = vcombine.low %v685_v27, %v689_v28 }
  0xd5   :  { %4190 = vmatpush1.bf16.msra.mxu0 %v6385_v26  ;;  %v697_v37 = vld [vmem:[#allocation2 + $0x1160] sm:$0xff]  ;;  %v218_v26 = vld [vmem:[#allocation2 + $0x268] sm:$0xff] }
  0xd6   :  { %4191 = vmatprep.subr.bf16.mxu0 %v6394_v16  ;;  %v6418_v42 = vcombine.high %v693_v36, %v697_v37  ;;  %v701_v45 = vld [vmem:[#allocation2 + $0x1180] sm:$0xff]  ;;  %v6417_v49 = vcombine.low %v693_v36, %v697_v37  ;;  %v5940_v19 = vcombine.high %v214_v13, %v218_v26  ;;  %v5939_v59 = vcombine.low %v214_v13, %v218_v26 }
  0xd7   :  { %4233 = vmatpush1.bf16.msra.mxu1 %v5883_v21  ;;  %v705_v3 = vld [vmem:[#allocation2 + $0x11a0] sm:$0xff]  ;;  %v222_v21 = vld [vmem:[#allocation2 + $0x288] sm:$0xff] }
  0xd8   :  { %4234 = vmatprep.subr.bf16.mxu1 %v5892_v23  ;;  %v6426_v52 = vcombine.high %v701_v45, %v705_v3  ;;  %v709_v56 = vld [vmem:[#allocation2 + $0x11c0] sm:$0xff]  ;;  %v6425_v60 = vcombine.low %v701_v45, %v705_v3 }
  0xd9   :  { %4192 = vmatpush1.bf16.msra.mxu0 %v6393_v22  ;;  %v713_v57 = vld [vmem:[#allocation2 + $0x11e0] sm:$0xff]  ;;  %v226_v22 = vld [vmem:[#allocation2 + $0x2a8] sm:$0xff] }
  0xda   :  { %4193 = vmatprep.subr.bf16.mxu0 %v6402_v25  ;;  %v6434_v62 = vcombine.high %v709_v56, %v713_v57  ;;  %v717_v6 = vld [vmem:[#allocation2 + $0x1200] sm:$0xff]  ;;  %v6433_v9 = vcombine.low %v709_v56, %v713_v57  ;;  %v5948_v27 = vcombine.high %v222_v21, %v226_v22  ;;  %v5947_v34 = vcombine.low %v222_v21, %v226_v22 }
  0xdb   :  { %4235 = vmatpush1.bf16.msra.mxu1 %v5891_v29  ;;  %v721_v7 = vld [vmem:[#allocation2 + $0x1220] sm:$0xff]  ;;  %v230_v29 = vld [vmem:[#allocation2 + $0x2c8] sm:$0xff] }
  0xdc   :  { %4236 = vmatprep.subr.bf16.mxu1 %v5900_v31  ;;  %v6442_v11 = vcombine.high %v717_v6, %v721_v7  ;;  %v725_v14 = vld [vmem:[#allocation2 + $0x1240] sm:$0xff]  ;;  %v6441_v18 = vcombine.low %v717_v6, %v721_v7 }
  0xdd   :  { %4194 = vmatpush1.bf16.msra.mxu0 %v6401_v30  ;;  %v729_v16 = vld [vmem:[#allocation2 + $0x1260] sm:$0xff]  ;;  %v234_v30 = vld [vmem:[#allocation2 + $0x2e8] sm:$0xff] }
  0xde   :  { %4195 = vmatprep.subr.bf16.mxu0 %v6410_v32  ;;  %v6450_v20 = vcombine.high %v725_v14, %v729_v16  ;;  %v733_v23 = vld [vmem:[#allocation2 + $0x1280] sm:$0xff]  ;;  %v6449_v0 = vcombine.low %v725_v14, %v729_v16  ;;  %v5956_v36 = vcombine.high %v230_v29, %v234_v30  ;;  %v5955_v43 = vcombine.low %v230_v29, %v234_v30 }
  0xdf   :  { %4237 = vmatpush1.bf16.msra.mxu1 %v5899_v39  ;;  %v737_v25 = vld [vmem:[#allocation2 + $0x12a0] sm:$0xff]  ;;  %v238_v39 = vld [vmem:[#allocation2 + $0x308] sm:$0xff]  ;;  %v7201_v29 = vpack.c.bf16 %v7181_v51, %v7181_v51 }
  0xe0   :  { %4238 = vmatprep.subr.bf16.mxu1 %v5908_v41  ;;  %v6458_v28 = vcombine.high %v733_v23, %v737_v25  ;;  %v741_v31 = vld [vmem:[#allocation2 + $0x12c0] sm:$0xff]  ;;  %v6457_v35 = vcombine.low %v733_v23, %v737_v25 }
  0xe1   :  { %4196 = vmatpush1.bf16.msra.mxu0 %v6409_v40  ;;  %v745_v32 = vld [vmem:[#allocation2 + $0x12e0] sm:$0xff]  ;;  %v242_v40 = vld [vmem:[#allocation2 + $0x328] sm:$0xff] }
  0xe2   :  { %4197 = vmatprep.subr.bf16.mxu0 %v6418_v42  ;;  %v6466_v37 = vcombine.high %v741_v31, %v745_v32  ;;  %v749_v41 = vld [vmem:[#allocation2 + $0x1300] sm:$0xff]  ;;  %v6465_v63 = vcombine.low %v741_v31, %v745_v32  ;;  %v5964_v45 = vcombine.high %v238_v39, %v242_v40  ;;  %v5963_v54 = vcombine.low %v238_v39, %v242_v40  ;;  %v163_v39 = vld [vmem:[#allocation2 + $0xb0] sm:$0xff] }
  0xe3   :  { %4239 = vmatpush1.bf16.msra.mxu1 %v5907_v48  ;;  %v753_v42 = vld [vmem:[#allocation2 + $0x1320] sm:$0xff]  ;;  %v246_v48 = vld [vmem:[#allocation2 + $0x348] sm:$0xff] }
  0xe4   :  { %4240 = vmatprep.subr.bf16.mxu1 %v5916_v50  ;;  %v6474_v3 = vcombine.high %v749_v41, %v753_v42  ;;  %v757_v50 = vld [vmem:[#allocation2 + $0x1340] sm:$0xff]  ;;  %v6473_v55 = vcombine.low %v749_v41, %v753_v42 }
  0xe5   :  { %4198 = vmatpush1.bf16.msra.mxu0 %v6417_v49  ;;  %v250_v49 = vld [vmem:[#allocation2 + $0x368] sm:$0xff] }
  0xe6   :  { %4199 = vmatprep.subr.bf16.mxu0 %v6426_v52  ;;  %v761_v52 = vld [vmem:[#allocation2 + $0x1360] sm:$0xff]  ;;  %v5972_v56 = vcombine.high %v246_v48, %v250_v49  ;;  %v5971_v2 = vcombine.low %v246_v48, %v250_v49 }
  0xe7   :  { %4241 = vmatpush1.bf16.msra.mxu1 %v5915_v58  ;;  %v6482_v57 = vcombine.high %v757_v50, %v761_v52  ;;  %v254_v58 = vld [vmem:[#allocation2 + $0x388] sm:$0xff]  ;;  %v6481_v5 = vcombine.low %v757_v50, %v761_v52 }
  0xe8   :  { %4242 = vmatprep.subr.bf16.mxu1 %v5924_v61  ;;  %v765_v61 = vld [vmem:[#allocation2 + $0x1380] sm:$0xff] }
  0xe9   :  { %4200 = vmatpush1.bf16.msra.mxu0 %v6425_v60  ;;  %v258_v60 = vld [vmem:[#allocation2 + $0x3a8] sm:$0xff] }
  0xea   :  { %4201 = vmatprep.subr.bf16.mxu0 %v6434_v62  ;;  %v769_v62 = vld [vmem:[#allocation2 + $0x13a0] sm:$0xff]  ;;  %v5980_v6 = vcombine.high %v254_v58, %v258_v60  ;;  %v5979_v13 = vcombine.low %v254_v58, %v258_v60 }
  0xeb   :  { %4243 = vmatpush1.bf16.msra.mxu1 %v5923_v8  ;;  %v6490_v7 = vcombine.high %v765_v61, %v769_v62  ;;  %v262_v8 = vld [vmem:[#allocation2 + $0x3c8] sm:$0xff]  ;;  %v6489_v26 = vcombine.low %v765_v61, %v769_v62 }
  0xec   :  { %4244 = vmatprep.subr.bf16.mxu1 %v5932_v24  ;;  %v773_v24 = vld [vmem:[#allocation2 + $0x13c0] sm:$0xff] }
  0xed   :  { %4202 = vmatpush1.bf16.msra.mxu0 %v6433_v9  ;;  %v266_v9 = vld [vmem:[#allocation2 + $0x3e8] sm:$0xff] }
  0xee   :  { %4203 = vmatprep.subr.bf16.mxu0 %v6442_v11  ;;  %v777_v11 = vld [vmem:[#allocation2 + $0x13e0] sm:$0xff]  ;;  %v5988_v14 = vcombine.high %v262_v8, %v266_v9  ;;  %v5987_v21 = vcombine.low %v262_v8, %v266_v9 }
  0xef   :  { %4245 = vmatpush1.bf16.msra.mxu1 %v5931_v17  ;;  %v6498_v16 = vcombine.high %v773_v24, %v777_v11  ;;  %v270_v17 = vld [vmem:[#allocation2 + $0x408] sm:$0xff]  ;;  %v6497_v22 = vcombine.low %v773_v24, %v777_v11 }
  0xf0   :  { %4246 = vmatprep.subr.bf16.mxu1 %v5940_v19  ;;  %v143_v19 = vld [vmem:[#allocation2 + $0x10] sm:$0xff] }
  0xf1   :  { %4204 = vmatpush1.bf16.msra.mxu0 %v6441_v18  ;;  %v274_v18 = vld [vmem:[#allocation2 + $0x428] sm:$0xff] }
  0xf2   :  { %4205 = vmatprep.subr.bf16.mxu0 %v6450_v20  ;;  %v147_v20 = vld [vmem:[#allocation2 + $0x30] sm:$0xff]  ;;  %v5996_v23 = vcombine.high %v270_v17, %v274_v18  ;;  %v5995_v30 = vcombine.low %v270_v17, %v274_v18 }
  0xf3   :  { %4247 = vmatpush1.bf16.msra.mxu1 %v5939_v59  ;;  %v5870_v25 = vcombine.high %v143_v19, %v147_v20  ;;  %v278_v59 = vld [vmem:[#allocation2 + $0x448] sm:$0xff]  ;;  %v5869_v31 = vcombine.low %v143_v19, %v147_v20 }
  0xf4   :  { %4248 = vmatprep.subr.bf16.mxu1 %v5948_v27  ;;  %v151_v27 = vld [vmem:[#allocation2 + $0x50] sm:$0xff] }
  0xf5   :  { %4206 = vmatpush1.bf16.msra.mxu0 %v6449_v0  ;;  %v282_v0 = vld [vmem:[#allocation2 + $0x468] sm:$0xff] }
  0xf6   :  { %4207 = vmatprep.subr.bf16.mxu0 %v6458_v28  ;;  %v155_v28 = vld [vmem:[#allocation2 + $0x70] sm:$0xff]  ;;  %v6004_v32 = vcombine.high %v278_v59, %v282_v0  ;;  %v6003_v40 = vcombine.low %v278_v59, %v282_v0 }
  0xf7   :  { %4249 = vmatpush1.bf16.msra.mxu1 %v5947_v34  ;;  %v5878_v34 = vcombine.high %v151_v27, %v155_v28  ;;  %v5877_v51 = vcombine.low %v151_v27, %v155_v28 }
  0xf8   :  { %4250 = vmatprep.subr.bf16.mxu1 %v5956_v36  ;;  %v290_v36 = vld [vmem:[#allocation2 + $0x4a8] sm:$0xff] }
  0xf9   :  { %4208 = vmatpush1.bf16.msra.mxu0 %v6457_v35  ;;  %v286_v35 = vld [vmem:[#allocation2 + $0x488] sm:$0xff] }
  0xfa   :  { %4209 = vmatprep.subr.bf16.mxu0 %v6466_v37  ;;  %v159_v37 = vld [vmem:[#allocation2 + $0x90] sm:$0xff]  ;;  %v6012_v41 = vcombine.high %v286_v35, %v290_v36  ;;  %v6011_v48 = vcombine.low %v286_v35, %v290_v36 }
  0xfb   :  { %4251 = vmatpush1.bf16.msra.mxu1 %v5955_v43  ;;  %v5886_v42 = vcombine.high %v159_v37, %v163_v39  ;;  %v294_v43 = vld [vmem:[#allocation2 + $0x4c8] sm:$0xff]  ;;  %v5885_v49 = vcombine.low %v159_v37, %v163_v39 }
  0xfc   :  { %4252 = vmatprep.subr.bf16.mxu1 %v5964_v45  ;;  %v167_v45 = vld [vmem:[#allocation2 + $0xd0] sm:$0xff] }
  0xfd   :  { %4210 = vmatpush1.bf16.msra.mxu0 %v6465_v63  ;;  %v298_v63 = vld [vmem:[#allocation2 + $0x4e8] sm:$0xff] }
  0xfe   :  { %4211 = vmatprep.subr.bf16.mxu0 %v6474_v3  ;;  %v171_v3 = vld [vmem:[#allocation2 + $0xf0] sm:$0xff]  ;;  %v6020_v50 = vcombine.high %v294_v43, %v298_v63  ;;  %v6019_v58 = vcombine.low %v294_v43, %v298_v63 }
  0xff   :  { %4253 = vmatpush1.bf16.msra.mxu1 %v5963_v54  ;;  %v5894_v52 = vcombine.high %v167_v45, %v171_v3  ;;  %v302_v54 = vld [vmem:[#allocation2 + $0x508] sm:$0xff]  ;;  %v5893_v60 = vcombine.low %v167_v45, %v171_v3 }
 0x100   :  { %4254 = vmatprep.subr.bf16.mxu1 %v5972_v56  ;;  %v175_v56 = vld [vmem:[#allocation2 + $0x110] sm:$0xff] }
 0x101   :  { %4212 = vmatpush1.bf16.msra.mxu0 %v6473_v55  ;;  %v306_v55 = vld [vmem:[#allocation2 + $0x528] sm:$0xff] }
 0x102   :  { %4213 = vmatprep.subr.bf16.mxu0 %v6482_v57  ;;  %v179_v57 = vld [vmem:[#allocation2 + $0x130] sm:$0xff]  ;;  %v6028_v61 = vcombine.high %v302_v54, %v306_v55  ;;  %v6027_v8 = vcombine.low %v302_v54, %v306_v55 }
 0x103   :  { %4255 = vmatpush1.bf16.msra.mxu1 %v5971_v2  ;;  %v5902_v62 = vcombine.high %v175_v56, %v179_v57  ;;  %v310_v2 = vld [vmem:[#allocation2 + $0x548] sm:$0xff]  ;;  %v5901_v9 = vcombine.low %v175_v56, %v179_v57 }
 0x104   :  { %4256 = vmatprep.subr.bf16.mxu1 %v5980_v6  ;;  %v183_v6 = vld [vmem:[#allocation2 + $0x150] sm:$0xff] }
 0x105   :  { %4214 = vmatpush1.bf16.msra.mxu0 %v6481_v5  ;;  %v314_v5 = vld [vmem:[#allocation2 + $0x568] sm:$0xff] }
 0x106   :  { %4215 = vmatprep.subr.bf16.mxu0 %v6490_v7  ;;  %v187_v7 = vld [vmem:[#allocation2 + $0x170] sm:$0xff]  ;;  %v6036_v24 = vcombine.high %v310_v2, %v314_v5  ;;  %v6035_v17 = vcombine.low %v310_v2, %v314_v5 }
 0x107   :  { %4257 = vmatpush1.bf16.msra.mxu1 %v5979_v13  ;;  %v5910_v11 = vcombine.high %v183_v6, %v187_v7  ;;  %v318_v13 = vld [vmem:[#allocation2 + $0x588] sm:$0xff]  ;;  %v5909_v18 = vcombine.low %v183_v6, %v187_v7 }
 0x108   :  { %4258 = vmatprep.subr.bf16.mxu1 %v5988_v14  ;;  %v191_v14 = vld [vmem:[#allocation2 + $0x190] sm:$0xff] }
 0x109   :  { %4216 = vmatpush1.bf16.msra.mxu0 %v6489_v26  ;;  %v322_v26 = vld [vmem:[#allocation2 + $0x5a8] sm:$0xff] }
 0x10a   :  { %4217 = vmatprep.subr.bf16.mxu0 %v6498_v16  ;;  %v195_v16 = vld [vmem:[#allocation2 + $0x1b0] sm:$0xff]  ;;  %v6044_v19 = vcombine.high %v318_v13, %v322_v26  ;;  %v6043_v59 = vcombine.low %v318_v13, %v322_v26 }
 0x10b   :  { %4259 = vmatpush1.bf16.msra.mxu1 %v5987_v21  ;;  %v5918_v20 = vcombine.high %v191_v14, %v195_v16  ;;  %v326_v21 = vld [vmem:[#allocation2 + $0x5c8] sm:$0xff]  ;;  %v5917_v0 = vcombine.low %v191_v14, %v195_v16 }
 0x10c   :  { %4269 = vmatprep.subr.bf16.mxu1 %v5996_v23  ;;  %v199_v23 = vld [vmem:[#allocation2 + $0x1d0] sm:$0xff] }
 0x10d   :  { %4218 = vmatpush1.bf16.msra.mxu0 %v6497_v22  ;;  %v330_v22 = vld [vmem:[#allocation2 + $0x5e8] sm:$0xff] }
 0x10e   :  { %4433 = vmatprep.subr.bf16.mxu0 %v5870_v25  ;;  %4261 = vmatmul.mubr.bf16.vlgmr.msra.gmra.mrb[4].mxu1 %v7162_v33  ;;  %v203_v25 = vld [vmem:[#allocation2 + $0x1f0] sm:$0xff]  ;;  %v6052_v27 = vcombine.high %v326_v21, %v330_v22  ;;  %v6051_v35 = vcombine.low %v326_v21, %v330_v22 }
 0x10f   :  { %4270 = vmatpush1.bf16.msra.mxu1 %v5995_v30  ;;  %4301 = vmatprep.mubr.bf16.mxu1 %v7170_v46  ;;  %v5926_v28 = vcombine.high %v199_v23, %v203_v25  ;;  %v334_v30 = vld [vmem:[#allocation2 + $0x608] sm:$0xff]  ;;  %v5925_v36 = vcombine.low %v199_v23, %v203_v25 }
 0x110   :  { %4220 = vmatmul.mubr.bf16.vlgmr.msra.gmra.mrb[0].mxu0 %v7201_v29  ;;  %4271 = vmatprep.subr.bf16.mxu1 %v6004_v32  ;;  %v207_v32 = vld [vmem:[#allocation2 + $0x210] sm:$0xff] }
 0x111   :  { %4434 = vmatpush1.bf16.msra.mxu0 %v5869_v31  ;;  %4465 = vmatprep.mubr.bf16.mxu0 %v7142_v12  ;;  %v338_v31 = vld [vmem:[#allocation2 + $0x628] sm:$0xff] }
 0x112   :  { %4435 = vmatprep.subr.bf16.mxu0 %v5878_v34  ;;  %v211_v34 = vld [vmem:[#allocation2 + $0x230] sm:$0xff]  ;;  %v6060_v37 = vcombine.high %v334_v30, %v338_v31  ;;  %v6059_v43 = vcombine.low %v334_v30, %v338_v31 }
 0x113   :  { %4272 = vmatpush1.bf16.msra.mxu1 %v6003_v40  ;;  %v5934_v39 = vcombine.high %v207_v32, %v211_v34  ;;  %v342_v40 = vld [vmem:[#allocation2 + $0x648] sm:$0xff]  ;;  %v5933_v63 = vcombine.low %v207_v32, %v211_v34 }
 0x114   :  { %4273 = vmatprep.subr.bf16.mxu1 %v6012_v41  ;;  %v215_v41 = vld [vmem:[#allocation2 + $0x250] sm:$0xff] }
 0x115   :  { %4436 = vmatpush1.bf16.msra.mxu0 %v5877_v51  ;;  %v346_v51 = vld [vmem:[#allocation2 + $0x668] sm:$0xff] }
 0x116   :  { %4437 = vmatprep.subr.bf16.mxu0 %v5886_v42  ;;  %v219_v42 = vld [vmem:[#allocation2 + $0x270] sm:$0xff]  ;;  %v6068_v45 = vcombine.high %v342_v40, %v346_v51  ;;  %v6067_v54 = vcombine.low %v342_v40, %v346_v51 }
 0x117   :  { %4274 = vmatpush1.bf16.msra.mxu1 %v6011_v48  ;;  %v5942_v3 = vcombine.high %v215_v41, %v219_v42  ;;  %v350_v48 = vld [vmem:[#allocation2 + $0x688] sm:$0xff]  ;;  %v5941_v55 = vcombine.low %v215_v41, %v219_v42 }
 0x118   :  { %4275 = vmatprep.subr.bf16.mxu1 %v6020_v50  ;;  %v223_v50 = vld [vmem:[#allocation2 + $0x290] sm:$0xff] }
 0x119   :  { %4438 = vmatpush1.bf16.msra.mxu0 %v5885_v49  ;;  %v354_v49 = vld [vmem:[#allocation2 + $0x6a8] sm:$0xff] }
 0x11a   :  { %4439 = vmatprep.subr.bf16.mxu0 %v5894_v52  ;;  %v227_v52 = vld [vmem:[#allocation2 + $0x2b0] sm:$0xff]  ;;  %v6076_v56 = vcombine.high %v350_v48, %v354_v49  ;;  %v6075_v2 = vcombine.low %v350_v48, %v354_v49 }
 0x11b   :  { %4276 = vmatpush1.bf16.msra.mxu1 %v6019_v58  ;;  %v5950_v57 = vcombine.high %v223_v50, %v227_v52  ;;  %v358_v58 = vld [vmem:[#allocation2 + $0x6c8] sm:$0xff]  ;;  %v5949_v5 = vcombine.low %v223_v50, %v227_v52 }
 0x11c   :  { %4277 = vmatprep.subr.bf16.mxu1 %v6028_v61  ;;  %v231_v61 = vld [vmem:[#allocation2 + $0x2d0] sm:$0xff] }
 0x11d   :  { %4440 = vmatpush1.bf16.msra.mxu0 %v5893_v60  ;;  %v362_v60 = vld [vmem:[#allocation2 + $0x6e8] sm:$0xff] }
 0x11e   :  { %4441 = vmatprep.subr.bf16.mxu0 %v5902_v62  ;;  %v235_v62 = vld [vmem:[#allocation2 + $0x2f0] sm:$0xff]  ;;  %v6084_v6 = vcombine.high %v358_v58, %v362_v60  ;;  %v6083_v13 = vcombine.low %v358_v58, %v362_v60 }
 0x11f   :  { %4278 = vmatpush1.bf16.msra.mxu1 %v6027_v8  ;;  %v5958_v7 = vcombine.high %v231_v61, %v235_v62  ;;  %v366_v8 = vld [vmem:[#allocation2 + $0x708] sm:$0xff]  ;;  %v5957_v26 = vcombine.low %v231_v61, %v235_v62 }
 0x120   :  { %4279 = vmatprep.subr.bf16.mxu1 %v6036_v24  ;;  %v239_v24 = vld [vmem:[#allocation2 + $0x310] sm:$0xff] }
 0x121   :  { %4442 = vmatpush1.bf16.msra.mxu0 %v5901_v9  ;;  %v370_v9 = vld [vmem:[#allocation2 + $0x728] sm:$0xff] }
 0x122   :  { %4443 = vmatprep.subr.bf16.mxu0 %v5910_v11  ;;  %v243_v11 = vld [vmem:[#allocation2 + $0x330] sm:$0xff]  ;;  %v6092_v14 = vcombine.high %v366_v8, %v370_v9  ;;  %v6091_v21 = vcombine.low %v366_v8, %v370_v9 }
 0x123   :  { %4280 = vmatpush1.bf16.msra.mxu1 %v6035_v17  ;;  %v5966_v16 = vcombine.high %v239_v24, %v243_v11  ;;  %v374_v17 = vld [vmem:[#allocation2 + $0x748] sm:$0xff]  ;;  %v5965_v22 = vcombine.low %v239_v24, %v243_v11 }
 0x124   :  { %4281 = vmatprep.subr.bf16.mxu1 %v6044_v19  ;;  %v247_v19 = vld [vmem:[#allocation2 + $0x350] sm:$0xff] }
 0x125   :  { %4444 = vmatpush1.bf16.msra.mxu0 %v5909_v18  ;;  %v378_v18 = vld [vmem:[#allocation2 + $0x768] sm:$0xff] }
 0x126   :  { %4445 = vmatprep.subr.bf16.mxu0 %v5918_v20  ;;  %v251_v20 = vld [vmem:[#allocation2 + $0x370] sm:$0xff]  ;;  %v6100_v23 = vcombine.high %v374_v17, %v378_v18  ;;  %v6099_v30 = vcombine.low %v374_v17, %v378_v18 }
 0x127   :  { %4282 = vmatpush1.bf16.msra.mxu1 %v6043_v59  ;;  %v5974_v25 = vcombine.high %v247_v19, %v251_v20  ;;  %v382_v59 = vld [vmem:[#allocation2 + $0x788] sm:$0xff]  ;;  %v5973_v31 = vcombine.low %v247_v19, %v251_v20 }
 0x128   :  { %4283 = vmatprep.subr.bf16.mxu1 %v6052_v27  ;;  %v255_v27 = vld [vmem:[#allocation2 + $0x390] sm:$0xff] }
 0x129   :  { %4446 = vmatpush1.bf16.msra.mxu0 %v5917_v0  ;;  %v386_v0 = vld [vmem:[#allocation2 + $0x7a8] sm:$0xff] }
 0x12a   :  { %4447 = vmatprep.subr.bf16.mxu0 %v5926_v28  ;;  %v259_v28 = vld [vmem:[#allocation2 + $0x3b0] sm:$0xff]  ;;  %v6108_v32 = vcombine.high %v382_v59, %v386_v0  ;;  %v6107_v40 = vcombine.low %v382_v59, %v386_v0 }
 0x12b   :  { %4284 = vmatpush1.bf16.msra.mxu1 %v6051_v35  ;;  %v5982_v34 = vcombine.high %v255_v27, %v259_v28  ;;  %v390_v35 = vld [vmem:[#allocation2 + $0x7c8] sm:$0xff]  ;;  %v5981_v51 = vcombine.low %v255_v27, %v259_v28 }
 0x12c   :  { %4285 = vmatprep.subr.bf16.mxu1 %v6060_v37  ;;  %v263_v37 = vld [vmem:[#allocation2 + $0x3d0] sm:$0xff] }
 0x12d   :  { %4448 = vmatpush1.bf16.msra.mxu0 %v5925_v36  ;;  %v394_v36 = vld [vmem:[#allocation2 + $0x7e8] sm:$0xff] }
 0x12e   :  { %4449 = vmatprep.subr.bf16.mxu0 %v5934_v39  ;;  %v267_v39 = vld [vmem:[#allocation2 + $0x3f0] sm:$0xff]  ;;  %v6116_v41 = vcombine.high %v390_v35, %v394_v36  ;;  %v6115_v48 = vcombine.low %v390_v35, %v394_v36 }
 0x12f   :  { %4286 = vmatpush1.bf16.msra.mxu1 %v6059_v43  ;;  %v5990_v42 = vcombine.high %v263_v37, %v267_v39  ;;  %v398_v43 = vld [vmem:[#allocation2 + $0x808] sm:$0xff]  ;;  %v5989_v49 = vcombine.low %v263_v37, %v267_v39 }
 0x130   :  { %4287 = vmatprep.subr.bf16.mxu1 %v6068_v45  ;;  %v271_v45 = vld [vmem:[#allocation2 + $0x410] sm:$0xff] }
 0x131   :  { %4450 = vmatpush1.bf16.msra.mxu0 %v5933_v63  ;;  %v402_v63 = vld [vmem:[#allocation2 + $0x828] sm:$0xff] }
 0x132   :  { %4451 = vmatprep.subr.bf16.mxu0 %v5942_v3  ;;  %v275_v3 = vld [vmem:[#allocation2 + $0x430] sm:$0xff]  ;;  %v6124_v50 = vcombine.high %v398_v43, %v402_v63  ;;  %v6123_v58 = vcombine.low %v398_v43, %v402_v63 }
 0x133   :  { %4288 = vmatpush1.bf16.msra.mxu1 %v6067_v54  ;;  %v5998_v52 = vcombine.high %v271_v45, %v275_v3  ;;  %v406_v54 = vld [vmem:[#allocation2 + $0x848] sm:$0xff]  ;;  %v5997_v60 = vcombine.low %v271_v45, %v275_v3 }
 0x134   :  { %4289 = vmatprep.subr.bf16.mxu1 %v6076_v56  ;;  %v279_v56 = vld [vmem:[#allocation2 + $0x450] sm:$0xff] }
 0x135   :  { %4452 = vmatpush1.bf16.msra.mxu0 %v5941_v55  ;;  %v410_v55 = vld [vmem:[#allocation2 + $0x868] sm:$0xff] }
 0x136   :  { %4453 = vmatprep.subr.bf16.mxu0 %v5950_v57  ;;  %v283_v57 = vld [vmem:[#allocation2 + $0x470] sm:$0xff]  ;;  %v6132_v61 = vcombine.high %v406_v54, %v410_v55  ;;  %v6131_v8 = vcombine.low %v406_v54, %v410_v55 }
 0x137   :  { %4290 = vmatpush1.bf16.msra.mxu1 %v6075_v2  ;;  %v6006_v62 = vcombine.high %v279_v56, %v283_v57  ;;  %v414_v2 = vld [vmem:[#allocation2 + $0x888] sm:$0xff]  ;;  %v6005_v9 = vcombine.low %v279_v56, %v283_v57 }
 0x138   :  { %4291 = vmatprep.subr.bf16.mxu1 %v6084_v6  ;;  %v287_v6 = vld [vmem:[#allocation2 + $0x490] sm:$0xff] }
 0x139   :  { %4454 = vmatpush1.bf16.msra.mxu0 %v5949_v5  ;;  %v418_v5 = vld [vmem:[#allocation2 + $0x8a8] sm:$0xff] }
 0x13a   :  { %4455 = vmatprep.subr.bf16.mxu0 %v5958_v7  ;;  %v291_v7 = vld [vmem:[#allocation2 + $0x4b0] sm:$0xff]  ;;  %v6140_v24 = vcombine.high %v414_v2, %v418_v5  ;;  %v6139_v17 = vcombine.low %v414_v2, %v418_v5 }
 0x13b   :  { %4292 = vmatpush1.bf16.msra.mxu1 %v6083_v13  ;;  %v6014_v11 = vcombine.high %v287_v6, %v291_v7  ;;  %v422_v13 = vld [vmem:[#allocation2 + $0x8c8] sm:$0xff]  ;;  %v6013_v18 = vcombine.low %v287_v6, %v291_v7 }
 0x13c   :  { %4293 = vmatprep.subr.bf16.mxu1 %v6092_v14  ;;  %v295_v14 = vld [vmem:[#allocation2 + $0x4d0] sm:$0xff] }
 0x13d   :  { %4456 = vmatpush1.bf16.msra.mxu0 %v5957_v26  ;;  %v426_v26 = vld [vmem:[#allocation2 + $0x8e8] sm:$0xff] }
 0x13e   :  { %4457 = vmatprep.subr.bf16.mxu0 %v5966_v16  ;;  %v299_v16 = vld [vmem:[#allocation2 + $0x4f0] sm:$0xff]  ;;  %v6148_v19 = vcombine.high %v422_v13, %v426_v26  ;;  %v6147_v59 = vcombine.low %v422_v13, %v426_v26 }
 0x13f   :  { %4294 = vmatpush1.bf16.msra.mxu1 %v6091_v21  ;;  %v6022_v20 = vcombine.high %v295_v14, %v299_v16  ;;  %v430_v21 = vld [vmem:[#allocation2 + $0x908] sm:$0xff]  ;;  %v6021_v0 = vcombine.low %v295_v14, %v299_v16 }
 0x140   :  { %4295 = vmatprep.subr.bf16.mxu1 %v6100_v23  ;;  %v303_v23 = vld [vmem:[#allocation2 + $0x510] sm:$0xff] }
 0x141   :  { %4458 = vmatpush1.bf16.msra.mxu0 %v5965_v22  ;;  %v434_v22 = vld [vmem:[#allocation2 + $0x928] sm:$0xff] }
 0x142   :  { %4459 = vmatprep.subr.bf16.mxu0 %v5974_v25  ;;  %v307_v25 = vld [vmem:[#allocation2 + $0x530] sm:$0xff]  ;;  %v6156_v27 = vcombine.high %v430_v21, %v434_v22  ;;  %v6155_v35 = vcombine.low %v430_v21, %v434_v22 }
 0x143   :  { %4296 = vmatpush1.bf16.msra.mxu1 %v6099_v30  ;;  %v6030_v28 = vcombine.high %v303_v23, %v307_v25  ;;  %v438_v30 = vld [vmem:[#allocation2 + $0x948] sm:$0xff]  ;;  %v6029_v36 = vcombine.low %v303_v23, %v307_v25 }
 0x144   :  { %4297 = vmatprep.subr.bf16.mxu1 %v6108_v32  ;;  %v311_v32 = vld [vmem:[#allocation2 + $0x550] sm:$0xff] }
 0x145   :  { %4460 = vmatpush1.bf16.msra.mxu0 %v5973_v31  ;;  %v442_v31 = vld [vmem:[#allocation2 + $0x968] sm:$0xff] }
 0x146   :  { %4461 = vmatprep.subr.bf16.mxu0 %v5982_v34  ;;  %v315_v34 = vld [vmem:[#allocation2 + $0x570] sm:$0xff]  ;;  %v6164_v37 = vcombine.high %v438_v30, %v442_v31  ;;  %v6163_v43 = vcombine.low %v438_v30, %v442_v31 }
 0x147   :  { %4298 = vmatpush1.bf16.msra.mxu1 %v6107_v40  ;;  %v6038_v39 = vcombine.high %v311_v32, %v315_v34  ;;  %v446_v40 = vld [vmem:[#allocation2 + $0x988] sm:$0xff]  ;;  %v6037_v63 = vcombine.low %v311_v32, %v315_v34 }
 0x148   :  { %4299 = vmatprep.subr.bf16.mxu1 %v6116_v41  ;;  %v319_v41 = vld [vmem:[#allocation2 + $0x590] sm:$0xff] }
 0x149   :  { %4462 = vmatpush1.bf16.msra.mxu0 %v5981_v51  ;;  %v450_v51 = vld [vmem:[#allocation2 + $0x9a8] sm:$0xff] }
 0x14a   :  { %4463 = vmatprep.subr.bf16.mxu0 %v5990_v42  ;;  %v323_v42 = vld [vmem:[#allocation2 + $0x5b0] sm:$0xff]  ;;  %v6172_v45 = vcombine.high %v446_v40, %v450_v51  ;;  %v6171_v54 = vcombine.low %v446_v40, %v450_v51 }
 0x14b   :  { %4300 = vmatpush1.bf16.msra.mxu1 %v6115_v48  ;;  %v6046_v3 = vcombine.high %v319_v41, %v323_v42  ;;  %v454_v48 = vld [vmem:[#allocation2 + $0x9c8] sm:$0xff]  ;;  %v6045_v55 = vcombine.low %v319_v41, %v323_v42 }
 0x14c   :  { %4310 = vmatprep.subr.bf16.mxu1 %v6124_v50  ;;  %v327_v50 = vld [vmem:[#allocation2 + $0x5d0] sm:$0xff] }
 0x14d   :  { %4464 = vmatpush1.bf16.msra.mxu0 %v5989_v49  ;;  %v458_v49 = vld [vmem:[#allocation2 + $0x9e8] sm:$0xff] }
 0x14e   :  { %4474 = vmatprep.subr.bf16.mxu0 %v5998_v52  ;;  %4302 = vmatmul.mubr.bf16.vlgmr.msra.gmra.mrb[4].mxu1 %v7187_v1  ;;  %v331_v52 = vld [vmem:[#allocation2 + $0x5f0] sm:$0xff]  ;;  %v6180_v56 = vcombine.high %v454_v48, %v458_v49  ;;  %v6179_v2 = vcombine.low %v454_v48, %v458_v49 }
 0x14f   :  { %4311 = vmatpush1.bf16.msra.mxu1 %v6123_v58  ;;  %4342 = vmatprep.mubr.bf16.mxu1 %v7144_v15  ;;  %v6054_v57 = vcombine.high %v327_v50, %v331_v52  ;;  %v462_v58 = vld [vmem:[#allocation2 + $0xa08] sm:$0xff]  ;;  %v6053_v5 = vcombine.low %v327_v50, %v331_v52 }
 0x150   :  { %4466 = vmatmul.mubr.bf16.vlgmr.msra.gmra.mrb[4].mxu0 %v7162_v33  ;;  %4312 = vmatprep.subr.bf16.mxu1 %v6132_v61  ;;  %v335_v61 = vld [vmem:[#allocation2 + $0x610] sm:$0xff] }
 0x151   :  { %4475 = vmatpush1.bf16.msra.mxu0 %v5997_v60  ;;  %4506 = vmatprep.mubr.bf16.mxu0 %v7170_v46  ;;  %v466_v60 = vld [vmem:[#allocation2 + $0xa28] sm:$0xff] }
 0x152   :  { %4476 = vmatprep.subr.bf16.mxu0 %v6006_v62  ;;  %v339_v62 = vld [vmem:[#allocation2 + $0x630] sm:$0xff]  ;;  %v6188_v6 = vcombine.high %v462_v58, %v466_v60  ;;  %v6187_v13 = vcombine.low %v462_v58, %v466_v60 }
 0x153   :  { %4313 = vmatpush1.bf16.msra.mxu1 %v6131_v8  ;;  %v6062_v7 = vcombine.high %v335_v61, %v339_v62  ;;  %v470_v8 = vld [vmem:[#allocation2 + $0xa48] sm:$0xff]  ;;  %v6061_v26 = vcombine.low %v335_v61, %v339_v62 }
 0x154   :  { %4314 = vmatprep.subr.bf16.mxu1 %v6140_v24  ;;  %v343_v24 = vld [vmem:[#allocation2 + $0x650] sm:$0xff] }
 0x155   :  { %4477 = vmatpush1.bf16.msra.mxu0 %v6005_v9  ;;  %v474_v9 = vld [vmem:[#allocation2 + $0xa68] sm:$0xff] }
 0x156   :  { %4478 = vmatprep.subr.bf16.mxu0 %v6014_v11  ;;  %v347_v11 = vld [vmem:[#allocation2 + $0x670] sm:$0xff]  ;;  %v6196_v14 = vcombine.high %v470_v8, %v474_v9  ;;  %v6195_v21 = vcombine.low %v470_v8, %v474_v9 }
 0x157   :  { %4315 = vmatpush1.bf16.msra.mxu1 %v6139_v17  ;;  %v6070_v16 = vcombine.high %v343_v24, %v347_v11  ;;  %v478_v17 = vld [vmem:[#allocation2 + $0xa88] sm:$0xff]  ;;  %v6069_v22 = vcombine.low %v343_v24, %v347_v11 }
 0x158   :  { %4316 = vmatprep.subr.bf16.mxu1 %v6148_v19  ;;  %v351_v19 = vld [vmem:[#allocation2 + $0x690] sm:$0xff] }
 0x159   :  { %4479 = vmatpush1.bf16.msra.mxu0 %v6013_v18  ;;  %v482_v18 = vld [vmem:[#allocation2 + $0xaa8] sm:$0xff] }
 0x15a   :  { %4480 = vmatprep.subr.bf16.mxu0 %v6022_v20  ;;  %v355_v20 = vld [vmem:[#allocation2 + $0x6b0] sm:$0xff]  ;;  %v6204_v23 = vcombine.high %v478_v17, %v482_v18  ;;  %v6203_v30 = vcombine.low %v478_v17, %v482_v18 }
 0x15b   :  { %4317 = vmatpush1.bf16.msra.mxu1 %v6147_v59  ;;  %v6078_v25 = vcombine.high %v351_v19, %v355_v20  ;;  %v486_v59 = vld [vmem:[#allocation2 + $0xac8] sm:$0xff]  ;;  %v6077_v31 = vcombine.low %v351_v19, %v355_v20 }
 0x15c   :  { %4318 = vmatprep.subr.bf16.mxu1 %v6156_v27  ;;  %v359_v27 = vld [vmem:[#allocation2 + $0x6d0] sm:$0xff] }
 0x15d   :  { %4481 = vmatpush1.bf16.msra.mxu0 %v6021_v0  ;;  %v490_v0 = vld [vmem:[#allocation2 + $0xae8] sm:$0xff] }
 0x15e   :  { %4482 = vmatprep.subr.bf16.mxu0 %v6030_v28  ;;  %v363_v28 = vld [vmem:[#allocation2 + $0x6f0] sm:$0xff]  ;;  %v6212_v32 = vcombine.high %v486_v59, %v490_v0  ;;  %v6211_v40 = vcombine.low %v486_v59, %v490_v0 }
 0x15f   :  { %4319 = vmatpush1.bf16.msra.mxu1 %v6155_v35  ;;  %v6086_v34 = vcombine.high %v359_v27, %v363_v28  ;;  %v494_v35 = vld [vmem:[#allocation2 + $0xb08] sm:$0xff]  ;;  %v6085_v51 = vcombine.low %v359_v27, %v363_v28 }
 0x160   :  { %4320 = vmatprep.subr.bf16.mxu1 %v6164_v37  ;;  %v367_v37 = vld [vmem:[#allocation2 + $0x710] sm:$0xff] }
 0x161   :  { %4483 = vmatpush1.bf16.msra.mxu0 %v6029_v36  ;;  %v498_v36 = vld [vmem:[#allocation2 + $0xb28] sm:$0xff] }
 0x162   :  { %4484 = vmatprep.subr.bf16.mxu0 %v6038_v39  ;;  %v371_v39 = vld [vmem:[#allocation2 + $0x730] sm:$0xff]  ;;  %v6220_v41 = vcombine.high %v494_v35, %v498_v36  ;;  %v6219_v48 = vcombine.low %v494_v35, %v498_v36 }
 0x163   :  { %4321 = vmatpush1.bf16.msra.mxu1 %v6163_v43  ;;  %v6094_v42 = vcombine.high %v367_v37, %v371_v39  ;;  %v502_v43 = vld [vmem:[#allocation2 + $0xb48] sm:$0xff]  ;;  %v6093_v49 = vcombine.low %v367_v37, %v371_v39 }
 0x164   :  { %4322 = vmatprep.subr.bf16.mxu1 %v6172_v45  ;;  %v375_v45 = vld [vmem:[#allocation2 + $0x750] sm:$0xff] }
 0x165   :  { %4485 = vmatpush1.bf16.msra.mxu0 %v6037_v63  ;;  %v506_v63 = vld [vmem:[#allocation2 + $0xb68] sm:$0xff] }
 0x166   :  { %4486 = vmatprep.subr.bf16.mxu0 %v6046_v3  ;;  %v379_v3 = vld [vmem:[#allocation2 + $0x770] sm:$0xff]  ;;  %v6228_v50 = vcombine.high %v502_v43, %v506_v63  ;;  %v6227_v58 = vcombine.low %v502_v43, %v506_v63 }
 0x167   :  { %4323 = vmatpush1.bf16.msra.mxu1 %v6171_v54  ;;  %v6102_v52 = vcombine.high %v375_v45, %v379_v3  ;;  %v510_v54 = vld [vmem:[#allocation2 + $0xb88] sm:$0xff]  ;;  %v6101_v60 = vcombine.low %v375_v45, %v379_v3 }
 0x168   :  { %4324 = vmatprep.subr.bf16.mxu1 %v6180_v56  ;;  %v383_v56 = vld [vmem:[#allocation2 + $0x790] sm:$0xff] }
 0x169   :  { %4487 = vmatpush1.bf16.msra.mxu0 %v6045_v55  ;;  %v514_v55 = vld [vmem:[#allocation2 + $0xba8] sm:$0xff] }
 0x16a   :  { %4488 = vmatprep.subr.bf16.mxu0 %v6054_v57  ;;  %v387_v57 = vld [vmem:[#allocation2 + $0x7b0] sm:$0xff]  ;;  %v6236_v61 = vcombine.high %v510_v54, %v514_v55  ;;  %v6235_v8 = vcombine.low %v510_v54, %v514_v55 }
 0x16b   :  { %4325 = vmatpush1.bf16.msra.mxu1 %v6179_v2  ;;  %v6110_v62 = vcombine.high %v383_v56, %v387_v57  ;;  %v518_v2 = vld [vmem:[#allocation2 + $0xbc8] sm:$0xff]  ;;  %v6109_v9 = vcombine.low %v383_v56, %v387_v57 }
 0x16c   :  { %4326 = vmatprep.subr.bf16.mxu1 %v6188_v6  ;;  %v391_v6 = vld [vmem:[#allocation2 + $0x7d0] sm:$0xff] }
 0x16d   :  { %4489 = vmatpush1.bf16.msra.mxu0 %v6053_v5  ;;  %v522_v5 = vld [vmem:[#allocation2 + $0xbe8] sm:$0xff] }
 0x16e   :  { %4490 = vmatprep.subr.bf16.mxu0 %v6062_v7  ;;  %v395_v7 = vld [vmem:[#allocation2 + $0x7f0] sm:$0xff]  ;;  %v6244_v24 = vcombine.high %v518_v2, %v522_v5  ;;  %v6243_v17 = vcombine.low %v518_v2, %v522_v5 }
 0x16f   :  { %4327 = vmatpush1.bf16.msra.mxu1 %v6187_v13  ;;  %v6118_v11 = vcombine.high %v391_v6, %v395_v7  ;;  %v526_v13 = vld [vmem:[#allocation2 + $0xc08] sm:$0xff]  ;;  %v6117_v18 = vcombine.low %v391_v6, %v395_v7 }
 0x170   :  { %4328 = vmatprep.subr.bf16.mxu1 %v6196_v14  ;;  %v399_v14 = vld [vmem:[#allocation2 + $0x810] sm:$0xff] }
 0x171   :  { %4491 = vmatpush1.bf16.msra.mxu0 %v6061_v26  ;;  %v530_v26 = vld [vmem:[#allocation2 + $0xc28] sm:$0xff] }
 0x172   :  { %4492 = vmatprep.subr.bf16.mxu0 %v6070_v16  ;;  %v403_v16 = vld [vmem:[#allocation2 + $0x830] sm:$0xff]  ;;  %v6252_v19 = vcombine.high %v526_v13, %v530_v26  ;;  %v6251_v59 = vcombine.low %v526_v13, %v530_v26 }
 0x173   :  { %4329 = vmatpush1.bf16.msra.mxu1 %v6195_v21  ;;  %v6126_v20 = vcombine.high %v399_v14, %v403_v16  ;;  %v534_v21 = vld [vmem:[#allocation2 + $0xc48] sm:$0xff]  ;;  %v6125_v0 = vcombine.low %v399_v14, %v403_v16 }
 0x174   :  { %4330 = vmatprep.subr.bf16.mxu1 %v6204_v23  ;;  %v407_v23 = vld [vmem:[#allocation2 + $0x850] sm:$0xff] }
 0x175   :  { %4493 = vmatpush1.bf16.msra.mxu0 %v6069_v22  ;;  %v538_v22 = vld [vmem:[#allocation2 + $0xc68] sm:$0xff] }
 0x176   :  { %4494 = vmatprep.subr.bf16.mxu0 %v6078_v25  ;;  %v411_v25 = vld [vmem:[#allocation2 + $0x870] sm:$0xff]  ;;  %v6260_v27 = vcombine.high %v534_v21, %v538_v22  ;;  %v6259_v35 = vcombine.low %v534_v21, %v538_v22 }
 0x177   :  { %4331 = vmatpush1.bf16.msra.mxu1 %v6203_v30  ;;  %v6134_v28 = vcombine.high %v407_v23, %v411_v25  ;;  %v542_v30 = vld [vmem:[#allocation2 + $0xc88] sm:$0xff]  ;;  %v6133_v36 = vcombine.low %v407_v23, %v411_v25  ;;  %v455_v21 = vld [vmem:[#allocation2 + $0x9d0] sm:$0xff] }
 0x178   :  { %4332 = vmatprep.subr.bf16.mxu1 %v6212_v32  ;;  %v415_v32 = vld [vmem:[#allocation2 + $0x890] sm:$0xff] }
 0x179   :  { %4495 = vmatpush1.bf16.msra.mxu0 %v6077_v31  ;;  %v546_v31 = vld [vmem:[#allocation2 + $0xca8] sm:$0xff]  ;;  %v459_v22 = vld [vmem:[#allocation2 + $0x9f0] sm:$0xff] }
 0x17a   :  { %4496 = vmatprep.subr.bf16.mxu0 %v6086_v34  ;;  %v419_v34 = vld [vmem:[#allocation2 + $0x8b0] sm:$0xff]  ;;  %v6268_v37 = vcombine.high %v542_v30, %v546_v31  ;;  %v6267_v43 = vcombine.low %v542_v30, %v546_v31  ;;  %v590_v30 = vld [vmem:[#allocation2 + $0xe08] sm:$0xff] }
 0x17b   :  { %4333 = vmatpush1.bf16.msra.mxu1 %v6211_v40  ;;  %v6142_v39 = vcombine.high %v415_v32, %v419_v34  ;;  %v550_v40 = vld [vmem:[#allocation2 + $0xcc8] sm:$0xff]  ;;  %v6141_v63 = vcombine.low %v415_v32, %v419_v34  ;;  %v463_v32 = vld [vmem:[#allocation2 + $0xa10] sm:$0xff] }
 0x17c   :  { %4334 = vmatprep.subr.bf16.mxu1 %v6220_v41  ;;  %v423_v41 = vld [vmem:[#allocation2 + $0x8d0] sm:$0xff]  ;;  %v594_v31 = vld [vmem:[#allocation2 + $0xe28] sm:$0xff] }
 0x17d   :  { %4497 = vmatpush1.bf16.msra.mxu0 %v6085_v51  ;;  %v554_v51 = vld [vmem:[#allocation2 + $0xce8] sm:$0xff]  ;;  %v467_v34 = vld [vmem:[#allocation2 + $0xa30] sm:$0xff] }
 0x17e   :  { %4498 = vmatprep.subr.bf16.mxu0 %v6094_v42  ;;  %v427_v42 = vld [vmem:[#allocation2 + $0x8f0] sm:$0xff]  ;;  %v6276_v45 = vcombine.high %v550_v40, %v554_v51  ;;  %v6275_v54 = vcombine.low %v550_v40, %v554_v51  ;;  %v598_v40 = vld [vmem:[#allocation2 + $0xe48] sm:$0xff] }
 0x17f   :  { %4335 = vmatpush1.bf16.msra.mxu1 %v6219_v48  ;;  %v6150_v3 = vcombine.high %v423_v41, %v427_v42  ;;  %v558_v48 = vld [vmem:[#allocation2 + $0xd08] sm:$0xff]  ;;  %v6149_v55 = vcombine.low %v423_v41, %v427_v42  ;;  %v471_v41 = vld [vmem:[#allocation2 + $0xa50] sm:$0xff] }
 0x180   :  { %4336 = vmatprep.subr.bf16.mxu1 %v6228_v50  ;;  %v431_v50 = vld [vmem:[#allocation2 + $0x910] sm:$0xff]  ;;  %v602_v51 = vld [vmem:[#allocation2 + $0xe68] sm:$0xff] }
 0x181   :  { %4499 = vmatpush1.bf16.msra.mxu0 %v6093_v49  ;;  %v562_v49 = vld [vmem:[#allocation2 + $0xd28] sm:$0xff]  ;;  %v475_v42 = vld [vmem:[#allocation2 + $0xa70] sm:$0xff] }
 0x182   :  { %4500 = vmatprep.subr.bf16.mxu0 %v6102_v52  ;;  %v435_v52 = vld [vmem:[#allocation2 + $0x930] sm:$0xff]  ;;  %v6284_v56 = vcombine.high %v558_v48, %v562_v49  ;;  %v6283_v2 = vcombine.low %v558_v48, %v562_v49  ;;  %v606_v48 = vld [vmem:[#allocation2 + $0xe88] sm:$0xff] }
 0x183   :  { %4337 = vmatpush1.bf16.msra.mxu1 %v6227_v58  ;;  %v6158_v57 = vcombine.high %v431_v50, %v435_v52  ;;  %v566_v58 = vld [vmem:[#allocation2 + $0xd48] sm:$0xff]  ;;  %v6157_v5 = vcombine.low %v431_v50, %v435_v52  ;;  %v479_v50 = vld [vmem:[#allocation2 + $0xa90] sm:$0xff] }
 0x184   :  { %4338 = vmatprep.subr.bf16.mxu1 %v6236_v61  ;;  %v439_v61 = vld [vmem:[#allocation2 + $0x950] sm:$0xff]  ;;  %v610_v49 = vld [vmem:[#allocation2 + $0xea8] sm:$0xff] }
 0x185   :  { %4501 = vmatpush1.bf16.msra.mxu0 %v6101_v60  ;;  %v570_v60 = vld [vmem:[#allocation2 + $0xd68] sm:$0xff]  ;;  %v483_v52 = vld [vmem:[#allocation2 + $0xab0] sm:$0xff] }
 0x186   :  { %4502 = vmatprep.subr.bf16.mxu0 %v6110_v62  ;;  %v443_v62 = vld [vmem:[#allocation2 + $0x970] sm:$0xff]  ;;  %v6292_v6 = vcombine.high %v566_v58, %v570_v60  ;;  %v6291_v13 = vcombine.low %v566_v58, %v570_v60  ;;  %v614_v58 = vld [vmem:[#allocation2 + $0xec8] sm:$0xff] }
 0x187   :  { %4339 = vmatpush1.bf16.msra.mxu1 %v6235_v8  ;;  %v6166_v7 = vcombine.high %v439_v61, %v443_v62  ;;  %v574_v8 = vld [vmem:[#allocation2 + $0xd88] sm:$0xff]  ;;  %v6165_v26 = vcombine.low %v439_v61, %v443_v62  ;;  %v487_v61 = vld [vmem:[#allocation2 + $0xad0] sm:$0xff] }
 0x188   :  { %4340 = vmatprep.subr.bf16.mxu1 %v6244_v24  ;;  %v447_v24 = vld [vmem:[#allocation2 + $0x990] sm:$0xff]  ;;  %v618_v60 = vld [vmem:[#allocation2 + $0xee8] sm:$0xff] }
 0x189   :  { %4503 = vmatpush1.bf16.msra.mxu0 %v6109_v9  ;;  %v578_v9 = vld [vmem:[#allocation2 + $0xda8] sm:$0xff]  ;;  %v491_v62 = vld [vmem:[#allocation2 + $0xaf0] sm:$0xff] }
 0x18a   :  { %4504 = vmatprep.subr.bf16.mxu0 %v6118_v11  ;;  %v451_v11 = vld [vmem:[#allocation2 + $0x9b0] sm:$0xff]  ;;  %v6300_v14 = vcombine.high %v574_v8, %v578_v9  ;;  %v6299_v25 = vcombine.low %v574_v8, %v578_v9  ;;  %v622_v8 = vld [vmem:[#allocation2 + $0xf08] sm:$0xff] }
 0x18b   :  { %4341 = vmatpush1.bf16.msra.mxu1 %v6243_v17  ;;  %v6174_v17 = vcombine.high %v447_v24, %v451_v11  ;;  %v626_v9 = vld [vmem:[#allocation2 + $0xf28] sm:$0xff] }
 0x18c   :  { %4351 = vmatprep.subr.bf16.mxu1 %v6252_v19  ;;  %v586_v19 = vld [vmem:[#allocation2 + $0xde8] sm:$0xff] }
 0x18d   :  { %4505 = vmatpush1.bf16.msra.mxu0 %v6117_v18  ;;  %v582_v18 = vld [vmem:[#allocation2 + $0xdc8] sm:$0xff] }
 0x18e   :  { %4515 = vmatprep.subr.bf16.mxu0 %v6126_v20  ;;  %4343 = vmatmul.mubr.bf16.vlgmr.msra.gmra.mrb[4].mxu1 %v7168_v38 }
 0x18f   :  { %4352 = vmatpush1.bf16.msra.mxu1 %v6251_v59  ;;  %4383 = vmatprep.mubr.bf16.mxu1 %v7173_v47 }
 0x190   :  { %4507 = vmatmul.mubr.bf16.vlgmr.msra.gmra.mrb[4].mxu0 %v7187_v1  ;;  %4353 = vmatprep.subr.bf16.mxu1 %v6260_v27  ;;  %v6308_v27 = vcombine.high %v582_v18, %v586_v19 }
 0x191   :  { %4516 = vmatpush1.bf16.msra.mxu0 %v6125_v0  ;;  %4547 = vmatprep.mubr.bf16.mxu0 %v7144_v15  ;;  %v6173_v0 = vcombine.low %v447_v24, %v451_v11  ;;  %v495_v24 = vld [vmem:[#allocation2 + $0xb10] sm:$0xff] }
 0x192   :  { %4517 = vmatprep.subr.bf16.mxu0 %v6134_v28  ;;  %v6182_v28 = vcombine.high %v455_v21, %v459_v22  ;;  %v499_v11 = vld [vmem:[#allocation2 + $0xb30] sm:$0xff] }
 0x193   :  { %4354 = vmatpush1.bf16.msra.mxu1 %v6259_v35  ;;  %v6307_v35 = vcombine.low %v582_v18, %v586_v19  ;;  %v630_v18 = vld [vmem:[#allocation2 + $0xf48] sm:$0xff] }
 0x194   :  { %4355 = vmatprep.subr.bf16.mxu1 %v6268_v37  ;;  %v6316_v37 = vcombine.high %v590_v30, %v594_v31  ;;  %v634_v19 = vld [vmem:[#allocation2 + $0xf68] sm:$0xff] }
 0x195   :  { %4518 = vmatpush1.bf16.msra.mxu0 %v6133_v36  ;;  %v6181_v36 = vcombine.low %v455_v21, %v459_v22  ;;  %v503_v21 = vld [vmem:[#allocation2 + $0xb50] sm:$0xff] }
 0x196   :  { %4519 = vmatprep.subr.bf16.mxu0 %v6142_v39  ;;  %v6190_v39 = vcombine.high %v463_v32, %v467_v34  ;;  %v507_v22 = vld [vmem:[#allocation2 + $0xb70] sm:$0xff] }
 0x197   :  { %4356 = vmatpush1.bf16.msra.mxu1 %v6267_v43  ;;  %v6315_v43 = vcombine.low %v590_v30, %v594_v31  ;;  %v511_v30 = vld [vmem:[#allocation2 + $0xb90] sm:$0xff] }
 0x198   :  { %4357 = vmatprep.subr.bf16.mxu1 %v6276_v45  ;;  %v6324_v45 = vcombine.high %v598_v40, %v602_v51  ;;  %v515_v31 = vld [vmem:[#allocation2 + $0xbb0] sm:$0xff] }
 0x199   :  { %4520 = vmatpush1.bf16.msra.mxu0 %v6141_v63  ;;  %v6189_v63 = vcombine.low %v463_v32, %v467_v34  ;;  %v6355_v32 = vcombine.low %v630_v18, %v634_v19  ;;  %v6229_v34 = vcombine.low %v503_v21, %v507_v22 }
 0x19a   :  { %4521 = vmatprep.subr.bf16.mxu0 %v6150_v3  ;;  %v6198_v3 = vcombine.high %v471_v41, %v475_v42 }
 0x19b   :  { %4358 = vmatpush1.bf16.msra.mxu1 %v6275_v54  ;;  %v6323_v54 = vcombine.low %v598_v40, %v602_v51  ;;  %v519_v40 = vld [vmem:[#allocation2 + $0xbd0] sm:$0xff] }
 0x19c   :  { %4359 = vmatprep.subr.bf16.mxu1 %v6284_v56  ;;  %v6332_v56 = vcombine.high %v606_v48, %v610_v49  ;;  %v523_v51 = vld [vmem:[#allocation2 + $0xbf0] sm:$0xff] }
 0x19d   :  { %4522 = vmatpush1.bf16.msra.mxu0 %v6149_v55  ;;  %v6197_v55 = vcombine.low %v471_v41, %v475_v42  ;;  %v6237_v42 = vcombine.low %v511_v30, %v515_v31 }
 0x19e   :  { %4523 = vmatprep.subr.bf16.mxu0 %v6158_v57  ;;  %v6206_v57 = vcombine.high %v479_v50, %v483_v52 }
 0x19f   :  { %4360 = vmatpush1.bf16.msra.mxu1 %v6283_v2  ;;  %v6331_v2 = vcombine.low %v606_v48, %v610_v49  ;;  %v527_v48 = vld [vmem:[#allocation2 + $0xc10] sm:$0xff] }
 0x1a0   :  { %4361 = vmatprep.subr.bf16.mxu1 %v6292_v6  ;;  %v6340_v6 = vcombine.high %v614_v58, %v618_v60  ;;  %v531_v49 = vld [vmem:[#allocation2 + $0xc30] sm:$0xff] }
 0x1a1   :  { %4524 = vmatpush1.bf16.msra.mxu0 %v6157_v5  ;;  %v7215_v16 = vpop.f32.mrb[0].mxu1  ;;  %v6205_v5 = vcombine.low %v479_v50, %v483_v52  ;;  %v6245_v52 = vcombine.low %v519_v40, %v523_v51 }
 0x1a2   :  { %4525 = vmatprep.subr.bf16.mxu0 %v6166_v7  ;;  %v7217_v20 = vpop.f32.mrb[1].mxu1  ;;  %v6214_v7 = vcombine.high %v487_v61, %v491_v62 }
 0x1a3   :  { %v4102_v23 = vpop.f32.mrb[2].mxu1  ;;  %4362 = vmatpush1.bf16.msra.mxu1 %v6291_v13  ;;  %v6339_v13 = vcombine.low %v614_v58, %v618_v60  ;;  %v535_v58 = vld [vmem:[#allocation2 + $0xc50] sm:$0xff] }
 0x1a4   :  { %v4103_v59 = vpop.f32.mrb[3].mxu1  ;;  %4363 = vmatprep.subr.bf16.mxu1 %v6300_v14  ;;  %v6348_v14 = vcombine.high %v622_v8, %v626_v9  ;;  %v6347_v23 = vcombine.low %v622_v8, %v626_v9  ;;  %v539_v60 = vld [vmem:[#allocation2 + $0xc70] sm:$0xff] }
 0x1a5   :  { %4526 = vmatpush1.bf16.msra.mxu0 %v6165_v26  ;;  %v6213_v26 = vcombine.low %v487_v61, %v491_v62  ;;  %v6356_v59 = vcombine.high %v630_v18, %v634_v19  ;;  %v6253_v62 = vcombine.low %v527_v48, %v531_v49  ;;  %v543_v8 = vld [vmem:[#allocation2 + $0xc90] sm:$0xff] }
 0x1a6   :  { %4527 = vmatprep.subr.bf16.mxu0 %v6174_v17  ;;  %v6222_v17 = vcombine.high %v495_v24, %v499_v11  ;;  %v547_v9 = vld [vmem:[#allocation2 + $0xcb0] sm:$0xff] }
 0x1a7   :  { %4364 = vmatpush1.bf16.msra.mxu1 %v6299_v25  ;;  %v6221_v25 = vcombine.low %v495_v24, %v499_v11  ;;  %v6261_v11 = vcombine.low %v535_v58, %v539_v60  ;;  %v551_v18 = vld [vmem:[#allocation2 + $0xcd0] sm:$0xff] }
 0x1a8   :  { %4365 = vmatprep.subr.bf16.mxu1 %v6308_v27  ;;  %v638_v27 = vld [vmem:[#allocation2 + $0xf88] sm:$0xff]  ;;  %v555_v19 = vld [vmem:[#allocation2 + $0xcf0] sm:$0xff] }
 0x1a9   :  { %4528 = vmatpush1.bf16.msra.mxu0 %v6173_v0  ;;  %v6230_v0 = vcombine.high %v503_v21, %v507_v22  ;;  %v6269_v22 = vcombine.low %v543_v8, %v547_v9 }
 0x1aa   :  { %4529 = vmatprep.subr.bf16.mxu0 %v6182_v28  ;;  %v642_v28 = vld [vmem:[#allocation2 + $0xfa8] sm:$0xff] }
 0x1ab   :  { %4366 = vmatpush1.bf16.msra.mxu1 %v6307_v35  ;;  %v6364_v35 = vcombine.high %v638_v27, %v642_v28  ;;  %v6363_v41 = vcombine.low %v638_v27, %v642_v28  ;;  %v559_v27 = vld [vmem:[#allocation2 + $0xd10] sm:$0xff] }
 0x1ac   :  { %4367 = vmatprep.subr.bf16.mxu1 %v6316_v37  ;;  %v646_v37 = vld [vmem:[#allocation2 + $0xfc8] sm:$0xff]  ;;  %v563_v28 = vld [vmem:[#allocation2 + $0xd30] sm:$0xff] }
 0x1ad   :  { %4530 = vmatpush1.bf16.msra.mxu0 %v6181_v36  ;;  %v6238_v36 = vcombine.high %v511_v30, %v515_v31  ;;  %v6277_v31 = vcombine.low %v551_v18, %v555_v19 }
 0x1ae   :  { %4531 = vmatprep.subr.bf16.mxu0 %v6190_v39  ;;  %v650_v39 = vld [vmem:[#allocation2 + $0xfe8] sm:$0xff] }
 0x1af   :  { %4368 = vmatpush1.bf16.msra.mxu1 %v6315_v43  ;;  %v6372_v43 = vcombine.high %v646_v37, %v650_v39  ;;  %v6371_v50 = vcombine.low %v646_v37, %v650_v39  ;;  %v698_v37 = vld [vmem:[#allocation2 + $0x1168] sm:$0xff]  ;;  %v781_v39 = vld [vmem:[#allocation4] sm:$0xff] }
 0x1b0   :  { %4369 = vmatprep.subr.bf16.mxu1 %v6324_v45  ;;  %v654_v45 = vld [vmem:[#allocation2 + $0x1008] sm:$0xff] }
 0x1b1   :  { %4532 = vmatpush1.bf16.msra.mxu0 %v6189_v63  ;;  %v6246_v63 = vcombine.high %v519_v40, %v523_v51  ;;  %v789_v40 = vsub.s32 1, %v7115_v44  ;;  %v567_v51 = vld [vmem:[#allocation2 + $0xd50] sm:$0xff] }
 0x1b2   :  { %4533 = vmatprep.subr.bf16.mxu0 %v6198_v3  ;;  %v658_v3 = vld [vmem:[#allocation2 + $0x1028] sm:$0xff] }
 0x1b3   :  { %4370 = vmatpush1.bf16.msra.mxu1 %v6323_v54  ;;  %v6380_v54 = vcombine.high %v654_v45, %v658_v3  ;;  %v6379_v61 = vcombine.low %v654_v45, %v658_v3 }
 0x1b4   :  { %4371 = vmatprep.subr.bf16.mxu1 %v6332_v56  ;;  %v662_v56 = vld [vmem:[#allocation2 + $0x1048] sm:$0xff] }
 0x1b5   :  { %4534 = vmatpush1.bf16.msra.mxu0 %v6197_v55  ;;  %v6254_v55 = vcombine.high %v527_v48, %v531_v49  ;;  %v702_v48 = vld [vmem:[#allocation2 + $0x1188] sm:$0xff] }
 0x1b6   :  { %4535 = vmatprep.subr.bf16.mxu0 %v6206_v57  ;;  %v666_v57 = vld [vmem:[#allocation2 + $0x1068] sm:$0xff] }
 0x1b7   :  { %4372 = vmatpush1.bf16.msra.mxu1 %v6331_v2  ;;  %v6388_v2 = vcombine.high %v662_v56, %v666_v57  ;;  %v6387_v24 = vcombine.low %v662_v56, %v666_v57  ;;  %v706_v49 = vld [vmem:[#allocation2 + $0x11a8] sm:$0xff] }
 0x1b8   :  { %4373 = vmatprep.subr.bf16.mxu1 %v6340_v6  ;;  %v670_v6 = vld [vmem:[#allocation2 + $0x1088] sm:$0xff]  ;;  %v6428_v57 = vcombine.high %v702_v48, %v706_v49 }
 0x1b9   :  { %4536 = vmatpush1.bf16.msra.mxu0 %v6205_v5  ;;  %v6262_v5 = vcombine.high %v535_v58, %v539_v60 }
 0x1ba   :  { %4537 = vmatprep.subr.bf16.mxu0 %v6214_v7  ;;  %v674_v7 = vld [vmem:[#allocation2 + $0x10a8] sm:$0xff] }
 0x1bb   :  { %4374 = vmatpush1.bf16.msra.mxu1 %v6339_v13  ;;  %v6396_v13 = vcombine.high %v670_v6, %v674_v7  ;;  %v6395_v21 = vcombine.low %v670_v6, %v674_v7  ;;  %v583_v6 = vld [vmem:[#allocation2 + $0xdd0] sm:$0xff] }
 0x1bc   :  { %4375 = vmatprep.subr.bf16.mxu1 %v6348_v14  ;;  %v678_v14 = vld [vmem:[#allocation2 + $0x10c8] sm:$0xff]  ;;  %v587_v7 = vld [vmem:[#allocation2 + $0xdf0] sm:$0xff] }
 0x1bd   :  { %4538 = vmatpush1.bf16.msra.mxu0 %v6213_v26  ;;  %v6270_v26 = vcombine.high %v543_v8, %v547_v9 }
 0x1be   :  { %4539 = vmatprep.subr.bf16.mxu0 %v6222_v17  ;;  %v682_v17 = vld [vmem:[#allocation2 + $0x10e8] sm:$0xff] }
 0x1bf   :  { %4376 = vmatpush1.bf16.msra.mxu1 %v6347_v23  ;;  %v6404_v23 = vcombine.high %v678_v14, %v682_v17  ;;  %v6403_v30 = vcombine.low %v678_v14, %v682_v17  ;;  %v6310_v14 = vcombine.high %v583_v6, %v587_v7  ;;  %v718_v17 = vld [vmem:[#allocation2 + $0x1208] sm:$0xff] }
 0x1c0   :  { %4377 = vmatprep.subr.bf16.mxu1 %v6356_v59  ;;  %v686_v59 = vld [vmem:[#allocation2 + $0x1108] sm:$0xff] }
 0x1c1   :  { %4540 = vmatpush1.bf16.msra.mxu0 %v6221_v25  ;;  %v6278_v25 = vcombine.high %v551_v18, %v555_v19  ;;  %v722_v18 = vld [vmem:[#allocation2 + $0x1228] sm:$0xff] }
 0x1c2   :  { %4541 = vmatprep.subr.bf16.mxu0 %v6230_v0  ;;  %v690_v0 = vld [vmem:[#allocation2 + $0x1128] sm:$0xff] }
 0x1c3   :  { %4378 = vmatpush1.bf16.msra.mxu1 %v6355_v32  ;;  %v6412_v32 = vcombine.high %v686_v59, %v690_v0 }
 0x1c4   :  { %4379 = vmatprep.subr.bf16.mxu1 %v6364_v35  ;;  %v6286_v35 = vcombine.high %v559_v27, %v563_v28 }
 0x1c5   :  { %4542 = vmatpush1.bf16.msra.mxu0 %v6229_v34  ;;  %v785_v34 = vsub.s32 0, %v7115_v44 }
 0x1c6   :  { %4543 = vmatprep.subr.bf16.mxu0 %v6238_v36  ;;  %v694_v36 = vld [vmem:[#allocation2 + $0x1148] sm:$0xff] }
 0x1c7   :  { %4380 = vmatpush1.bf16.msra.mxu1 %v6363_v41  ;;  %v571_v41 = vld [vmem:[#allocation2 + $0xd70] sm:$0xff]  ;;  %v786_v45 = vrot.slane %v781_v39, %v785_v34 }
 0x1c8   :  { %4381 = vmatprep.subr.bf16.mxu1 %v6372_v43  ;;  %v6285_v43 = vcombine.low %v559_v27, %v563_v28  ;;  %v6294_v3 = vcombine.high %v567_v51, %v571_v41  ;;  %v6293_v56 = vcombine.low %v567_v51, %v571_v41  ;;  %v726_v27 = vld [vmem:[#allocation2 + $0x1248] sm:$0xff]  ;;  %v607_v41 = vld [vmem:[#allocation2 + $0xe90] sm:$0xff] }
 0x1c9   :  { %4544 = vmatpush1.bf16.msra.mxu0 %v6237_v42  ;;  %v6411_v42 = vcombine.low %v686_v59, %v690_v0  ;;  %v6634_v58 = vadd.f32 %v7215_v16, %v786_v45  ;;  %v6444_v59 = vcombine.high %v718_v17, %v722_v18  ;;  %v730_v28 = vld [vmem:[#allocation2 + $0x1268] sm:$0xff] }
 0x1ca   :  { %4545 = vmatprep.subr.bf16.mxu0 %v6246_v63  ;;  %v6420_v63 = vcombine.high %v694_v36, %v698_v37  ;;  %v738_v51 = vld [vmem:[#allocation2 + $0x12a8] sm:$0xff] }
 0x1cb   :  { %4382 = vmatpush1.bf16.msra.mxu1 %v6371_v50  ;;  %v790_v50 = vrot.slane %v781_v39, %v789_v40  ;;  %v734_v39 = vld [vmem:[#allocation2 + $0x1288] sm:$0xff] }
 0x1cc   :  { %4392 = vmatprep.subr.bf16.mxu1 %v6380_v54  ;;  %v579_v54 = vld [vmem:[#allocation2 + $0xdb0] sm:$0xff]  ;;  %v6460_v45 = vcombine.high %v734_v39, %v738_v51 }
 0x1cd   :  { %4546 = vmatpush1.bf16.msra.mxu0 %v6245_v52  ;;  %v575_v52 = vld [vmem:[#allocation2 + $0xd90] sm:$0xff] }
 0x1ce   :  { %4556 = vmatprep.subr.bf16.mxu0 %v6254_v55  ;;  %4384 = vmatmul.mubr.bf16.vlgmr.msra.gmra.mrb[4].mxu1 %v7191_v4  ;;  %v6419_v55 = vcombine.low %v694_v36, %v698_v37  ;;  %v6302_v60 = vcombine.high %v575_v52, %v579_v54  ;;  %v6452_v36 = vcombine.high %v726_v27, %v730_v28 }
 0x1cf   :  { %4393 = vmatpush1.bf16.msra.mxu1 %v6379_v61  ;;  %4424 = vmatprep.mubr.bf16.mxu1 %v7193_v10  ;;  %v710_v61 = vld [vmem:[#allocation2 + $0x11c8] sm:$0xff] }
 0x1d0   :  { %4548 = vmatmul.mubr.bf16.vlgmr.msra.gmra.mrb[4].mxu0 %v7168_v38  ;;  %4394 = vmatprep.subr.bf16.mxu1 %v6388_v2  ;;  %v6636_v2 = vadd.f32 %v7217_v20, %v790_v50  ;;  %v615_v50 = vld [vmem:[#allocation2 + $0xed0] sm:$0xff] }
 0x1d1   :  { %4557 = vmatpush1.bf16.msra.mxu0 %v6253_v62  ;;  %4588 = vmatprep.mubr.bf16.mxu0 %v7173_v47  ;;  %v714_v62 = vld [vmem:[#allocation2 + $0x11e8] sm:$0xff] }
 0x1d2   :  { %4558 = vmatprep.subr.bf16.mxu0 %v6262_v5  ;;  %v6436_v16 = vcombine.high %v710_v61, %v714_v62 }
 0x1d3   :  { %4395 = vmatpush1.bf16.msra.mxu1 %v6387_v24  ;;  %v6427_v24 = vcombine.low %v702_v48, %v706_v49  ;;  %v742_v48 = vld [vmem:[#allocation2 + $0x12c8] sm:$0xff] }
 0x1d4   :  { %4396 = vmatprep.subr.bf16.mxu1 %v6396_v13  ;;  %v6301_v13 = vcombine.low %v575_v52, %v579_v54  ;;  %v746_v49 = vld [vmem:[#allocation2 + $0x12e8] sm:$0xff]  ;;  %v619_v52 = vld [vmem:[#allocation2 + $0xef0] sm:$0xff]  ;;  %v6459_v54 = vcombine.low %v734_v39, %v738_v51  ;;  %v144_v51 = vld [vmem:[#allocation2 + $0x18] sm:$0xff] }
 0x1d5   :  { %4559 = vmatpush1.bf16.msra.mxu0 %v6261_v11 }
 0x1d6   :  { %4560 = vmatprep.subr.bf16.mxu0 %v6270_v26 }
 0x1d7   :  { %4397 = vmatpush1.bf16.msra.mxu1 %v6395_v21  ;;  %v591_v21 = vld [vmem:[#allocation2 + $0xe10] sm:$0xff] }
 0x1d8   :  { %4398 = vmatprep.subr.bf16.mxu1 %v6404_v23  ;;  %v6435_v23 = vcombine.low %v710_v61, %v714_v62  ;;  %v623_v61 = vld [vmem:[#allocation2 + $0xf10] sm:$0xff] }
 0x1d9   :  { %4561 = vmatpush1.bf16.msra.mxu0 %v6269_v22  ;;  %v595_v22 = vld [vmem:[#allocation2 + $0xe30] sm:$0xff] }
 0x1da   :  { %4562 = vmatprep.subr.bf16.mxu0 %v6278_v25  ;;  %v6309_v25 = vcombine.low %v583_v6, %v587_v7  ;;  %v6318_v0 = vcombine.high %v591_v21, %v595_v22  ;;  %v627_v62 = vld [vmem:[#allocation2 + $0xf30] sm:$0xff] }
 0x1db   :  { %4399 = vmatpush1.bf16.msra.mxu1 %v6403_v30  ;;  %v599_v30 = vld [vmem:[#allocation2 + $0xe50] sm:$0xff]  ;;  %v6350_v7 = vcombine.high %v623_v61, %v627_v62 }
 0x1dc   :  { %4400 = vmatprep.subr.bf16.mxu1 %v6412_v32  ;;  %v6443_v32 = vcombine.low %v718_v17, %v722_v18 }
 0x1dd   :  { %4563 = vmatpush1.bf16.msra.mxu0 %v6277_v31  ;;  %v603_v31 = vld [vmem:[#allocation2 + $0xe70] sm:$0xff] }
 0x1de   :  { %4564 = vmatprep.subr.bf16.mxu0 %v6286_v35  ;;  %v6317_v35 = vcombine.low %v591_v21, %v595_v22  ;;  %v6326_v37 = vcombine.high %v599_v30, %v603_v31  ;;  %v770_v21 = vld [vmem:[#allocation2 + $0x13a8] sm:$0xff]  ;;  %v639_v22 = vld [vmem:[#allocation2 + $0xf90] sm:$0xff] }
 0x1df   :  { %4401 = vmatpush1.bf16.msra.mxu1 %v6411_v42  ;;  %v611_v42 = vld [vmem:[#allocation2 + $0xeb0] sm:$0xff] }
 0x1e0   :  { %4402 = vmatprep.subr.bf16.mxu1 %v6420_v63  ;;  %v6325_v63 = vcombine.low %v599_v30, %v603_v31  ;;  %v778_v30 = vld [vmem:[#allocation2 + $0x13e8] sm:$0xff]  ;;  %v647_v31 = vld [vmem:[#allocation2 + $0xfd0] sm:$0xff] }
 0x1e1   :  { %4565 = vmatpush1.bf16.msra.mxu0 %v6285_v43  ;;  %v6451_v43 = vcombine.low %v726_v27, %v730_v28  ;;  %v774_v28 = vld [vmem:[#allocation2 + $0x13c8] sm:$0xff] }
 0x1e2   :  { %4566 = vmatprep.subr.bf16.mxu0 %v6294_v3  ;;  %v6334_v3 = vcombine.high %v607_v41, %v611_v42 }
 0x1e3   :  { %v4221_v5 = vpop.f32.mrb[0].mxu0  ;;  %4403 = vmatpush1.bf16.msra.mxu1 %v6419_v55  ;;  %v6333_v55 = vcombine.low %v607_v41, %v611_v42  ;;  %v148_v41 = vld [vmem:[#allocation2 + $0x38] sm:$0xff]  ;;  %v655_v42 = vld [vmem:[#allocation2 + $0x1010] sm:$0xff] }
 0x1e4   :  { %v7231_v8 = vadd.f32 %v6634_v58, %v4221_v5  ;;  %v4223_v9 = vpop.f32.mrb[1].mxu0  ;;  %4404 = vmatprep.subr.bf16.mxu1 %v6428_v57  ;;  %v6342_v57 = vcombine.high %v615_v50, %v619_v52  ;;  %v750_v58 = vld [vmem:[#allocation2 + $0x1308] sm:$0xff]  ;;  %v6341_v5 = vcombine.low %v615_v50, %v619_v52  ;;  %v156_v50 = vld [vmem:[#allocation2 + $0x78] sm:$0xff]  ;;  %v663_v52 = vld [vmem:[#allocation2 + $0x1050] sm:$0xff] }
 0x1e5   :  { %v7233_v11 = vadd.f32 %v6636_v2, %v4223_v9  ;;  %4567 = vmatpush1.bf16.msra.mxu0 %v6293_v56  ;;  %v4225_v26 = vpop.f32.mrb[2].mxu0  ;;  %v6468_v56 = vcombine.high %v742_v48, %v746_v49  ;;  %v6467_v2 = vcombine.low %v742_v48, %v746_v49  ;;  %v758_v9 = vld [vmem:[#allocation2 + $0x1348] sm:$0xff]  ;;  %v152_v49 = vld [vmem:[#allocation2 + $0x58] sm:$0xff] }
 0x1e6   :  { %4568 = vmatprep.subr.bf16.mxu0 %v6302_v60  ;;  %v4226_v20 = vpop.f32.mrb[3].mxu0  ;;  %v754_v60 = vld [vmem:[#allocation2 + $0x1328] sm:$0xff] }
 0x1e7   :  { %v4851_v19 = vcombine.low %v7231_v8, %v7233_v11  ;;  %4405 = vmatpush1.bf16.msra.mxu1 %v6427_v24  ;;  %v6476_v6 = vcombine.high %v750_v58, %v754_v60  ;;  %v762_v24 = vld [vmem:[#allocation2 + $0x1368] sm:$0xff]  ;;  %v6475_v26 = vcombine.low %v750_v58, %v754_v60  ;;  %v160_v60 = vld [vmem:[#allocation2 + $0x98] sm:$0xff] }
 0x1e8   :  { %4406 = vmatprep.subr.bf16.mxu1 %v6436_v16  ;;  %v635_v16 = vld [vmem:[#allocation2 + $0xf70] sm:$0xff]  ;;  %v6484_v17 = vcombine.high %v758_v9, %v762_v24  ;;  %v766_v20 = vld [vmem:[#allocation2 + $0x1388] sm:$0xff] }
 0x1e9   :  { %4569 = vmatpush1.bf16.msra.mxu0 %v6301_v13  ;;  %v631_v13 = vld [vmem:[#allocation2 + $0xf50] sm:$0xff] }
 0x1ea   :  { %4570 = vmatprep.subr.bf16.mxu0 %v6310_v14  ;;  %v6349_v14 = vcombine.low %v623_v61, %v627_v62  ;;  %v6358_v18 = vcombine.high %v631_v13, %v635_v16  ;;  %v164_v61 = vld [vmem:[#allocation2 + $0xb8] sm:$0xff]  ;;  %v671_v62 = vld [vmem:[#allocation2 + $0x1090] sm:$0xff] }
 0x1eb   :  { %4407 = vmatpush1.bf16.msra.mxu1 %v6435_v23  ;;  %v643_v23 = vld [vmem:[#allocation2 + $0xfb0] sm:$0xff] }
 0x1ec   :  { %4408 = vmatprep.subr.bf16.mxu1 %v6444_v59  ;;  %v6357_v59 = vcombine.low %v631_v13, %v635_v16  ;;  %v6366_v27 = vcombine.high %v639_v22, %v643_v23  ;;  %v172_v13 = vld [vmem:[#allocation2 + $0xf8] sm:$0xff]  ;;  %v679_v16 = vld [vmem:[#allocation2 + $0x10d0] sm:$0xff] }
 0x1ed   :  { %4571 = vmatpush1.bf16.msra.mxu0 %v6309_v25  ;;  %v6483_v25 = vcombine.low %v758_v9, %v762_v24  ;;  %v168_v24 = vld [vmem:[#allocation2 + $0xd8] sm:$0xff] }
 0x1ee   :  { %4572 = vmatprep.subr.bf16.mxu0 %v6318_v0  ;;  %v6492_v0 = vcombine.high %v766_v20, %v770_v21 }
 0x1ef   :  { %4409 = vmatpush1.bf16.msra.mxu1 %v6443_v32  ;;  %v651_v32 = vld [vmem:[#allocation2 + $0xff0] sm:$0xff] }
 0x1f0   :  { %4410 = vmatprep.subr.bf16.mxu1 %v6452_v36  ;;  %v6365_v36 = vcombine.low %v639_v22, %v643_v23  ;;  %v6374_v39 = vcombine.high %v647_v31, %v651_v32  ;;  %v180_v22 = vld [vmem:[#allocation2 + $0x138] sm:$0xff]  ;;  %v687_v23 = vld [vmem:[#allocation2 + $0x1110] sm:$0xff] }
 0x1f1   :  { %4573 = vmatpush1.bf16.msra.mxu0 %v6317_v35  ;;  %v6491_v35 = vcombine.low %v766_v20, %v770_v21  ;;  %v176_v21 = vld [vmem:[#allocation2 + $0x118] sm:$0xff] }
 0x1f2   :  { %4574 = vmatprep.subr.bf16.mxu0 %v6326_v37  ;;  %v6500_v37 = vcombine.high %v774_v28, %v778_v30 }
 0x1f3   :  { %4411 = vmatpush1.bf16.msra.mxu1 %v6451_v43  ;;  %v659_v43 = vld [vmem:[#allocation2 + $0x1030] sm:$0xff] }
 0x1f4   :  { %4412 = vmatprep.subr.bf16.mxu1 %v6460_v45  ;;  %v6373_v45 = vcombine.low %v647_v31, %v651_v32  ;;  %v6382_v48 = vcombine.high %v655_v42, %v659_v43  ;;  %v695_v31 = vld [vmem:[#allocation2 + $0x1150] sm:$0xff] }
 0x1f5   :  { %4575 = vmatpush1.bf16.msra.mxu0 %v6325_v63  ;;  %v6499_v63 = vcombine.low %v774_v28, %v778_v30  ;;  %v184_v28 = vld [vmem:[#allocation2 + $0x158] sm:$0xff]  ;;  %v699_v32 = vld [vmem:[#allocation2 + $0x1170] sm:$0xff] }
 0x1f6   :  { %4576 = vmatprep.subr.bf16.mxu0 %v6334_v3  ;;  %v5872_v3 = vcombine.high %v144_v51, %v148_v41  ;;  %v188_v30 = vld [vmem:[#allocation2 + $0x178] sm:$0xff] }
 0x1f7   :  { %4413 = vmatpush1.bf16.msra.mxu1 %v6459_v54  ;;  %v667_v54 = vld [vmem:[#allocation2 + $0x1070] sm:$0xff] }
 0x1f8   :  { %4414 = vmatprep.subr.bf16.mxu1 %v6468_v56  ;;  %v6381_v56 = vcombine.low %v655_v42, %v659_v43  ;;  %v6390_v58 = vcombine.high %v663_v52, %v667_v54  ;;  %v703_v42 = vld [vmem:[#allocation2 + $0x1190] sm:$0xff] }
 0x1f9   :  { %4577 = vmatpush1.bf16.msra.mxu0 %v6333_v55  ;;  %v5871_v55 = vcombine.low %v144_v51, %v148_v41  ;;  %v192_v51 = vld [vmem:[#allocation2 + $0x198] sm:$0xff]  ;;  %v707_v43 = vld [vmem:[#allocation2 + $0x11b0] sm:$0xff] }
 0x1fa   :  { %4578 = vmatprep.subr.bf16.mxu0 %v6342_v57  ;;  %v5880_v57 = vcombine.high %v152_v49, %v156_v50  ;;  %v196_v41 = vld [vmem:[#allocation2 + $0x1b8] sm:$0xff] }
 0x1fb   :  { %4415 = vmatpush1.bf16.msra.mxu1 %v6467_v2  ;;  %v675_v2 = vld [vmem:[#allocation2 + $0x10b0] sm:$0xff] }
 0x1fc   :  { %4416 = vmatprep.subr.bf16.mxu1 %v6476_v6  ;;  %v6389_v6 = vcombine.low %v663_v52, %v667_v54  ;;  %v6398_v9 = vcombine.high %v671_v62, %v675_v2  ;;  %v711_v52 = vld [vmem:[#allocation2 + $0x11d0] sm:$0xff] }
 0x1fd   :  { %4579 = vmatpush1.bf16.msra.mxu0 %v6341_v5  ;;  %v5879_v5 = vcombine.low %v152_v49, %v156_v50  ;;  %v200_v49 = vld [vmem:[#allocation2 + $0x1d8] sm:$0xff]  ;;  %v715_v54 = vld [vmem:[#allocation2 + $0x11f0] sm:$0xff] }
 0x1fe   :  { %4580 = vmatprep.subr.bf16.mxu0 %v6350_v7  ;;  %v5888_v7 = vcombine.high %v160_v60, %v164_v61  ;;  %v204_v50 = vld [vmem:[#allocation2 + $0x1f8] sm:$0xff] }
 0x1ff   :  { %4417 = vmatpush1.bf16.msra.mxu1 %v6475_v26  ;;  %v683_v26 = vld [vmem:[#allocation2 + $0x10f0] sm:$0xff] }
 0x200   :  { %4418 = vmatprep.subr.bf16.mxu1 %v6484_v17  ;;  %v6397_v17 = vcombine.low %v671_v62, %v675_v2  ;;  %v6406_v20 = vcombine.high %v679_v16, %v683_v26  ;;  %v719_v62 = vld [vmem:[#allocation2 + $0x1210] sm:$0xff] }
 0x201   :  { %4581 = vmatpush1.bf16.msra.mxu0 %v6349_v14  ;;  %v5887_v14 = vcombine.low %v160_v60, %v164_v61  ;;  %v208_v60 = vld [vmem:[#allocation2 + $0x218] sm:$0xff]  ;;  %v723_v2 = vld [vmem:[#allocation2 + $0x1230] sm:$0xff] }
 0x202   :  { %4582 = vmatprep.subr.bf16.mxu0 %v6358_v18  ;;  %v5896_v18 = vcombine.high %v168_v24, %v172_v13  ;;  %v212_v61 = vld [vmem:[#allocation2 + $0x238] sm:$0xff] }
 0x203   :  { %4419 = vmatpush1.bf16.msra.mxu1 %v6483_v25  ;;  %v691_v25 = vld [vmem:[#allocation2 + $0x1130] sm:$0xff] }
 0x204   :  { %4420 = vmatprep.subr.bf16.mxu1 %v6492_v0  ;;  %v6405_v0 = vcombine.low %v679_v16, %v683_v26  ;;  %v727_v16 = vld [vmem:[#allocation2 + $0x1250] sm:$0xff] }
 0x205   :  { %4583 = vmatpush1.bf16.msra.mxu0 %v6357_v59  ;;  %v5895_v59 = vcombine.low %v168_v24, %v172_v13  ;;  %v216_v24 = vld [vmem:[#allocation2 + $0x258] sm:$0xff]  ;;  %v731_v26 = vld [vmem:[#allocation2 + $0x1270] sm:$0xff] }
 0x206   :  { %4584 = vmatprep.subr.bf16.mxu0 %v6366_v27  ;;  %v5904_v27 = vcombine.high %v176_v21, %v180_v22  ;;  %v220_v13 = vld [vmem:[#allocation2 + $0x278] sm:$0xff] }
 0x207   :  { %4421 = vmatpush1.bf16.msra.mxu1 %v6491_v35  ;;  %v5903_v35 = vcombine.low %v176_v21, %v180_v22  ;;  %v224_v21 = vld [vmem:[#allocation2 + $0x298] sm:$0xff] }
 0x208   :  { %4422 = vmatprep.subr.bf16.mxu1 %v6500_v37  ;;  %v5912_v37 = vcombine.high %v184_v28, %v188_v30  ;;  %v228_v22 = vld [vmem:[#allocation2 + $0x2b8] sm:$0xff] }
 0x209   :  { %4585 = vmatpush1.bf16.msra.mxu0 %v6365_v36  ;;  %v6413_v36 = vcombine.low %v687_v23, %v691_v25 }
 0x20a   :  { %4586 = vmatprep.subr.bf16.mxu0 %v6374_v39  ;;  %v6422_v39 = vcombine.high %v695_v31, %v699_v32 }
 0x20b   :  { %4423 = vmatpush1.bf16.msra.mxu1 %v6499_v63  ;;  %v5911_v63 = vcombine.low %v184_v28, %v188_v30  ;;  %v232_v28 = vld [vmem:[#allocation2 + $0x2d8] sm:$0xff] }
 0x20c   :  { %4638 = vmatprep.subr.bf16.mxu1 %v5872_v3  ;;  %v5920_v3 = vcombine.high %v192_v51, %v196_v41  ;;  %v236_v30 = vld [vmem:[#allocation2 + $0x2f8] sm:$0xff] }
 0x20d   :  { %4587 = vmatpush1.bf16.msra.mxu0 %v6373_v45  ;;  %v6421_v45 = vcombine.low %v695_v31, %v699_v32  ;;  %v743_v31 = vld [vmem:[#allocation2 + $0x12d0] sm:$0xff] }
 0x20e   :  { %4597 = vmatprep.subr.bf16.mxu0 %v6382_v48  ;;  %4425 = vmatmul.mubr.bf16.vlgmr.msra.gmra.mrb[4].mxu1 %v7201_v29  ;;  %v6430_v48 = vcombine.high %v703_v42, %v707_v43  ;;  %v747_v32 = vld [vmem:[#allocation2 + $0x12f0] sm:$0xff] }
 0x20f   :  { %4639 = vmatpush1.bf16.msra.mxu1 %v5871_v55  ;;  %4670 = vmatprep.mubr.bf16.mxu1 %v7142_v12  ;;  %v6414_v12 = vcombine.high %v687_v23, %v691_v25  ;;  %v5919_v55 = vcombine.low %v192_v51, %v196_v41  ;;  %v735_v23 = vld [vmem:[#allocation2 + $0x1290] sm:$0xff]  ;;  %v240_v51 = vld [vmem:[#allocation2 + $0x318] sm:$0xff] }
 0x210   :  { %4589 = vmatmul.mubr.bf16.vlgmr.msra.gmra.mrb[4].mxu0 %v7191_v4  ;;  %4640 = vmatprep.subr.bf16.mxu1 %v5880_v57  ;;  %v5928_v57 = vcombine.high %v200_v49, %v204_v50  ;;  %v739_v25 = vld [vmem:[#allocation2 + $0x12b0] sm:$0xff]  ;;  %v244_v41 = vld [vmem:[#allocation2 + $0x338] sm:$0xff] }
 0x211   :  { %4598 = vmatpush1.bf16.msra.mxu0 %v6381_v56  ;;  %4629 = vmatprep.mubr.bf16.mxu0 %v7193_v10  ;;  %v6429_v56 = vcombine.low %v703_v42, %v707_v43  ;;  %v751_v42 = vld [vmem:[#allocation2 + $0x1310] sm:$0xff] }
 0x212   :  { %4599 = vmatprep.subr.bf16.mxu0 %v6390_v58  ;;  %v6438_v58 = vcombine.high %v711_v52, %v715_v54  ;;  %v755_v43 = vld [vmem:[#allocation2 + $0x1330] sm:$0xff] }
 0x213   :  { %4641 = vmatpush1.bf16.msra.mxu1 %v5879_v5  ;;  %v5927_v5 = vcombine.low %v200_v49, %v204_v50  ;;  %v248_v49 = vld [vmem:[#allocation2 + $0x358] sm:$0xff] }
 0x214   :  { %4642 = vmatprep.subr.bf16.mxu1 %v5888_v7  ;;  %v5936_v7 = vcombine.high %v208_v60, %v212_v61  ;;  %v252_v50 = vld [vmem:[#allocation2 + $0x378] sm:$0xff] }
 0x215   :  { %4600 = vmatpush1.bf16.msra.mxu0 %v6389_v6  ;;  %v6437_v6 = vcombine.low %v711_v52, %v715_v54  ;;  %v759_v52 = vld [vmem:[#allocation2 + $0x1350] sm:$0xff] }
 0x216   :  { %4601 = vmatprep.subr.bf16.mxu0 %v6398_v9  ;;  %v6446_v9 = vcombine.high %v719_v62, %v723_v2  ;;  %v763_v54 = vld [vmem:[#allocation2 + $0x1370] sm:$0xff] }
 0x217   :  { %4643 = vmatpush1.bf16.msra.mxu1 %v5887_v14  ;;  %v5935_v14 = vcombine.low %v208_v60, %v212_v61  ;;  %v256_v60 = vld [vmem:[#allocation2 + $0x398] sm:$0xff] }
 0x218   :  { %4644 = vmatprep.subr.bf16.mxu1 %v5896_v18  ;;  %v5944_v18 = vcombine.high %v216_v24, %v220_v13  ;;  %v260_v61 = vld [vmem:[#allocation2 + $0x3b8] sm:$0xff] }
 0x219   :  { %4602 = vmatpush1.bf16.msra.mxu0 %v6397_v17  ;;  %v6445_v17 = vcombine.low %v719_v62, %v723_v2  ;;  %v767_v62 = vld [vmem:[#allocation2 + $0x1390] sm:$0xff] }
 0x21a   :  { %4603 = vmatprep.subr.bf16.mxu0 %v6406_v20  ;;  %v6454_v20 = vcombine.high %v727_v16, %v731_v26  ;;  %v771_v2 = vld [vmem:[#allocation2 + $0x13b0] sm:$0xff] }
 0x21b   :  { %4645 = vmatpush1.bf16.msra.mxu1 %v5895_v59  ;;  %v5943_v59 = vcombine.low %v216_v24, %v220_v13  ;;  %v264_v24 = vld [vmem:[#allocation2 + $0x3d8] sm:$0xff] }
 0x21c   :  { %4646 = vmatprep.subr.bf16.mxu1 %v5904_v27  ;;  %v5952_v27 = vcombine.high %v224_v21, %v228_v22  ;;  %v268_v13 = vld [vmem:[#allocation2 + $0x3f8] sm:$0xff] }
 0x21d   :  { %4604 = vmatpush1.bf16.msra.mxu0 %v6405_v0  ;;  %v6453_v0 = vcombine.low %v727_v16, %v731_v26  ;;  %v775_v16 = vld [vmem:[#allocation2 + $0x13d0] sm:$0xff] }
 0x21e   :  { %4605 = vmatprep.subr.bf16.mxu0 %v6414_v12  ;;  %v6462_v12 = vcombine.high %v735_v23, %v739_v25  ;;  %v779_v26 = vld [vmem:[#allocation2 + $0x13f0] sm:$0xff] }
 0x21f   :  { %4647 = vmatpush1.bf16.msra.mxu1 %v5903_v35  ;;  %v5951_v35 = vcombine.low %v224_v21, %v228_v22  ;;  %v272_v21 = vld [vmem:[#allocation2 + $0x418] sm:$0xff] }
 0x220   :  { %4648 = vmatprep.subr.bf16.mxu1 %v5912_v37  ;;  %v5960_v37 = vcombine.high %v232_v28, %v236_v30  ;;  %v276_v22 = vld [vmem:[#allocation2 + $0x438] sm:$0xff] }
 0x221   :  { %4606 = vmatpush1.bf16.msra.mxu0 %v6413_v36  ;;  %v6461_v36 = vcombine.low %v735_v23, %v739_v25  ;;  %v5991_v23 = vcombine.low %v264_v24, %v268_v13  ;;  %v6501_v25 = vcombine.low %v775_v16, %v779_v26 }
 0x222   :  { %4607 = vmatprep.subr.bf16.mxu0 %v6422_v39  ;;  %v6470_v39 = vcombine.high %v743_v31, %v747_v32 }
 0x223   :  { %4649 = vmatpush1.bf16.msra.mxu1 %v5911_v63  ;;  %v5959_v63 = vcombine.low %v232_v28, %v236_v30  ;;  %v5999_v28 = vcombine.low %v272_v21, %v276_v22  ;;  %v6729_v30 = vld [vmem:[#allocation6] ss:$8 sps:$4 sm:$0xff]  }
 0x224   :  { %4650 = vmatprep.subr.bf16.mxu1 %v5920_v3  ;;  %v5968_v3 = vcombine.high %v240_v51, %v244_v41 }
 0x225   :  { %4608 = vmatpush1.bf16.msra.mxu0 %v6421_v45  ;;  %v6469_v45 = vcombine.low %v743_v31, %v747_v32  ;;  %v6734_v32 = vld [vmem:[#allocation6 + $0x14] ss:$8 sps:$4 sm:$0xff]  }
 0x226   :  { %4609 = vmatprep.subr.bf16.mxu0 %v6430_v48  ;;  %v6478_v48 = vcombine.high %v751_v42, %v755_v43 }
 0x227   :  { %4651 = vmatpush1.bf16.msra.mxu1 %v5919_v55  ;;  %v5967_v55 = vcombine.low %v240_v51, %v244_v41  ;;  %v6732_v51 = vld [vmem:[#allocation6 + $0x10] ss:$8 sps:$4 sm:$0xff]  }
 0x228   :  { %4652 = vmatprep.subr.bf16.mxu1 %v5928_v57  ;;  %v5976_v57 = vcombine.high %v248_v49, %v252_v50 }
 0x229   :  { %4610 = vmatpush1.bf16.msra.mxu0 %v6429_v56  ;;  %v6477_v56 = vcombine.low %v751_v42, %v755_v43  ;;  %v6737_v42 = vld [vmem:[#allocation6 + $0x24] ss:$8 sps:$4 sm:$0xff]   ;;  %v296_v43 = vld [vmem:[#allocation2 + $0x4d8] sm:$0xff] }
 0x22a   :  { %4611 = vmatprep.subr.bf16.mxu0 %v6438_v58  ;;  %v6486_v58 = vcombine.high %v759_v52, %v763_v54 }
 0x22b   :  { %4653 = vmatpush1.bf16.msra.mxu1 %v5927_v5  ;;  %v5975_v5 = vcombine.low %v248_v49, %v252_v50  ;;  %v304_v49 = vld [vmem:[#allocation2 + $0x518] sm:$0xff] }
 0x22c   :  { %4654 = vmatprep.subr.bf16.mxu1 %v5936_v7  ;;  %v5984_v7 = vcombine.high %v256_v60, %v260_v61  ;;  %v308_v50 = vld [vmem:[#allocation2 + $0x538] sm:$0xff] }
 0x22d   :  { %4612 = vmatpush1.bf16.msra.mxu0 %v6437_v6  ;;  %v6485_v6 = vcombine.low %v759_v52, %v763_v54  ;;  %v6738_v54 = vld [vmem:[#allocation6 + $0x30] ss:$8 sps:$4 sm:$0xff]  }
 0x22e   :  { %4613 = vmatprep.subr.bf16.mxu0 %v6446_v9  ;;  %v6494_v9 = vcombine.high %v767_v62, %v771_v2 }
 0x22f   :  { %4655 = vmatpush1.bf16.msra.mxu1 %v5935_v14  ;;  %v5983_v14 = vcombine.low %v256_v60, %v260_v61  ;;  %v6741_v60 = vld [vmem:[#allocation6 + $0x40] ss:$8 sps:$4 sm:$0xff]  }
 0x230   :  { %4656 = vmatprep.subr.bf16.mxu1 %v5944_v18  ;;  %v5992_v18 = vcombine.high %v264_v24, %v268_v13  ;;  %v6749_v24 = vld [vmem:[#allocation6 + $0x64] ss:$8 sps:$4 sm:$0xff]   ;;  %v328_v13 = vld [vmem:[#allocation2 + $0x5d8] sm:$0xff] }
 0x231   :  { %4614 = vmatpush1.bf16.msra.mxu0 %v6445_v17  ;;  %v6493_v17 = vcombine.low %v767_v62, %v771_v2  ;;  %v6746_v62 = vld [vmem:[#allocation6 + $0x54] ss:$8 sps:$4 sm:$0xff]  }
 0x232   :  { %4615 = vmatprep.subr.bf16.mxu0 %v6454_v20  ;;  %v6502_v20 = vcombine.high %v775_v16, %v779_v26  ;;  %v320_v2 = vld [vmem:[#allocation2 + $0x598] sm:$0xff] }
 0x233   :  { %4657 = vmatpush1.bf16.msra.mxu1 %v5943_v59  ;;  %v6000_v59 = vcombine.high %v272_v21, %v276_v22  ;;  %v332_v16 = vld [vmem:[#allocation2 + $0x5f8] sm:$0xff] }
 0x234   :  { %4658 = vmatprep.subr.bf16.mxu1 %v5952_v27  ;;  %v280_v27 = vld [vmem:[#allocation2 + $0x458] sm:$0xff]  ;;  %v6055_v22 = vcombine.low %v328_v13, %v332_v16 }
 0x235   :  { %4616 = vmatpush1.bf16.msra.mxu0 %v6453_v0  ;;  %v6731_v0 = vld [vmem:[#allocation6 + $0x4] ss:$8 sps:$4 sm:$0xff]   ;;  %v340_v21 = vld [vmem:[#allocation2 + $0x638] sm:$0xff] }
 0x236   :  { %4617 = vmatprep.subr.bf16.mxu0 %v6462_v12  ;;  %v284_v12 = vld [vmem:[#allocation2 + $0x478] sm:$0xff] }
 0x237   :  { %4659 = vmatpush1.bf16.msra.mxu1 %v5951_v35  ;;  %v6008_v31 = vcombine.high %v280_v27, %v284_v12  ;;  %v288_v35 = vld [vmem:[#allocation2 + $0x498] sm:$0xff] }
 0x238   :  { %4660 = vmatprep.subr.bf16.mxu1 %v5960_v37  ;;  %v4890_v37 = vpack.c.bf16 %v7233_v11, %v7233_v11 }
 0x239   :  { %4618 = vmatpush1.bf16.msra.mxu0 %v6461_v36  ;;  %v292_v36 = vld [vmem:[#allocation2 + $0x4b8] sm:$0xff] }
 0x23a   :  { %4619 = vmatprep.subr.bf16.mxu0 %v6470_v39  ;;  %v6007_v39 = vcombine.low %v280_v27, %v284_v12  ;;  %v6016_v41 = vcombine.high %v288_v35, %v292_v36  ;;  %v348_v27 = vld [vmem:[#allocation2 + $0x678] sm:$0xff] }
 0x23b   :  { %4661 = vmatpush1.bf16.msra.mxu1 %v5959_v63  ;;  %v300_v63 = vld [vmem:[#allocation2 + $0x4f8] sm:$0xff] }
 0x23c   :  { %4662 = vmatprep.subr.bf16.mxu1 %v5968_v3  ;;  %v6024_v3 = vcombine.high %v296_v43, %v300_v63  ;;  %v6023_v52 = vcombine.low %v296_v43, %v300_v63  ;;  %v6759_v63 = vld [vmem:[#allocation6 + $0xa0] ss:$8 sps:$4 sm:$0xff]  }
 0x23d   :  { %4620 = vmatpush1.bf16.msra.mxu0 %v6469_v45  ;;  %v6015_v45 = vcombine.low %v288_v35, %v292_v36  ;;  %v356_v35 = vld [vmem:[#allocation2 + $0x6b8] sm:$0xff] }
 0x23e   :  { %4621 = vmatprep.subr.bf16.mxu0 %v6478_v48  ;;  %v6740_v48 = vld [vmem:[#allocation6 + $0x34] ss:$8 sps:$4 sm:$0xff]  }
 0x23f   :  { %4663 = vmatpush1.bf16.msra.mxu1 %v5967_v55  ;;  %v6032_v55 = vcombine.high %v304_v49, %v308_v50 }
 0x240   :  { %4664 = vmatprep.subr.bf16.mxu1 %v5976_v57  ;;  %v312_v57 = vld [vmem:[#allocation2 + $0x558] sm:$0xff] }
 0x241   :  { %4622 = vmatpush1.bf16.msra.mxu0 %v6477_v56  ;;  %v6743_v56 = vld [vmem:[#allocation6 + $0x44] ss:$8 sps:$4 sm:$0xff]  }
 0x242   :  { %4623 = vmatprep.subr.bf16.mxu0 %v6486_v58  ;;  %v6031_v58 = vcombine.low %v304_v49, %v308_v50  ;;  %v6762_v50 = vld [vmem:[#allocation6 + $0xb0] ss:$8 sps:$4 sm:$0xff]  }
 0x243   :  { %4665 = vmatpush1.bf16.msra.mxu1 %v5975_v5  ;;  %v324_v5 = vld [vmem:[#allocation2 + $0x5b8] sm:$0xff] }
 0x244   :  { %4666 = vmatprep.subr.bf16.mxu1 %v5984_v7  ;;  %v6744_v7 = vld [vmem:[#allocation6 + $0x50] ss:$8 sps:$4 sm:$0xff]   ;;  %v6047_v26 = vcombine.low %v320_v2, %v324_v5 }
 0x245   :  { %4624 = vmatpush1.bf16.msra.mxu0 %v6485_v6 }
 0x246   :  { %4625 = vmatprep.subr.bf16.mxu0 %v6494_v9  ;;  %v6048_v9 = vcombine.high %v320_v2, %v324_v5  ;;  %v6768_v5 = vld [vmem:[#allocation6 + $0xd0] ss:$8 sps:$4 sm:$0xff]  }
 0x247   :  { %4667 = vmatpush1.bf16.msra.mxu1 %v5983_v14  ;;  %v6747_v14 = vld [vmem:[#allocation6 + $0x60] ss:$8 sps:$4 sm:$0xff]  }
 0x248   :  { %4668 = vmatprep.subr.bf16.mxu1 %v5992_v18  ;;  %v6752_v18 = vld [vmem:[#allocation6 + $0x74] ss:$8 sps:$4 sm:$0xff]  }
 0x249   :  { %4626 = vmatpush1.bf16.msra.mxu0 %v6493_v17  ;;  %v6056_v17 = vcombine.high %v328_v13, %v332_v16  ;;  %v6771_v16 = vld [vmem:[#allocation6 + $0xe0] ss:$8 sps:$4 sm:$0xff]  }
 0x24a   :  { %4627 = vmatprep.subr.bf16.mxu0 %v6502_v20  ;;  %v336_v20 = vld [vmem:[#allocation2 + $0x618] sm:$0xff] }
 0x24b   :  { %4669 = vmatpush1.bf16.msra.mxu1 %v5991_v23  ;;  %v6750_v23 = vld [vmem:[#allocation6 + $0x70] ss:$8 sps:$4 sm:$0xff]   ;;  %v6063_v12 = vcombine.low %v336_v20, %v340_v21 }
 0x24c   :  { %4679 = vmatprep.subr.bf16.mxu1 %v6000_v59  ;;  %v6755_v59 = vld [vmem:[#allocation6 + $0x84] ss:$8 sps:$4 sm:$0xff]  }
 0x24d   :  { %4628 = vmatpush1.bf16.msra.mxu0 %v6501_v25  ;;  %v6064_v25 = vcombine.high %v336_v20, %v340_v21  ;;  %v6774_v21 = vld [vmem:[#allocation6 + $0xf0] ss:$8 sps:$4 sm:$0xff]  }
 0x24e   :  { %5677 = vmatprep.subr.bf16.mxu0 %v6731_v0  ;;  %4671 = vmatmul.mubr.bf16.vlgmr.msra.gmra.mrb[8].mxu1 %v7162_v33  ;;  %v6735_v33 = vld [vmem:[#allocation6 + $0x20] ss:$8 sps:$4 sm:$0xff]   ;;  %v344_v0 = vld [vmem:[#allocation2 + $0x658] sm:$0xff] }
 0x24f   :  { %4680 = vmatpush1.bf16.msra.mxu1 %v5999_v28  ;;  %4711 = vmatprep.mubr.bf16.mxu1 %v7170_v46  ;;  %v316_v46 = vld [vmem:[#allocation2 + $0x578] sm:$0xff]  ;;  %v6753_v28 = vld [vmem:[#allocation6 + $0x80] ss:$8 sps:$4 sm:$0xff]   ;;  %v6071_v36 = vcombine.low %v344_v0, %v348_v27 }
 0x250   :  { %4630 = vmatmul.mubr.bf16.vlgmr.msra.gmra.mrb[4].mxu0 %v7201_v29  ;;  %4681 = vmatprep.subr.bf16.mxu1 %v6008_v31  ;;  %v6040_v61 = vcombine.high %v312_v57, %v316_v46  ;;  %v6039_v6 = vcombine.low %v312_v57, %v316_v46  ;;  %v6758_v31 = vld [vmem:[#allocation6 + $0x94] ss:$8 sps:$4 sm:$0xff]   ;;  %v6765_v46 = vld [vmem:[#allocation6 + $0xc0] ss:$8 sps:$4 sm:$0xff]  }
 0x251   :  { %5678 = vmatpush1.bf16.msra.mxu0 %v6729_v30  ;;  %5709 = vmatprep.mubr.bf16.mxu0 %v4890_v37  ;;  %v6072_v30 = vcombine.high %v344_v0, %v348_v27  ;;  %v6756_v37 = vld [vmem:[#allocation6 + $0x90] ss:$8 sps:$4 sm:$0xff]  }
 0x252   :  { %5679 = vmatprep.subr.bf16.mxu0 %v6734_v32  ;;  %v352_v32 = vld [vmem:[#allocation2 + $0x698] sm:$0xff] }
 0x253   :  { %4682 = vmatpush1.bf16.msra.mxu1 %v6007_v39  ;;  %v6080_v39 = vcombine.high %v352_v32, %v356_v35  ;;  %v6079_v43 = vcombine.low %v352_v32, %v356_v35  ;;  %v6782_v32 = vld [vmem:[#allocation6 + $0x114] ss:$8 sps:$4 sm:$0xff]  }
 0x254   :  { %4683 = vmatprep.subr.bf16.mxu1 %v6016_v41  ;;  %v360_v41 = vld [vmem:[#allocation2 + $0x6d8] sm:$0xff] }
 0x255   :  { %5680 = vmatpush1.bf16.msra.mxu0 %v6732_v51  ;;  %v6761_v51 = vld [vmem:[#allocation6 + $0xa4] ss:$8 sps:$4 sm:$0xff]  }
 0x256   :  { %5681 = vmatprep.subr.bf16.mxu0 %v6737_v42  ;;  %v364_v42 = vld [vmem:[#allocation2 + $0x6f8] sm:$0xff] }
 0x257   :  { %4684 = vmatpush1.bf16.msra.mxu1 %v6015_v45  ;;  %v6088_v45 = vcombine.high %v360_v41, %v364_v42  ;;  %v6087_v49 = vcombine.low %v360_v41, %v364_v42  ;;  %v6785_v41 = vld [vmem:[#allocation6 + $0x124] ss:$8 sps:$4 sm:$0xff]  }
 0x258   :  { %4685 = vmatprep.subr.bf16.mxu1 %v6024_v3  ;;  %v368_v3 = vld [vmem:[#allocation2 + $0x718] sm:$0xff] }
 0x259   :  { %5682 = vmatpush1.bf16.msra.mxu0 %v6735_v33  ;;  %v6764_v33 = vld [vmem:[#allocation6 + $0xb4] ss:$8 sps:$4 sm:$0xff]  }
 0x25a   :  { %5683 = vmatprep.subr.bf16.mxu0 %v6740_v48  ;;  %v372_v48 = vld [vmem:[#allocation2 + $0x738] sm:$0xff] }
 0x25b   :  { %4686 = vmatpush1.bf16.msra.mxu1 %v6023_v52  ;;  %v6096_v52 = vcombine.high %v368_v3, %v372_v48  ;;  %v6095_v57 = vcombine.low %v368_v3, %v372_v48 }
 0x25c   :  { %4687 = vmatprep.subr.bf16.mxu1 %v6032_v55  ;;  %v376_v55 = vld [vmem:[#allocation2 + $0x758] sm:$0xff] }
 0x25d   :  { %5684 = vmatpush1.bf16.msra.mxu0 %v6738_v54  ;;  %v6767_v54 = vld [vmem:[#allocation6 + $0xc4] ss:$8 sps:$4 sm:$0xff]  }
 0x25e   :  { %5685 = vmatprep.subr.bf16.mxu0 %v6743_v56  ;;  %v380_v56 = vld [vmem:[#allocation2 + $0x778] sm:$0xff] }
 0x25f   :  { %4688 = vmatpush1.bf16.msra.mxu1 %v6031_v58  ;;  %v6104_v58 = vcombine.high %v376_v55, %v380_v56  ;;  %v6103_v2 = vcombine.low %v376_v55, %v380_v56  ;;  %v6789_v56 = vld [vmem:[#allocation6 + $0x140] ss:$8 sps:$4 sm:$0xff]  }
 0x260   :  { %4689 = vmatprep.subr.bf16.mxu1 %v6040_v61  ;;  %v384_v61 = vld [vmem:[#allocation2 + $0x798] sm:$0xff] }
 0x261   :  { %5686 = vmatpush1.bf16.msra.mxu0 %v6741_v60  ;;  %v6770_v60 = vld [vmem:[#allocation6 + $0xd4] ss:$8 sps:$4 sm:$0xff]  }
 0x262   :  { %5687 = vmatprep.subr.bf16.mxu0 %v6746_v62  ;;  %v388_v62 = vld [vmem:[#allocation2 + $0x7b8] sm:$0xff] }
 0x263   :  { %4690 = vmatpush1.bf16.msra.mxu1 %v6039_v6  ;;  %v6112_v6 = vcombine.high %v384_v61, %v388_v62  ;;  %v6111_v13 = vcombine.low %v384_v61, %v388_v62  ;;  %v6792_v62 = vld [vmem:[#allocation6 + $0x150] ss:$8 sps:$4 sm:$0xff]  }
 0x264   :  { %4691 = vmatprep.subr.bf16.mxu1 %v6048_v9  ;;  %v392_v9 = vld [vmem:[#allocation2 + $0x7d8] sm:$0xff] }
 0x265   :  { %5688 = vmatpush1.bf16.msra.mxu0 %v6744_v7  ;;  %v6773_v7 = vld [vmem:[#allocation6 + $0xe4] ss:$8 sps:$4 sm:$0xff]  }
 0x266   :  { %5689 = vmatprep.subr.bf16.mxu0 %v6749_v24  ;;  %v396_v24 = vld [vmem:[#allocation2 + $0x7f8] sm:$0xff] }
 0x267   :  { %4692 = vmatpush1.bf16.msra.mxu1 %v6047_v26  ;;  %v6120_v26 = vcombine.high %v392_v9, %v396_v24  ;;  %v6119_v20 = vcombine.low %v392_v9, %v396_v24  ;;  %v6795_v24 = vld [vmem:[#allocation6 + $0x160] ss:$8 sps:$4 sm:$0xff]  }
 0x268   :  { %4693 = vmatprep.subr.bf16.mxu1 %v6056_v17  ;;  %v400_v17 = vld [vmem:[#allocation2 + $0x818] sm:$0xff] }
 0x269   :  { %5690 = vmatpush1.bf16.msra.mxu0 %v6747_v14  ;;  %v6776_v14 = vld [vmem:[#allocation6 + $0xf4] ss:$8 sps:$4 sm:$0xff]  }
 0x26a   :  { %5691 = vmatprep.subr.bf16.mxu0 %v6752_v18  ;;  %v404_v18 = vld [vmem:[#allocation2 + $0x838] sm:$0xff] }
 0x26b   :  { %4694 = vmatpush1.bf16.msra.mxu1 %v6055_v22  ;;  %v6128_v22 = vcombine.high %v400_v17, %v404_v18  ;;  %v6127_v0 = vcombine.low %v400_v17, %v404_v18  ;;  %v6798_v18 = vld [vmem:[#allocation6 + $0x170] ss:$8 sps:$4 sm:$0xff]  }
 0x26c   :  { %4695 = vmatprep.subr.bf16.mxu1 %v6064_v25  ;;  %v412_v25 = vld [vmem:[#allocation2 + $0x878] sm:$0xff] }
 0x26d   :  { %5692 = vmatpush1.bf16.msra.mxu0 %v6750_v23  ;;  %v408_v23 = vld [vmem:[#allocation2 + $0x858] sm:$0xff] }
 0x26e   :  { %5693 = vmatprep.subr.bf16.mxu0 %v6755_v59  ;;  %v6779_v59 = vld [vmem:[#allocation6 + $0x104] ss:$8 sps:$4 sm:$0xff]   ;;  %v6136_v27 = vcombine.high %v408_v23, %v412_v25  ;;  %v6135_v35 = vcombine.low %v408_v23, %v412_v25 }
 0x26f   :  { %4696 = vmatpush1.bf16.msra.mxu1 %v6063_v12  ;;  %v6777_v12 = vld [vmem:[#allocation6 + $0x100] ss:$8 sps:$4 sm:$0xff]  }
 0x270   :  { %4697 = vmatprep.subr.bf16.mxu1 %v6072_v30  ;;  %v416_v30 = vld [vmem:[#allocation2 + $0x898] sm:$0xff] }
 0x271   :  { %5694 = vmatpush1.bf16.msra.mxu0 %v6753_v28  ;;  %v4889_v28 = vpack.c.bf16 %v7231_v8, %v7231_v8 }
 0x272   :  { %5695 = vmatprep.subr.bf16.mxu0 %v6758_v31  ;;  %v420_v31 = vld [vmem:[#allocation2 + $0x8b8] sm:$0xff] }
 0x273   :  { %4698 = vmatpush1.bf16.msra.mxu1 %v6071_v36  ;;  %v6144_v36 = vcombine.high %v416_v30, %v420_v31  ;;  %v6143_v42 = vcombine.low %v416_v30, %v420_v31  ;;  %v6804_v31 = vld [vmem:[#allocation6 + $0x190] ss:$8 sps:$4 sm:$0xff]  }
 0x274   :  { %4699 = vmatprep.subr.bf16.mxu1 %v6080_v39  ;;  %v424_v39 = vld [vmem:[#allocation2 + $0x8d8] sm:$0xff] }
 0x275   :  { %5696 = vmatpush1.bf16.msra.mxu0 %v6756_v37  ;;  %v6780_v37 = vld [vmem:[#allocation6 + $0x110] ss:$8 sps:$4 sm:$0xff]  }
 0x276   :  { %5697 = vmatprep.subr.bf16.mxu0 %v6761_v51  ;;  %v428_v51 = vld [vmem:[#allocation2 + $0x8f8] sm:$0xff] }
 0x277   :  { %4700 = vmatpush1.bf16.msra.mxu1 %v6079_v43  ;;  %v6152_v43 = vcombine.high %v424_v39, %v428_v51  ;;  %v6151_v3 = vcombine.low %v424_v39, %v428_v51  ;;  %v6807_v51 = vld [vmem:[#allocation6 + $0x1a0] ss:$8 sps:$4 sm:$0xff]  }
 0x278   :  { %4701 = vmatprep.subr.bf16.mxu1 %v6088_v45  ;;  %v436_v45 = vld [vmem:[#allocation2 + $0x938] sm:$0xff] }
 0x279   :  { %5698 = vmatpush1.bf16.msra.mxu0 %v6759_v63  ;;  %v6783_v63 = vld [vmem:[#allocation6 + $0x120] ss:$8 sps:$4 sm:$0xff]  }
 0x27a   :  { %5699 = vmatprep.subr.bf16.mxu0 %v6764_v33  ;;  %v6788_v33 = vld [vmem:[#allocation6 + $0x134] ss:$8 sps:$4 sm:$0xff]  }
 0x27b   :  { %4702 = vmatpush1.bf16.msra.mxu1 %v6087_v49  ;;  %v6786_v49 = vld [vmem:[#allocation6 + $0x130] ss:$8 sps:$4 sm:$0xff]  }
 0x27c   :  { %4703 = vmatprep.subr.bf16.mxu1 %v6096_v52  ;;  %v444_v52 = vld [vmem:[#allocation2 + $0x978] sm:$0xff] }
 0x27d   :  { %5700 = vmatpush1.bf16.msra.mxu0 %v6762_v50  ;;  %v440_v50 = vld [vmem:[#allocation2 + $0x958] sm:$0xff] }
 0x27e   :  { %5701 = vmatprep.subr.bf16.mxu0 %v6767_v54  ;;  %v6168_v55 = vcombine.high %v440_v50, %v444_v52 }
 0x27f   :  { %4704 = vmatpush1.bf16.msra.mxu1 %v6095_v57  ;;  %v448_v57 = vld [vmem:[#allocation2 + $0x998] sm:$0xff] }
 0x280   :  { %4705 = vmatprep.subr.bf16.mxu1 %v6104_v58  ;;  %v6794_v58 = vld [vmem:[#allocation6 + $0x154] ss:$8 sps:$4 sm:$0xff]  }
 0x281   :  { %5702 = vmatpush1.bf16.msra.mxu0 %v6765_v46  ;;  %v452_v46 = vld [vmem:[#allocation2 + $0x9b8] sm:$0xff] }
 0x282   :  { %5703 = vmatprep.subr.bf16.mxu0 %v6770_v60  ;;  %v6167_v60 = vcombine.low %v440_v50, %v444_v52  ;;  %v6176_v61 = vcombine.high %v448_v57, %v452_v46  ;;  %v6813_v52 = vld [vmem:[#allocation6 + $0x1c0] ss:$8 sps:$4 sm:$0xff]  }
 0x283   :  { %4706 = vmatpush1.bf16.msra.mxu1 %v6103_v2  ;;  %v456_v2 = vld [vmem:[#allocation2 + $0x9d8] sm:$0xff] }
 0x284   :  { %4707 = vmatprep.subr.bf16.mxu1 %v6112_v6  ;;  %v6797_v6 = vld [vmem:[#allocation6 + $0x164] ss:$8 sps:$4 sm:$0xff]  }
 0x285   :  { %5704 = vmatpush1.bf16.msra.mxu0 %v6768_v5  ;;  %v460_v5 = vld [vmem:[#allocation2 + $0x9f8] sm:$0xff] }
 0x286   :  { %5705 = vmatprep.subr.bf16.mxu0 %v6773_v7  ;;  %v6175_v7 = vcombine.low %v448_v57, %v452_v46  ;;  %v6184_v9 = vcombine.high %v456_v2, %v460_v5  ;;  %v6816_v46 = vld [vmem:[#allocation6 + $0x1d0] ss:$8 sps:$4 sm:$0xff]  }
 0x287   :  { %4708 = vmatpush1.bf16.msra.mxu1 %v6111_v13  ;;  %v464_v13 = vld [vmem:[#allocation2 + $0xa18] sm:$0xff] }
 0x288   :  { %4709 = vmatprep.subr.bf16.mxu1 %v6120_v26  ;;  %v6800_v26 = vld [vmem:[#allocation6 + $0x174] ss:$8 sps:$4 sm:$0xff]  }
 0x289   :  { %5706 = vmatpush1.bf16.msra.mxu0 %v6771_v16  ;;  %v468_v16 = vld [vmem:[#allocation2 + $0xa38] sm:$0xff] }
 0x28a   :  { %5707 = vmatprep.subr.bf16.mxu0 %v6776_v14  ;;  %v6183_v14 = vcombine.low %v456_v2, %v460_v5  ;;  %v6192_v17 = vcombine.high %v464_v13, %v468_v16  ;;  %v6191_v23 = vcombine.low %v464_v13, %v468_v16  ;;  %v6819_v5 = vld [vmem:[#allocation6 + $0x1e0] ss:$8 sps:$4 sm:$0xff]   ;;  %v6822_v16 = vld [vmem:[#allocation6 + $0x1f0] ss:$8 sps:$4 sm:$0xff]  }
 0x28b   :  { %4710 = vmatpush1.bf16.msra.mxu1 %v6119_v20  ;;  %v472_v20 = vld [vmem:[#allocation2 + $0xa58] sm:$0xff] }
 0x28c   :  { %4720 = vmatprep.subr.bf16.mxu1 %v6128_v22  ;;  %v6803_v22 = vld [vmem:[#allocation6 + $0x184] ss:$8 sps:$4 sm:$0xff]  }
 0x28d   :  { %5708 = vmatpush1.bf16.msra.mxu0 %v6774_v21  ;;  %v476_v21 = vld [vmem:[#allocation2 + $0xa78] sm:$0xff] }
 0x28e   :  { %5718 = vmatprep.subr.bf16.mxu0 %v6779_v59  ;;  %4712 = vmatmul.mubr.bf16.vlgmr.msra.gmra.mrb[8].mxu1 %v7187_v1  ;;  %v432_v1 = vld [vmem:[#allocation2 + $0x918] sm:$0xff]  ;;  %v6200_v25 = vcombine.high %v472_v20, %v476_v21  ;;  %v6801_v59 = vld [vmem:[#allocation6 + $0x180] ss:$8 sps:$4 sm:$0xff]  }
 0x28f   :  { %4721 = vmatpush1.bf16.msra.mxu1 %v6127_v0  ;;  %4752 = vmatprep.mubr.bf16.mxu1 %v7144_v15  ;;  %v6160_v48 = vcombine.high %v432_v1, %v436_v45  ;;  %v6791_v15 = vld [vmem:[#allocation6 + $0x144] ss:$8 sps:$4 sm:$0xff]   ;;  %v6159_v54 = vcombine.low %v432_v1, %v436_v45  ;;  %v480_v0 = vld [vmem:[#allocation2 + $0xa98] sm:$0xff] }
 0x290   :  { %5710 = vmatmul.mubr.bf16.vlgmr.msra.gmra.mrb[8].mxu0 %v4889_v28  ;;  %4722 = vmatprep.subr.bf16.mxu1 %v6136_v27  ;;  %v484_v27 = vld [vmem:[#allocation2 + $0xab8] sm:$0xff]  ;;  %v6199_v28 = vcombine.low %v472_v20, %v476_v21 }
 0x291   :  { %5719 = vmatpush1.bf16.msra.mxu0 %v6777_v12  ;;  %v6806_v12 = vld [vmem:[#allocation6 + $0x194] ss:$8 sps:$4 sm:$0xff]   ;;  %v6208_v30 = vcombine.high %v480_v0, %v484_v27  ;;  %v6810_v45 = vld [vmem:[#allocation6 + $0x1b0] ss:$8 sps:$4 sm:$0xff]  }
 0x292   :  { %5720 = vmatprep.subr.bf16.mxu0 %v6782_v32  ;;  %v488_v32 = vld [vmem:[#allocation2 + $0xad8] sm:$0xff] }
 0x293   :  { %4723 = vmatpush1.bf16.msra.mxu1 %v6135_v35  ;;  %v492_v35 = vld [vmem:[#allocation2 + $0xaf8] sm:$0xff] }
 0x294   :  { %4724 = vmatprep.subr.bf16.mxu1 %v6144_v36  ;;  %v6809_v36 = vld [vmem:[#allocation6 + $0x1a4] ss:$8 sps:$4 sm:$0xff]   ;;  %v6216_v39 = vcombine.high %v488_v32, %v492_v35  ;;  %v544_v21 = vld [vmem:[#allocation2 + $0xc98] sm:$0xff] }
 0x295   :  { %5721 = vmatpush1.bf16.msra.mxu0 %v6780_v37  ;;  %v6207_v37 = vcombine.low %v480_v0, %v484_v27  ;;  %v556_v0 = vld [vmem:[#allocation2 + $0xcf8] sm:$0xff] }
 0x296   :  { %5722 = vmatprep.subr.bf16.mxu0 %v6785_v41  ;;  %v496_v41 = vld [vmem:[#allocation2 + $0xb18] sm:$0xff] }
 0x297   :  { %4725 = vmatpush1.bf16.msra.mxu1 %v6143_v42  ;;  %v500_v42 = vld [vmem:[#allocation2 + $0xb38] sm:$0xff] }
 0x298   :  { %4726 = vmatprep.subr.bf16.mxu1 %v6152_v43  ;;  %v6812_v43 = vld [vmem:[#allocation6 + $0x1b4] ss:$8 sps:$4 sm:$0xff]   ;;  %v6224_v1 = vcombine.high %v496_v41, %v500_v42 }
 0x299   :  { %5723 = vmatpush1.bf16.msra.mxu0 %v6783_v63  ;;  %v6215_v63 = vcombine.low %v488_v32, %v492_v35  ;;  %v568_v35 = vld [vmem:[#allocation2 + $0xd58] sm:$0xff] }
 0x29a   :  { %5724 = vmatprep.subr.bf16.mxu0 %v6788_v33  ;;  %v504_v33 = vld [vmem:[#allocation2 + $0xb58] sm:$0xff] }
 0x29b   :  { %4727 = vmatpush1.bf16.msra.mxu1 %v6151_v3  ;;  %v508_v3 = vld [vmem:[#allocation2 + $0xb78] sm:$0xff] }
 0x29c   :  { %4728 = vmatprep.subr.bf16.mxu1 %v6160_v48  ;;  %v6815_v48 = vld [vmem:[#allocation6 + $0x1c4] ss:$8 sps:$4 sm:$0xff]   ;;  %v6232_v50 = vcombine.high %v504_v33, %v508_v3 }
 0x29d   :  { %5725 = vmatpush1.bf16.msra.mxu0 %v6786_v49  ;;  %v6223_v49 = vcombine.low %v496_v41, %v500_v42  ;;  %v580_v41 = vld [vmem:[#allocation2 + $0xdb8] sm:$0xff]  ;;  %v7254_v42 = vld [vmem:[#allocation4] sm:$0xff] }
 0x29e   :  { %5726 = vmatprep.subr.bf16.mxu0 %v6791_v15  ;;  %v512_v15 = vld [vmem:[#allocation2 + $0xb98] sm:$0xff] }
 0x29f   :  { %4729 = vmatpush1.bf16.msra.mxu1 %v6159_v54  ;;  %v516_v54 = vld [vmem:[#allocation2 + $0xbb8] sm:$0xff] }
 0x2a0   :  { %4730 = vmatprep.subr.bf16.mxu1 %v6168_v55  ;;  %v6818_v55 = vld [vmem:[#allocation6 + $0x1d4] ss:$8 sps:$4 sm:$0xff]   ;;  %v6240_v57 = vcombine.high %v512_v15, %v516_v54 }
 0x2a1   :  { %5727 = vmatpush1.bf16.msra.mxu0 %v6789_v56  ;;  %v6231_v56 = vcombine.low %v504_v33, %v508_v3  ;;  %v584_v3 = vld [vmem:[#allocation2 + $0xdd8] sm:$0xff] }
 0x2a2   :  { %5728 = vmatprep.subr.bf16.mxu0 %v6794_v58  ;;  %v520_v58 = vld [vmem:[#allocation2 + $0xbd8] sm:$0xff] }
 0x2a3   :  { %4731 = vmatpush1.bf16.msra.mxu1 %v6167_v60  ;;  %v524_v60 = vld [vmem:[#allocation2 + $0xbf8] sm:$0xff] }
 0x2a4   :  { %4732 = vmatprep.subr.bf16.mxu1 %v6176_v61  ;;  %v6821_v61 = vld [vmem:[#allocation6 + $0x1e4] ss:$8 sps:$4 sm:$0xff]   ;;  %v6248_v2 = vcombine.high %v520_v58, %v524_v60 }
 0x2a5   :  { %5729 = vmatpush1.bf16.msra.mxu0 %v6792_v62  ;;  %v6239_v62 = vcombine.low %v512_v15, %v516_v54 }
 0x2a6   :  { %5730 = vmatprep.subr.bf16.mxu0 %v6797_v6  ;;  %v528_v6 = vld [vmem:[#allocation2 + $0xc18] sm:$0xff] }
 0x2a7   :  { %4733 = vmatpush1.bf16.msra.mxu1 %v6175_v7  ;;  %v532_v7 = vld [vmem:[#allocation2 + $0xc38] sm:$0xff] }
 0x2a8   :  { %4734 = vmatprep.subr.bf16.mxu1 %v6184_v9  ;;  %v6824_v9 = vld [vmem:[#allocation6 + $0x1f4] ss:$8 sps:$4 sm:$0xff]   ;;  %v6256_v13 = vcombine.high %v528_v6, %v532_v7 }
 0x2a9   :  { %5731 = vmatpush1.bf16.msra.mxu0 %v6795_v24  ;;  %v6247_v24 = vcombine.low %v520_v58, %v524_v60  ;;  %v6825_v58 = vld [vmem:[#allocation6 + $0x200] ss:$8 sps:$4 sm:$0xff]   ;;  %v592_v60 = vld [vmem:[#allocation2 + $0xe18] sm:$0xff] }
 0x2aa   :  { %5732 = vmatprep.subr.bf16.mxu0 %v6800_v26  ;;  %v536_v26 = vld [vmem:[#allocation2 + $0xc58] sm:$0xff] }
 0x2ab   :  { %4735 = vmatpush1.bf16.msra.mxu1 %v6183_v14  ;;  %v540_v14 = vld [vmem:[#allocation2 + $0xc78] sm:$0xff] }
 0x2ac   :  { %4736 = vmatprep.subr.bf16.mxu1 %v6192_v17  ;;  %v6827_v17 = vld [vmem:[#allocation6 + $0x204] ss:$8 sps:$4 sm:$0xff]   ;;  %v6264_v20 = vcombine.high %v536_v26, %v540_v14 }
 0x2ad   :  { %5733 = vmatpush1.bf16.msra.mxu0 %v6798_v18  ;;  %v6255_v18 = vcombine.low %v528_v6, %v532_v7 }
 0x2ae   :  { %5734 = vmatprep.subr.bf16.mxu0 %v6803_v22  ;;  %v548_v22 = vld [vmem:[#allocation2 + $0xcb8] sm:$0xff] }
 0x2af   :  { %4737 = vmatpush1.bf16.msra.mxu1 %v6191_v23  ;;  %v6263_v23 = vcombine.low %v536_v26, %v540_v14  ;;  %v6271_v27 = vcombine.low %v544_v21, %v548_v22  ;;  %v604_v26 = vld [vmem:[#allocation2 + $0xe78] sm:$0xff]  ;;  %v6833_v14 = vld [vmem:[#allocation6 + $0x224] ss:$8 sps:$4 sm:$0xff]  }
 0x2b0   :  { %4738 = vmatprep.subr.bf16.mxu1 %v6200_v25  ;;  %v6272_v25 = vcombine.high %v544_v21, %v548_v22 }
 0x2b1   :  { %5735 = vmatpush1.bf16.msra.mxu0 %v6801_v59  ;;  %v552_v59 = vld [vmem:[#allocation2 + $0xcd8] sm:$0xff] }
 0x2b2   :  { %5736 = vmatprep.subr.bf16.mxu0 %v6806_v12  ;;  %v6280_v12 = vcombine.high %v552_v59, %v556_v0 }
 0x2b3   :  { %4739 = vmatpush1.bf16.msra.mxu1 %v6199_v28  ;;  %v560_v28 = vld [vmem:[#allocation2 + $0xd18] sm:$0xff] }
 0x2b4   :  { %4740 = vmatprep.subr.bf16.mxu1 %v6208_v30  ;;  %v564_v30 = vld [vmem:[#allocation2 + $0xd38] sm:$0xff] }
 0x2b5   :  { %5737 = vmatpush1.bf16.msra.mxu0 %v6804_v31  ;;  %v6279_v31 = vcombine.low %v552_v59, %v556_v0  ;;  %v6288_v32 = vcombine.high %v560_v28, %v564_v30  ;;  %v620_v59 = vld [vmem:[#allocation2 + $0xef8] sm:$0xff]  ;;  %v6839_v0 = vld [vmem:[#allocation6 + $0x244] ss:$8 sps:$4 sm:$0xff]  }
 0x2b6   :  { %5738 = vmatprep.subr.bf16.mxu0 %v6809_v36  ;;  %v793_v36 = vsub.s32 2, %v7115_v44 }
 0x2b7   :  { %4741 = vmatpush1.bf16.msra.mxu1 %v6207_v37  ;;  %v797_v37 = vsub.s32 3, %v7115_v44 }
 0x2b8   :  { %4742 = vmatprep.subr.bf16.mxu1 %v6216_v39 }
 0x2b9   :  { %5739 = vmatpush1.bf16.msra.mxu0 %v6807_v51  ;;  %v576_v51 = vld [vmem:[#allocation2 + $0xd98] sm:$0xff] }
 0x2ba   :  { %5740 = vmatprep.subr.bf16.mxu0 %v6812_v43  ;;  %v794_v43 = vrot.slane %v7254_v42, %v793_v36  ;;  %v6303_v54 = vcombine.low %v576_v51, %v580_v41  ;;  %v6840_v36 = vld [vmem:[#allocation6 + $0x250] ss:$8 sps:$4 sm:$0xff]  }
 0x2bb   :  { %4743 = vmatpush1.bf16.msra.mxu1 %v6215_v63  ;;  %v798_v63 = vrot.slane %v7254_v42, %v797_v37  ;;  %v636_v37 = vld [vmem:[#allocation2 + $0xf78] sm:$0xff] }
 0x2bc   :  { %4744 = vmatprep.subr.bf16.mxu1 %v6224_v1 }
 0x2bd   :  { %5741 = vmatpush1.bf16.msra.mxu0 %v6810_v45  ;;  %v6304_v45 = vcombine.high %v576_v51, %v580_v41 }
 0x2be   :  { %5742 = vmatprep.subr.bf16.mxu0 %v6815_v48  ;;  %v588_v48 = vld [vmem:[#allocation2 + $0xdf8] sm:$0xff] }
 0x2bf   :  { %4745 = vmatpush1.bf16.msra.mxu1 %v6223_v49  ;;  %v6311_v7 = vcombine.low %v584_v3, %v588_v48 }
 0x2c0   :  { %4746 = vmatprep.subr.bf16.mxu1 %v6232_v50 }
 0x2c1   :  { %5743 = vmatpush1.bf16.msra.mxu0 %v6813_v52 }
 0x2c2   :  { %5744 = vmatprep.subr.bf16.mxu0 %v6818_v55 }
 0x2c3   :  { %4747 = vmatpush1.bf16.msra.mxu1 %v6231_v56  ;;  %v6312_v56 = vcombine.high %v584_v3, %v588_v48  ;;  %v6846_v48 = vld [vmem:[#allocation6 + $0x270] ss:$8 sps:$4 sm:$0xff]  }
 0x2c4   :  { %4748 = vmatprep.subr.bf16.mxu1 %v6240_v57 }
 0x2c5   :  { %5745 = vmatpush1.bf16.msra.mxu0 %v6816_v46 }
 0x2c6   :  { %5746 = vmatprep.subr.bf16.mxu0 %v6821_v61  ;;  %v596_v61 = vld [vmem:[#allocation2 + $0xe38] sm:$0xff] }
 0x2c7   :  { %4749 = vmatpush1.bf16.msra.mxu1 %v6239_v62  ;;  %v6319_v8 = vcombine.low %v592_v60, %v596_v61 }
 0x2c8   :  { %4750 = vmatprep.subr.bf16.mxu1 %v6248_v2  ;;  %v6830_v2 = vld [vmem:[#allocation6 + $0x214] ss:$8 sps:$4 sm:$0xff]  }
 0x2c9   :  { %5747 = vmatpush1.bf16.msra.mxu0 %v6819_v5  ;;  %v4859_v5 = vrot.slane %v4851_v19, %v7118_v53  ;;  %v6831_v19 = vld [vmem:[#allocation6 + $0x220] ss:$8 sps:$4 sm:$0xff]  }
 0x2ca   :  { %5748 = vmatprep.subr.bf16.mxu0 %v6824_v9  ;;  %v6320_v9 = vcombine.high %v592_v60, %v596_v61  ;;  %v6852_v61 = vld [vmem:[#allocation6 + $0x290] ss:$8 sps:$4 sm:$0xff]  }
 0x2cb   :  { %4751 = vmatpush1.bf16.msra.mxu1 %v6247_v24 }
 0x2cc   :  { %4761 = vmatprep.subr.bf16.mxu1 %v6256_v13  ;;  %v6828_v13 = vld [vmem:[#allocation6 + $0x210] ss:$8 sps:$4 sm:$0xff]  }
 0x2cd   :  { %5749 = vmatpush1.bf16.msra.mxu0 %v6822_v16  ;;  %v600_v16 = vld [vmem:[#allocation2 + $0xe58] sm:$0xff] }
 0x2ce   :  { %5759 = vmatprep.subr.bf16.mxu0 %v6827_v17  ;;  %4753 = vmatmul.mubr.bf16.vlgmr.msra.gmra.mrb[8].mxu1 %v7168_v38  ;;  %v572_v38 = vld [vmem:[#allocation2 + $0xd78] sm:$0xff]  ;;  %v6328_v11 = vcombine.high %v600_v16, %v604_v26  ;;  %v6327_v21 = vcombine.low %v600_v16, %v604_v26 }
 0x2cf   :  { %4762 = vmatpush1.bf16.msra.mxu1 %v6255_v18  ;;  %4793 = vmatprep.mubr.bf16.mxu1 %v7173_v47  ;;  %v6287_v47 = vcombine.low %v560_v28, %v564_v30  ;;  %v6296_v39 = vcombine.high %v568_v35, %v572_v38  ;;  %v6295_v1 = vcombine.low %v568_v35, %v572_v38  ;;  %v608_v17 = vld [vmem:[#allocation2 + $0xe98] sm:$0xff]  ;;  %v6837_v28 = vld [vmem:[#allocation6 + $0x240] ss:$8 sps:$4 sm:$0xff]  }
 0x2d0   :  { %4763 = vmatprep.subr.bf16.mxu1 %v6264_v20  ;;  %v612_v18 = vld [vmem:[#allocation2 + $0xeb8] sm:$0xff] }
 0x2d1   :  { %v6836_v20 = vld [vmem:[#allocation6 + $0x234] ss:$8 sps:$4 sm:$0xff]   ;;  %v6336_v22 = vcombine.high %v608_v17, %v612_v18 }
 0x2d2   :  { %v624_v30 = vld [vmem:[#allocation2 + $0xf18] sm:$0xff] }
 0x2d3   :  { %4764 = vmatpush1.bf16.msra.mxu1 %v6263_v23  ;;  %v6834_v23 = vld [vmem:[#allocation6 + $0x230] ss:$8 sps:$4 sm:$0xff]   ;;  %v6860_v16 = vld [vmem:[#allocation6 + $0x2b4] ss:$8 sps:$4 sm:$0xff]  }
 0x2d4   :  { %4765 = vmatprep.subr.bf16.mxu1 %v6272_v25  ;;  %v616_v25 = vld [vmem:[#allocation2 + $0xed8] sm:$0xff] }
 0x2d5   :  { %v6343_v35 = vcombine.low %v616_v25, %v620_v59 }
 0x2d7   :  { %4766 = vmatpush1.bf16.msra.mxu1 %v6271_v27  ;;  %v6335_v27 = vcombine.low %v608_v17, %v612_v18  ;;  %v6863_v17 = vld [vmem:[#allocation6 + $0x2c4] ss:$8 sps:$4 sm:$0xff]  }
 0x2d8   :  { %4767 = vmatprep.subr.bf16.mxu1 %v6280_v12  ;;  %v6344_v12 = vcombine.high %v616_v25, %v620_v59  ;;  %v6864_v59 = vld [vmem:[#allocation6 + $0x2d0] ss:$8 sps:$4 sm:$0xff]  }
 0x2db   :  { %4768 = vmatpush1.bf16.msra.mxu1 %v6279_v31  ;;  %v628_v31 = vld [vmem:[#allocation2 + $0xf38] sm:$0xff] }
 0x2dc   :  { %4769 = vmatprep.subr.bf16.mxu1 %v6288_v32  ;;  %v6842_v32 = vld [vmem:[#allocation6 + $0x254] ss:$8 sps:$4 sm:$0xff]   ;;  %v6352_v38 = vcombine.high %v624_v30, %v628_v31  ;;  %v6351_v51 = vcombine.low %v624_v30, %v628_v31  ;;  %v801_v30 = vsub.s32 4, %v7115_v44  ;;  %v805_v31 = vsub.s32 5, %v7115_v44 }
 0x2df   :  { %4770 = vmatpush1.bf16.msra.mxu1 %v6287_v47  ;;  %v632_v47 = vld [vmem:[#allocation2 + $0xf58] sm:$0xff] }
 0x2e0   :  { %4771 = vmatprep.subr.bf16.mxu1 %v6296_v39  ;;  %v6845_v39 = vld [vmem:[#allocation6 + $0x264] ss:$8 sps:$4 sm:$0xff]   ;;  %v6360_v41 = vcombine.high %v632_v47, %v636_v37 }
 0x2e1   :  { %v4426_v33 = vpop.f32.mrb[4].mxu1 }
 0x2e2   :  { %v6638_v49 = vadd.f32 %v4426_v33, %v794_v43  ;;  %v4428_v50 = vpop.f32.mrb[5].mxu1  ;;  %v6843_v43 = vld [vmem:[#allocation6 + $0x260] ss:$8 sps:$4 sm:$0xff]   ;;  %v6359_v33 = vcombine.low %v632_v47, %v636_v37  ;;  %v6872_v47 = vld [vmem:[#allocation6 + $0x2f4] ss:$8 sps:$4 sm:$0xff]   ;;  %v802_v37 = vrot.slane %v7254_v42, %v801_v30 }
 0x2e3   :  { %v6639_v52 = vadd.f32 %v4428_v50, %v798_v63  ;;  %v4430_v15 = vpop.f32.mrb[6].mxu1  ;;  %4772 = vmatpush1.bf16.msra.mxu1 %v6295_v1  ;;  %v640_v63 = vld [vmem:[#allocation2 + $0xf98] sm:$0xff] }
 0x2e4   :  { %v4431_v55 = vpop.f32.mrb[7].mxu1  ;;  %4773 = vmatprep.subr.bf16.mxu1 %v6304_v45  ;;  %v4891_v62 = vpack.c.bf16 %v6638_v49, %v6638_v49  ;;  %v644_v1 = vld [vmem:[#allocation2 + $0xfb8] sm:$0xff] }
 0x2e5   :  { %v4852_v57 = vcombine.low %v6638_v49, %v6639_v52  ;;  %v4892_v46 = vpack.c.bf16 %v6639_v52, %v6639_v52  ;;  %v6848_v45 = vld [vmem:[#allocation6 + $0x274] ss:$8 sps:$4 sm:$0xff]   ;;  %v6368_v3 = vcombine.high %v640_v63, %v644_v1  ;;  %v6851_v52 = vld [vmem:[#allocation6 + $0x284] ss:$8 sps:$4 sm:$0xff]   ;;  %v6367_v15 = vcombine.low %v640_v63, %v644_v1  ;;  %v6849_v55 = vld [vmem:[#allocation6 + $0x280] ss:$8 sps:$4 sm:$0xff]  }
 0x2e6   :  { %v648_v49 = vld [vmem:[#allocation2 + $0xfd8] sm:$0xff] }
 0x2e7   :  { %v4866_v6 = vrot.slane %v4852_v57, %v7118_v53  ;;  %4774 = vmatpush1.bf16.msra.mxu1 %v6303_v54  ;;  %5750 = vmatprep.mubr.bf16.mxu0 %v4892_v46  ;;  %v652_v50 = vld [vmem:[#allocation2 + $0xff8] sm:$0xff] }
 0x2e8   :  { %5751 = vmatmul.mubr.bf16.vlgmr.msra.gmra.mrb[8].mxu0 %v4891_v62  ;;  %4775 = vmatprep.subr.bf16.mxu1 %v6312_v56  ;;  %v6376_v54 = vcombine.high %v648_v49, %v652_v50  ;;  %v656_v56 = vld [vmem:[#allocation2 + $0x1018] sm:$0xff] }
 0x2e9   :  { %v4867_v24 = vcombine.low %v4859_v5, %v4866_v6  ;;  %5760 = vmatpush1.bf16.msra.mxu0 %v6825_v58  ;;  %v660_v57 = vld [vmem:[#allocation2 + $0x1038] sm:$0xff]  ;;  %v6375_v58 = vcombine.low %v648_v49, %v652_v50  ;;  %v6857_v5 = vld [vmem:[#allocation6 + $0x2a4] ss:$8 sps:$4 sm:$0xff]  }
 0x2ea   :  { %5761 = vmatprep.subr.bf16.mxu0 %v6830_v2  ;;  %v6854_v46 = vld [vmem:[#allocation6 + $0x294] ss:$8 sps:$4 sm:$0xff]   ;;  %v6384_v60 = vcombine.high %v656_v56, %v660_v57  ;;  %v6383_v6 = vcombine.low %v656_v56, %v660_v57  ;;  %v6888_v30 = vld [vmem:[#allocation6 + $0x350] ss:$8 sps:$4 sm:$0xff]  }
 0x2eb   :  { %4887 = vst [vmem:[%s7307_s5] sm:$0xff] %v4867_v24  ;;  %4776 = vmatpush1.bf16.msra.mxu1 %v6311_v7  ;;  %v664_v62 = vld [vmem:[#allocation2 + $0x1058] sm:$0xff] }
 0x2ec   :  { %4777 = vmatprep.subr.bf16.mxu1 %v6320_v9  ;;  %v668_v2 = vld [vmem:[#allocation2 + $0x1078] sm:$0xff]  ;;  %v6855_v9 = vld [vmem:[#allocation6 + $0x2a0] ss:$8 sps:$4 sm:$0xff]  }
 0x2ed   :  { %5762 = vmatpush1.bf16.msra.mxu0 %v6828_v13  ;;  %v6392_v7 = vcombine.high %v664_v62, %v668_v2  ;;  %v672_v24 = vld [vmem:[#allocation2 + $0x1098] sm:$0xff]  ;;  %v6391_v26 = vcombine.low %v664_v62, %v668_v2 }
 0x2ee   :  { %5763 = vmatprep.subr.bf16.mxu0 %v6833_v14  ;;  %v676_v13 = vld [vmem:[#allocation2 + $0x10b8] sm:$0xff] }
 0x2ef   :  { %4778 = vmatpush1.bf16.msra.mxu1 %v6319_v8  ;;  %v6400_v14 = vcombine.high %v672_v24, %v676_v13  ;;  %v6858_v8 = vld [vmem:[#allocation6 + $0x2b0] ss:$8 sps:$4 sm:$0xff]   ;;  %v6399_v18 = vcombine.low %v672_v24, %v676_v13  ;;  %v6878_v62 = vld [vmem:[#allocation6 + $0x314] ss:$8 sps:$4 sm:$0xff]   ;;  %v6881_v24 = vld [vmem:[#allocation6 + $0x324] ss:$8 sps:$4 sm:$0xff]  }
 0x2f0   :  { %4779 = vmatprep.subr.bf16.mxu1 %v6328_v11  ;;  %v680_v11 = vld [vmem:[#allocation2 + $0x10d8] sm:$0xff] }
 0x2f1   :  { %5764 = vmatpush1.bf16.msra.mxu0 %v6831_v19  ;;  %v684_v19 = vld [vmem:[#allocation2 + $0x10f8] sm:$0xff] }
 0x2f2   :  { %5765 = vmatprep.subr.bf16.mxu0 %v6836_v20  ;;  %v6408_v20 = vcombine.high %v680_v11, %v684_v19  ;;  %v712_v63 = vld [vmem:[#allocation2 + $0x11d8] sm:$0xff] }
 0x2f3   :  { %4780 = vmatpush1.bf16.msra.mxu1 %v6327_v21  ;;  %v688_v21 = vld [vmem:[#allocation2 + $0x1118] sm:$0xff] }
 0x2f4   :  { %4781 = vmatprep.subr.bf16.mxu1 %v6336_v22  ;;  %v692_v22 = vld [vmem:[#allocation2 + $0x1138] sm:$0xff] }
 0x2f5   :  { %5766 = vmatpush1.bf16.msra.mxu0 %v6834_v23  ;;  %v6866_v23 = vld [vmem:[#allocation6 + $0x2d4] ss:$8 sps:$4 sm:$0xff]   ;;  %v6416_v25 = vcombine.high %v688_v21, %v692_v22 }
 0x2f6   :  { %5767 = vmatprep.subr.bf16.mxu0 %v6839_v0  ;;  %v696_v0 = vld [vmem:[#allocation2 + $0x1158] sm:$0xff] }
 0x2f7   :  { %4782 = vmatpush1.bf16.msra.mxu1 %v6335_v27  ;;  %v700_v27 = vld [vmem:[#allocation2 + $0x1178] sm:$0xff] }
 0x2f8   :  { %4783 = vmatprep.subr.bf16.mxu1 %v6344_v12  ;;  %v6869_v12 = vld [vmem:[#allocation6 + $0x2e4] ss:$8 sps:$4 sm:$0xff]   ;;  %v716_v1 = vld [vmem:[#allocation2 + $0x11f8] sm:$0xff] }
 0x2f9   :  { %5768 = vmatpush1.bf16.msra.mxu0 %v6837_v28  ;;  %v6415_v28 = vcombine.low %v688_v21, %v692_v22  ;;  %v724_v56 = vld [vmem:[#allocation2 + $0x1238] sm:$0xff]  ;;  %v6887_v21 = vld [vmem:[#allocation6 + $0x344] ss:$8 sps:$4 sm:$0xff]  }
 0x2fa   :  { %5769 = vmatprep.subr.bf16.mxu0 %v6842_v32  ;;  %v6424_v32 = vcombine.high %v696_v0, %v700_v27 }
 0x2fb   :  { %4784 = vmatpush1.bf16.msra.mxu1 %v6343_v35  ;;  %v6867_v35 = vld [vmem:[#allocation6 + $0x2e0] ss:$8 sps:$4 sm:$0xff]  }
 0x2fc   :  { %4785 = vmatprep.subr.bf16.mxu1 %v6352_v38  ;;  %v704_v38 = vld [vmem:[#allocation2 + $0x1198] sm:$0xff] }
 0x2fd   :  { %5770 = vmatpush1.bf16.msra.mxu0 %v6840_v36  ;;  %v708_v36 = vld [vmem:[#allocation2 + $0x11b8] sm:$0xff] }
 0x2fe   :  { %5771 = vmatprep.subr.bf16.mxu0 %v6845_v39  ;;  %v6423_v39 = vcombine.low %v696_v0, %v700_v27  ;;  %v6431_v49 = vcombine.low %v704_v38, %v708_v36  ;;  %v6890_v0 = vld [vmem:[#allocation6 + $0x354] ss:$8 sps:$4 sm:$0xff]  }
 0x2ff   :  { %4786 = vmatpush1.bf16.msra.mxu1 %v6351_v51  ;;  %v806_v51 = vrot.slane %v7254_v42, %v805_v31 }
 0x300   :  { %4787 = vmatprep.subr.bf16.mxu1 %v6360_v41  ;;  %v6432_v41 = vcombine.high %v704_v38, %v708_v36  ;;  %v768_v38 = vld [vmem:[#allocation2 + $0x1398] sm:$0xff] }
 0x301   :  { %5772 = vmatpush1.bf16.msra.mxu0 %v6843_v43  ;;  %v6870_v43 = vld [vmem:[#allocation6 + $0x2f0] ss:$8 sps:$4 sm:$0xff]  }
 0x302   :  { %5773 = vmatprep.subr.bf16.mxu0 %v6848_v45  ;;  %v772_v36 = vld [vmem:[#allocation2 + $0x13b8] sm:$0xff] }
 0x303   :  { %4788 = vmatpush1.bf16.msra.mxu1 %v6359_v33  ;;  %v6875_v33 = vld [vmem:[#allocation6 + $0x304] ss:$8 sps:$4 sm:$0xff]  }
 0x304   :  { %4789 = vmatprep.subr.bf16.mxu1 %v6368_v3 }
 0x305   :  { %5774 = vmatpush1.bf16.msra.mxu0 %v6846_v48 }
 0x306   :  { %5775 = vmatprep.subr.bf16.mxu0 %v6851_v52 }
 0x307   :  { %4790 = vmatpush1.bf16.msra.mxu1 %v6367_v15  ;;  %v6440_v15 = vcombine.high %v712_v63, %v716_v1 }
 0x308   :  { %4791 = vmatprep.subr.bf16.mxu1 %v6376_v54 }
 0x309   :  { %5776 = vmatpush1.bf16.msra.mxu0 %v6849_v55  ;;  %v720_v55 = vld [vmem:[#allocation2 + $0x1218] sm:$0xff] }
 0x30a   :  { %5777 = vmatprep.subr.bf16.mxu0 %v6854_v46  ;;  %v6448_v2 = vcombine.high %v720_v55, %v724_v56 }
 0x30b   :  { %4792 = vmatpush1.bf16.msra.mxu1 %v6375_v58  ;;  %v6873_v58 = vld [vmem:[#allocation6 + $0x300] ss:$8 sps:$4 sm:$0xff]  }
 0x30c   :  { %4802 = vmatprep.subr.bf16.mxu1 %v6384_v60 }
 0x30d   :  { %5778 = vmatpush1.bf16.msra.mxu0 %v6852_v61  ;;  %v6439_v61 = vcombine.low %v712_v63, %v716_v1  ;;  %v6894_v63 = vld [vmem:[#allocation6 + $0x370] ss:$8 sps:$4 sm:$0xff]   ;;  %v6495_v1 = vcombine.low %v768_v38, %v772_v36 }
 0x30e   :  { %4794 = vmatmul.mubr.bf16.vlgmr.msra.gmra.mrb[8].mxu1 %v7191_v4  ;;  %5779 = vmatprep.subr.bf16.mxu0 %v6857_v5  ;;  %v6861_v4 = vld [vmem:[#allocation6 + $0x2c0] ss:$8 sps:$4 sm:$0xff]   ;;  %v728_v5 = vld [vmem:[#allocation2 + $0x1258] sm:$0xff] }
 0x30f   :  { %4803 = vmatpush1.bf16.msra.mxu1 %v6383_v6  ;;  %4834 = vmatprep.mubr.bf16.mxu1 %v7193_v10  ;;  %v6407_v10 = vcombine.low %v680_v11, %v684_v19  ;;  %v732_v6 = vld [vmem:[#allocation2 + $0x1278] sm:$0xff] }
 0x310   :  { %4804 = vmatprep.subr.bf16.mxu1 %v6392_v7  ;;  %v6876_v7 = vld [vmem:[#allocation6 + $0x310] ss:$8 sps:$4 sm:$0xff]   ;;  %v6456_v13 = vcombine.high %v728_v5, %v732_v6  ;;  %v6884_v11 = vld [vmem:[#allocation6 + $0x334] ss:$8 sps:$4 sm:$0xff]  }
 0x311   :  { %5780 = vmatpush1.bf16.msra.mxu0 %v6855_v9  ;;  %v6447_v9 = vcombine.low %v720_v55, %v724_v56  ;;  %v6903_v55 = vld [vmem:[#allocation6 + $0x3a0] ss:$8 sps:$4 sm:$0xff]   ;;  %v6908_v56 = vld [vmem:[#allocation6 + $0x3b4] ss:$8 sps:$4 sm:$0xff]  }
 0x312   :  { %5781 = vmatprep.subr.bf16.mxu0 %v6860_v16  ;;  %v736_v16 = vld [vmem:[#allocation2 + $0x1298] sm:$0xff] }
 0x313   :  { %4805 = vmatpush1.bf16.msra.mxu1 %v6391_v26  ;;  %v740_v26 = vld [vmem:[#allocation2 + $0x12b8] sm:$0xff] }
 0x314   :  { %4806 = vmatprep.subr.bf16.mxu1 %v6400_v14  ;;  %v6879_v14 = vld [vmem:[#allocation6 + $0x320] ss:$8 sps:$4 sm:$0xff]   ;;  %v6464_v19 = vcombine.high %v736_v16, %v740_v26 }
 0x315   :  { %5782 = vmatpush1.bf16.msra.mxu0 %v6858_v8  ;;  %v6455_v8 = vcombine.low %v728_v5, %v732_v6  ;;  %v6915_v5 = vld [vmem:[#allocation6 + $0x3e0] ss:$8 sps:$4 sm:$0xff]   ;;  %v6918_v6 = vld [vmem:[#allocation6 + $0x3f0] ss:$8 sps:$4 sm:$0xff]  }
 0x316   :  { %5783 = vmatprep.subr.bf16.mxu0 %v6863_v17  ;;  %v744_v17 = vld [vmem:[#allocation2 + $0x12d8] sm:$0xff] }
 0x317   :  { %4807 = vmatpush1.bf16.msra.mxu1 %v6399_v18  ;;  %v748_v18 = vld [vmem:[#allocation2 + $0x12f8] sm:$0xff] }
 0x318   :  { %4808 = vmatprep.subr.bf16.mxu1 %v6408_v20  ;;  %v6882_v20 = vld [vmem:[#allocation6 + $0x330] ss:$8 sps:$4 sm:$0xff]   ;;  %v6472_v22 = vcombine.high %v744_v17, %v748_v18 }
 0x319   :  { %5784 = vmatpush1.bf16.msra.mxu0 %v6861_v4  ;;  %v6463_v4 = vcombine.low %v736_v16, %v740_v26 }
 0x31a   :  { %5785 = vmatprep.subr.bf16.mxu0 %v6866_v23  ;;  %v752_v23 = vld [vmem:[#allocation2 + $0x1318] sm:$0xff] }
 0x31b   :  { %4809 = vmatpush1.bf16.msra.mxu1 %v6407_v10  ;;  %v756_v10 = vld [vmem:[#allocation2 + $0x1338] sm:$0xff] }
 0x31c   :  { %4810 = vmatprep.subr.bf16.mxu1 %v6416_v25  ;;  %v6885_v25 = vld [vmem:[#allocation6 + $0x340] ss:$8 sps:$4 sm:$0xff]   ;;  %v6480_v27 = vcombine.high %v752_v23, %v756_v10  ;;  %v6479_v31 = vcombine.low %v752_v23, %v756_v10 }
 0x31d   :  { %5786 = vmatpush1.bf16.msra.mxu0 %v6864_v59  ;;  %v6471_v59 = vcombine.low %v744_v17, %v748_v18 }
 0x31e   :  { %5787 = vmatprep.subr.bf16.mxu0 %v6869_v12  ;;  %v760_v12 = vld [vmem:[#allocation2 + $0x1358] sm:$0xff] }
 0x31f   :  { %4811 = vmatpush1.bf16.msra.mxu1 %v6415_v28  ;;  %v764_v28 = vld [vmem:[#allocation2 + $0x1378] sm:$0xff] }
 0x320   :  { %4812 = vmatprep.subr.bf16.mxu1 %v6424_v32  ;;  %v6893_v32 = vld [vmem:[#allocation6 + $0x364] ss:$8 sps:$4 sm:$0xff]  }
 0x321   :  { %5788 = vmatpush1.bf16.msra.mxu0 %v6867_v35  ;;  %v6488_v35 = vcombine.high %v760_v12, %v764_v28 }
 0x322   :  { %5789 = vmatprep.subr.bf16.mxu0 %v6872_v47  ;;  %v6891_v47 = vld [vmem:[#allocation6 + $0x360] ss:$8 sps:$4 sm:$0xff]  }
 0x323   :  { %v4631_v45 = vpop.f32.mrb[4].mxu0  ;;  %4813 = vmatpush1.bf16.msra.mxu1 %v6423_v39  ;;  %v6896_v39 = vld [vmem:[#allocation6 + $0x374] ss:$8 sps:$4 sm:$0xff]  }
 0x324   :  { %v7272_v3 = vadd.f32 %v4631_v45, %v802_v37  ;;  %v4633_v48 = vpop.f32.mrb[5].mxu0  ;;  %4814 = vmatprep.subr.bf16.mxu1 %v6432_v41  ;;  %v6487_v37 = vcombine.low %v760_v12, %v764_v28  ;;  %v776_v41 = vld [vmem:[#allocation2 + $0x13d8] sm:$0xff]  ;;  %v6899_v45 = vld [vmem:[#allocation6 + $0x384] ss:$8 sps:$4 sm:$0xff]  }
 0x325   :  { %v7274_v50 = vadd.f32 %v4633_v48, %v806_v51  ;;  %v4635_v52 = vpop.f32.mrb[6].mxu0  ;;  %5790 = vmatpush1.bf16.msra.mxu0 %v6870_v43  ;;  %v6496_v51 = vcombine.high %v768_v38, %v772_v36  ;;  %v780_v43 = vld [vmem:[#allocation2 + $0x13f8] sm:$0xff]  ;;  %v6897_v48 = vld [vmem:[#allocation6 + $0x380] ss:$8 sps:$4 sm:$0xff]  }
 0x326   :  { %v4636_v54 = vpop.f32.mrb[7].mxu0  ;;  %5800 = vmatprep.subr.bf16.mxu0 %v6875_v33  ;;  %v4893_v60 = vpack.c.bf16 %v7272_v3, %v7272_v3  ;;  %v6504_v33 = vcombine.high %v776_v41, %v780_v43  ;;  %v6902_v52 = vld [vmem:[#allocation6 + $0x394] ss:$8 sps:$4 sm:$0xff]  }
 0x327   :  { %v4868_v57 = vcombine.low %v7272_v3, %v7274_v50  ;;  %v4894_v46 = vpack.c.bf16 %v7274_v50, %v7274_v50  ;;  %4815 = vmatpush1.bf16.msra.mxu1 %v6431_v49  ;;  %v6503_v49 = vcombine.low %v776_v41, %v780_v43  ;;  %v6905_v54 = vld [vmem:[#allocation6 + $0x3a4] ss:$8 sps:$4 sm:$0xff]  }
 0x328   :  { %4816 = vmatprep.subr.bf16.mxu1 %v6440_v15  ;;  %v6900_v15 = vld [vmem:[#allocation6 + $0x390] ss:$8 sps:$4 sm:$0xff]  }
 0x329   :  { %5791 = vmatprep.mubr.bf16.mxu0 %v4894_v46  ;;  %v6906_v46 = vld [vmem:[#allocation6 + $0x3b0] ss:$8 sps:$4 sm:$0xff]  }
 0x32a   :  { %5792 = vmatmul.mubr.bf16.vlgmr.msra.gmra.mrb[8].mxu0 %v4893_v60  ;;  %v6909_v60 = vld [vmem:[#allocation6 + $0x3c0] ss:$8 sps:$4 sm:$0xff]  }
 0x32b   :  { %5801 = vmatpush1.bf16.msra.mxu0 %v6873_v58  ;;  %4817 = vmatpush1.bf16.msra.mxu1 %v6439_v61  ;;  %v6911_v58 = vld [vmem:[#allocation6 + $0x3c4] ss:$8 sps:$4 sm:$0xff]   ;;  %v6914_v61 = vld [vmem:[#allocation6 + $0x3d4] ss:$8 sps:$4 sm:$0xff]  }
 0x32c   :  { %5802 = vmatprep.subr.bf16.mxu0 %v6878_v62  ;;  %4818 = vmatprep.subr.bf16.mxu1 %v6448_v2  ;;  %v6912_v62 = vld [vmem:[#allocation6 + $0x3d0] ss:$8 sps:$4 sm:$0xff]   ;;  %v6917_v2 = vld [vmem:[#allocation6 + $0x3e4] ss:$8 sps:$4 sm:$0xff]  }
 0x32f   :  { %5803 = vmatpush1.bf16.msra.mxu0 %v6876_v7  ;;  %4819 = vmatpush1.bf16.msra.mxu1 %v6447_v9  ;;  %v809_v7 = vsub.s32 6, %v7115_v44  ;;  %v813_v9 = vsub.s32 7, %v7115_v44 }
 0x330   :  { %5804 = vmatprep.subr.bf16.mxu0 %v6881_v24  ;;  %4820 = vmatprep.subr.bf16.mxu1 %v6456_v13 }
 0x331   :  { %v810_v24 = vrot.slane %v7254_v42, %v809_v7  ;;  %v814_v13 = vrot.slane %v7254_v42, %v813_v9  ;;  %v5025_v42 = vld [vmem:[#allocation7] sm:$0x3] }
 0x332   :  { %v5030_v23 = vrot.slane %v5025_v42, %v785_v34  ;;  %v5034_v10 = vrot.slane %v5025_v42, %v789_v40 }
 0x333   :  { %5805 = vmatpush1.bf16.msra.mxu0 %v6879_v14  ;;  %4821 = vmatpush1.bf16.msra.mxu1 %v6455_v8 }
 0x334   :  { %5806 = vmatprep.subr.bf16.mxu0 %v6884_v11  ;;  %4822 = vmatprep.subr.bf16.mxu1 %v6464_v19 }
 0x337   :  { %5807 = vmatpush1.bf16.msra.mxu0 %v6882_v20  ;;  %4823 = vmatpush1.bf16.msra.mxu1 %v6463_v4  ;;  %v4876_v4 = vrot.slane %v4868_v57, %v7118_v53 }
 0x338   :  { %5808 = vmatprep.subr.bf16.mxu0 %v6887_v21  ;;  %4824 = vmatprep.subr.bf16.mxu1 %v6472_v22 }
 0x33b   :  { %5809 = vmatpush1.bf16.msra.mxu0 %v6885_v25  ;;  %4825 = vmatpush1.bf16.msra.mxu1 %v6471_v59 }
 0x33c   :  { %5810 = vmatprep.subr.bf16.mxu0 %v6890_v0  ;;  %4826 = vmatprep.subr.bf16.mxu1 %v6480_v27 }
 0x33f   :  { %5811 = vmatpush1.bf16.msra.mxu0 %v6888_v30  ;;  %4827 = vmatpush1.bf16.msra.mxu1 %v6479_v31 }
 0x340   :  { %5812 = vmatprep.subr.bf16.mxu0 %v6893_v32  ;;  %4828 = vmatprep.subr.bf16.mxu1 %v6488_v35 }
 0x343   :  { %5813 = vmatpush1.bf16.msra.mxu0 %v6891_v47  ;;  %4829 = vmatpush1.bf16.msra.mxu1 %v6487_v37 }
 0x344   :  { %5814 = vmatprep.subr.bf16.mxu0 %v6896_v39  ;;  %4830 = vmatprep.subr.bf16.mxu1 %v6496_v51 }
 0x347   :  { %5815 = vmatpush1.bf16.msra.mxu0 %v6894_v63  ;;  %4831 = vmatpush1.bf16.msra.mxu1 %v6495_v1 }
 0x348   :  { %5816 = vmatprep.subr.bf16.mxu0 %v6899_v45  ;;  %4832 = vmatprep.subr.bf16.mxu1 %v6504_v33 }
 0x34b   :  { %5817 = vmatpush1.bf16.msra.mxu0 %v6897_v48  ;;  %4833 = vmatpush1.bf16.msra.mxu1 %v6503_v49 }
 0x34c   :  { %5818 = vmatprep.subr.bf16.mxu0 %v6902_v52 }
 0x34e   :  { %4835 = vmatmul.mubr.bf16.vlgmr.msra.gmra.mrb[8].mxu1 %v7201_v29  ;;  %v6920_v29 = vld [vmem:[#allocation6 + $0x3f4] ss:$8 sps:$4 sm:$0xff]  }
 0x34f   :  { %5819 = vmatpush1.bf16.msra.mxu0 %v6900_v15 }
 0x350   :  { %5820 = vmatprep.subr.bf16.mxu0 %v6905_v54 }
 0x353   :  { %5821 = vmatpush1.bf16.msra.mxu0 %v6903_v55 }
 0x354   :  { %5822 = vmatprep.subr.bf16.mxu0 %v6908_v56 }
 0x357   :  { %5823 = vmatpush1.bf16.msra.mxu0 %v6906_v46 }
 0x358   :  { %5824 = vmatprep.subr.bf16.mxu0 %v6911_v58 }
 0x35b   :  { %5825 = vmatpush1.bf16.msra.mxu0 %v6909_v60 }
 0x35c   :  { %5826 = vmatprep.subr.bf16.mxu0 %v6914_v61 }
 0x35f   :  { %5827 = vmatpush1.bf16.msra.mxu0 %v6912_v62 }
 0x360   :  { %5828 = vmatprep.subr.bf16.mxu0 %v6917_v2 }
 0x363   :  { %5829 = vmatpush1.bf16.msra.mxu0 %v6915_v5 }
 0x364   :  { %5830 = vmatprep.subr.bf16.mxu0 %v6920_v29 }
 0x367   :  { %5831 = vmatpush1.bf16.msra.mxu0 %v6918_v6 }
 0x421   :  { %v4836_v16 = vpop.f32.mrb[8].mxu1 }
 0x422   :  { %v6642_v26 = vadd.f32 %v4836_v16, %v810_v24  ;;  %v4838_v14 = vpop.f32.mrb[9].mxu1 }
 0x423   :  { %v6643_v8 = vadd.f32 %v4838_v14, %v814_v13  ;;  %v4840_v11 = vpop.f32.mrb[10].mxu1 }
 0x424   :  { %v4841_v19 = vpop.f32.mrb[11].mxu1  ;;  %v4895_v20 = vpack.c.bf16 %v6642_v26, %v6642_v26 }
 0x425   :  { %v4869_v17 = vcombine.low %v6642_v26, %v6643_v8  ;;  %v4896_v18 = vpack.c.bf16 %v6643_v8, %v6643_v8 }
 0x427   :  { %v4883_v21 = vrot.slane %v4869_v17, %v7118_v53  ;;  %5832 = vmatprep.mubr.bf16.mxu0 %v4896_v18 }
 0x428   :  { %5833 = vmatmul.mubr.bf16.vlgmr.msra.gmra.mrb[8].mxu0 %v4895_v20 }
 0x429   :  { %v4884_v22 = vcombine.low %v4876_v4, %v4883_v21 }
 0x42b   :  { %4888 = vst [vmem:[%s7307_s5 + $0x8] sm:$0xff] %v4884_v22 }
 0x4fb   :  { %v5834_v25 = vpop.f32.mrb[8].mxu0 }
 0x4fc   :  { %v6644_v59 = vadd.f32 %v5834_v25, %v5030_v23  ;;  %v5836_v3 = vpop.f32.mrb[9].mxu0 }
 0x4fd   :  { %v6645_v50 = vadd.f32 %v5836_v3, %v5034_v10  ;;  %v5838_v57 = vpop.f32.mrb[10].mxu0 }
 0x4fe   :  { %v5839_v53 = vpop.f32.mrb[11].mxu0 }
 0x4ff   :  { %v5843_v0 = vcombine.low %v6644_v59, %v6645_v50 }
 0x501   :  { %6633 = vst.sshfl [vmem:[%s7308_s6] sm:$0x33 pattern:$0x76325410] %v5843_v0 }
 0x502   :  { %5861 = vsyncpa [#allocation3], 1 }
 0x503   :  { %5862 = vsyncpa [#allocation5], 1 }
 0x504   :  { %5863 = vsyncpa [#allocation8], 1 }

</bundles_post_ra>
